<compile_context>
chip_gen: v6e
topology: v6e:2x2x1
jax: 0.10.0
libtpu: 0.0.40
codegen_flags: <defaults>
</compile_context>

<pallas_src>
import functools

import jax
import jax.numpy as jnp
from jax.experimental import pallas as pl
from jax.experimental.pallas import tpu as pltpu

LANE = 128


def _round_up(x, m):
    return (x + m - 1) // m * m


# ------------------------------ Pallas kernel -------------------------------

def _conv_matmul_kernel(patch_ref, w_ref, b_ref, o_ref):
    # patch_ref: (TM, Kd)    bf16 im2col patches for one M tile (9 taps fused)
    # w_ref:     (Kd, CoutP) bf16 fused 3x3 weights (tap-major rows)
    # b_ref:     (1, CoutP)  f32 bias (zero-padded to lane-dense width)
    # o_ref:     (TM, CoutP) f32 output tile
    acc = jnp.dot(patch_ref[...], w_ref[...], preferred_element_type=jnp.float32)
    o_ref[...] = jnp.maximum(acc + b_ref[...], 0.0).astype(o_ref.dtype)


def _conv_matmul_relu(patch, w_mat, b_row):
    """patch (M, Kd) bf16 @ w_mat (Kd, CoutP) bf16 + bias, ReLU -> (M, CoutP) f32."""
    M, Kd = patch.shape
    CoutP = w_mat.shape[1]

    Mp = _round_up(M, 8)
    if Mp != M:                                  # keep sublane dim a multiple of 8
        patch = jnp.pad(patch, ((0, Mp - M), (0, 0)))
    TM = 256 if Mp % 256 == 0 else Mp            # 256-row tiles feed the 256-wide MXU
    grid = (Mp // TM,)                           # and shard across the 2 TCs on v7x

    out = pl.pallas_call(
        _conv_matmul_kernel,
        out_shape=jax.ShapeDtypeStruct((Mp, CoutP), jnp.float32),
        grid_spec=pltpu.PrefetchScalarGridSpec(
            num_scalar_prefetch=0,
            grid=grid,
            in_specs=[
                pl.BlockSpec((TM, Kd), lambda i: (i, 0)),
                pl.BlockSpec((Kd, CoutP), lambda i: (0, 0)),
                pl.BlockSpec((1, CoutP), lambda i: (0, 0)),
            ],
            out_specs=pl.BlockSpec((TM, CoutP), lambda i: (i, 0)),
        ),
        compiler_params=pltpu.CompilerParams(
            dimension_semantics=("parallel",)),
    )(patch, w_mat, b_row)
    return out[:M]


# --------------------------- conv / tconv glue ------------------------------

def conv3x3(x, w_mat, b_row, cout, *, stride=1, pad=(1, 1)):
    """3x3 conv + bias + ReLU on NHWC input via one fused Pallas matmul."""
    N, H, W, Cin = x.shape
    xp = jnp.pad(x, ((0, 0), (pad[0], pad[1]), (pad[0], pad[1]), (0, 0)))
    Hp, Wp = xp.shape[1], xp.shape[2]
    Ho = (Hp - 3) // stride + 1
    Wo = (Wp - 3) // stride + 1
    M = N * Ho * Wo
    cols = []
    for kh in range(3):
        for kw in range(3):
            sl = xp[:, kh:kh + stride * (Ho - 1) + 1:stride,
                       kw:kw + stride * (Wo - 1) + 1:stride, :]
            cols.append(sl.reshape(M, Cin))
    patch = jnp.concatenate(cols, axis=-1).astype(jnp.bfloat16)   # (M, 9*Cin)
    out = _conv_matmul_relu(patch, w_mat, b_row)                  # (M, CoutP) f32
    return out[:, :cout].reshape(N, Ho, Wo, cout)


def tconv3x3_s2(x, w_mat, b_row, cout):
    """ConvTranspose2d(k=3, stride=2, padding=1, output_padding=1) + ReLU.
    Zero-insert upsample (lax.pad interior=1) + equivalent direct 3x3 conv."""
    x_up = jax.lax.pad(x, jnp.zeros((), x.dtype),
                       ((0, 0, 0), (0, 0, 1), (0, 0, 1), (0, 0, 0)))
    # pad = k-1-p = 1 on top/left, +output_padding on bottom/right
    return conv3x3(x_up, w_mat, b_row, cout, stride=1, pad=(1, 2))


def tconv3x3_s1(x, w_mat, b_row, cout):
    """ConvTranspose2d(k=3, stride=1, padding=1) + ReLU."""
    return conv3x3(x, w_mat, b_row, cout, stride=1, pad=(1, 1))


# ------------------------------- parameters ---------------------------------

def init_params(key):
    ks = jax.random.split(key, 9)

    def conv_p(k, cout, cin):                 # Conv2d weight (Cout, Cin, 3, 3)
        kw, kb = jax.random.split(k)
        bound = 1.0 / jnp.sqrt(cin * 9.0)
        return (jax.random.uniform(kw, (cout, cin, 3, 3), jnp.float32, -bound, bound),
                jax.random.uniform(kb, (cout,), jnp.float32, -bound, bound))

    def tconv_p(k, cin, cout):                # ConvTranspose2d weight (Cin, Cout, 3, 3)
        kw, kb = jax.random.split(k)
        bound = 1.0 / jnp.sqrt(cin * 9.0)
        return (jax.random.uniform(kw, (cin, cout, 3, 3), jnp.float32, -bound, bound),
                jax.random.uniform(kb, (cout,), jnp.float32, -bound, bound))

    return {
        "conv1":    conv_p(ks[0], 64, 1),
        "conv2":    conv_p(ks[1], 64, 64),
        "conv3":    conv_p(ks[2], 128, 64),
        "conv4":    conv_p(ks[3], 256, 128),
        "t_conv1":  tconv_p(ks[4], 256, 128),
        "t_conv2":  tconv_p(ks[5], 256, 64),
        "t_conv3":  tconv_p(ks[6], 128, 128),
        "t_conv4":  tconv_p(ks[7], 192, 15),
        "converge": conv_p(ks[8], 2, 16),
    }


def _prep_conv_weight(w_oihw, b):
    """PyTorch Conv2d weight (Cout, Cin, 3, 3) -> fused matmul operands."""
    cout, cin = int(w_oihw.shape[0]), int(w_oihw.shape[1])
    coutp = _round_up(cout, LANE)
    w = jnp.transpose(w_oihw, (2, 3, 1, 0)).reshape(9 * cin, cout)   # (kh,kw,cin)-major rows
    w = jnp.pad(w, ((0, 0), (0, coutp - cout))).astype(jnp.bfloat16)
    b_row = jnp.pad(b.reshape(1, cout), ((0, 0), (0, coutp - cout))).astype(jnp.float32)
    return w, b_row, cout


def _prep_tconv_weight(w_iohw, b):
    """ConvTranspose2d weight (Cin, Cout, 3, 3): spatial flip + channel swap
    gives the equivalent direct-conv weight, then same fused-matmul prep."""
    w_conv = jnp.transpose(jnp.flip(w_iohw, axis=(2, 3)), (1, 0, 2, 3))
    return _prep_conv_weight(w_conv, b)


def prepare_params(params):
    prepped = {}
    for name in ("conv1", "conv2", "conv3", "conv4", "converge"):
        prepped[name] = _prep_conv_weight(*params[name])
    for name in ("t_conv1", "t_conv2", "t_conv3", "t_conv4"):
        prepped[name] = _prep_tconv_weight(*params[name])
    return prepped


# -------------------------------- forward -----------------------------------

def conv_autoencoder_forward(prepped, x_nchw):
    x = jnp.transpose(x_nchw, (0, 2, 3, 1))                  # NCHW -> NHWC
    x1 = conv3x3(x,  *prepped["conv1"], stride=1)            # (N,16,16, 64)
    x2 = conv3x3(x1, *prepped["conv2"], stride=2)            # (N, 8, 8, 64)
    x3 = conv3x3(x2, *prepped["conv3"], stride=2)            # (N, 4, 4,128)
    x4 = conv3x3(x3, *prepped["conv4"], stride=2)            # (N, 2, 2,256)

    xd = tconv3x3_s2(x4, *prepped["t_conv1"])                # (N, 4, 4,128)
    xd = jnp.concatenate([xd, x3], axis=-1)                  # 256 ch
    # nn.Dropout(0.2) is identity in inference mode
    xd = tconv3x3_s2(xd, *prepped["t_conv2"])                # (N, 8, 8, 64)
    xd = jnp.concatenate([xd, x2], axis=-1)                  # 128 ch
    xd = tconv3x3_s2(xd, *prepped["t_conv3"])                # (N,16,16,128)
    xd = jnp.concatenate([xd, x1], axis=-1)                  # 192 ch
    xd = tconv3x3_s1(xd, *prepped["t_conv4"])                # (N,16,16, 15)
    xd = jnp.concatenate([xd, x], axis=-1)                   # 16 ch
    out = conv3x3(xd, *prepped["converge"], stride=1)        # (N,16,16,  2)
    return jnp.transpose(out, (0, 3, 1, 2))                  # NHWC -> NCHW


if __name__ == "__main__":
    key = jax.random.PRNGKey(0)
    pkey, xkey = jax.random.split(key)
    params = init_params(pkey)
    prepped = prepare_params(params)                         # one-time weight prep
    x = jax.random.normal(xkey, (2, 1, 16, 16), jnp.float32)  # NCHW, 1 channel in

    fwd = jax.jit(functools.partial(conv_autoencoder_forward, prepped))
    y = fwd(x)
    jax.block_until_ready(y)
    assert y.shape == (2, 2, 16, 16), y.shape
    assert bool(jnp.all(y >= 0.0))   # reference model applies F.relu on the final layer
    print("KERNEL_OK")
</pallas_src>

<mosaic_0001>
module attributes {stable_mosaic.version = 11 : i64} {
  func.func @_conv_matmul_kernel(%arg0: i32, %arg1: memref<256x9xbf16, #tpu.memory_space<vmem>>, %arg2: memref<9x128xbf16, #tpu.memory_space<vmem>>, %arg3: memref<1x128xf32, #tpu.memory_space<vmem>>, %arg4: memref<256x128xf32, #tpu.memory_space<vmem>>) attributes {dimension_semantics = [#tpu.dimension_semantics<parallel>], iteration_bounds = array<i64: 2>, scalar_prefetch = 0 : i64, scratch_operands = 0 : i64, tpu.core_type = #tpu.core_type<tc>, window_params = [{transform_indices = @transform_0, window_bounds = array<i64: 256, 9>}, {pipeline_mode = #tpu.pipeline_mode<synchronous>, transform_indices = @transform_1, window_bounds = array<i64: 9, 128>}, {pipeline_mode = #tpu.pipeline_mode<synchronous>, transform_indices = @transform_2, window_bounds = array<i64: 1, 128>}, {transform_indices = @transform_3, window_bounds = array<i64: 256, 128>}]} {
    %c0 = arith.constant 0 : index
    %c0_0 = arith.constant 0 : index
    %0 = vector.load %arg1[%c0, %c0_0] : memref<256x9xbf16, #tpu.memory_space<vmem>>, vector<256x9xbf16>
    %c0_1 = arith.constant 0 : index
    %c0_2 = arith.constant 0 : index
    %1 = vector.load %arg2[%c0_1, %c0_2] : memref<9x128xbf16, #tpu.memory_space<vmem>>, vector<9x128xbf16>
    %cst = arith.constant dense<0.000000e+00> : vector<256x128xf32>
    %2 = tpu.matmul %0, %1, %cst {dimension_numbers = #tpu.dot_dimension_numbers<[1], [0], [0], [1], [0, 0, 1, 1], [], []>} : vector<256x9xbf16>, vector<9x128xbf16>, vector<256x128xf32> -> vector<256x128xf32>
    %c0_3 = arith.constant 0 : index
    %c0_4 = arith.constant 0 : index
    %3 = vector.load %arg3[%c0_3, %c0_4] : memref<1x128xf32, #tpu.memory_space<vmem>>, vector<1x128xf32>
    %4 = vector.broadcast %3 : vector<1x128xf32> to vector<256x128xf32>
    %5 = arith.addf %2, %4 : vector<256x128xf32>
    %cst_5 = arith.constant 0.000000e+00 : f32
    %6 = vector.broadcast %cst_5 : f32 to vector<256x128xf32>
    %7 = arith.maximumf %5, %6 : vector<256x128xf32>
    %c0_6 = arith.constant 0 : index
    %c0_7 = arith.constant 0 : index
    %8 = vector.load %arg4[%c0_6, %c0_7] : memref<256x128xf32, #tpu.memory_space<vmem>>, vector<256x128xf32>
    tpu.vector_store %arg4[%c0_6, %c0_7], %7 {strides = array<i32>} : memref<256x128xf32, #tpu.memory_space<vmem>>, vector<256x128xf32>,
    return
  }
  func.func @transform_0(%arg0: i32) -> (i32, i32) {
    %c0_i32 = arith.constant 0 : i32
    %c0_i32_0 = arith.constant 0 : i32
    return %arg0, %c0_i32 : i32, i32
  }
  func.func @transform_1(%arg0: i32) -> (i32, i32) {
    %c0_i32 = arith.constant 0 : i32
    %c0_i32_0 = arith.constant 0 : i32
    %c0_i32_1 = arith.constant 0 : i32
    return %c0_i32, %c0_i32_0 : i32, i32
  }
  func.func @transform_2(%arg0: i32) -> (i32, i32) {
    %c0_i32 = arith.constant 0 : i32
    %c0_i32_0 = arith.constant 0 : i32
    %c0_i32_1 = arith.constant 0 : i32
    return %c0_i32, %c0_i32_0 : i32, i32
  }
  func.func @transform_3(%arg0: i32) -> (i32, i32) {
    %c0_i32 = arith.constant 0 : i32
    %c0_i32_0 = arith.constant 0 : i32
    return %arg0, %c0_i32 : i32, i32
  }
}

module attributes {stable_mosaic.version = 11 : i64} {
  func.func @_conv_matmul_kernel(%arg0: i32, %arg1: memref<128x576xbf16, #tpu.memory_space<vmem>>, %arg2: memref<576x128xbf16, #tpu.memory_space<vmem>>, %arg3: memref<1x128xf32, #tpu.memory_space<vmem>>, %arg4: memref<128x128xf32, #tpu.memory_space<vmem>>) attributes {dimension_semantics = [#tpu.dimension_semantics<parallel>], iteration_bounds = array<i64: 1>, scalar_prefetch = 0 : i64, scratch_operands = 0 : i64, tpu.core_type = #tpu.core_type<tc>, window_params = [{transform_indices = @transform_0, window_bounds = array<i64: 128, 576>}, {pipeline_mode = #tpu.pipeline_mode<synchronous>, transform_indices = @transform_1, window_bounds = array<i64: 576, 128>}, {pipeline_mode = #tpu.pipeline_mode<synchronous>, transform_indices = @transform_2, window_bounds = array<i64: 1, 128>}, {transform_indices = @transform_3, window_bounds = array<i64: 128, 128>}]} {
    %c0 = arith.constant 0 : index
    %c0_0 = arith.constant 0 : index
    %0 = vector.load %arg1[%c0, %c0_0] : memref<128x576xbf16, #tpu.memory_space<vmem>>, vector<128x576xbf16>
    %c0_1 = arith.constant 0 : index
    %c0_2 = arith.constant 0 : index
    %1 = vector.load %arg2[%c0_1, %c0_2] : memref<576x128xbf16, #tpu.memory_space<vmem>>, vector<576x128xbf16>
    %cst = arith.constant dense<0.000000e+00> : vector<128x128xf32>
    %2 = tpu.matmul %0, %1, %cst {dimension_numbers = #tpu.dot_dimension_numbers<[1], [0], [0], [1], [0, 0, 1, 1], [], []>} : vector<128x576xbf16>, vector<576x128xbf16>, vector<128x128xf32> -> vector<128x128xf32>
    %c0_3 = arith.constant 0 : index
    %c0_4 = arith.constant 0 : index
    %3 = vector.load %arg3[%c0_3, %c0_4] : memref<1x128xf32, #tpu.memory_space<vmem>>, vector<1x128xf32>
    %4 = vector.broadcast %3 : vector<1x128xf32> to vector<128x128xf32>
    %5 = arith.addf %2, %4 : vector<128x128xf32>
    %cst_5 = arith.constant 0.000000e+00 : f32
    %6 = vector.broadcast %cst_5 : f32 to vector<128x128xf32>
    %7 = arith.maximumf %5, %6 : vector<128x128xf32>
    %c0_6 = arith.constant 0 : index
    %c0_7 = arith.constant 0 : index
    %8 = vector.load %arg4[%c0_6, %c0_7] : memref<128x128xf32, #tpu.memory_space<vmem>>, vector<128x128xf32>
    tpu.vector_store %arg4[%c0_6, %c0_7], %7 {strides = array<i32>} : memref<128x128xf32, #tpu.memory_space<vmem>>, vector<128x128xf32>,
    return
  }
  func.func @transform_0(%arg0: i32) -> (i32, i32) {
    %c0_i32 = arith.constant 0 : i32
    %c0_i32_0 = arith.constant 0 : i32
    return %arg0, %c0_i32 : i32, i32
  }
  func.func @transform_1(%arg0: i32) -> (i32, i32) {
    %c0_i32 = arith.constant 0 : i32
    %c0_i32_0 = arith.constant 0 : i32
    %c0_i32_1 = arith.constant 0 : i32
    return %c0_i32, %c0_i32_0 : i32, i32
  }
  func.func @transform_2(%arg0: i32) -> (i32, i32) {
    %c0_i32 = arith.constant 0 : i32
    %c0_i32_0 = arith.constant 0 : i32
    %c0_i32_1 = arith.constant 0 : i32
    return %c0_i32, %c0_i32_0 : i32, i32
  }
  func.func @transform_3(%arg0: i32) -> (i32, i32) {
    %c0_i32 = arith.constant 0 : i32
    %c0_i32_0 = arith.constant 0 : i32
    return %arg0, %c0_i32 : i32, i32
  }
}

module attributes {stable_mosaic.version = 11 : i64} {
  func.func @_conv_matmul_kernel(%arg0: i32, %arg1: memref<32x576xbf16, #tpu.memory_space<vmem>>, %arg2: memref<576x128xbf16, #tpu.memory_space<vmem>>, %arg3: memref<1x128xf32, #tpu.memory_space<vmem>>, %arg4: memref<32x128xf32, #tpu.memory_space<vmem>>) attributes {dimension_semantics = [#tpu.dimension_semantics<parallel>], iteration_bounds = array<i64: 1>, scalar_prefetch = 0 : i64, scratch_operands = 0 : i64, tpu.core_type = #tpu.core_type<tc>, window_params = [{transform_indices = @transform_0, window_bounds = array<i64: 32, 576>}, {pipeline_mode = #tpu.pipeline_mode<synchronous>, transform_indices = @transform_1, window_bounds = array<i64: 576, 128>}, {pipeline_mode = #tpu.pipeline_mode<synchronous>, transform_indices = @transform_2, window_bounds = array<i64: 1, 128>}, {transform_indices = @transform_3, window_bounds = array<i64: 32, 128>}]} {
    %c0 = arith.constant 0 : index
    %c0_0 = arith.constant 0 : index
    %0 = vector.load %arg1[%c0, %c0_0] : memref<32x576xbf16, #tpu.memory_space<vmem>>, vector<32x576xbf16>
    %c0_1 = arith.constant 0 : index
    %c0_2 = arith.constant 0 : index
    %1 = vector.load %arg2[%c0_1, %c0_2] : memref<576x128xbf16, #tpu.memory_space<vmem>>, vector<576x128xbf16>
    %cst = arith.constant dense<0.000000e+00> : vector<32x128xf32>
    %2 = tpu.matmul %0, %1, %cst {dimension_numbers = #tpu.dot_dimension_numbers<[1], [0], [0], [1], [0, 0, 1, 1], [], []>} : vector<32x576xbf16>, vector<576x128xbf16>, vector<32x128xf32> -> vector<32x128xf32>
    %c0_3 = arith.constant 0 : index
    %c0_4 = arith.constant 0 : index
    %3 = vector.load %arg3[%c0_3, %c0_4] : memref<1x128xf32, #tpu.memory_space<vmem>>, vector<1x128xf32>
    %4 = vector.broadcast %3 : vector<1x128xf32> to vector<32x128xf32>
    %5 = arith.addf %2, %4 : vector<32x128xf32>
    %cst_5 = arith.constant 0.000000e+00 : f32
    %6 = vector.broadcast %cst_5 : f32 to vector<32x128xf32>
    %7 = arith.maximumf %5, %6 : vector<32x128xf32>
    %c0_6 = arith.constant 0 : index
    %c0_7 = arith.constant 0 : index
    %8 = vector.load %arg4[%c0_6, %c0_7] : memref<32x128xf32, #tpu.memory_space<vmem>>, vector<32x128xf32>
    tpu.vector_store %arg4[%c0_6, %c0_7], %7 {strides = array<i32>} : memref<32x128xf32, #tpu.memory_space<vmem>>, vector<32x128xf32>,
    return
  }
  func.func @transform_0(%arg0: i32) -> (i32, i32) {
    %c0_i32 = arith.constant 0 : i32
    %c0_i32_0 = arith.constant 0 : i32
    return %arg0, %c0_i32 : i32, i32
  }
  func.func @transform_1(%arg0: i32) -> (i32, i32) {
    %c0_i32 = arith.constant 0 : i32
    %c0_i32_0 = arith.constant 0 : i32
    %c0_i32_1 = arith.constant 0 : i32
    return %c0_i32, %c0_i32_0 : i32, i32
  }
  func.func @transform_2(%arg0: i32) -> (i32, i32) {
    %c0_i32 = arith.constant 0 : i32
    %c0_i32_0 = arith.constant 0 : i32
    %c0_i32_1 = arith.constant 0 : i32
    return %c0_i32, %c0_i32_0 : i32, i32
  }
  func.func @transform_3(%arg0: i32) -> (i32, i32) {
    %c0_i32 = arith.constant 0 : i32
    %c0_i32_0 = arith.constant 0 : i32
    return %arg0, %c0_i32 : i32, i32
  }
}

module attributes {stable_mosaic.version = 11 : i64} {
  func.func @_conv_matmul_kernel(%arg0: i32, %arg1: memref<8x1152xbf16, #tpu.memory_space<vmem>>, %arg2: memref<1152x256xbf16, #tpu.memory_space<vmem>>, %arg3: memref<1x256xf32, #tpu.memory_space<vmem>>, %arg4: memref<8x256xf32, #tpu.memory_space<vmem>>) attributes {dimension_semantics = [#tpu.dimension_semantics<parallel>], iteration_bounds = array<i64: 1>, scalar_prefetch = 0 : i64, scratch_operands = 0 : i64, tpu.core_type = #tpu.core_type<tc>, window_params = [{transform_indices = @transform_0, window_bounds = array<i64: 8, 1152>}, {pipeline_mode = #tpu.pipeline_mode<synchronous>, transform_indices = @transform_1, window_bounds = array<i64: 1152, 256>}, {pipeline_mode = #tpu.pipeline_mode<synchronous>, transform_indices = @transform_2, window_bounds = array<i64: 1, 256>}, {transform_indices = @transform_3, window_bounds = array<i64: 8, 256>}]} {
    %c0 = arith.constant 0 : index
    %c0_0 = arith.constant 0 : index
    %0 = vector.load %arg1[%c0, %c0_0] : memref<8x1152xbf16, #tpu.memory_space<vmem>>, vector<8x1152xbf16>
    %c0_1 = arith.constant 0 : index
    %c0_2 = arith.constant 0 : index
    %1 = vector.load %arg2[%c0_1, %c0_2] : memref<1152x256xbf16, #tpu.memory_space<vmem>>, vector<1152x256xbf16>
    %cst = arith.constant dense<0.000000e+00> : vector<8x256xf32>
    %2 = tpu.matmul %0, %1, %cst {dimension_numbers = #tpu.dot_dimension_numbers<[1], [0], [0], [1], [0, 0, 1, 1], [], []>} : vector<8x1152xbf16>, vector<1152x256xbf16>, vector<8x256xf32> -> vector<8x256xf32>
    %c0_3 = arith.constant 0 : index
    %c0_4 = arith.constant 0 : index
    %3 = vector.load %arg3[%c0_3, %c0_4] : memref<1x256xf32, #tpu.memory_space<vmem>>, vector<1x256xf32>
    %4 = vector.broadcast %3 : vector<1x256xf32> to vector<8x256xf32>
    %5 = arith.addf %2, %4 : vector<8x256xf32>
    %cst_5 = arith.constant 0.000000e+00 : f32
    %6 = vector.broadcast %cst_5 : f32 to vector<8x256xf32>
    %7 = arith.maximumf %5, %6 : vector<8x256xf32>
    %c0_6 = arith.constant 0 : index
    %c0_7 = arith.constant 0 : index
    %8 = vector.load %arg4[%c0_6, %c0_7] : memref<8x256xf32, #tpu.memory_space<vmem>>, vector<8x256xf32>
    tpu.vector_store %arg4[%c0_6, %c0_7], %7 {strides = array<i32>} : memref<8x256xf32, #tpu.memory_space<vmem>>, vector<8x256xf32>,
    return
  }
  func.func @transform_0(%arg0: i32) -> (i32, i32) {
    %c0_i32 = arith.constant 0 : i32
    %c0_i32_0 = arith.constant 0 : i32
    return %arg0, %c0_i32 : i32, i32
  }
  func.func @transform_1(%arg0: i32) -> (i32, i32) {
    %c0_i32 = arith.constant 0 : i32
    %c0_i32_0 = arith.constant 0 : i32
    %c0_i32_1 = arith.constant 0 : i32
    return %c0_i32, %c0_i32_0 : i32, i32
  }
  func.func @transform_2(%arg0: i32) -> (i32, i32) {
    %c0_i32 = arith.constant 0 : i32
    %c0_i32_0 = arith.constant 0 : i32
    %c0_i32_1 = arith.constant 0 : i32
    return %c0_i32, %c0_i32_0 : i32, i32
  }
  func.func @transform_3(%arg0: i32) -> (i32, i32) {
    %c0_i32 = arith.constant 0 : i32
    %c0_i32_0 = arith.constant 0 : i32
    return %arg0, %c0_i32 : i32, i32
  }
}

module attributes {stable_mosaic.version = 11 : i64} {
  func.func @_conv_matmul_kernel(%arg0: i32, %arg1: memref<32x2304xbf16, #tpu.memory_space<vmem>>, %arg2: memref<2304x128xbf16, #tpu.memory_space<vmem>>, %arg3: memref<1x128xf32, #tpu.memory_space<vmem>>, %arg4: memref<32x128xf32, #tpu.memory_space<vmem>>) attributes {dimension_semantics = [#tpu.dimension_semantics<parallel>], iteration_bounds = array<i64: 1>, scalar_prefetch = 0 : i64, scratch_operands = 0 : i64, tpu.core_type = #tpu.core_type<tc>, window_params = [{transform_indices = @transform_0, window_bounds = array<i64: 32, 2304>}, {pipeline_mode = #tpu.pipeline_mode<synchronous>, transform_indices = @transform_1, window_bounds = array<i64: 2304, 128>}, {pipeline_mode = #tpu.pipeline_mode<synchronous>, transform_indices = @transform_2, window_bounds = array<i64: 1, 128>}, {transform_indices = @transform_3, window_bounds = array<i64: 32, 128>}]} {
    %c0 = arith.constant 0 : index
    %c0_0 = arith.constant 0 : index
    %0 = vector.load %arg1[%c0, %c0_0] : memref<32x2304xbf16, #tpu.memory_space<vmem>>, vector<32x2304xbf16>
    %c0_1 = arith.constant 0 : index
    %c0_2 = arith.constant 0 : index
    %1 = vector.load %arg2[%c0_1, %c0_2] : memref<2304x128xbf16, #tpu.memory_space<vmem>>, vector<2304x128xbf16>
    %cst = arith.constant dense<0.000000e+00> : vector<32x128xf32>
    %2 = tpu.matmul %0, %1, %cst {dimension_numbers = #tpu.dot_dimension_numbers<[1], [0], [0], [1], [0, 0, 1, 1], [], []>} : vector<32x2304xbf16>, vector<2304x128xbf16>, vector<32x128xf32> -> vector<32x128xf32>
    %c0_3 = arith.constant 0 : index
    %c0_4 = arith.constant 0 : index
    %3 = vector.load %arg3[%c0_3, %c0_4] : memref<1x128xf32, #tpu.memory_space<vmem>>, vector<1x128xf32>
    %4 = vector.broadcast %3 : vector<1x128xf32> to vector<32x128xf32>
    %5 = arith.addf %2, %4 : vector<32x128xf32>
    %cst_5 = arith.constant 0.000000e+00 : f32
    %6 = vector.broadcast %cst_5 : f32 to vector<32x128xf32>
    %7 = arith.maximumf %5, %6 : vector<32x128xf32>
    %c0_6 = arith.constant 0 : index
    %c0_7 = arith.constant 0 : index
    %8 = vector.load %arg4[%c0_6, %c0_7] : memref<32x128xf32, #tpu.memory_space<vmem>>, vector<32x128xf32>
    tpu.vector_store %arg4[%c0_6, %c0_7], %7 {strides = array<i32>} : memref<32x128xf32, #tpu.memory_space<vmem>>, vector<32x128xf32>,
    return
  }
  func.func @transform_0(%arg0: i32) -> (i32, i32) {
    %c0_i32 = arith.constant 0 : i32
    %c0_i32_0 = arith.constant 0 : i32
    return %arg0, %c0_i32 : i32, i32
  }
  func.func @transform_1(%arg0: i32) -> (i32, i32) {
    %c0_i32 = arith.constant 0 : i32
    %c0_i32_0 = arith.constant 0 : i32
    %c0_i32_1 = arith.constant 0 : i32
    return %c0_i32, %c0_i32_0 : i32, i32
  }
  func.func @transform_2(%arg0: i32) -> (i32, i32) {
    %c0_i32 = arith.constant 0 : i32
    %c0_i32_0 = arith.constant 0 : i32
    %c0_i32_1 = arith.constant 0 : i32
    return %c0_i32, %c0_i32_0 : i32, i32
  }
  func.func @transform_3(%arg0: i32) -> (i32, i32) {
    %c0_i32 = arith.constant 0 : i32
    %c0_i32_0 = arith.constant 0 : i32
    return %arg0, %c0_i32 : i32, i32
  }
}

module attributes {stable_mosaic.version = 11 : i64} {
  func.func @_conv_matmul_kernel(%arg0: i32, %arg1: memref<128x2304xbf16, #tpu.memory_space<vmem>>, %arg2: memref<2304x128xbf16, #tpu.memory_space<vmem>>, %arg3: memref<1x128xf32, #tpu.memory_space<vmem>>, %arg4: memref<128x128xf32, #tpu.memory_space<vmem>>) attributes {dimension_semantics = [#tpu.dimension_semantics<parallel>], iteration_bounds = array<i64: 1>, scalar_prefetch = 0 : i64, scratch_operands = 0 : i64, tpu.core_type = #tpu.core_type<tc>, window_params = [{transform_indices = @transform_0, window_bounds = array<i64: 128, 2304>}, {pipeline_mode = #tpu.pipeline_mode<synchronous>, transform_indices = @transform_1, window_bounds = array<i64: 2304, 128>}, {pipeline_mode = #tpu.pipeline_mode<synchronous>, transform_indices = @transform_2, window_bounds = array<i64: 1, 128>}, {transform_indices = @transform_3, window_bounds = array<i64: 128, 128>}]} {
    %c0 = arith.constant 0 : index
    %c0_0 = arith.constant 0 : index
    %0 = vector.load %arg1[%c0, %c0_0] : memref<128x2304xbf16, #tpu.memory_space<vmem>>, vector<128x2304xbf16>
    %c0_1 = arith.constant 0 : index
    %c0_2 = arith.constant 0 : index
    %1 = vector.load %arg2[%c0_1, %c0_2] : memref<2304x128xbf16, #tpu.memory_space<vmem>>, vector<2304x128xbf16>
    %cst = arith.constant dense<0.000000e+00> : vector<128x128xf32>
    %2 = tpu.matmul %0, %1, %cst {dimension_numbers = #tpu.dot_dimension_numbers<[1], [0], [0], [1], [0, 0, 1, 1], [], []>} : vector<128x2304xbf16>, vector<2304x128xbf16>, vector<128x128xf32> -> vector<128x128xf32>
    %c0_3 = arith.constant 0 : index
    %c0_4 = arith.constant 0 : index
    %3 = vector.load %arg3[%c0_3, %c0_4] : memref<1x128xf32, #tpu.memory_space<vmem>>, vector<1x128xf32>
    %4 = vector.broadcast %3 : vector<1x128xf32> to vector<128x128xf32>
    %5 = arith.addf %2, %4 : vector<128x128xf32>
    %cst_5 = arith.constant 0.000000e+00 : f32
    %6 = vector.broadcast %cst_5 : f32 to vector<128x128xf32>
    %7 = arith.maximumf %5, %6 : vector<128x128xf32>
    %c0_6 = arith.constant 0 : index
    %c0_7 = arith.constant 0 : index
    %8 = vector.load %arg4[%c0_6, %c0_7] : memref<128x128xf32, #tpu.memory_space<vmem>>, vector<128x128xf32>
    tpu.vector_store %arg4[%c0_6, %c0_7], %7 {strides = array<i32>} : memref<128x128xf32, #tpu.memory_space<vmem>>, vector<128x128xf32>,
    return
  }
  func.func @transform_0(%arg0: i32) -> (i32, i32) {
    %c0_i32 = arith.constant 0 : i32
    %c0_i32_0 = arith.constant 0 : i32
    return %arg0, %c0_i32 : i32, i32
  }
  func.func @transform_1(%arg0: i32) -> (i32, i32) {
    %c0_i32 = arith.constant 0 : i32
    %c0_i32_0 = arith.constant 0 : i32
    %c0_i32_1 = arith.constant 0 : i32
    return %c0_i32, %c0_i32_0 : i32, i32
  }
  func.func @transform_2(%arg0: i32) -> (i32, i32) {
    %c0_i32 = arith.constant 0 : i32
    %c0_i32_0 = arith.constant 0 : i32
    %c0_i32_1 = arith.constant 0 : i32
    return %c0_i32, %c0_i32_0 : i32, i32
  }
  func.func @transform_3(%arg0: i32) -> (i32, i32) {
    %c0_i32 = arith.constant 0 : i32
    %c0_i32_0 = arith.constant 0 : i32
    return %arg0, %c0_i32 : i32, i32
  }
}

module attributes {stable_mosaic.version = 11 : i64} {
  func.func @_conv_matmul_kernel(%arg0: i32, %arg1: memref<256x1152xbf16, #tpu.memory_space<vmem>>, %arg2: memref<1152x128xbf16, #tpu.memory_space<vmem>>, %arg3: memref<1x128xf32, #tpu.memory_space<vmem>>, %arg4: memref<256x128xf32, #tpu.memory_space<vmem>>) attributes {dimension_semantics = [#tpu.dimension_semantics<parallel>], iteration_bounds = array<i64: 2>, scalar_prefetch = 0 : i64, scratch_operands = 0 : i64, tpu.core_type = #tpu.core_type<tc>, window_params = [{transform_indices = @transform_0, window_bounds = array<i64: 256, 1152>}, {pipeline_mode = #tpu.pipeline_mode<synchronous>, transform_indices = @transform_1, window_bounds = array<i64: 1152, 128>}, {pipeline_mode = #tpu.pipeline_mode<synchronous>, transform_indices = @transform_2, window_bounds = array<i64: 1, 128>}, {transform_indices = @transform_3, window_bounds = array<i64: 256, 128>}]} {
    %c0 = arith.constant 0 : index
    %c0_0 = arith.constant 0 : index
    %0 = vector.load %arg1[%c0, %c0_0] : memref<256x1152xbf16, #tpu.memory_space<vmem>>, vector<256x1152xbf16>
    %c0_1 = arith.constant 0 : index
    %c0_2 = arith.constant 0 : index
    %1 = vector.load %arg2[%c0_1, %c0_2] : memref<1152x128xbf16, #tpu.memory_space<vmem>>, vector<1152x128xbf16>
    %cst = arith.constant dense<0.000000e+00> : vector<256x128xf32>
    %2 = tpu.matmul %0, %1, %cst {dimension_numbers = #tpu.dot_dimension_numbers<[1], [0], [0], [1], [0, 0, 1, 1], [], []>} : vector<256x1152xbf16>, vector<1152x128xbf16>, vector<256x128xf32> -> vector<256x128xf32>
    %c0_3 = arith.constant 0 : index
    %c0_4 = arith.constant 0 : index
    %3 = vector.load %arg3[%c0_3, %c0_4] : memref<1x128xf32, #tpu.memory_space<vmem>>, vector<1x128xf32>
    %4 = vector.broadcast %3 : vector<1x128xf32> to vector<256x128xf32>
    %5 = arith.addf %2, %4 : vector<256x128xf32>
    %cst_5 = arith.constant 0.000000e+00 : f32
    %6 = vector.broadcast %cst_5 : f32 to vector<256x128xf32>
    %7 = arith.maximumf %5, %6 : vector<256x128xf32>
    %c0_6 = arith.constant 0 : index
    %c0_7 = arith.constant 0 : index
    %8 = vector.load %arg4[%c0_6, %c0_7] : memref<256x128xf32, #tpu.memory_space<vmem>>, vector<256x128xf32>
    tpu.vector_store %arg4[%c0_6, %c0_7], %7 {strides = array<i32>} : memref<256x128xf32, #tpu.memory_space<vmem>>, vector<256x128xf32>,
    return
  }
  func.func @transform_0(%arg0: i32) -> (i32, i32) {
    %c0_i32 = arith.constant 0 : i32
    %c0_i32_0 = arith.constant 0 : i32
    return %arg0, %c0_i32 : i32, i32
  }
  func.func @transform_1(%arg0: i32) -> (i32, i32) {
    %c0_i32 = arith.constant 0 : i32
    %c0_i32_0 = arith.constant 0 : i32
    %c0_i32_1 = arith.constant 0 : i32
    return %c0_i32, %c0_i32_0 : i32, i32
  }
  func.func @transform_2(%arg0: i32) -> (i32, i32) {
    %c0_i32 = arith.constant 0 : i32
    %c0_i32_0 = arith.constant 0 : i32
    %c0_i32_1 = arith.constant 0 : i32
    return %c0_i32, %c0_i32_0 : i32, i32
  }
  func.func @transform_3(%arg0: i32) -> (i32, i32) {
    %c0_i32 = arith.constant 0 : i32
    %c0_i32_0 = arith.constant 0 : i32
    return %arg0, %c0_i32 : i32, i32
  }
}

module attributes {stable_mosaic.version = 11 : i64} {
  func.func @_conv_matmul_kernel(%arg0: i32, %arg1: memref<256x1728xbf16, #tpu.memory_space<vmem>>, %arg2: memref<1728x128xbf16, #tpu.memory_space<vmem>>, %arg3: memref<1x128xf32, #tpu.memory_space<vmem>>, %arg4: memref<256x128xf32, #tpu.memory_space<vmem>>) attributes {dimension_semantics = [#tpu.dimension_semantics<parallel>], iteration_bounds = array<i64: 2>, scalar_prefetch = 0 : i64, scratch_operands = 0 : i64, tpu.core_type = #tpu.core_type<tc>, window_params = [{transform_indices = @transform_0, window_bounds = array<i64: 256, 1728>}, {pipeline_mode = #tpu.pipeline_mode<synchronous>, transform_indices = @transform_1, window_bounds = array<i64: 1728, 128>}, {pipeline_mode = #tpu.pipeline_mode<synchronous>, transform_indices = @transform_2, window_bounds = array<i64: 1, 128>}, {transform_indices = @transform_3, window_bounds = array<i64: 256, 128>}]} {
    %c0 = arith.constant 0 : index
    %c0_0 = arith.constant 0 : index
    %0 = vector.load %arg1[%c0, %c0_0] : memref<256x1728xbf16, #tpu.memory_space<vmem>>, vector<256x1728xbf16>
    %c0_1 = arith.constant 0 : index
    %c0_2 = arith.constant 0 : index
    %1 = vector.load %arg2[%c0_1, %c0_2] : memref<1728x128xbf16, #tpu.memory_space<vmem>>, vector<1728x128xbf16>
    %cst = arith.constant dense<0.000000e+00> : vector<256x128xf32>
    %2 = tpu.matmul %0, %1, %cst {dimension_numbers = #tpu.dot_dimension_numbers<[1], [0], [0], [1], [0, 0, 1, 1], [], []>} : vector<256x1728xbf16>, vector<1728x128xbf16>, vector<256x128xf32> -> vector<256x128xf32>
    %c0_3 = arith.constant 0 : index
    %c0_4 = arith.constant 0 : index
    %3 = vector.load %arg3[%c0_3, %c0_4] : memref<1x128xf32, #tpu.memory_space<vmem>>, vector<1x128xf32>
    %4 = vector.broadcast %3 : vector<1x128xf32> to vector<256x128xf32>
    %5 = arith.addf %2, %4 : vector<256x128xf32>
    %cst_5 = arith.constant 0.000000e+00 : f32
    %6 = vector.broadcast %cst_5 : f32 to vector<256x128xf32>
    %7 = arith.maximumf %5, %6 : vector<256x128xf32>
    %c0_6 = arith.constant 0 : index
    %c0_7 = arith.constant 0 : index
    %8 = vector.load %arg4[%c0_6, %c0_7] : memref<256x128xf32, #tpu.memory_space<vmem>>, vector<256x128xf32>
    tpu.vector_store %arg4[%c0_6, %c0_7], %7 {strides = array<i32>} : memref<256x128xf32, #tpu.memory_space<vmem>>, vector<256x128xf32>,
    return
  }
  func.func @transform_0(%arg0: i32) -> (i32, i32) {
    %c0_i32 = arith.constant 0 : i32
    %c0_i32_0 = arith.constant 0 : i32
    return %arg0, %c0_i32 : i32, i32
  }
  func.func @transform_1(%arg0: i32) -> (i32, i32) {
    %c0_i32 = arith.constant 0 : i32
    %c0_i32_0 = arith.constant 0 : i32
    %c0_i32_1 = arith.constant 0 : i32
    return %c0_i32, %c0_i32_0 : i32, i32
  }
  func.func @transform_2(%arg0: i32) -> (i32, i32) {
    %c0_i32 = arith.constant 0 : i32
    %c0_i32_0 = arith.constant 0 : i32
    %c0_i32_1 = arith.constant 0 : i32
    return %c0_i32, %c0_i32_0 : i32, i32
  }
  func.func @transform_3(%arg0: i32) -> (i32, i32) {
    %c0_i32 = arith.constant 0 : i32
    %c0_i32_0 = arith.constant 0 : i32
    return %arg0, %c0_i32 : i32, i32
  }
}

module attributes {stable_mosaic.version = 11 : i64} {
  func.func @_conv_matmul_kernel(%arg0: i32, %arg1: memref<256x144xbf16, #tpu.memory_space<vmem>>, %arg2: memref<144x128xbf16, #tpu.memory_space<vmem>>, %arg3: memref<1x128xf32, #tpu.memory_space<vmem>>, %arg4: memref<256x128xf32, #tpu.memory_space<vmem>>) attributes {dimension_semantics = [#tpu.dimension_semantics<parallel>], iteration_bounds = array<i64: 2>, scalar_prefetch = 0 : i64, scratch_operands = 0 : i64, tpu.core_type = #tpu.core_type<tc>, window_params = [{transform_indices = @transform_0, window_bounds = array<i64: 256, 144>}, {pipeline_mode = #tpu.pipeline_mode<synchronous>, transform_indices = @transform_1, window_bounds = array<i64: 144, 128>}, {pipeline_mode = #tpu.pipeline_mode<synchronous>, transform_indices = @transform_2, window_bounds = array<i64: 1, 128>}, {transform_indices = @transform_3, window_bounds = array<i64: 256, 128>}]} {
    %c0 = arith.constant 0 : index
    %c0_0 = arith.constant 0 : index
    %0 = vector.load %arg1[%c0, %c0_0] : memref<256x144xbf16, #tpu.memory_space<vmem>>, vector<256x144xbf16>
    %c0_1 = arith.constant 0 : index
    %c0_2 = arith.constant 0 : index
    %1 = vector.load %arg2[%c0_1, %c0_2] : memref<144x128xbf16, #tpu.memory_space<vmem>>, vector<144x128xbf16>
    %cst = arith.constant dense<0.000000e+00> : vector<256x128xf32>
    %2 = tpu.matmul %0, %1, %cst {dimension_numbers = #tpu.dot_dimension_numbers<[1], [0], [0], [1], [0, 0, 1, 1], [], []>} : vector<256x144xbf16>, vector<144x128xbf16>, vector<256x128xf32> -> vector<256x128xf32>
    %c0_3 = arith.constant 0 : index
    %c0_4 = arith.constant 0 : index
    %3 = vector.load %arg3[%c0_3, %c0_4] : memref<1x128xf32, #tpu.memory_space<vmem>>, vector<1x128xf32>
    %4 = vector.broadcast %3 : vector<1x128xf32> to vector<256x128xf32>
    %5 = arith.addf %2, %4 : vector<256x128xf32>
    %cst_5 = arith.constant 0.000000e+00 : f32
    %6 = vector.broadcast %cst_5 : f32 to vector<256x128xf32>
    %7 = arith.maximumf %5, %6 : vector<256x128xf32>
    %c0_6 = arith.constant 0 : index
    %c0_7 = arith.constant 0 : index
    %8 = vector.load %arg4[%c0_6, %c0_7] : memref<256x128xf32, #tpu.memory_space<vmem>>, vector<256x128xf32>
    tpu.vector_store %arg4[%c0_6, %c0_7], %7 {strides = array<i32>} : memref<256x128xf32, #tpu.memory_space<vmem>>, vector<256x128xf32>,
    return
  }
  func.func @transform_0(%arg0: i32) -> (i32, i32) {
    %c0_i32 = arith.constant 0 : i32
    %c0_i32_0 = arith.constant 0 : i32
    return %arg0, %c0_i32 : i32, i32
  }
  func.func @transform_1(%arg0: i32) -> (i32, i32) {
    %c0_i32 = arith.constant 0 : i32
    %c0_i32_0 = arith.constant 0 : i32
    %c0_i32_1 = arith.constant 0 : i32
    return %c0_i32, %c0_i32_0 : i32, i32
  }
  func.func @transform_2(%arg0: i32) -> (i32, i32) {
    %c0_i32 = arith.constant 0 : i32
    %c0_i32_0 = arith.constant 0 : i32
    %c0_i32_1 = arith.constant 0 : i32
    return %c0_i32, %c0_i32_0 : i32, i32
  }
  func.func @transform_3(%arg0: i32) -> (i32, i32) {
    %c0_i32 = arith.constant 0 : i32
    %c0_i32_0 = arith.constant 0 : i32
    return %arg0, %c0_i32 : i32, i32
  }
}

</mosaic_0001>

<bundles_post_ra>
// kernel: conv_autoencoder_forward.9
= control target key start
LH: loop header
LB: loop body
LE: loop exit
PB: predicated region body
PF: predicated region fallthrough
CT: control target
= control target key end

     0   :  { %8 = vsyncpa [#allocation3], 0  ;;  %s1103_s0 = inlined_call_operand.vmem [shape: bf16[512,9], index: 0, kind: input, shape index: {}]   ;;  %s1104_s1 = inlined_call_operand.hbm [shape: bf16[9,128], index: 1, kind: input, shape index: {}]   ;;  %s1105_s2 = inlined_call_operand.hbm [shape: f32[1,128], index: 2, kind: input, shape index: {}]   ;;  %s1106_s3 = inlined_call_operand.vmem [shape: f32[512,128], index: 3, kind: output, shape index: {}]  }
   0x1   :  { %9 = vsyncpa [#allocation5], 0  ;;  %s932_s12 = smov 0  }
   0x2 LB: > { %s688_s13 = sadd.s32 4294967295, %s905_s12   ;;  %p690_p0 = scmp.ge.s32.totalorder %s905_s12, 1  ;;  %s905_s12 = sphi %s932_s12, %s15_s12  }
   0x3   : > { %p114_p1 = scmp.lt.s32.totalorder %s905_s12, 3  ;;  %s907_s14 = smov [#allocation2]  }
   0x4   : > { %s126_s15 = sshll.u32 %s907_s14, 4  ;;  %p946_p3 = scmp.eq.s32.totalorder %s688_s13, 0  ;;  %s127_s15 = int_to_ptr.vmem [resolvable:$true] %s126_s15 }
   0x5   : > { %p940_p2 = pnand %p690_p0, %p114_p1  ;;  %s908_s18 = smov [#allocation4]  }
   0x6   : > { %s140_s19 = sshll.u32 %s908_s18, 4  ;;  %s850_s21 = scalar_lea.vmem %s127_s15, 128  ;;  %s141_s19 = int_to_ptr.vmem [resolvable:$true] %s140_s19 }
   0x7   : > { %p798_p4 = pneg %p940_p2  ;;  %p851_p7 = scmp.ne.s32.totalorder %s127_s15, %s850_s21 }
   0x8   : > { %p858_p10 = scmp.lt.s32.totalorder %s127_s15, %s127_s15  ;;  %p859_p11 = scmp.lt.s32.totalorder %s850_s21, %s850_s21 }
   0x9   : > { %p954_p5 = pnand %p946_p3, %p798_p4 }
   0xa   : > { %p860_p12 = por %p859_p11, %p858_p10 }
   0xb   : > { %p841_p6 = pneg %p954_p5 }
   0xd   : > { %p853_p8 = pnand %p851_p7, %p841_p6 }
   0xf   : > { %p854_p9 = pneg %p853_p8 }
  0x11   : > { %p861_p13 = pnand %p860_p12, %p854_p9 }
  0x13   : > { %864 = shalt.err (!%p861_p13)
}
  0x14   : > { %s909_s22 = smov 64   ;;  %s910_s23 = smov 4  }
  0x15   : > { %801 = dma.hbm_to_vmem [thread:$0]  (!%p954_p5), %s1104_s1, 128, %s127_s15, [#allocation3], %s909_s22, %s909_s22, %s910_s23  }
  0x16   : > { %s876_s26 = scalar_lea.vmem %s141_s19, 16  ;;  %s883_s27 = scalar_lea.vmem %s141_s19, 32 }
  0x17   : > { %p877_p0 = scmp.ne.s32.totalorder %s141_s19, %s876_s26  ;;  %p884_p7 = scmp.lt.s32.totalorder %s141_s19, %s141_s19 }
  0x18   : > { %p885_p8 = scmp.lt.s32.totalorder %s883_s27, %s876_s26 }
  0x19   : > { %p879_p1 = pnand %p877_p0, %p841_p6 }
  0x1a   : > { %p886_p9 = por %p885_p8, %p884_p7 }
  0x1b   : > { %p880_p4 = pneg %p879_p1 }
  0x1d   : > { %p887_p10 = pnand %p886_p9, %p880_p4 }
  0x1f   : > { %890 = shalt.err (!%p887_p10)
}
  0x20   : > { %804 = dma.hbm_to_vmem [thread:$0]  (!%p954_p5), %s1105_s2, 16, %s141_s19, [#allocation5]  }
  0x21   : > { %162 = sbr.rel (%p940_p2) target bundleno = 278 (0x116), region = 32 }
  0x26   : > { %896 = dma.done.wait (%p946_p3), [#allocation3], 128  }
  0x27   : > { %898 = vsyncadd (%p946_p3), [#allocation3], 4294967168 }
  0x28   : > { %900 = dma.done.wait (%p946_p3), [#allocation5], 16  }
  0x29   : > { %902 = vsyncadd (%p946_p3), [#allocation5], 4294967280  ;;  %vm378_vm0 = vcmask 1043456   ;;  %s697_s30 = sshll.u32 %s688_s13, 5  ;;  %vm379_vm1 = vcmask 1044480   ;;  %v911_v0 = vmov 65535  }
  0x2a   : > { %p191_p5 = scmp.lt.s32.totalorder %s697_s30, 63  ;;  %v380_v1 = vsel %vm378_vm0, 4294967295, %v911_v0  ;;  %vm329_vm2 = vcmask 72704   ;;  %v822_v3 = vld [vmem:[#allocation2] sm:$0x1f]  }
  0x2b   : > { %v381_v2 = vsel %vm379_vm1, %v380_v1, 0  ;;  %v1028_v21 = vld [vmem:[#allocation4] ss:$0 sm:$0xff] }
  0x2c   : > { %s1111_s30 = smov (!%p191_p5, %s697_s30), 63  ;;  %v383_v5 = vand.u32 %v822_v3, %v381_v2 }
  0x2d   : > { %s698_s4 = sshll.u32 %s1111_s30, 2  ;;  %s700_s8 = sshll.u32 %s1111_s30, 3 }
  0x2e   : > { %s994_s7 = scalar_lea.vmem %s1103_s0, %s698_s4  ;;  %754 = vmatprep.subr.bf16.mxu0 %v383_v5  ;;  %788 = vmatprep.subr.bf16.mxu1 %v383_v5  ;;  %s1036_s11 = scalar_lea.vmem %s1106_s3, %s700_s8 }
  0x2f   : > { %v823_v4 = vld [vmem:[%s994_s7] sm:$0xff]   ;;  %v825_v7 = vld [vmem:[%s994_s7 + $0x8] sm:$0xff]   ;;  %755 = vmatpush3.bf16.msra.mxu0 %v383_v5  ;;  %789 = vmatpush3.bf16.msra.mxu1 %v383_v5  ;;  %v827_v9 = vld [vmem:[%s994_s7 + $0x10] sm:$0xff]  }
  0x30   : > { %v824_v6 = vld [vmem:[%s994_s7 + $0x40] sm:$0xff]   ;;  %756 = vmatprep.mubr.msk.bf16.mxu0 %vm329_vm2, %v823_v4  ;;  %v826_v8 = vld [vmem:[%s994_s7 + $0x48] sm:$0xff]   ;;  %v828_v10 = vld [vmem:[%s994_s7 + $0x50] sm:$0xff]  }
  0x31   : > { %772 = vmatprep.mubr.msk.bf16.mxu1 %vm329_vm2, %v824_v6  ;;  %v829_v11 = vld [vmem:[%s994_s7 + $0x18] sm:$0xff]   ;;  %v831_v13 = vld [vmem:[%s994_s7 + $0x20] sm:$0xff]   ;;  %v833_v15 = vld [vmem:[%s994_s7 + $0x28] sm:$0xff]  }
  0x32   : > { %757 = vmatmul.mubr.msk.bf16.vlgmr.msra.gmra.mxu0 %vm329_vm2, %v825_v7  ;;  %773 = vmatmul.mubr.msk.bf16.vlgmr.msra.gmra.mxu1 %vm329_vm2, %v826_v8  ;;  %v830_v12 = vld [vmem:[%s994_s7 + $0x58] sm:$0xff]   ;;  %v832_v14 = vld [vmem:[%s994_s7 + $0x60] sm:$0xff]   ;;  %v834_v16 = vld [vmem:[%s994_s7 + $0x68] sm:$0xff]  }
  0x33   : > { %760 = vmatprep.mubr.msk.bf16.mxu0 %vm329_vm2, %v827_v9  ;;  %776 = vmatprep.mubr.msk.bf16.mxu1 %vm329_vm2, %v828_v10  ;;  %v835_v17 = vld [vmem:[%s994_s7 + $0x30] sm:$0xff]   ;;  %v837_v19 = vld [vmem:[%s994_s7 + $0x38] sm:$0xff]  }
  0x34   : > { %v836_v18 = vld [vmem:[%s994_s7 + $0x70] sm:$0xff]   ;;  %v838_v20 = vld [vmem:[%s994_s7 + $0x78] sm:$0xff]  }
  0x3a   : > { %761 = vmatmul.mubr.msk.bf16.gmra.mxu0 %vm329_vm2, %v829_v11  ;;  %777 = vmatmul.mubr.msk.bf16.gmra.mxu1 %vm329_vm2, %v830_v12 }
  0x3b   : > { %764 = vmatprep.mubr.msk.bf16.mxu0 %vm329_vm2, %v831_v13  ;;  %780 = vmatprep.mubr.msk.bf16.mxu1 %vm329_vm2, %v832_v14 }
  0x42   : > { %765 = vmatmul.mubr.msk.bf16.gmra.mxu0 %vm329_vm2, %v833_v15  ;;  %781 = vmatmul.mubr.msk.bf16.gmra.mxu1 %vm329_vm2, %v834_v16 }
  0x43   : > { %768 = vmatprep.mubr.msk.bf16.mxu0 %vm329_vm2, %v835_v17  ;;  %784 = vmatprep.mubr.msk.bf16.mxu1 %vm329_vm2, %v836_v18 }
  0x4a   : > { %769 = vmatmul.mubr.msk.bf16.gmra.mxu0 %vm329_vm2, %v837_v19  ;;  %785 = vmatmul.mubr.msk.bf16.gmra.mxu1 %vm329_vm2, %v838_v20 }
  0xf2   : > { %v758_v22 = vpop.f32.mrf.mxu0  ;;  %v774_v23 = vpop.f32.mrf.mxu1 }
  0xf3   : > { %v428_v24 = vadd.f32 %v758_v22, %v1028_v21  ;;  %v492_v25 = vadd.f32 %v774_v23, %v1028_v21 }
  0xf4   : > { %v419_v26 = vpop.f32.mrf.mxu0  ;;  %v483_v27 = vpop.f32.mrf.mxu1 }
  0xf5   : > { %v548_v28 = vmax.f32 %v428_v24, 0.0  ;;  %v564_v29 = vmax.f32 %v492_v25, 0.0  ;;  %v420_v30 = vadd.f32 %v1028_v21, %v419_v26  ;;  %v484_v31 = vadd.f32 %v1028_v21, %v483_v27 }
  0xf6   : > { %v759_v32 = vpop.f32.mrf.mxu0  ;;  %v775_v33 = vpop.f32.mrf.mxu1 }
  0xf7   : > { %580 = vst [vmem:[%s1036_s11 + $0x10] sm:$0xff] %v548_v28  ;;  %596 = vst [vmem:[%s1036_s11 + $0x90] sm:$0xff] %v564_v29  ;;  %v546_v34 = vmax.f32 %v420_v30, 0.0  ;;  %v562_v35 = vmax.f32 %v484_v31, 0.0  ;;  %v431_v36 = vadd.f32 %v759_v32, %v1028_v21  ;;  %v495_v37 = vadd.f32 %v775_v33, %v1028_v21 }
  0xf8   : > { %v422_v38 = vpop.f32.mrf.mxu0  ;;  %v486_v39 = vpop.f32.mrf.mxu1 }
  0xf9   : > { %578 = vst [vmem:[%s1036_s11] sm:$0xff] %v546_v34  ;;  %594 = vst [vmem:[%s1036_s11 + $0x80] sm:$0xff] %v562_v35  ;;  %v549_v40 = vmax.f32 %v431_v36, 0.0  ;;  %v565_v41 = vmax.f32 %v495_v37, 0.0  ;;  %v423_v42 = vadd.f32 %v1028_v21, %v422_v38  ;;  %v487_v43 = vadd.f32 %v1028_v21, %v486_v39 }
  0xfa   : > { %v762_v44 = vpop.f32.mrf.mxu0  ;;  %v778_v45 = vpop.f32.mrf.mxu1 }
  0xfb   : > { %581 = vst [vmem:[%s1036_s11 + $0x18] sm:$0xff] %v549_v40  ;;  %597 = vst [vmem:[%s1036_s11 + $0x98] sm:$0xff] %v565_v41  ;;  %v547_v46 = vmax.f32 %v423_v42, 0.0  ;;  %v563_v47 = vmax.f32 %v487_v43, 0.0  ;;  %v444_v48 = vadd.f32 %v762_v44, %v1028_v21  ;;  %v508_v49 = vadd.f32 %v778_v45, %v1028_v21 }
  0xfc   : > { %v435_v50 = vpop.f32.mrf.mxu0  ;;  %v499_v51 = vpop.f32.mrf.mxu1 }
  0xfd   : > { %579 = vst [vmem:[%s1036_s11 + $0x8] sm:$0xff] %v547_v46  ;;  %595 = vst [vmem:[%s1036_s11 + $0x88] sm:$0xff] %v563_v47  ;;  %v552_v52 = vmax.f32 %v444_v48, 0.0  ;;  %v568_v53 = vmax.f32 %v508_v49, 0.0  ;;  %v436_v54 = vadd.f32 %v1028_v21, %v435_v50  ;;  %v500_v55 = vadd.f32 %v1028_v21, %v499_v51 }
  0xfe   : > { %v763_v56 = vpop.f32.mrf.mxu0  ;;  %v779_v57 = vpop.f32.mrf.mxu1 }
  0xff   : > { %584 = vst [vmem:[%s1036_s11 + $0x30] sm:$0xff] %v552_v52  ;;  %600 = vst [vmem:[%s1036_s11 + $0xb0] sm:$0xff] %v568_v53  ;;  %v550_v58 = vmax.f32 %v436_v54, 0.0  ;;  %v566_v59 = vmax.f32 %v500_v55, 0.0  ;;  %v447_v60 = vadd.f32 %v763_v56, %v1028_v21  ;;  %v511_v61 = vadd.f32 %v779_v57, %v1028_v21 }
 0x100   : > { %v438_v62 = vpop.f32.mrf.mxu0  ;;  %v502_v63 = vpop.f32.mrf.mxu1 }
 0x101   : > { %582 = vst [vmem:[%s1036_s11 + $0x20] sm:$0xff] %v550_v58  ;;  %598 = vst [vmem:[%s1036_s11 + $0xa0] sm:$0xff] %v566_v59  ;;  %v553_v0 = vmax.f32 %v447_v60, 0.0  ;;  %v569_v1 = vmax.f32 %v511_v61, 0.0  ;;  %v439_v2 = vadd.f32 %v1028_v21, %v438_v62  ;;  %v503_v3 = vadd.f32 %v1028_v21, %v502_v63 }
 0x102   : > { %v766_v4 = vpop.f32.mrf.mxu0  ;;  %v782_v5 = vpop.f32.mrf.mxu1 }
 0x103   : > { %585 = vst [vmem:[%s1036_s11 + $0x38] sm:$0xff] %v553_v0  ;;  %601 = vst [vmem:[%s1036_s11 + $0xb8] sm:$0xff] %v569_v1  ;;  %v551_v6 = vmax.f32 %v439_v2, 0.0  ;;  %v567_v7 = vmax.f32 %v503_v3, 0.0  ;;  %v460_v8 = vadd.f32 %v766_v4, %v1028_v21  ;;  %v524_v9 = vadd.f32 %v782_v5, %v1028_v21 }
 0x104   : > { %v451_v10 = vpop.f32.mrf.mxu0  ;;  %v515_v11 = vpop.f32.mrf.mxu1 }
 0x105   : > { %583 = vst [vmem:[%s1036_s11 + $0x28] sm:$0xff] %v551_v6  ;;  %599 = vst [vmem:[%s1036_s11 + $0xa8] sm:$0xff] %v567_v7  ;;  %v556_v12 = vmax.f32 %v460_v8, 0.0  ;;  %v572_v13 = vmax.f32 %v524_v9, 0.0  ;;  %v452_v14 = vadd.f32 %v1028_v21, %v451_v10  ;;  %v516_v15 = vadd.f32 %v1028_v21, %v515_v11 }
 0x106   : > { %v767_v16 = vpop.f32.mrf.mxu0  ;;  %v783_v17 = vpop.f32.mrf.mxu1 }
 0x107   : > { %588 = vst [vmem:[%s1036_s11 + $0x50] sm:$0xff] %v556_v12  ;;  %604 = vst [vmem:[%s1036_s11 + $0xd0] sm:$0xff] %v572_v13  ;;  %v554_v18 = vmax.f32 %v452_v14, 0.0  ;;  %v570_v19 = vmax.f32 %v516_v15, 0.0  ;;  %v463_v20 = vadd.f32 %v767_v16, %v1028_v21  ;;  %v527_v22 = vadd.f32 %v783_v17, %v1028_v21 }
 0x108   : > { %v454_v23 = vpop.f32.mrf.mxu0  ;;  %v518_v24 = vpop.f32.mrf.mxu1 }
 0x109   : > { %586 = vst [vmem:[%s1036_s11 + $0x40] sm:$0xff] %v554_v18  ;;  %602 = vst [vmem:[%s1036_s11 + $0xc0] sm:$0xff] %v570_v19  ;;  %v557_v25 = vmax.f32 %v463_v20, 0.0  ;;  %v573_v26 = vmax.f32 %v527_v22, 0.0  ;;  %v455_v27 = vadd.f32 %v1028_v21, %v454_v23  ;;  %v519_v28 = vadd.f32 %v1028_v21, %v518_v24 }
 0x10a   : > { %v770_v29 = vpop.f32.mrf.mxu0  ;;  %v786_v30 = vpop.f32.mrf.mxu1 }
 0x10b   : > { %589 = vst [vmem:[%s1036_s11 + $0x58] sm:$0xff] %v557_v25  ;;  %605 = vst [vmem:[%s1036_s11 + $0xd8] sm:$0xff] %v573_v26  ;;  %v555_v31 = vmax.f32 %v455_v27, 0.0  ;;  %v571_v32 = vmax.f32 %v519_v28, 0.0  ;;  %v476_v33 = vadd.f32 %v770_v29, %v1028_v21  ;;  %v540_v34 = vadd.f32 %v786_v30, %v1028_v21 }
 0x10c   : > { %v467_v35 = vpop.f32.mrf.mxu0  ;;  %v531_v36 = vpop.f32.mrf.mxu1 }
 0x10d   : > { %587 = vst [vmem:[%s1036_s11 + $0x48] sm:$0xff] %v555_v31  ;;  %603 = vst [vmem:[%s1036_s11 + $0xc8] sm:$0xff] %v571_v32  ;;  %v560_v37 = vmax.f32 %v476_v33, 0.0  ;;  %v576_v38 = vmax.f32 %v540_v34, 0.0  ;;  %v468_v39 = vadd.f32 %v1028_v21, %v467_v35  ;;  %v532_v40 = vadd.f32 %v1028_v21, %v531_v36 }
 0x10e   : > { %v771_v41 = vpop.f32.mrf.mxu0  ;;  %v787_v42 = vpop.f32.mrf.mxu1 }
 0x10f   : > { %592 = vst [vmem:[%s1036_s11 + $0x70] sm:$0xff] %v560_v37  ;;  %608 = vst [vmem:[%s1036_s11 + $0xf0] sm:$0xff] %v576_v38  ;;  %v558_v43 = vmax.f32 %v468_v39, 0.0  ;;  %v574_v44 = vmax.f32 %v532_v40, 0.0  ;;  %v479_v45 = vadd.f32 %v771_v41, %v1028_v21  ;;  %v543_v46 = vadd.f32 %v787_v42, %v1028_v21 }
 0x110   : > { %v470_v47 = vpop.f32.mrf.mxu0  ;;  %v534_v48 = vpop.f32.mrf.mxu1 }
 0x111   : > { %590 = vst [vmem:[%s1036_s11 + $0x60] sm:$0xff] %v558_v43  ;;  %606 = vst [vmem:[%s1036_s11 + $0xe0] sm:$0xff] %v574_v44  ;;  %v561_v49 = vmax.f32 %v479_v45, 0.0  ;;  %v577_v50 = vmax.f32 %v543_v46, 0.0  ;;  %v471_v51 = vadd.f32 %v1028_v21, %v470_v47  ;;  %v535_v52 = vadd.f32 %v1028_v21, %v534_v48 }
 0x113   : > { %593 = vst [vmem:[%s1036_s11 + $0x78] sm:$0xff] %v561_v49  ;;  %609 = vst [vmem:[%s1036_s11 + $0xf8] sm:$0xff] %v577_v50  ;;  %v559_v53 = vmax.f32 %v471_v51, 0.0  ;;  %v575_v54 = vmax.f32 %v535_v52, 0.0 }
 0x115   : > { %591 = vst [vmem:[%s1036_s11 + $0x68] sm:$0xff] %v559_v53  ;;  %607 = vst [vmem:[%s1036_s11 + $0xe8] sm:$0xff] %v575_v54 }
 0x116 PF: > { %s15_s12 = sadd.s32 1, %s905_s12  }
 0x117   : > { %p12_p2 = scmp.ge.s32.totalorder %s15_s12, 4  }
 0x119   :  { %14 = sbr.rel (!%p12_p2) target bundleno = 2 (0x2), region = 71 }
 0x11e   :  { %632 = vsyncpa [#allocation3], 1 }
 0x11f   :  { %634 = vsyncpa [#allocation3 + $0x1], 1 }
 0x120   :  { %635 = vsyncpa [#allocation5], 1 }

// kernel: conv_autoencoder_forward.10
= control target key start
LH: loop header
LB: loop body
LE: loop exit
PB: predicated region body
PF: predicated region fallthrough
CT: control target
= control target key end

     0   :  { %vm558_vm0 = vcmask 523264   ;;  %s1677_s1 = inlined_call_operand.vmem [shape: bf16[576,128], index: 1, kind: input, shape index: {}]   ;;  %s1678_s0 = inlined_call_operand.vmem [shape: bf16[128,576], index: 0, kind: input, shape index: {}]   ;;  %s1679_s2 = inlined_call_operand.vmem [shape: f32[1,128], index: 2, kind: input, shape index: {}]   ;;  %s1680_s3 = inlined_call_operand.vmem [shape: f32[128,128], index: 3, kind: output, shape index: {}]  }
   0x1   :  { %v1167_v0 = vld [vmem:[%s1677_s1 + $0x78] sm:$0xff]   ;;  %v1171_v4 = vld [vmem:[%s1677_s1 + $0x70] sm:$0xff]   ;;  %v1175_v8 = vld [vmem:[%s1677_s1 + $0x68] sm:$0xff]  }
   0x2   :  { %v1168_v1 = vld [vmem:[%s1677_s1 + $0xf8] sm:$0xff]   ;;  %995 = vmatprep.subr.bf16.mxu0 %v1167_v0  ;;  %v1172_v5 = vld [vmem:[%s1677_s1 + $0xf0] sm:$0xff]   ;;  %v1176_v9 = vld [vmem:[%s1677_s1 + $0xe8] sm:$0xff]  }
   0x3   :  { %v1169_v2 = vld [vmem:[%s1677_s1 + $0x38] sm:$0xff]   ;;  %1059 = vmatprep.subr.bf16.mxu1 %v1168_v1  ;;  %v1173_v6 = vld [vmem:[%s1677_s1 + $0x30] sm:$0xff]   ;;  %v1177_v10 = vld [vmem:[%s1677_s1 + $0x28] sm:$0xff]  }
   0x4   :  { %v1170_v3 = vld [vmem:[%s1677_s1 + $0xb8] sm:$0xff]   ;;  %996 = vmatpush3.bf16.msra.mxu0 %v1169_v2  ;;  %v1174_v7 = vld [vmem:[%s1677_s1 + $0xb0] sm:$0xff]   ;;  %v1178_v11 = vld [vmem:[%s1677_s1 + $0xa8] sm:$0xff]  }
   0x5   :  { %1060 = vmatpush3.bf16.msra.mxu1 %v1170_v3  ;;  %997 = vmatprep.subr.bf16.mxu0 %v1171_v4  ;;  %v1179_v12 = vld [vmem:[%s1677_s1 + $0x60] sm:$0xff]   ;;  %v1183_v16 = vld [vmem:[%s1677_s1 + $0x58] sm:$0xff]   ;;  %v1187_v20 = vld [vmem:[%s1677_s1 + $0x50] sm:$0xff]  }
   0x6   :  { %1061 = vmatprep.subr.bf16.mxu1 %v1172_v5  ;;  %v1180_v13 = vld [vmem:[%s1677_s1 + $0xe0] sm:$0xff]   ;;  %v1184_v17 = vld [vmem:[%s1677_s1 + $0xd8] sm:$0xff]   ;;  %v1188_v21 = vld [vmem:[%s1677_s1 + $0xd0] sm:$0xff]  }
   0x7   :  { %v1181_v14 = vld [vmem:[%s1677_s1 + $0x20] sm:$0xff]   ;;  %v1185_v18 = vld [vmem:[%s1677_s1 + $0x18] sm:$0xff]   ;;  %v1189_v22 = vld [vmem:[%s1677_s1 + $0x10] sm:$0xff]  }
   0x8   :  { %998 = vmatpush3.bf16.msra.mxu0 %v1173_v6  ;;  %v1182_v15 = vld [vmem:[%s1677_s1 + $0xa0] sm:$0xff]   ;;  %v1186_v19 = vld [vmem:[%s1677_s1 + $0x98] sm:$0xff]   ;;  %v1190_v23 = vld [vmem:[%s1677_s1 + $0x90] sm:$0xff]  }
   0x9   :  { %1062 = vmatpush3.bf16.msra.mxu1 %v1174_v7  ;;  %999 = vmatprep.subr.bf16.mxu0 %v1175_v8  ;;  %v1191_v24 = vld [vmem:[%s1677_s1 + $0x48] sm:$0xff]   ;;  %v1195_v28 = vld [vmem:[%s1677_s1 + $0x40] sm:$0xff]   ;;  %v1205_v36 = vld [vmem:[%s1677_s1 + $0x118] sm:$0xff]  }
   0xa   :  { %1063 = vmatprep.subr.bf16.mxu1 %v1176_v9  ;;  %v1192_v25 = vld [vmem:[%s1677_s1 + $0xc8] sm:$0xff]   ;;  %v1196_v29 = vld [vmem:[%s1677_s1 + $0xc0] sm:$0xff]   ;;  %v1218_v42 = vld [vmem:[%s1677_s1 + $0x110] sm:$0xff]  }
   0xb   :  { %v1193_v26 = vld [vmem:[%s1677_s1 + $0x8] sm:$0xff]   ;;  %v1197_v30 = vld [vmem:[%s1677_s1] sm:$0xff]   ;;  %v1214_v43 = vld [vmem:[%s1678_s0 + $0x5c] ss:$20 sps:$4 sm:$0xff]  }
   0xc   :  { %1000 = vmatpush3.bf16.msra.mxu0 %v1177_v10  ;;  %v1194_v27 = vld [vmem:[%s1677_s1 + $0x88] sm:$0xff]   ;;  %v1198_v31 = vld [vmem:[%s1677_s1 + $0x80] sm:$0xff]   ;;  %v1219_v47 = vld [vmem:[%s1678_s0 + $0x7c] ss:$20 sps:$4 sm:$0xff]  }
   0xd   :  { %1064 = vmatpush3.bf16.msra.mxu1 %v1178_v11  ;;  %1001 = vmatprep.subr.bf16.mxu0 %v1179_v12  ;;  %v1199_v32 = vld [vmem:[%s1678_s0] ss:$20 sps:$4 sm:$0xff]   ;;  %v1201_v33 = vld [vmem:[%s1678_s0 + $0x4] ss:$20 sps:$4 sm:$0xff]   ;;  %v1202_v34 = vld [vmem:[%s1678_s0 + $0x8] ss:$20 sps:$4 sm:$0xff]  }
   0xe   :  { %1065 = vmatprep.subr.bf16.mxu1 %v1180_v13  ;;  %v1204_v35 = vld [vmem:[%s1678_s0 + $0xc] ss:$20 sps:$4 sm:$0xff]   ;;  %615 = vmatprep.mubr.bf16.mxu0 %v1201_v33  ;;  %v1208_v38 = vld [vmem:[%s1678_s0 + $0x34] ss:$20 sps:$4 sm:$0xff]   ;;  %v1211_v40 = vld [vmem:[%s1678_s0 + $0x30] ss:$20 sps:$4 sm:$0xff]  }
   0xf   :  { %712 = vmatprep.mubr.bf16.mxu1 %v1204_v35  ;;  %v1206_v37 = vld [vmem:[%s1678_s0 + $0x2c] ss:$20 sps:$4 sm:$0xff]   ;;  %v1210_v39 = vld [vmem:[%s1678_s0 + $0x28] ss:$20 sps:$4 sm:$0xff]   ;;  %v1216_v44 = vld [vmem:[%s1678_s0 + $0x50] ss:$20 sps:$4 sm:$0xff]  }
  0x10   :  { %1002 = vmatpush3.bf16.msra.mxu0 %v1181_v14  ;;  %v1212_v41 = vld [vmem:[%s1678_s0 + $0x54] ss:$20 sps:$4 sm:$0xff]   ;;  %v1217_v45 = vld [vmem:[%s1678_s0 + $0x58] ss:$20 sps:$4 sm:$0xff]   ;;  %v1244_v49 = vld [vmem:[%s1677_s1 + $0x100] sm:$0xff]  }
  0x11   :  { %1066 = vmatpush3.bf16.msra.mxu1 %v1182_v15  ;;  %1003 = vmatprep.subr.bf16.mxu0 %v1183_v16  ;;  %v1231_v46 = vld [vmem:[%s1677_s1 + $0x108] sm:$0xff]   ;;  %v1221_v48 = vld [vmem:[%s1678_s0 + $0x84] ss:$20 sps:$4 sm:$0xff]   ;;  %v1224_v51 = vld [vmem:[%s1678_s0 + $0x80] ss:$20 sps:$4 sm:$0xff]  }
  0x12   :  { %1067 = vmatprep.subr.bf16.mxu1 %v1184_v17  ;;  %v1223_v50 = vld [vmem:[%s1678_s0 + $0x78] ss:$20 sps:$4 sm:$0xff]   ;;  %v1229_v54 = vld [vmem:[%s1678_s0 + $0xa0] ss:$20 sps:$4 sm:$0xff]   ;;  %v1230_v55 = vld [vmem:[%s1678_s0 + $0xa8] ss:$20 sps:$4 sm:$0xff]  }
  0x13   :  { %v1225_v52 = vld [vmem:[%s1678_s0 + $0xa4] ss:$20 sps:$4 sm:$0xff]   ;;  %v1227_v53 = vld [vmem:[%s1678_s0 + $0xac] ss:$20 sps:$4 sm:$0xff]   ;;  %v1234_v57 = vld [vmem:[%s1678_s0 + $0xd4] ss:$20 sps:$4 sm:$0xff]  }
  0x14   :  { %1004 = vmatpush3.bf16.msra.mxu0 %v1185_v18  ;;  %v1232_v56 = vld [vmem:[%s1678_s0 + $0xcc] ss:$20 sps:$4 sm:$0xff]   ;;  %v1236_v58 = vld [vmem:[%s1678_s0 + $0xc8] ss:$20 sps:$4 sm:$0xff]   ;;  %v1237_v59 = vld [vmem:[%s1678_s0 + $0xd0] ss:$20 sps:$4 sm:$0xff]  }
  0x15   :  { %1068 = vmatpush3.bf16.msra.mxu1 %v1186_v19  ;;  %1005 = vmatprep.subr.bf16.mxu0 %v1187_v20  ;;  %v1238_v60 = vld [vmem:[%s1678_s0 + $0xf4] ss:$20 sps:$4 sm:$0xff]   ;;  %v1240_v61 = vld [vmem:[%s1678_s0 + $0xfc] ss:$20 sps:$4 sm:$0xff]   ;;  %v1243_v63 = vld [vmem:[%s1678_s0 + $0xf8] ss:$20 sps:$4 sm:$0xff]  }
  0x16   :  { %1069 = vmatprep.subr.bf16.mxu1 %v1188_v21  ;;  %v1242_v62 = vld [vmem:[%s1678_s0 + $0xf0] ss:$20 sps:$4 sm:$0xff]   ;;  %v1249_v2 = vld [vmem:[%s1678_s0 + $0x118] ss:$20 sps:$4 sm:$0xff]   ;;  %v1250_v3 = vld [vmem:[%s1678_s0 + $0x120] ss:$20 sps:$4 sm:$0xff]  }
  0x17   :  { %v1245_v0 = vld [vmem:[%s1678_s0 + $0x11c] ss:$20 sps:$4 sm:$0xff]   ;;  %v1247_v1 = vld [vmem:[%s1678_s0 + $0x124] ss:$20 sps:$4 sm:$0xff]   ;;  %v1255_v8 = vld [vmem:[%s1678_s0 + $0x60] ss:$20 sps:$4 sm:$0xff]  }
  0x18   :  { %1006 = vmatpush3.bf16.msra.mxu0 %v1189_v22  ;;  %v1251_v4 = vld [vmem:[%s1678_s0 + $0x10] ss:$20 sps:$4 sm:$0xff]   ;;  %v1253_v6 = vld [vmem:[%s1678_s0 + $0x38] ss:$20 sps:$4 sm:$0xff]   ;;  %v1256_v9 = vld [vmem:[%s1678_s0 + $0x100] ss:$20 sps:$4 sm:$0xff]  }
  0x19   :  { %1070 = vmatpush3.bf16.msra.mxu1 %v1190_v23  ;;  %1007 = vmatprep.subr.bf16.mxu0 %v1191_v24  ;;  %v1252_v5 = vld [vmem:[%s1678_s0 + $0xb0] ss:$20 sps:$4 sm:$0xff]   ;;  %v1254_v7 = vld [vmem:[%s1678_s0 + $0xd8] ss:$20 sps:$4 sm:$0xff]   ;;  %v1257_v10 = vld [vmem:[%s1678_s0 + $0x88] ss:$20 sps:$4 sm:$0xff]  }
  0x1a   :  { %1071 = vmatprep.subr.bf16.mxu1 %v1192_v25  ;;  %v1258_v11 = vld [vmem:[%s1678_s0 + $0x128] ss:$20 sps:$4 sm:$0xff]  }
  0x1c   :  { %1008 = vmatpush3.bf16.msra.mxu0 %v1193_v26 }
  0x1d   :  { %1072 = vmatpush3.bf16.msra.mxu1 %v1194_v27  ;;  %1009 = vmatprep.subr.bf16.mxu0 %v1195_v28 }
  0x1e   :  { %1073 = vmatprep.subr.bf16.mxu1 %v1196_v29 }
  0x20   :  { %1010 = vmatpush3.bf16.msra.mxu0 %v1197_v30 }
  0x21   :  { %1074 = vmatpush3.bf16.msra.mxu1 %v1198_v31  ;;  %1135 = vmatprep.subr.bf16.mxu0 %v1205_v36 }
  0x22   :  { %1159 = vmatprep.subr.bf16.mxu1 %v1205_v36 }
  0x23   :  { %616 = vmatmul.mubr.bf16.vlgmr.msra.gmra.mxu0 %v1199_v32 }
  0x24   :  { %713 = vmatmul.mubr.bf16.vlgmr.msra.gmra.mxu1 %v1202_v34  ;;  %1136 = vmatpush3.bf16.msra.mxu0 %v1205_v36 }
  0x25   :  { %1163 = vmatpush3.bf16.msra.mxu1 %v1205_v36  ;;  %623 = vmatprep.mubr.bf16.mxu0 %v1206_v37 }
  0x26   :  { %720 = vmatprep.mubr.bf16.mxu1 %v1208_v38  ;;  %1137 = vmatprep.subr.bf16.mxu0 %v1218_v42 }
  0x27   :  { %1160 = vmatprep.subr.bf16.mxu1 %v1218_v42 }
  0x28   :  { %1138 = vmatpush3.bf16.msra.mxu0 %v1218_v42 }
  0x29   :  { %1164 = vmatpush3.bf16.msra.mxu1 %v1218_v42  ;;  %1139 = vmatprep.subr.bf16.mxu0 %v1231_v46 }
  0x2a   :  { %1161 = vmatprep.subr.bf16.mxu1 %v1231_v46 }
  0x2b   :  { %624 = vmatmul.mubr.bf16.gmra.mxu0 %v1210_v39 }
  0x2c   :  { %721 = vmatmul.mubr.bf16.gmra.mxu1 %v1211_v40  ;;  %631 = vmatprep.mubr.bf16.mxu0 %v1212_v41 }
  0x2d   :  { %728 = vmatprep.mubr.bf16.mxu1 %v1214_v43  ;;  %1140 = vmatpush3.bf16.msra.mxu0 %v1231_v46 }
  0x2e   :  { %1165 = vmatpush3.bf16.msra.mxu1 %v1231_v46  ;;  %1141 = vmatprep.subr.bf16.mxu0 %v1244_v49 }
  0x2f   :  { %1162 = vmatprep.subr.bf16.mxu1 %v1244_v49 }
  0x31   :  { %1142 = vmatpush3.bf16.msra.mxu0 %v1244_v49 }
  0x32   :  { %1166 = vmatpush3.bf16.msra.mxu1 %v1244_v49 }
  0x33   :  { %632 = vmatmul.mubr.bf16.gmra.mxu0 %v1216_v44 }
  0x34   :  { %729 = vmatmul.mubr.bf16.gmra.mxu1 %v1217_v45  ;;  %639 = vmatprep.mubr.bf16.mxu0 %v1219_v47 }
  0x35   :  { %736 = vmatprep.mubr.bf16.mxu1 %v1221_v48 }
  0x3b   :  { %640 = vmatmul.mubr.bf16.gmra.mxu0 %v1223_v50 }
  0x3c   :  { %737 = vmatmul.mubr.bf16.gmra.mxu1 %v1224_v51  ;;  %647 = vmatprep.mubr.bf16.mxu0 %v1225_v52 }
  0x3d   :  { %744 = vmatprep.mubr.bf16.mxu1 %v1227_v53 }
  0x43   :  { %648 = vmatmul.mubr.bf16.gmra.mxu0 %v1229_v54 }
  0x44   :  { %745 = vmatmul.mubr.bf16.gmra.mxu1 %v1230_v55  ;;  %655 = vmatprep.mubr.bf16.mxu0 %v1232_v56 }
  0x45   :  { %752 = vmatprep.mubr.bf16.mxu1 %v1234_v57 }
  0x4b   :  { %656 = vmatmul.mubr.bf16.gmra.mxu0 %v1236_v58 }
  0x4c   :  { %753 = vmatmul.mubr.bf16.gmra.mxu1 %v1237_v59  ;;  %663 = vmatprep.mubr.bf16.mxu0 %v1238_v60 }
  0x4d   :  { %760 = vmatprep.mubr.bf16.mxu1 %v1240_v61 }
  0x53   :  { %664 = vmatmul.mubr.bf16.gmra.mxu0 %v1242_v62 }
  0x54   :  { %761 = vmatmul.mubr.bf16.gmra.mxu1 %v1243_v63  ;;  %671 = vmatprep.mubr.bf16.mxu0 %v1245_v0 }
  0x55   :  { %768 = vmatprep.mubr.bf16.mxu1 %v1247_v1 }
  0x5b   :  { %672 = vmatmul.mubr.bf16.gmra.mxu0 %v1249_v2  ;;  %v1566_v2 = vld [vmem:[%s1679_s2] ss:$0 sm:$0xff] }
  0x5c   :  { %769 = vmatmul.mubr.bf16.gmra.mxu1 %v1250_v3  ;;  %1143 = vmatprep.mubr.msk.bf16.mxu0 %vm558_vm0, %v1251_v4 }
  0x5d   :  { %1151 = vmatprep.mubr.msk.bf16.mxu1 %vm558_vm0, %v1252_v5 }
  0x63   :  { %1144 = vmatmul.mubr.msk.bf16.vlgmr.msra.gmra.mxu0 %vm558_vm0, %v1253_v6 }
  0x64   :  { %1152 = vmatmul.mubr.msk.bf16.vlgmr.msra.gmra.mxu1 %vm558_vm0, %v1254_v7  ;;  %1147 = vmatprep.mubr.msk.bf16.mxu0 %vm558_vm0, %v1255_v8 }
  0x65   :  { %1155 = vmatprep.mubr.msk.bf16.mxu1 %vm558_vm0, %v1256_v9 }
  0x6b   :  { %1148 = vmatmul.mubr.msk.bf16.gmra.mxu0 %vm558_vm0, %v1257_v10 }
  0x6c   :  { %1156 = vmatmul.mubr.msk.bf16.gmra.mxu1 %vm558_vm0, %v1258_v11 }
  0xe3   :  { %v1011_v12 = vpop.f32.mrf.mxu0 }
  0xe4   :  { %v1515_v13 = vpop.f32.mrf.mxu1 }
  0xe5   :  { %v1012_v14 = vpop.f32.mrf.mxu0 }
  0xe6   :  { %v1517_v15 = vpop.f32.mrf.mxu1  ;;  %v1013_v0 = vadd.f32 %v1012_v14, %v1011_v12 }
  0xe7   :  { %v1014_v16 = vpop.f32.mrf.mxu0  ;;  %v1077_v14 = vadd.f32 %v1517_v15, %v1515_v13 }
  0xe8   :  { %v1519_v17 = vpop.f32.mrf.mxu1  ;;  %v618_v10 = vadd.f32 %v1013_v0, %v1566_v2 }
  0xe9   :  { %v1015_v18 = vpop.f32.mrf.mxu0 }
  0xea   :  { %v1079_v19 = vpop.f32.mrf.mxu1  ;;  %v1016_v3 = vadd.f32 %v1015_v18, %v1014_v16 }
  0xeb   :  { %v1017_v20 = vpop.f32.mrf.mxu0  ;;  %v1080_v16 = vadd.f32 %v1079_v19, %v1519_v17 }
  0xec   :  { %v1521_v21 = vpop.f32.mrf.mxu1 }
  0xed   :  { %v1018_v22 = vpop.f32.mrf.mxu0 }
  0xee   :  { %v1523_v23 = vpop.f32.mrf.mxu1  ;;  %v1019_v5 = vadd.f32 %v1018_v22, %v1017_v20 }
  0xef   :  { %v1020_v24 = vpop.f32.mrf.mxu0  ;;  %v1083_v13 = vadd.f32 %v1523_v23, %v1521_v21 }
  0xf0   :  { %v1525_v25 = vpop.f32.mrf.mxu1  ;;  %v626_v18 = vadd.f32 %v1019_v5, %v1566_v2 }
  0xf1   :  { %v1021_v26 = vpop.f32.mrf.mxu0 }
  0xf2   :  { %v1527_v27 = vpop.f32.mrf.mxu1  ;;  %v1022_v7 = vadd.f32 %v1021_v26, %v1020_v24  ;;  %v723_v23 = vadd.f32 %v1083_v13, %v626_v18 }
  0xf3   :  { %v1023_v28 = vpop.f32.mrf.mxu0  ;;  %v1086_v17 = vadd.f32 %v1527_v27, %v1525_v25 }
  0xf4   :  { %v1529_v29 = vpop.f32.mrf.mxu1  ;;  %v629_v26 = vadd.f32 %v1022_v7, %v1566_v2 }
  0xf5   :  { %v1024_v30 = vpop.f32.mrf.mxu0 }
  0xf6   :  { %v1531_v31 = vpop.f32.mrf.mxu1  ;;  %v1025_v8 = vadd.f32 %v1024_v30, %v1023_v28  ;;  %v726_v27 = vadd.f32 %v1086_v17, %v629_v26 }
  0xf7   :  { %v1026_v32 = vpop.f32.mrf.mxu0  ;;  %v1089_v19 = vadd.f32 %v1531_v31, %v1529_v29 }
  0xf8   :  { %v1533_v33 = vpop.f32.mrf.mxu1  ;;  %v634_v28 = vadd.f32 %v1025_v8, %v1566_v2 }
  0xf9   :  { %1681 = vst [vmem:[#allocation2_spill] sm:$0xff] %v1533_v33  ;;  %v1027_v34 = vpop.f32.mrf.mxu0 }
  0xfa   :  { %v1535_v35 = vpop.f32.mrf.mxu1  ;;  %v1028_v30 = vadd.f32 %v1027_v34, %v1026_v32  ;;  %v1599_v5 = vadd.f32 %v1089_v19, %v634_v28 }
  0xfb   :  { %1682 = vst [vmem:[#allocation3_spill] sm:$0xff] %v1535_v35  ;;  %v1029_v36 = vpop.f32.mrf.mxu0  ;;  %v621_v35 = vadd.f32 %v1016_v3, %v1566_v2  ;;  %v715_v3 = vadd.f32 %v1077_v14, %v618_v10 }
  0xfc   :  { %v1537_v37 = vpop.f32.mrf.mxu1 }
  0xfd   :  { %v1030_v38 = vpop.f32.mrf.mxu0 }
  0xfe   :  { %v1539_v39 = vpop.f32.mrf.mxu1  ;;  %v1031_v20 = vadd.f32 %v1030_v38, %v1029_v36 }
  0xff   :  { %v1541_v40 = vpop.f32.mrf.mxu0  ;;  %v1095_v29 = vadd.f32 %v1539_v39, %v1537_v37 }
 0x100   :  { %v1543_v41 = vpop.f32.mrf.mxu1  ;;  %v642_v32 = vadd.f32 %v1031_v20, %v1566_v2 }
 0x101   :  { %v1545_v42 = vpop.f32.mrf.mxu0 }
 0x102   :  { %v1547_v43 = vpop.f32.mrf.mxu1  ;;  %v739_v20 = vadd.f32 %v1095_v29, %v642_v32 }
 0x103   :  { %v1035_v44 = vpop.f32.mrf.mxu0 }
 0x104   :  { %v1549_v45 = vpop.f32.mrf.mxu1 }
 0x105   :  { %v1036_v46 = vpop.f32.mrf.mxu0 }
 0x106   :  { %v1551_v47 = vpop.f32.mrf.mxu1  ;;  %v1037_v22 = vadd.f32 %v1036_v46, %v1035_v44  ;;  %v718_v44 = vadd.f32 %v1080_v16, %v621_v35 }
 0x107   :  { %v1038_v48 = vpop.f32.mrf.mxu0  ;;  %v1101_v31 = vadd.f32 %v1551_v47, %v1549_v45 }
 0x108   :  { %v1553_v49 = vpop.f32.mrf.mxu1  ;;  %v650_v34 = vadd.f32 %v1037_v22, %v1566_v2 }
 0x109   :  { %v1039_v50 = vpop.f32.mrf.mxu0 }
 0x10a   :  { %v1555_v51 = vpop.f32.mrf.mxu1  ;;  %v1040_v36 = vadd.f32 %v1039_v50, %v1038_v48  ;;  %v747_v18 = vadd.f32 %v1101_v31, %v650_v34 }
 0x10b   :  { %v1041_v52 = vpop.f32.mrf.mxu0  ;;  %v1104_v37 = vadd.f32 %v1555_v51, %v1553_v49 }
 0x10c   :  { %v1105_v53 = vpop.f32.mrf.mxu1 }
 0x10d   :  { %v1042_v54 = vpop.f32.mrf.mxu0 }
 0x10e   :  { %v1106_v55 = vpop.f32.mrf.mxu1  ;;  %v1043_v11 = vadd.f32 %v1042_v54, %v1041_v52 }
 0x10f   :  { %v1044_v56 = vpop.f32.mrf.mxu0  ;;  %v1107_v46 = vadd.f32 %v1106_v55, %v1105_v53  ;;  %v653_v53 = vadd.f32 %v1040_v36, %v1566_v2 }
 0x110   :  { %v1108_v57 = vpop.f32.mrf.mxu1  ;;  %v658_v15 = vadd.f32 %v1043_v11, %v1566_v2  ;;  %v1034_v11 = vadd.f32 %v1545_v42, %v1541_v40 }
 0x111   :  { %v1045_v58 = vpop.f32.mrf.mxu0  ;;  %v750_v49 = vadd.f32 %v1104_v37, %v653_v53 }
 0x112   :  { %v1109_v59 = vpop.f32.mrf.mxu1  ;;  %v1046_v52 = vadd.f32 %v1045_v58, %v1044_v56  ;;  %v1596_v56 = vadd.f32 %v1028_v30, %v1566_v2  ;;  %v755_v50 = vadd.f32 %v1107_v46, %v658_v15  ;;  %v645_v15 = vadd.f32 %v1034_v11, %v1566_v2 }
 0x113   :  { %v1047_v60 = vpop.f32.mrf.mxu0  ;;  %v1110_v55 = vadd.f32 %v1109_v59, %v1108_v57 }
 0x114   :  { %v1557_v61 = vpop.f32.mrf.mxu1  ;;  %v661_v58 = vadd.f32 %v1046_v52, %v1566_v2 }
 0x115   :  { %v1048_v62 = vpop.f32.mrf.mxu0 }
 0x116   :  { %v1559_v63 = vpop.f32.mrf.mxu1  ;;  %v1049_v7 = vadd.f32 %v1048_v62, %v1047_v60 }
 0x117   :  { %v1561_v1 = vpop.f32.mrf.mxu0 }
 0x118   :  { %v1568_v4 = vpop.f32.mrf.mxu1 }
 0x119   :  { %v1570_v6 = vpop.f32.mrf.mxu0 }
 0x11a   :  { %v1572_v9 = vpop.f32.mrf.mxu1  ;;  %v1052_v51 = vadd.f32 %v1570_v6, %v1561_v1 }
 0x11b   :  { %v1053_v12 = vpop.f32.mrf.mxu0 }
 0x11c   :  { %v1578_v33 = vpop.f32.mrf.mxu1  ;;  %v669_v46 = vadd.f32 %v1052_v51, %v1566_v2 }
 0x11d   :  { %v1054_v24 = vpop.f32.mrf.mxu0 }
 0x11e   :  { %v1118_v54 = vpop.f32.mrf.mxu1  ;;  %v1055_v35 = vadd.f32 %v1054_v24, %v1053_v12  ;;  %v758_v12 = vadd.f32 %v1110_v55, %v661_v58  ;;  %v666_v24 = vadd.f32 %v1049_v7, %v1566_v2 }
 0x11f   :  { %v1056_v0 = vpop.f32.mrf.mxu0  ;;  %v1119_v28 = vadd.f32 %v1118_v54, %v1578_v33 }
 0x120   :  { %v1591_v38 = vpop.f32.mrf.mxu1  ;;  %v674_v22 = vadd.f32 %v1055_v35, %v1566_v2 }
 0x121   :  { %v1057_v21 = vpop.f32.mrf.mxu0 }
 0x122   :  { %v1121_v25 = vpop.f32.mrf.mxu1  ;;  %v1058_v57 = vadd.f32 %v1057_v21, %v1056_v0  ;;  %v1113_v0 = vadd.f32 %v1559_v63, %v1557_v61  ;;  %v771_v36 = vadd.f32 %v1119_v28, %v674_v22  ;;  %v1098_v61 = vadd.f32 %v1547_v43, %v1543_v41  ;;  %v1683_v41 = vld [vmem:[#allocation2_spill] sm:$0xff]  ;;  %v1684_v43 = vld [vmem:[#allocation3_spill] sm:$0xff] }
 0x123   :  { %v1145_v48 = vpop.f32.mrf.mxu0  ;;  %v1122_v21 = vadd.f32 %v1121_v25, %v1591_v38  ;;  %v1092_v29 = vadd.f32 %v1684_v43, %v1683_v41  ;;  %v1116_v38 = vadd.f32 %v1572_v9, %v1568_v4 }
 0x124   :  { %v820_v8 = vadd.f32 %v1145_v48, %v723_v23  ;;  %v1153_v10 = vpop.f32.mrf.mxu1  ;;  %v677_v33 = vadd.f32 %v1058_v57, %v1566_v2  ;;  %v763_v34 = vadd.f32 %v1113_v0, %v666_v24  ;;  %v742_v48 = vadd.f32 %v1098_v61, %v645_v15 }
 0x125   :  { %v852_v14 = vadd.f32 %v1153_v10, %v755_v50  ;;  %v811_v16 = vpop.f32.mrf.mxu0  ;;  %v734_v10 = vadd.f32 %v1092_v29, %v1596_v56 }
 0x126   :  { %v876_v39 = vmax.f32 %v820_v8, 0.0  ;;  %v812_v45 = vadd.f32 %v811_v16, %v715_v3  ;;  %v843_v47 = vpop.f32.mrf.mxu1  ;;  %v774_v55 = vadd.f32 %v1122_v21, %v677_v33 }
 0x127   :  { %v884_v59 = vmax.f32 %v852_v14, 0.0  ;;  %v844_v60 = vadd.f32 %v843_v47, %v747_v18  ;;  %v1146_v62 = vpop.f32.mrf.mxu0  ;;  %v766_v14 = vadd.f32 %v1116_v38, %v669_v46 }
 0x128   :  { %892 = vst [vmem:[%s1680_s3 + $0x10] sm:$0xff] %v876_v39  ;;  %v874_v40 = vmax.f32 %v812_v45, 0.0  ;;  %v823_v42 = vadd.f32 %v1146_v62, %v726_v27  ;;  %v1154_v26 = vpop.f32.mrf.mxu1 }
 0x129   :  { %900 = vst [vmem:[%s1680_s3 + $0x50] sm:$0xff] %v884_v59  ;;  %v882_v30 = vmax.f32 %v844_v60, 0.0  ;;  %v855_v52 = vadd.f32 %v1154_v26, %v758_v12  ;;  %v814_v13 = vpop.f32.mrf.mxu0 }
 0x12a   :  { %890 = vst [vmem:[%s1680_s3] sm:$0xff] %v874_v40  ;;  %v877_v3 = vmax.f32 %v823_v42, 0.0  ;;  %v815_v1 = vadd.f32 %v814_v13, %v718_v44  ;;  %v846_v6 = vpop.f32.mrf.mxu1 }
 0x12b   :  { %898 = vst [vmem:[%s1680_s3 + $0x40] sm:$0xff] %v882_v30  ;;  %v885_v54 = vmax.f32 %v855_v52, 0.0  ;;  %v847_v17 = vadd.f32 %v846_v6, %v750_v49  ;;  %v1149_v19 = vpop.f32.mrf.mxu0 }
 0x12c   :  { %893 = vst [vmem:[%s1680_s3 + $0x18] sm:$0xff] %v877_v3  ;;  %v875_v63 = vmax.f32 %v815_v1, 0.0  ;;  %v836_v44 = vadd.f32 %v1149_v19, %v739_v20  ;;  %v1157_v32 = vpop.f32.mrf.mxu1 }
 0x12d   :  { %901 = vst [vmem:[%s1680_s3 + $0x58] sm:$0xff] %v885_v54  ;;  %v883_v23 = vmax.f32 %v847_v17, 0.0  ;;  %v868_v58 = vadd.f32 %v1157_v32, %v771_v36  ;;  %v827_v27 = vpop.f32.mrf.mxu0 }
 0x12e   :  { %891 = vst [vmem:[%s1680_s3 + $0x8] sm:$0xff] %v875_v63  ;;  %v880_v31 = vmax.f32 %v836_v44, 0.0  ;;  %v828_v35 = vadd.f32 %v827_v27, %v1599_v5  ;;  %v859_v2 = vpop.f32.mrf.mxu1 }
 0x12f   :  { %899 = vst [vmem:[%s1680_s3 + $0x48] sm:$0xff] %v883_v23  ;;  %v888_v25 = vmax.f32 %v868_v58, 0.0  ;;  %v860_v50 = vadd.f32 %v859_v2, %v763_v34  ;;  %v1150_v53 = vpop.f32.mrf.mxu0 }
 0x130   :  { %896 = vst [vmem:[%s1680_s3 + $0x30] sm:$0xff] %v880_v31  ;;  %v878_v7 = vmax.f32 %v828_v35, 0.0  ;;  %v839_v8 = vadd.f32 %v1150_v53, %v742_v48  ;;  %v1158_v5 = vpop.f32.mrf.mxu1 }
 0x131   :  { %904 = vst [vmem:[%s1680_s3 + $0x70] sm:$0xff] %v888_v25  ;;  %v886_v4 = vmax.f32 %v860_v50, 0.0  ;;  %v871_v9 = vadd.f32 %v1158_v5, %v774_v55  ;;  %v830_v11 = vpop.f32.mrf.mxu0 }
 0x132   :  { %894 = vst [vmem:[%s1680_s3 + $0x20] sm:$0xff] %v878_v7  ;;  %v881_v16 = vmax.f32 %v839_v8, 0.0  ;;  %v831_v18 = vadd.f32 %v830_v11, %v734_v10  ;;  %v862_v20 = vpop.f32.mrf.mxu1 }
 0x133   :  { %902 = vst [vmem:[%s1680_s3 + $0x60] sm:$0xff] %v886_v4  ;;  %v889_v56 = vmax.f32 %v871_v9, 0.0  ;;  %v863_v37 = vadd.f32 %v862_v20, %v766_v14 }
 0x134   :  { %897 = vst [vmem:[%s1680_s3 + $0x38] sm:$0xff] %v881_v16  ;;  %v879_v39 = vmax.f32 %v831_v18, 0.0 }
 0x135   :  { %905 = vst [vmem:[%s1680_s3 + $0x78] sm:$0xff] %v889_v56  ;;  %v887_v45 = vmax.f32 %v863_v37, 0.0 }
 0x136   :  { %895 = vst [vmem:[%s1680_s3 + $0x28] sm:$0xff] %v879_v39 }
 0x137   :  { %903 = vst [vmem:[%s1680_s3 + $0x68] sm:$0xff] %v887_v45 }

// kernel: conv_autoencoder_forward.11
= control target key start
LH: loop header
LB: loop body
LE: loop exit
PB: predicated region body
PF: predicated region fallthrough
CT: control target
= control target key end

     0   :  { %vm372_vm0 = vcmask 523264   ;;  %s884_s1 = inlined_call_operand.vmem [shape: bf16[576,128], index: 1, kind: input, shape index: {}]   ;;  %s885_s0 = inlined_call_operand.vmem [shape: bf16[32,576], index: 0, kind: input, shape index: {}]   ;;  %s886_s2 = inlined_call_operand.vmem [shape: f32[1,128], index: 2, kind: input, shape index: {}]   ;;  %s887_s3 = inlined_call_operand.vmem [shape: f32[32,128], index: 3, kind: output, shape index: {}]  }
   0x1   :  { %v661_v0 = vld [vmem:[%s884_s1 + $0x78] sm:$0xff]   ;;  %v665_v4 = vld [vmem:[%s884_s1 + $0x70] sm:$0xff]   ;;  %v669_v8 = vld [vmem:[%s884_s1 + $0x68] sm:$0xff]  }
   0x2   :  { %v662_v1 = vld [vmem:[%s884_s1 + $0xf8] sm:$0xff]   ;;  %587 = vmatprep.subr.bf16.mxu0 %v661_v0  ;;  %v666_v5 = vld [vmem:[%s884_s1 + $0xf0] sm:$0xff]   ;;  %v670_v9 = vld [vmem:[%s884_s1 + $0xe8] sm:$0xff]  }
   0x3   :  { %v663_v2 = vld [vmem:[%s884_s1 + $0x38] sm:$0xff]   ;;  %615 = vmatprep.subr.bf16.mxu1 %v662_v1  ;;  %v667_v6 = vld [vmem:[%s884_s1 + $0x30] sm:$0xff]   ;;  %v671_v10 = vld [vmem:[%s884_s1 + $0x28] sm:$0xff]  }
   0x4   :  { %v664_v3 = vld [vmem:[%s884_s1 + $0xb8] sm:$0xff]   ;;  %588 = vmatpush3.bf16.msra.mxu0 %v663_v2  ;;  %v668_v7 = vld [vmem:[%s884_s1 + $0xb0] sm:$0xff]   ;;  %v672_v11 = vld [vmem:[%s884_s1 + $0xa8] sm:$0xff]  }
   0x5   :  { %616 = vmatpush3.bf16.msra.mxu1 %v664_v3  ;;  %589 = vmatprep.subr.bf16.mxu0 %v665_v4  ;;  %v673_v12 = vld [vmem:[%s884_s1 + $0x60] sm:$0xff]   ;;  %v677_v16 = vld [vmem:[%s884_s1 + $0x58] sm:$0xff]   ;;  %v681_v20 = vld [vmem:[%s884_s1 + $0x50] sm:$0xff]  }
   0x6   :  { %617 = vmatprep.subr.bf16.mxu1 %v666_v5  ;;  %v674_v13 = vld [vmem:[%s884_s1 + $0xe0] sm:$0xff]   ;;  %v678_v17 = vld [vmem:[%s884_s1 + $0xd8] sm:$0xff]   ;;  %v682_v21 = vld [vmem:[%s884_s1 + $0xd0] sm:$0xff]  }
   0x7   :  { %v675_v14 = vld [vmem:[%s884_s1 + $0x20] sm:$0xff]   ;;  %v679_v18 = vld [vmem:[%s884_s1 + $0x18] sm:$0xff]   ;;  %v683_v22 = vld [vmem:[%s884_s1 + $0x10] sm:$0xff]  }
   0x8   :  { %590 = vmatpush3.bf16.msra.mxu0 %v667_v6  ;;  %v676_v15 = vld [vmem:[%s884_s1 + $0xa0] sm:$0xff]   ;;  %v680_v19 = vld [vmem:[%s884_s1 + $0x98] sm:$0xff]   ;;  %v684_v23 = vld [vmem:[%s884_s1 + $0x90] sm:$0xff]  }
   0x9   :  { %618 = vmatpush3.bf16.msra.mxu1 %v668_v7  ;;  %591 = vmatprep.subr.bf16.mxu0 %v669_v8  ;;  %v685_v24 = vld [vmem:[%s884_s1 + $0x48] sm:$0xff]   ;;  %v689_v28 = vld [vmem:[%s884_s1 + $0x40] sm:$0xff]   ;;  %v699_v36 = vld [vmem:[%s884_s1 + $0x118] sm:$0xff]  }
   0xa   :  { %619 = vmatprep.subr.bf16.mxu1 %v670_v9  ;;  %v686_v25 = vld [vmem:[%s884_s1 + $0xc8] sm:$0xff]   ;;  %v690_v29 = vld [vmem:[%s884_s1 + $0xc0] sm:$0xff]   ;;  %v700_v37 = vld [vmem:[%s884_s1 + $0x110] sm:$0xff]  }
   0xb   :  { %v687_v26 = vld [vmem:[%s884_s1 + $0x8] sm:$0xff]   ;;  %v691_v30 = vld [vmem:[%s884_s1] sm:$0xff]  }
   0xc   :  { %592 = vmatpush3.bf16.msra.mxu0 %v671_v10  ;;  %v688_v27 = vld [vmem:[%s884_s1 + $0x88] sm:$0xff]   ;;  %v692_v31 = vld [vmem:[%s884_s1 + $0x80] sm:$0xff]  }
   0xd   :  { %620 = vmatpush3.bf16.msra.mxu1 %v672_v11  ;;  %593 = vmatprep.subr.bf16.mxu0 %v673_v12  ;;  %v693_v32 = vld [vmem:[%s885_s0] ss:$20 sps:$4 sm:$0xff]   ;;  %v695_v33 = vld [vmem:[%s885_s0 + $0x4] ss:$20 sps:$4 sm:$0xff]   ;;  %v696_v34 = vld [vmem:[%s885_s0 + $0x8] ss:$20 sps:$4 sm:$0xff]  }
   0xe   :  { %621 = vmatprep.subr.bf16.mxu1 %v674_v13  ;;  %v698_v35 = vld [vmem:[%s885_s0 + $0xc] ss:$20 sps:$4 sm:$0xff]   ;;  %411 = vmatprep.mubr.bf16.mxu0 %v695_v33  ;;  %v703_v39 = vld [vmem:[%s885_s0 + $0x34] ss:$20 sps:$4 sm:$0xff]   ;;  %v706_v42 = vld [vmem:[%s885_s0 + $0x30] ss:$20 sps:$4 sm:$0xff]  }
   0xf   :  { %460 = vmatprep.mubr.bf16.mxu1 %v698_v35  ;;  %v701_v38 = vld [vmem:[%s885_s0 + $0x2c] ss:$20 sps:$4 sm:$0xff]   ;;  %v705_v40 = vld [vmem:[%s885_s0 + $0x28] ss:$20 sps:$4 sm:$0xff]   ;;  %v709_v43 = vld [vmem:[%s885_s0 + $0x10] ss:$20 sps:$4 sm:$0xff]  }
  0x10   :  { %594 = vmatpush3.bf16.msra.mxu0 %v675_v14  ;;  %v707_v41 = vld [vmem:[%s884_s1 + $0x108] sm:$0xff]   ;;  %v708_v44 = vld [vmem:[%s884_s1 + $0x100] sm:$0xff]  }
  0x11   :  { %622 = vmatpush3.bf16.msra.mxu1 %v676_v15  ;;  %595 = vmatprep.subr.bf16.mxu0 %v677_v16  ;;  %v710_v45 = vld [vmem:[%s885_s0 + $0x38] ss:$20 sps:$4 sm:$0xff]   ;;  %v538_v58 = vld [vmem:[%s886_s2] ss:$0 sm:$0xff] }
  0x12   :  { %623 = vmatprep.subr.bf16.mxu1 %v678_v17 }
  0x14   :  { %596 = vmatpush3.bf16.msra.mxu0 %v679_v18 }
  0x15   :  { %624 = vmatpush3.bf16.msra.mxu1 %v680_v19  ;;  %597 = vmatprep.subr.bf16.mxu0 %v681_v20 }
  0x16   :  { %625 = vmatprep.subr.bf16.mxu1 %v682_v21 }
  0x18   :  { %598 = vmatpush3.bf16.msra.mxu0 %v683_v22 }
  0x19   :  { %626 = vmatpush3.bf16.msra.mxu1 %v684_v23  ;;  %599 = vmatprep.subr.bf16.mxu0 %v685_v24 }
  0x1a   :  { %627 = vmatprep.subr.bf16.mxu1 %v686_v25 }
  0x1c   :  { %600 = vmatpush3.bf16.msra.mxu0 %v687_v26 }
  0x1d   :  { %628 = vmatpush3.bf16.msra.mxu1 %v688_v27  ;;  %601 = vmatprep.subr.bf16.mxu0 %v689_v28 }
  0x1e   :  { %629 = vmatprep.subr.bf16.mxu1 %v690_v29 }
  0x20   :  { %602 = vmatpush3.bf16.msra.mxu0 %v691_v30 }
  0x21   :  { %630 = vmatpush3.bf16.msra.mxu1 %v692_v31  ;;  %649 = vmatprep.subr.bf16.mxu0 %v699_v36 }
  0x23   :  { %412 = vmatmul.mubr.bf16.vlgmr.msra.gmra.mxu0 %v693_v32 }
  0x24   :  { %461 = vmatmul.mubr.bf16.vlgmr.msra.gmra.mxu1 %v696_v34  ;;  %650 = vmatpush3.bf16.msra.mxu0 %v699_v36 }
  0x25   :  { %651 = vmatprep.subr.bf16.mxu0 %v700_v37  ;;  %419 = vmatprep.mubr.bf16.mxu0 %v701_v38 }
  0x26   :  { %468 = vmatprep.mubr.bf16.mxu1 %v703_v39 }
  0x28   :  { %652 = vmatpush3.bf16.msra.mxu0 %v700_v37 }
  0x29   :  { %653 = vmatprep.subr.bf16.mxu0 %v707_v41 }
  0x2b   :  { %420 = vmatmul.mubr.bf16.gmra.mxu0 %v705_v40 }
  0x2c   :  { %469 = vmatmul.mubr.bf16.gmra.mxu1 %v706_v42  ;;  %657 = vmatprep.mubr.msk.bf16.mxu0 %vm372_vm0, %v709_v43 }
  0x2d   :  { %654 = vmatpush3.bf16.msra.mxu0 %v707_v41 }
  0x2e   :  { %655 = vmatprep.subr.bf16.mxu0 %v708_v44 }
  0x31   :  { %656 = vmatpush3.bf16.msra.mxu0 %v708_v44 }
  0x34   :  { %658 = vmatmul.mubr.msk.bf16.vlgmr.msra.gmra.mxu0 %vm372_vm0, %v710_v45 }
  0xe3   :  { %v603_v46 = vpop.f32.mrf.mxu0 }
  0xe4   :  { %v631_v47 = vpop.f32.mrf.mxu1 }
  0xe5   :  { %v604_v48 = vpop.f32.mrf.mxu0 }
  0xe6   :  { %v632_v49 = vpop.f32.mrf.mxu1  ;;  %v605_v56 = vadd.f32 %v604_v48, %v603_v46 }
  0xe7   :  { %v606_v50 = vpop.f32.mrf.mxu0  ;;  %v633_v2 = vadd.f32 %v632_v49, %v631_v47 }
  0xe8   :  { %v634_v51 = vpop.f32.mrf.mxu1  ;;  %v414_v1 = vadd.f32 %v605_v56, %v538_v58 }
  0xe9   :  { %v607_v52 = vpop.f32.mrf.mxu0 }
  0xea   :  { %v635_v53 = vpop.f32.mrf.mxu1  ;;  %v608_v3 = vadd.f32 %v607_v52, %v606_v50  ;;  %v463_v13 = vadd.f32 %v633_v2, %v414_v1 }
  0xeb   :  { %v609_v54 = vpop.f32.mrf.mxu0  ;;  %v636_v16 = vadd.f32 %v635_v53, %v634_v51 }
  0xec   :  { %v637_v55 = vpop.f32.mrf.mxu1  ;;  %v417_v11 = vadd.f32 %v608_v3, %v538_v58 }
  0xed   :  { %v610_v57 = vpop.f32.mrf.mxu0 }
  0xee   :  { %v611_v59 = vadd.f32 %v610_v57, %v609_v54  ;;  %v638_v60 = vpop.f32.mrf.mxu1  ;;  %v466_v22 = vadd.f32 %v636_v16, %v417_v11 }
  0xef   :  { %v639_v61 = vadd.f32 %v638_v60, %v637_v55  ;;  %v612_v62 = vpop.f32.mrf.mxu0 }
  0xf0   :  { %v422_v63 = vadd.f32 %v611_v59, %v538_v58  ;;  %v640_v0 = vpop.f32.mrf.mxu1 }
  0xf1   :  { %v613_v4 = vpop.f32.mrf.mxu0 }
  0xf2   :  { %v614_v5 = vadd.f32 %v613_v4, %v612_v62  ;;  %v641_v6 = vpop.f32.mrf.mxu1  ;;  %v471_v7 = vadd.f32 %v639_v61, %v422_v63 }
  0xf3   :  { %v642_v9 = vadd.f32 %v641_v6, %v640_v0 }
  0xf4   :  { %v425_v8 = vadd.f32 %v614_v5, %v538_v58  ;;  %v659_v10 = vpop.f32.mrf.mxu0 }
  0xf5   :  { %v520_v12 = vadd.f32 %v659_v10, %v471_v7 }
  0xf6   :  { %v511_v14 = vpop.f32.mrf.mxu0  ;;  %v474_v15 = vadd.f32 %v642_v9, %v425_v8 }
  0xf7   :  { %v528_v17 = vmax.f32 %v520_v12, 0.0  ;;  %v512_v18 = vadd.f32 %v511_v14, %v463_v13 }
  0xf8   :  { %v660_v19 = vpop.f32.mrf.mxu0 }
  0xf9   :  { %532 = vst [vmem:[%s887_s3 + $0x10] sm:$0xff] %v528_v17  ;;  %v526_v20 = vmax.f32 %v512_v18, 0.0  ;;  %v523_v21 = vadd.f32 %v660_v19, %v474_v15 }
  0xfa   :  { %v514_v23 = vpop.f32.mrf.mxu0 }
  0xfb   :  { %530 = vst [vmem:[%s887_s3] sm:$0xff] %v526_v20  ;;  %v529_v24 = vmax.f32 %v523_v21, 0.0  ;;  %v515_v25 = vadd.f32 %v514_v23, %v466_v22 }
  0xfd   :  { %533 = vst [vmem:[%s887_s3 + $0x18] sm:$0xff] %v529_v24  ;;  %v527_v26 = vmax.f32 %v515_v25, 0.0 }
  0xff   :  { %531 = vst [vmem:[%s887_s3 + $0x8] sm:$0xff] %v527_v26 }

// kernel: conv_autoencoder_forward.12
= control target key start
LH: loop header
LB: loop body
LE: loop exit
PB: predicated region body
PF: predicated region fallthrough
CT: control target
= control target key end

     0   :  { %s2009_s1 = inlined_call_operand.vmem [shape: bf16[1152,256], index: 1, kind: input, shape index: {}]   ;;  %s2010_s0 = inlined_call_operand.vmem [shape: bf16[8,1152], index: 0, kind: input, shape index: {}]   ;;  %s2011_s2 = inlined_call_operand.vmem [shape: f32[1,256], index: 2, kind: input, shape index: {}]   ;;  %s2012_s3 = inlined_call_operand.vmem [shape: f32[8,256], index: 3, kind: output, shape index: {}]  }
   0x1   :  { %v1295_v0 = vld [vmem:[%s2009_s1 + $0x74] ss:$8 sps:$4 sm:$0xff]   ;;  %v1297_v1 = vld [vmem:[%s2009_s1 + $0x70] ss:$8 sps:$4 sm:$0xff]   ;;  %v1301_v4 = vld [vmem:[%s2009_s1 + $0x64] ss:$8 sps:$4 sm:$0xff]  }
   0x2   :  { %928 = vmatprep.subr.bf16.mxu0 %v1295_v0  ;;  %v1298_v2 = vld [vmem:[%s2009_s1 + $0x174] ss:$8 sps:$4 sm:$0xff]   ;;  %v1300_v3 = vld [vmem:[%s2009_s1 + $0x170] ss:$8 sps:$4 sm:$0xff]   ;;  %v1303_v5 = vld [vmem:[%s2009_s1 + $0x60] ss:$8 sps:$4 sm:$0xff]  }
   0x3   :  { %929 = vmatpush1.bf16.msra.mxu0 %v1297_v1  ;;  %969 = vmatprep.subr.bf16.mxu1 %v1298_v2  ;;  %v1304_v6 = vld [vmem:[%s2009_s1 + $0x164] ss:$8 sps:$4 sm:$0xff]   ;;  %v1306_v7 = vld [vmem:[%s2009_s1 + $0x160] ss:$8 sps:$4 sm:$0xff]   ;;  %v1307_v8 = vld [vmem:[%s2009_s1 + $0x54] ss:$8 sps:$4 sm:$0xff]  }
   0x4   :  { %970 = vmatpush1.bf16.msra.mxu1 %v1300_v3  ;;  %930 = vmatprep.subr.bf16.mxu0 %v1301_v4  ;;  %v1309_v9 = vld [vmem:[%s2009_s1 + $0x50] ss:$8 sps:$4 sm:$0xff]   ;;  %v1310_v10 = vld [vmem:[%s2009_s1 + $0x154] ss:$8 sps:$4 sm:$0xff]   ;;  %v1313_v11 = vld [vmem:[%s2009_s1 + $0x44] ss:$8 sps:$4 sm:$0xff]  }
   0x5   :  { %971 = vmatprep.subr.bf16.mxu1 %v1304_v6  ;;  %v1312_v12 = vld [vmem:[%s2009_s1 + $0x150] ss:$8 sps:$4 sm:$0xff]   ;;  %v1316_v13 = vld [vmem:[%s2009_s1 + $0x144] ss:$8 sps:$4 sm:$0xff]   ;;  %v1315_v14 = vld [vmem:[%s2009_s1 + $0x40] ss:$8 sps:$4 sm:$0xff]  }
   0x6   :  { %v1319_v15 = vld [vmem:[%s2009_s1 + $0x34] ss:$8 sps:$4 sm:$0xff]   ;;  %v1318_v16 = vld [vmem:[%s2009_s1 + $0x140] ss:$8 sps:$4 sm:$0xff]   ;;  %v1321_v18 = vld [vmem:[%s2009_s1 + $0x30] ss:$8 sps:$4 sm:$0xff]  }
   0x7   :  { %931 = vmatpush1.bf16.msra.mxu0 %v1303_v5  ;;  %v1322_v17 = vld [vmem:[%s2009_s1 + $0x134] ss:$8 sps:$4 sm:$0xff]   ;;  %v1325_v19 = vld [vmem:[%s2009_s1 + $0x24] ss:$8 sps:$4 sm:$0xff]   ;;  %v1324_v20 = vld [vmem:[%s2009_s1 + $0x130] ss:$8 sps:$4 sm:$0xff]  }
   0x8   :  { %932 = vmatprep.subr.bf16.mxu0 %v1307_v8  ;;  %972 = vmatpush1.bf16.msra.mxu1 %v1306_v7  ;;  %v1328_v21 = vld [vmem:[%s2009_s1 + $0x124] ss:$8 sps:$4 sm:$0xff]   ;;  %v1327_v22 = vld [vmem:[%s2009_s1 + $0x20] ss:$8 sps:$4 sm:$0xff]   ;;  %v1331_v23 = vld [vmem:[%s2009_s1 + $0x14] ss:$8 sps:$4 sm:$0xff]  }
   0x9   :  { %973 = vmatprep.subr.bf16.mxu1 %v1310_v10  ;;  %v1330_v24 = vld [vmem:[%s2009_s1 + $0x120] ss:$8 sps:$4 sm:$0xff]   ;;  %v1334_v25 = vld [vmem:[%s2009_s1 + $0x114] ss:$8 sps:$4 sm:$0xff]   ;;  %v1333_v26 = vld [vmem:[%s2009_s1 + $0x10] ss:$8 sps:$4 sm:$0xff]  }
   0xa   :  { %v1337_v27 = vld [vmem:[%s2009_s1 + $0x4] ss:$8 sps:$4 sm:$0xff]   ;;  %v1336_v28 = vld [vmem:[%s2009_s1 + $0x110] ss:$8 sps:$4 sm:$0xff]   ;;  %v1339_v30 = vld [vmem:[%s2009_s1] ss:$8 sps:$4 sm:$0xff]  }
   0xb   :  { %933 = vmatpush1.bf16.msra.mxu0 %v1309_v9  ;;  %v1340_v29 = vld [vmem:[%s2009_s1 + $0x104] ss:$8 sps:$4 sm:$0xff]   ;;  %v1343_v31 = vld [vmem:[%s2009_s1 + $0xf4] ss:$8 sps:$4 sm:$0xff]   ;;  %v1342_v32 = vld [vmem:[%s2009_s1 + $0x100] ss:$8 sps:$4 sm:$0xff]  }
   0xc   :  { %934 = vmatprep.subr.bf16.mxu0 %v1313_v11  ;;  %974 = vmatpush1.bf16.msra.mxu1 %v1312_v12  ;;  %v1346_v33 = vld [vmem:[%s2009_s1 + $0x1f4] ss:$8 sps:$4 sm:$0xff]   ;;  %v1345_v34 = vld [vmem:[%s2009_s1 + $0xf0] ss:$8 sps:$4 sm:$0xff]   ;;  %v1349_v35 = vld [vmem:[%s2009_s1 + $0xe4] ss:$8 sps:$4 sm:$0xff]  }
   0xd   :  { %975 = vmatprep.subr.bf16.mxu1 %v1316_v13  ;;  %v1348_v36 = vld [vmem:[%s2009_s1 + $0x1f0] ss:$8 sps:$4 sm:$0xff]   ;;  %v1352_v37 = vld [vmem:[%s2009_s1 + $0x1e4] ss:$8 sps:$4 sm:$0xff]   ;;  %v1351_v38 = vld [vmem:[%s2009_s1 + $0xe0] ss:$8 sps:$4 sm:$0xff]  }
   0xe   :  { %v1355_v39 = vld [vmem:[%s2009_s1 + $0xd4] ss:$8 sps:$4 sm:$0xff]   ;;  %v1354_v40 = vld [vmem:[%s2009_s1 + $0x1e0] ss:$8 sps:$4 sm:$0xff]   ;;  %v1357_v42 = vld [vmem:[%s2009_s1 + $0xd0] ss:$8 sps:$4 sm:$0xff]  }
   0xf   :  { %935 = vmatpush1.bf16.msra.mxu0 %v1315_v14  ;;  %v1358_v41 = vld [vmem:[%s2009_s1 + $0x1d4] ss:$8 sps:$4 sm:$0xff]   ;;  %v1361_v43 = vld [vmem:[%s2009_s1 + $0xc4] ss:$8 sps:$4 sm:$0xff]   ;;  %v1360_v44 = vld [vmem:[%s2009_s1 + $0x1d0] ss:$8 sps:$4 sm:$0xff]  }
  0x10   :  { %936 = vmatprep.subr.bf16.mxu0 %v1319_v15  ;;  %976 = vmatpush1.bf16.msra.mxu1 %v1318_v16  ;;  %v1364_v45 = vld [vmem:[%s2009_s1 + $0x1c4] ss:$8 sps:$4 sm:$0xff]   ;;  %v1363_v47 = vld [vmem:[%s2009_s1 + $0xc0] ss:$8 sps:$4 sm:$0xff]   ;;  %v1367_v49 = vld [vmem:[%s2009_s1 + $0xb4] ss:$8 sps:$4 sm:$0xff]  }
  0x11   :  { %977 = vmatprep.subr.bf16.mxu1 %v1322_v17  ;;  %v15_v46 = vld [vmem:[%s2010_s0] sm:$0xff]  ;;  %v16_v50 = vld [vmem:[%s2010_s0 + $0x8] sm:$0xff]  ;;  %v1370_v53 = vld [vmem:[%s2009_s1 + $0x1b4] ss:$8 sps:$4 sm:$0xff]  }
  0x12   :  { %v1142_v48 = vcombine.high %v15_v46, %v15_v46  ;;  %v1366_v51 = vld [vmem:[%s2009_s1 + $0x1c0] ss:$8 sps:$4 sm:$0xff]   ;;  %v1144_v52 = vcombine.high %v16_v50, %v16_v50  ;;  %v1369_v54 = vld [vmem:[%s2009_s1 + $0xb0] ss:$8 sps:$4 sm:$0xff]   ;;  %v1373_v55 = vld [vmem:[%s2009_s1 + $0xa4] ss:$8 sps:$4 sm:$0xff]   ;;  %v1141_v5 = vcombine.low %v15_v46, %v15_v46  ;;  %v1143_v8 = vcombine.low %v16_v50, %v16_v50 }
  0x13   :  { %937 = vmatpush1.bf16.msra.mxu0 %v1321_v18  ;;  %v1372_v56 = vld [vmem:[%s2009_s1 + $0x1b0] ss:$8 sps:$4 sm:$0xff]   ;;  %v1376_v57 = vld [vmem:[%s2009_s1 + $0x1a4] ss:$8 sps:$4 sm:$0xff]   ;;  %v1375_v58 = vld [vmem:[%s2009_s1 + $0xa0] ss:$8 sps:$4 sm:$0xff]  }
  0x14   :  { %938 = vmatprep.subr.bf16.mxu0 %v1325_v19  ;;  %978 = vmatpush1.bf16.msra.mxu1 %v1324_v20  ;;  %v1379_v59 = vld [vmem:[%s2009_s1 + $0x94] ss:$8 sps:$4 sm:$0xff]   ;;  %v1378_v60 = vld [vmem:[%s2009_s1 + $0x1a0] ss:$8 sps:$4 sm:$0xff]   ;;  %v1381_v62 = vld [vmem:[%s2009_s1 + $0x90] ss:$8 sps:$4 sm:$0xff]  }
  0x15   :  { %979 = vmatprep.subr.bf16.mxu1 %v1328_v21  ;;  %960 = vmatprep.mubr.bf16.mxu0 %v1142_v48  ;;  %v1382_v61 = vld [vmem:[%s2009_s1 + $0x194] ss:$8 sps:$4 sm:$0xff]   ;;  %v1385_v63 = vld [vmem:[%s2009_s1 + $0x84] ss:$8 sps:$4 sm:$0xff]   ;;  %v1384_v0 = vld [vmem:[%s2009_s1 + $0x190] ss:$8 sps:$4 sm:$0xff]  }
  0x16   :  { %1001 = vmatprep.mubr.bf16.mxu1 %v1144_v52  ;;  %v1388_v1 = vld [vmem:[%s2009_s1 + $0x184] ss:$8 sps:$4 sm:$0xff]   ;;  %v1387_v2 = vld [vmem:[%s2009_s1 + $0x80] ss:$8 sps:$4 sm:$0xff]   ;;  %v1395_v3 = vld [vmem:[%s2009_s1 + $0x274] ss:$8 sps:$4 sm:$0xff]  }
  0x17   :  { %939 = vmatpush1.bf16.msra.mxu0 %v1327_v22  ;;  %v1392_v4 = vld [vmem:[%s2009_s1 + $0x180] ss:$8 sps:$4 sm:$0xff]   ;;  %v1400_v6 = vld [vmem:[%s2009_s1 + $0x374] ss:$8 sps:$4 sm:$0xff]   ;;  %v1393_v7 = vld [vmem:[%s2009_s1 + $0x270] ss:$8 sps:$4 sm:$0xff]  }
  0x18   :  { %940 = vmatprep.subr.bf16.mxu0 %v1331_v23  ;;  %980 = vmatpush1.bf16.msra.mxu1 %v1330_v24  ;;  %v1403_v9 = vld [vmem:[%s2009_s1 + $0x264] ss:$8 sps:$4 sm:$0xff]   ;;  %v1398_v10 = vld [vmem:[%s2009_s1 + $0x370] ss:$8 sps:$4 sm:$0xff]   ;;  %v1401_v12 = vld [vmem:[%s2009_s1 + $0x260] ss:$8 sps:$4 sm:$0xff]  }
  0x19   :  { %981 = vmatprep.subr.bf16.mxu1 %v1334_v25  ;;  %v1406_v11 = vld [vmem:[%s2009_s1 + $0x364] ss:$8 sps:$4 sm:$0xff]   ;;  %v1409_v13 = vld [vmem:[%s2009_s1 + $0x254] ss:$8 sps:$4 sm:$0xff]   ;;  %v1404_v14 = vld [vmem:[%s2009_s1 + $0x360] ss:$8 sps:$4 sm:$0xff]  }
  0x1a   :  { %v1412_v15 = vld [vmem:[%s2009_s1 + $0x354] ss:$8 sps:$4 sm:$0xff]   ;;  %v1407_v16 = vld [vmem:[%s2009_s1 + $0x250] ss:$8 sps:$4 sm:$0xff]   ;;  %v1415_v17 = vld [vmem:[%s2009_s1 + $0x244] ss:$8 sps:$4 sm:$0xff]  }
  0x1b   :  { %941 = vmatpush1.bf16.msra.mxu0 %v1333_v26  ;;  %v1410_v18 = vld [vmem:[%s2009_s1 + $0x350] ss:$8 sps:$4 sm:$0xff]   ;;  %v1418_v19 = vld [vmem:[%s2009_s1 + $0x344] ss:$8 sps:$4 sm:$0xff]   ;;  %v1413_v20 = vld [vmem:[%s2009_s1 + $0x240] ss:$8 sps:$4 sm:$0xff]  }
  0x1c   :  { %942 = vmatprep.subr.bf16.mxu0 %v1337_v27  ;;  %982 = vmatpush1.bf16.msra.mxu1 %v1336_v28  ;;  %v1421_v21 = vld [vmem:[%s2009_s1 + $0x234] ss:$8 sps:$4 sm:$0xff]   ;;  %v1416_v22 = vld [vmem:[%s2009_s1 + $0x340] ss:$8 sps:$4 sm:$0xff]   ;;  %v1419_v24 = vld [vmem:[%s2009_s1 + $0x230] ss:$8 sps:$4 sm:$0xff]  }
  0x1d   :  { %983 = vmatprep.subr.bf16.mxu1 %v1340_v29  ;;  %v1424_v23 = vld [vmem:[%s2009_s1 + $0x334] ss:$8 sps:$4 sm:$0xff]   ;;  %v1427_v25 = vld [vmem:[%s2009_s1 + $0x224] ss:$8 sps:$4 sm:$0xff]   ;;  %v1422_v26 = vld [vmem:[%s2009_s1 + $0x330] ss:$8 sps:$4 sm:$0xff]  }
  0x1e   :  { %v1430_v27 = vld [vmem:[%s2009_s1 + $0x324] ss:$8 sps:$4 sm:$0xff]   ;;  %v1425_v28 = vld [vmem:[%s2009_s1 + $0x220] ss:$8 sps:$4 sm:$0xff]   ;;  %v1433_v29 = vld [vmem:[%s2009_s1 + $0x214] ss:$8 sps:$4 sm:$0xff]  }
  0x1f   :  { %943 = vmatpush1.bf16.msra.mxu0 %v1339_v30  ;;  %v1428_v30 = vld [vmem:[%s2009_s1 + $0x320] ss:$8 sps:$4 sm:$0xff]   ;;  %v1446_v46 = vld [vmem:[%s2009_s1 + $0x3f0] ss:$8 sps:$4 sm:$0xff]  }
  0x20   :  { %944 = vmatprep.subr.bf16.mxu0 %v1343_v31  ;;  %984 = vmatpush1.bf16.msra.mxu1 %v1342_v32  ;;  %v1436_v31 = vld [vmem:[%s2009_s1 + $0x314] ss:$8 sps:$4 sm:$0xff]   ;;  %v1449_v48 = vld [vmem:[%s2009_s1 + $0x2e0] ss:$8 sps:$4 sm:$0xff]   ;;  %v1455_v52 = vld [vmem:[%s2009_s1 + $0x2d0] ss:$8 sps:$4 sm:$0xff]  }
  0x21   :  { %985 = vmatprep.subr.bf16.mxu1 %v1346_v33  ;;  %v1820_v32 = vld [vmem:[%s2010_s0 + $0x10] sm:$0xff]  ;;  %v1452_v50 = vld [vmem:[%s2009_s1 + $0x3e0] ss:$8 sps:$4 sm:$0xff]  }
  0x22   :  { %v1431_v33 = vld [vmem:[%s2009_s1 + $0x210] ss:$8 sps:$4 sm:$0xff]  }
  0x23   :  { %945 = vmatpush2.bf16.msra.mxu0 %v1345_v34  ;;  %v1146_v34 = vcombine.high %v1820_v32, %v1820_v32 }
  0x24   :  { %946 = vmatprep.subr.bf16.mxu0 %v1349_v35  ;;  %986 = vmatpush2.bf16.msra.mxu1 %v1348_v36  ;;  %v1830_v35 = vld [vmem:[%s2010_s0 + $0x18] sm:$0xff]  ;;  %v1439_v36 = vld [vmem:[%s2009_s1 + $0x204] ss:$8 sps:$4 sm:$0xff]  }
  0x25   :  { %987 = vmatprep.subr.bf16.mxu1 %v1352_v37  ;;  %v1148_v37 = vcombine.high %v1830_v35, %v1830_v35 }
  0x27   :  { %947 = vmatpush2.bf16.msra.mxu0 %v1351_v38  ;;  %v1434_v38 = vld [vmem:[%s2009_s1 + $0x310] ss:$8 sps:$4 sm:$0xff]  }
  0x28   :  { %948 = vmatprep.subr.bf16.mxu0 %v1355_v39  ;;  %988 = vmatpush2.bf16.msra.mxu1 %v1354_v40  ;;  %v1442_v39 = vld [vmem:[%s2009_s1 + $0x304] ss:$8 sps:$4 sm:$0xff]   ;;  %v1437_v40 = vld [vmem:[%s2009_s1 + $0x200] ss:$8 sps:$4 sm:$0xff]  }
  0x29   :  { %989 = vmatprep.subr.bf16.mxu1 %v1358_v41  ;;  %v1445_v41 = vld [vmem:[%s2009_s1 + $0x2f4] ss:$8 sps:$4 sm:$0xff]  }
  0x2b   :  { %949 = vmatpush2.bf16.msra.mxu0 %v1357_v42  ;;  %v1440_v42 = vld [vmem:[%s2009_s1 + $0x300] ss:$8 sps:$4 sm:$0xff]  }
  0x2c   :  { %950 = vmatprep.subr.bf16.mxu0 %v1361_v43  ;;  %990 = vmatpush2.bf16.msra.mxu1 %v1360_v44  ;;  %v1448_v43 = vld [vmem:[%s2009_s1 + $0x3f4] ss:$8 sps:$4 sm:$0xff]   ;;  %v1443_v44 = vld [vmem:[%s2009_s1 + $0x2f0] ss:$8 sps:$4 sm:$0xff]  }
  0x2d   :  { %991 = vmatprep.subr.bf16.mxu1 %v1364_v45  ;;  %v1451_v45 = vld [vmem:[%s2009_s1 + $0x2e4] ss:$8 sps:$4 sm:$0xff]  }
  0x2f   :  { %951 = vmatpush2.bf16.msra.mxu0 %v1363_v47  ;;  %v1454_v47 = vld [vmem:[%s2009_s1 + $0x3e4] ss:$8 sps:$4 sm:$0xff]  }
  0x30   :  { %952 = vmatprep.subr.bf16.mxu0 %v1367_v49  ;;  %992 = vmatpush2.bf16.msra.mxu1 %v1366_v51  ;;  %v1457_v49 = vld [vmem:[%s2009_s1 + $0x2d4] ss:$8 sps:$4 sm:$0xff]  }
  0x31   :  { %993 = vmatprep.subr.bf16.mxu1 %v1370_v53  ;;  %v1460_v51 = vld [vmem:[%s2009_s1 + $0x3d4] ss:$8 sps:$4 sm:$0xff]   ;;  %v1463_v53 = vld [vmem:[%s2009_s1 + $0x2c4] ss:$8 sps:$4 sm:$0xff]  }
  0x33   :  { %953 = vmatpush2.bf16.msra.mxu0 %v1369_v54  ;;  %v1458_v54 = vld [vmem:[%s2009_s1 + $0x3d0] ss:$8 sps:$4 sm:$0xff]  }
  0x34   :  { %954 = vmatprep.subr.bf16.mxu0 %v1373_v55  ;;  %994 = vmatpush2.bf16.msra.mxu1 %v1372_v56  ;;  %v1466_v55 = vld [vmem:[%s2009_s1 + $0x3c4] ss:$8 sps:$4 sm:$0xff]   ;;  %v1461_v56 = vld [vmem:[%s2009_s1 + $0x2c0] ss:$8 sps:$4 sm:$0xff]  }
  0x35   :  { %995 = vmatprep.subr.bf16.mxu1 %v1376_v57  ;;  %v1469_v57 = vld [vmem:[%s2009_s1 + $0x2b4] ss:$8 sps:$4 sm:$0xff]  }
  0x37   :  { %955 = vmatpush2.bf16.msra.mxu0 %v1375_v58  ;;  %v1464_v58 = vld [vmem:[%s2009_s1 + $0x3c0] ss:$8 sps:$4 sm:$0xff]  }
  0x38   :  { %956 = vmatprep.subr.bf16.mxu0 %v1379_v59  ;;  %996 = vmatpush2.bf16.msra.mxu1 %v1378_v60  ;;  %v1472_v59 = vld [vmem:[%s2009_s1 + $0x3b4] ss:$8 sps:$4 sm:$0xff]   ;;  %v1467_v60 = vld [vmem:[%s2009_s1 + $0x2b0] ss:$8 sps:$4 sm:$0xff]  }
  0x39   :  { %997 = vmatprep.subr.bf16.mxu1 %v1382_v61  ;;  %v1475_v61 = vld [vmem:[%s2009_s1 + $0x2a4] ss:$8 sps:$4 sm:$0xff]  }
  0x3b   :  { %957 = vmatpush2.bf16.msra.mxu0 %v1381_v62  ;;  %v1470_v62 = vld [vmem:[%s2009_s1 + $0x3b0] ss:$8 sps:$4 sm:$0xff]  }
  0x3c   :  { %958 = vmatprep.subr.bf16.mxu0 %v1385_v63  ;;  %998 = vmatpush2.bf16.msra.mxu1 %v1384_v0  ;;  %v1478_v63 = vld [vmem:[%s2009_s1 + $0x3a4] ss:$8 sps:$4 sm:$0xff]   ;;  %v1473_v0 = vld [vmem:[%s2009_s1 + $0x2a0] ss:$8 sps:$4 sm:$0xff]  }
  0x3d   :  { %999 = vmatprep.subr.bf16.mxu1 %v1388_v1  ;;  %v1481_v1 = vld [vmem:[%s2009_s1 + $0x294] ss:$8 sps:$4 sm:$0xff]  }
  0x3f   :  { %959 = vmatpush2.bf16.msra.mxu0 %v1387_v2  ;;  %v1476_v2 = vld [vmem:[%s2009_s1 + $0x3a0] ss:$8 sps:$4 sm:$0xff]  }
  0x40   :  { %1010 = vmatprep.subr.bf16.mxu0 %v1395_v3  ;;  %1000 = vmatpush2.bf16.msra.mxu1 %v1392_v4  ;;  %v1484_v3 = vld [vmem:[%s2009_s1 + $0x394] ss:$8 sps:$4 sm:$0xff]   ;;  %v1479_v4 = vld [vmem:[%s2009_s1 + $0x290] ss:$8 sps:$4 sm:$0xff]  }
  0x41   :  { %1051 = vmatprep.subr.bf16.mxu1 %v1400_v6  ;;  %v1482_v6 = vld [vmem:[%s2009_s1 + $0x390] ss:$8 sps:$4 sm:$0xff]  }
  0x42   :  { %961 = vmatmul.mubr.bf16.vlgmr.msra.gmra.mxu0 %v1141_v5  ;;  %v1487_v5 = vld [vmem:[%s2009_s1 + $0x284] ss:$8 sps:$4 sm:$0xff]  }
  0x43   :  { %1011 = vmatpush1.bf16.msra.mxu0 %v1393_v7  ;;  %1002 = vmatmul.mubr.bf16.vlgmr.msra.gmra.mxu1 %v1143_v8  ;;  %v1490_v7 = vld [vmem:[%s2009_s1 + $0x384] ss:$8 sps:$4 sm:$0xff]   ;;  %v1485_v8 = vld [vmem:[%s2009_s1 + $0x280] ss:$8 sps:$4 sm:$0xff]  }
  0x44   :  { %1012 = vmatprep.subr.bf16.mxu0 %v1403_v9  ;;  %1052 = vmatpush1.bf16.msra.mxu1 %v1398_v10  ;;  %v1495_v9 = vld [vmem:[%s2009_s1 + $0x474] ss:$8 sps:$4 sm:$0xff]   ;;  %v1488_v10 = vld [vmem:[%s2009_s1 + $0x380] ss:$8 sps:$4 sm:$0xff]  }
  0x45   :  { %1053 = vmatprep.subr.bf16.mxu1 %v1406_v11  ;;  %1042 = vmatprep.mubr.bf16.mxu0 %v1146_v34  ;;  %v1145_v11 = vcombine.low %v1820_v32, %v1820_v32 }
  0x46   :  { %1083 = vmatprep.mubr.bf16.mxu1 %v1148_v37 }
  0x47   :  { %1013 = vmatpush1.bf16.msra.mxu0 %v1401_v12  ;;  %v1493_v12 = vld [vmem:[%s2009_s1 + $0x470] ss:$8 sps:$4 sm:$0xff]  }
  0x48   :  { %1014 = vmatprep.subr.bf16.mxu0 %v1409_v13  ;;  %1054 = vmatpush1.bf16.msra.mxu1 %v1404_v14  ;;  %v1147_v13 = vcombine.low %v1830_v35, %v1830_v35  ;;  %v1500_v14 = vld [vmem:[%s2009_s1 + $0x464] ss:$8 sps:$4 sm:$0xff]  }
  0x49   :  { %1055 = vmatprep.subr.bf16.mxu1 %v1412_v15  ;;  %v1498_v15 = vld [vmem:[%s2009_s1 + $0x460] ss:$8 sps:$4 sm:$0xff]  }
  0x4b   :  { %1015 = vmatpush1.bf16.msra.mxu0 %v1407_v16  ;;  %v1520_v16 = vmov 0  }
  0x4c   :  { %1016 = vmatprep.subr.bf16.mxu0 %v1415_v17  ;;  %1056 = vmatpush1.bf16.msra.mxu1 %v1410_v18  ;;  %v1503_v17 = vld [vmem:[%s2009_s1 + $0x454] ss:$8 sps:$4 sm:$0xff]   ;;  %v1501_v18 = vld [vmem:[%s2009_s1 + $0x450] ss:$8 sps:$4 sm:$0xff]  }
  0x4d   :  { %1057 = vmatprep.subr.bf16.mxu1 %v1418_v19  ;;  %v1506_v19 = vld [vmem:[%s2009_s1 + $0x444] ss:$8 sps:$4 sm:$0xff]  }
  0x4f   :  { %1017 = vmatpush1.bf16.msra.mxu0 %v1413_v20  ;;  %v1504_v20 = vld [vmem:[%s2009_s1 + $0x440] ss:$8 sps:$4 sm:$0xff]  }
  0x50   :  { %1018 = vmatprep.subr.bf16.mxu0 %v1421_v21  ;;  %1058 = vmatpush1.bf16.msra.mxu1 %v1416_v22  ;;  %v1509_v21 = vld [vmem:[%s2009_s1 + $0x434] ss:$8 sps:$4 sm:$0xff]   ;;  %v1507_v22 = vld [vmem:[%s2009_s1 + $0x430] ss:$8 sps:$4 sm:$0xff]  }
  0x51   :  { %1059 = vmatprep.subr.bf16.mxu1 %v1424_v23  ;;  %v1512_v23 = vld [vmem:[%s2009_s1 + $0x424] ss:$8 sps:$4 sm:$0xff]  }
  0x53   :  { %1019 = vmatpush1.bf16.msra.mxu0 %v1419_v24  ;;  %v1510_v24 = vld [vmem:[%s2009_s1 + $0x420] ss:$8 sps:$4 sm:$0xff]  }
  0x54   :  { %1020 = vmatprep.subr.bf16.mxu0 %v1427_v25  ;;  %1060 = vmatpush1.bf16.msra.mxu1 %v1422_v26  ;;  %v1515_v25 = vld [vmem:[%s2009_s1 + $0x414] ss:$8 sps:$4 sm:$0xff]   ;;  %v1513_v26 = vld [vmem:[%s2009_s1 + $0x410] ss:$8 sps:$4 sm:$0xff]  }
  0x55   :  { %1061 = vmatprep.subr.bf16.mxu1 %v1430_v27  ;;  %v1518_v27 = vld [vmem:[%s2009_s1 + $0x404] ss:$8 sps:$4 sm:$0xff]  }
  0x57   :  { %1021 = vmatpush1.bf16.msra.mxu0 %v1425_v28  ;;  %v1516_v28 = vld [vmem:[%s2009_s1 + $0x400] ss:$8 sps:$4 sm:$0xff]  }
  0x58   :  { %1022 = vmatprep.subr.bf16.mxu0 %v1433_v29  ;;  %1062 = vmatpush1.bf16.msra.mxu1 %v1428_v30  ;;  %v1519_v29 = vld [vmem:[%s2010_s0 + $0x20] ss:$0 sps:$4 sm:$0xff]   ;;  %v166_v30 = vlaneseq }
  0x59   :  { %1063 = vmatprep.subr.bf16.mxu1 %v1436_v31 }
  0x5a   :  { %v167_v31 = vshrl.u32 %v166_v30, 7 }
  0x5b   :  { %1023 = vmatpush1.bf16.msra.mxu0 %v1431_v33  ;;  %v164_v33 = vld [vmem:[%s2011_s2] sm:$0x3] }
  0x5c   :  { %1024 = vmatprep.subr.bf16.mxu0 %v1439_v36  ;;  %1064 = vmatpush1.bf16.msra.mxu1 %v1434_v38  ;;  %v168_v32 = vsub.s32 0, %v167_v31  ;;  %v172_v34 = vsub.s32 1, %v167_v31 }
  0x5d   :  { %1065 = vmatprep.subr.bf16.mxu1 %v1442_v39 }
  0x5e   :  { %v169_v35 = vrot.slane %v164_v33, %v168_v32  ;;  %v173_v36 = vrot.slane %v164_v33, %v172_v34 }
  0x5f   :  { %1025 = vmatpush1.bf16.msra.mxu0 %v1437_v40 }
  0x60   :  { %1026 = vmatprep.subr.bf16.mxu0 %v1445_v41  ;;  %1066 = vmatpush1.bf16.msra.mxu1 %v1440_v42 }
  0x61   :  { %1067 = vmatprep.subr.bf16.mxu1 %v1448_v43 }
  0x63   :  { %1027 = vmatpush2.bf16.msra.mxu0 %v1443_v44 }
  0x64   :  { %1028 = vmatprep.subr.bf16.mxu0 %v1451_v45  ;;  %1068 = vmatpush2.bf16.msra.mxu1 %v1446_v46 }
  0x65   :  { %1069 = vmatprep.subr.bf16.mxu1 %v1454_v47 }
  0x67   :  { %1029 = vmatpush2.bf16.msra.mxu0 %v1449_v48 }
  0x68   :  { %1030 = vmatprep.subr.bf16.mxu0 %v1457_v49  ;;  %1070 = vmatpush2.bf16.msra.mxu1 %v1452_v50 }
  0x69   :  { %1071 = vmatprep.subr.bf16.mxu1 %v1460_v51 }
  0x6b   :  { %1031 = vmatpush2.bf16.msra.mxu0 %v1455_v52 }
  0x6c   :  { %1032 = vmatprep.subr.bf16.mxu0 %v1463_v53  ;;  %1072 = vmatpush2.bf16.msra.mxu1 %v1458_v54 }
  0x6d   :  { %1073 = vmatprep.subr.bf16.mxu1 %v1466_v55 }
  0x6f   :  { %1033 = vmatpush2.bf16.msra.mxu0 %v1461_v56 }
  0x70   :  { %1034 = vmatprep.subr.bf16.mxu0 %v1469_v57  ;;  %1074 = vmatpush2.bf16.msra.mxu1 %v1464_v58 }
  0x71   :  { %1075 = vmatprep.subr.bf16.mxu1 %v1472_v59 }
  0x73   :  { %1035 = vmatpush2.bf16.msra.mxu0 %v1467_v60 }
  0x74   :  { %1036 = vmatprep.subr.bf16.mxu0 %v1475_v61  ;;  %1076 = vmatpush2.bf16.msra.mxu1 %v1470_v62 }
  0x75   :  { %1077 = vmatprep.subr.bf16.mxu1 %v1478_v63 }
  0x77   :  { %1037 = vmatpush2.bf16.msra.mxu0 %v1473_v0 }
  0x78   :  { %1038 = vmatprep.subr.bf16.mxu0 %v1481_v1  ;;  %1078 = vmatpush2.bf16.msra.mxu1 %v1476_v2 }
  0x79   :  { %1079 = vmatprep.subr.bf16.mxu1 %v1484_v3 }
  0x7b   :  { %1039 = vmatpush2.bf16.msra.mxu0 %v1479_v4 }
  0x7c   :  { %1040 = vmatprep.subr.bf16.mxu0 %v1487_v5  ;;  %1080 = vmatpush2.bf16.msra.mxu1 %v1482_v6 }
  0x7d   :  { %1081 = vmatprep.subr.bf16.mxu1 %v1490_v7 }
  0x7f   :  { %1041 = vmatpush2.bf16.msra.mxu0 %v1485_v8 }
  0x80   :  { %1092 = vmatprep.subr.bf16.mxu0 %v1495_v9  ;;  %1082 = vmatpush2.bf16.msra.mxu1 %v1488_v10 }
  0x82   :  { %1043 = vmatmul.mubr.bf16.vlgmr.msra.gmra.mxu0 %v1145_v11 }
  0x83   :  { %1093 = vmatpush1.bf16.msra.mxu0 %v1493_v12  ;;  %1124 = vmatprep.mubr.bf16.mxu0 %v1520_v16 }
  0x84   :  { %1084 = vmatmul.mubr.bf16.vlgmr.msra.gmra.mxu1 %v1147_v13  ;;  %1094 = vmatprep.subr.bf16.mxu0 %v1500_v14 }
  0x87   :  { %1095 = vmatpush1.bf16.msra.mxu0 %v1498_v15 }
  0x88   :  { %1096 = vmatprep.subr.bf16.mxu0 %v1503_v17 }
  0x8b   :  { %1097 = vmatpush1.bf16.msra.mxu0 %v1501_v18 }
  0x8c   :  { %1098 = vmatprep.subr.bf16.mxu0 %v1506_v19 }
  0x8f   :  { %1099 = vmatpush1.bf16.msra.mxu0 %v1504_v20 }
  0x90   :  { %1100 = vmatprep.subr.bf16.mxu0 %v1509_v21 }
  0x93   :  { %1101 = vmatpush1.bf16.msra.mxu0 %v1507_v22 }
  0x94   :  { %1102 = vmatprep.subr.bf16.mxu0 %v1512_v23 }
  0x97   :  { %1103 = vmatpush1.bf16.msra.mxu0 %v1510_v24 }
  0x98   :  { %1104 = vmatprep.subr.bf16.mxu0 %v1515_v25 }
  0x9b   :  { %1105 = vmatpush1.bf16.msra.mxu0 %v1513_v26 }
  0x9c   :  { %1106 = vmatprep.subr.bf16.mxu0 %v1518_v27 }
  0x9f   :  { %1107 = vmatpush1.bf16.msra.mxu0 %v1516_v28 }
  0xa2   :  { %1125 = vmatmul.mubr.bf16.vlgmr.msra.gmra.mxu0 %v1519_v29 }
 0x102   :  { %v962_v37 = vpop.f32.mrf.mxu0 }
 0x103   :  { %v963_v38 = vadd.f32 %v962_v37, %v169_v35  ;;  %v1003_v40 = vpop.f32.mrf.mxu1 }
 0x104   :  { %v964_v39 = vpop.f32.mrf.mxu0 }
 0x105   :  { %v965_v41 = vadd.f32 %v964_v39, %v173_v36  ;;  %v1004_v42 = vadd.f32 %v1003_v40, %v963_v38  ;;  %v1005_v44 = vpop.f32.mrf.mxu1 }
 0x106   :  { %v966_v43 = vpop.f32.mrf.mxu0 }
 0x107   :  { %v1006_v45 = vadd.f32 %v1005_v44, %v965_v41  ;;  %v1007_v47 = vpop.f32.mrf.mxu1 }
 0x108   :  { %v967_v46 = vpop.f32.mrf.mxu0 }
 0x109   :  { %v1008_v48 = vpop.f32.mrf.mxu1 }
 0x142   :  { %v1044_v49 = vpop.f32.mrf.mxu0 }
 0x143   :  { %v1045_v57 = vadd.f32 %v1044_v49, %v1004_v42 }
 0x144   :  { %v1046_v50 = vpop.f32.mrf.mxu0  ;;  %v1085_v51 = vpop.f32.mrf.mxu1 }
 0x145   :  { %v1047_v58 = vadd.f32 %v1046_v50, %v1006_v45  ;;  %v1086_v59 = vadd.f32 %v1085_v51, %v1045_v57 }
 0x146   :  { %v1048_v52 = vpop.f32.mrf.mxu0  ;;  %v1087_v53 = vpop.f32.mrf.mxu1 }
 0x147   :  { %v1088_v61 = vadd.f32 %v1087_v53, %v1047_v58 }
 0x148   :  { %v1049_v54 = vpop.f32.mrf.mxu0  ;;  %v1089_v55 = vpop.f32.mrf.mxu1 }
 0x14a   :  { %v1090_v56 = vpop.f32.mrf.mxu1 }
 0x162   :  { %v1126_v60 = vpop.f32.mrf.mxu0 }
 0x163   :  { %v1127_v62 = vadd.f32 %v1126_v60, %v1086_v59 }
 0x164   :  { %v1128_v63 = vpop.f32.mrf.mxu0 }
 0x165   :  { %v1133_v0 = vmax.f32 %v1127_v62, 0.0  ;;  %v1129_v1 = vadd.f32 %v1128_v63, %v1088_v61 }
 0x166   :  { %v1130_v2 = vpop.f32.mrf.mxu0 }
 0x167   :  { %1135 = vst [vmem:[%s2012_s3] sm:$0xff] %v1133_v0  ;;  %v1134_v3 = vmax.f32 %v1129_v1, 0.0 }
 0x168   :  { %v1131_v4 = vpop.f32.mrf.mxu0 }
 0x169   :  { %1136 = vst [vmem:[%s2012_s3 + $0x8] sm:$0xff] %v1134_v3 }

// kernel: conv_autoencoder_forward.13
= control target key start
LH: loop header
LB: loop body
LE: loop exit
PB: predicated region body
PF: predicated region fallthrough
CT: control target
= control target key end

     0   :  { %s3110_s1 = inlined_call_operand.vmem [shape: bf16[2304,128], index: 1, kind: input, shape index: {}]   ;;  %s3111_s0 = inlined_call_operand.vmem [shape: bf16[32,2304], index: 0, kind: input, shape index: {}]   ;;  %s3112_s2 = inlined_call_operand.vmem [shape: f32[1,128], index: 2, kind: input, shape index: {}]   ;;  %s3113_s3 = inlined_call_operand.vmem [shape: f32[32,128], index: 3, kind: output, shape index: {}]  }
   0x1   :  { %v2292_v0 = vld [vmem:[%s3110_s1 + $0x78] sm:$0xff]   ;;  %v2296_v4 = vld [vmem:[%s3110_s1 + $0x70] sm:$0xff]   ;;  %v2300_v8 = vld [vmem:[%s3110_s1 + $0x68] sm:$0xff]  }
   0x2   :  { %v2293_v1 = vld [vmem:[%s3110_s1 + $0xf8] sm:$0xff]   ;;  %2024 = vmatprep.subr.bf16.mxu0 %v2292_v0  ;;  %v2297_v5 = vld [vmem:[%s3110_s1 + $0xf0] sm:$0xff]   ;;  %v2301_v9 = vld [vmem:[%s3110_s1 + $0xe8] sm:$0xff]  }
   0x3   :  { %v2294_v2 = vld [vmem:[%s3110_s1 + $0x38] sm:$0xff]   ;;  %2052 = vmatprep.subr.bf16.mxu1 %v2293_v1  ;;  %v2298_v6 = vld [vmem:[%s3110_s1 + $0x30] sm:$0xff]   ;;  %v2302_v10 = vld [vmem:[%s3110_s1 + $0x28] sm:$0xff]  }
   0x4   :  { %v2295_v3 = vld [vmem:[%s3110_s1 + $0xb8] sm:$0xff]   ;;  %2025 = vmatpush3.bf16.msra.mxu0 %v2294_v2  ;;  %v2299_v7 = vld [vmem:[%s3110_s1 + $0xb0] sm:$0xff]   ;;  %v2303_v11 = vld [vmem:[%s3110_s1 + $0xa8] sm:$0xff]  }
   0x5   :  { %2053 = vmatpush3.bf16.msra.mxu1 %v2295_v3  ;;  %2026 = vmatprep.subr.bf16.mxu0 %v2296_v4  ;;  %v2304_v12 = vld [vmem:[%s3110_s1 + $0x60] sm:$0xff]   ;;  %v2308_v16 = vld [vmem:[%s3110_s1 + $0x58] sm:$0xff]   ;;  %v2312_v20 = vld [vmem:[%s3110_s1 + $0x50] sm:$0xff]  }
   0x6   :  { %2054 = vmatprep.subr.bf16.mxu1 %v2297_v5  ;;  %v2305_v13 = vld [vmem:[%s3110_s1 + $0xe0] sm:$0xff]   ;;  %v2309_v17 = vld [vmem:[%s3110_s1 + $0xd8] sm:$0xff]   ;;  %v2313_v21 = vld [vmem:[%s3110_s1 + $0xd0] sm:$0xff]  }
   0x7   :  { %v2306_v14 = vld [vmem:[%s3110_s1 + $0x20] sm:$0xff]   ;;  %v2310_v18 = vld [vmem:[%s3110_s1 + $0x18] sm:$0xff]   ;;  %v2314_v22 = vld [vmem:[%s3110_s1 + $0x10] sm:$0xff]  }
   0x8   :  { %2027 = vmatpush3.bf16.msra.mxu0 %v2298_v6  ;;  %v2307_v15 = vld [vmem:[%s3110_s1 + $0xa0] sm:$0xff]   ;;  %v2311_v19 = vld [vmem:[%s3110_s1 + $0x98] sm:$0xff]   ;;  %v2315_v23 = vld [vmem:[%s3110_s1 + $0x90] sm:$0xff]  }
   0x9   :  { %2055 = vmatpush3.bf16.msra.mxu1 %v2299_v7  ;;  %2028 = vmatprep.subr.bf16.mxu0 %v2300_v8  ;;  %v2316_v24 = vld [vmem:[%s3110_s1 + $0x48] sm:$0xff]   ;;  %v2320_v28 = vld [vmem:[%s3110_s1 + $0x40] sm:$0xff]   ;;  %v2330_v36 = vld [vmem:[%s3110_s1 + $0x178] sm:$0xff]  }
   0xa   :  { %2056 = vmatprep.subr.bf16.mxu1 %v2301_v9  ;;  %v2317_v25 = vld [vmem:[%s3110_s1 + $0xc8] sm:$0xff]   ;;  %v2321_v29 = vld [vmem:[%s3110_s1 + $0xc0] sm:$0xff]   ;;  %v2331_v37 = vld [vmem:[%s3110_s1 + $0x1f8] sm:$0xff]  }
   0xb   :  { %v2318_v26 = vld [vmem:[%s3110_s1 + $0x8] sm:$0xff]   ;;  %v2322_v30 = vld [vmem:[%s3110_s1] sm:$0xff]   ;;  %v2332_v38 = vld [vmem:[%s3110_s1 + $0x138] sm:$0xff]  }
   0xc   :  { %2029 = vmatpush3.bf16.msra.mxu0 %v2302_v10  ;;  %v2319_v27 = vld [vmem:[%s3110_s1 + $0x88] sm:$0xff]   ;;  %v2323_v31 = vld [vmem:[%s3110_s1 + $0x80] sm:$0xff]   ;;  %v2333_v39 = vld [vmem:[%s3110_s1 + $0x1b8] sm:$0xff]  }
   0xd   :  { %2057 = vmatpush3.bf16.msra.mxu1 %v2303_v11  ;;  %2030 = vmatprep.subr.bf16.mxu0 %v2304_v12  ;;  %v2324_v32 = vld [vmem:[%s3111_s0] ss:$72 sps:$4 sm:$0xff]   ;;  %v2326_v33 = vld [vmem:[%s3111_s0 + $0x4] ss:$72 sps:$4 sm:$0xff]   ;;  %v2334_v40 = vld [vmem:[%s3110_s1 + $0x170] sm:$0xff]  }
   0xe   :  { %2058 = vmatprep.subr.bf16.mxu1 %v2305_v13  ;;  %v2327_v34 = vld [vmem:[%s3111_s0 + $0x8] ss:$72 sps:$4 sm:$0xff]   ;;  %v2329_v35 = vld [vmem:[%s3111_s0 + $0xc] ss:$72 sps:$4 sm:$0xff]   ;;  %1422 = vmatprep.mubr.bf16.mxu0 %v2326_v33  ;;  %v2342_v48 = vld [vmem:[%s3110_s1 + $0x160] sm:$0xff]  }
   0xf   :  { %1471 = vmatprep.mubr.bf16.mxu1 %v2329_v35  ;;  %v2335_v41 = vld [vmem:[%s3110_s1 + $0x1f0] sm:$0xff]   ;;  %v2338_v44 = vld [vmem:[%s3110_s1 + $0x168] sm:$0xff]   ;;  %v2343_v49 = vld [vmem:[%s3110_s1 + $0x1e0] sm:$0xff]  }
  0x10   :  { %2031 = vmatpush3.bf16.msra.mxu0 %v2306_v14  ;;  %v2336_v42 = vld [vmem:[%s3110_s1 + $0x130] sm:$0xff]   ;;  %v2339_v45 = vld [vmem:[%s3110_s1 + $0x1e8] sm:$0xff]   ;;  %v2344_v50 = vld [vmem:[%s3110_s1 + $0x120] sm:$0xff]  }
  0x11   :  { %2059 = vmatpush3.bf16.msra.mxu1 %v2307_v15  ;;  %2032 = vmatprep.subr.bf16.mxu0 %v2308_v16  ;;  %v2337_v43 = vld [vmem:[%s3110_s1 + $0x1b0] sm:$0xff]   ;;  %v2340_v46 = vld [vmem:[%s3110_s1 + $0x128] sm:$0xff]   ;;  %v2345_v51 = vld [vmem:[%s3110_s1 + $0x1a0] sm:$0xff]  }
  0x12   :  { %2060 = vmatprep.subr.bf16.mxu1 %v2309_v17  ;;  %v2341_v47 = vld [vmem:[%s3110_s1 + $0x1a8] sm:$0xff]   ;;  %v2346_v52 = vld [vmem:[%s3111_s0 + $0x94] ss:$72 sps:$4 sm:$0xff]   ;;  %v2350_v55 = vld [vmem:[%s3111_s0 + $0x90] ss:$72 sps:$4 sm:$0xff]  }
  0x13   :  { %v2348_v53 = vld [vmem:[%s3110_s1 + $0x158] sm:$0xff]   ;;  %v2356_v60 = vld [vmem:[%s3110_s1 + $0x150] sm:$0xff]   ;;  %v2360_v0 = vld [vmem:[%s3110_s1 + $0x148] sm:$0xff]  }
  0x14   :  { %2033 = vmatpush3.bf16.msra.mxu0 %v2310_v18  ;;  %v2349_v54 = vld [vmem:[%s3110_s1 + $0x1d8] sm:$0xff]   ;;  %v2357_v61 = vld [vmem:[%s3110_s1 + $0x1d0] sm:$0xff]   ;;  %v2361_v1 = vld [vmem:[%s3110_s1 + $0x1c8] sm:$0xff]  }
  0x15   :  { %2061 = vmatpush3.bf16.msra.mxu1 %v2311_v19  ;;  %2034 = vmatprep.subr.bf16.mxu0 %v2312_v20  ;;  %v2351_v56 = vld [vmem:[%s3110_s1 + $0x118] sm:$0xff]   ;;  %v2358_v62 = vld [vmem:[%s3110_s1 + $0x110] sm:$0xff]   ;;  %v2362_v2 = vld [vmem:[%s3110_s1 + $0x108] sm:$0xff]  }
  0x16   :  { %2062 = vmatprep.subr.bf16.mxu1 %v2313_v21  ;;  %v2352_v57 = vld [vmem:[%s3110_s1 + $0x198] sm:$0xff]   ;;  %v2359_v63 = vld [vmem:[%s3110_s1 + $0x190] sm:$0xff]   ;;  %v2363_v3 = vld [vmem:[%s3110_s1 + $0x188] sm:$0xff]  }
  0x17   :  { %v2353_v58 = vld [vmem:[%s3111_s0 + $0x9c] ss:$72 sps:$4 sm:$0xff]   ;;  %v2355_v59 = vld [vmem:[%s3111_s0 + $0x98] ss:$72 sps:$4 sm:$0xff]   ;;  %v2378_v16 = vld [vmem:[%s3110_s1 + $0x270] sm:$0xff]  }
  0x18   :  { %2035 = vmatpush3.bf16.msra.mxu0 %v2314_v22  ;;  %v2364_v4 = vld [vmem:[%s3110_s1 + $0x140] sm:$0xff]   ;;  %v2368_v8 = vld [vmem:[%s3111_s0 + $0x10] ss:$72 sps:$4 sm:$0xff]   ;;  %v2370_v9 = vld [vmem:[%s3111_s0 + $0x14] ss:$72 sps:$4 sm:$0xff]  }
  0x19   :  { %2063 = vmatpush3.bf16.msra.mxu1 %v2315_v23  ;;  %2036 = vmatprep.subr.bf16.mxu0 %v2316_v24  ;;  %v2365_v5 = vld [vmem:[%s3110_s1 + $0x1c0] sm:$0xff]   ;;  %v2374_v12 = vld [vmem:[%s3110_s1 + $0x278] sm:$0xff]   ;;  %v2379_v17 = vld [vmem:[%s3110_s1 + $0x2f0] sm:$0xff]  }
  0x1a   :  { %2064 = vmatprep.subr.bf16.mxu1 %v2317_v25  ;;  %v2366_v6 = vld [vmem:[%s3110_s1 + $0x100] sm:$0xff]   ;;  %v2375_v13 = vld [vmem:[%s3110_s1 + $0x2f8] sm:$0xff]   ;;  %v2380_v18 = vld [vmem:[%s3110_s1 + $0x230] sm:$0xff]  }
  0x1b   :  { %v2367_v7 = vld [vmem:[%s3110_s1 + $0x180] sm:$0xff]   ;;  %v2376_v14 = vld [vmem:[%s3110_s1 + $0x238] sm:$0xff]   ;;  %v2381_v19 = vld [vmem:[%s3110_s1 + $0x2b0] sm:$0xff]  }
  0x1c   :  { %2037 = vmatpush3.bf16.msra.mxu0 %v2318_v26  ;;  %v2371_v10 = vld [vmem:[%s3111_s0 + $0x18] ss:$72 sps:$4 sm:$0xff]   ;;  %v2373_v11 = vld [vmem:[%s3111_s0 + $0x1c] ss:$72 sps:$4 sm:$0xff]   ;;  %v2385_v22 = vld [vmem:[%s3110_s1 + $0x268] sm:$0xff]  }
  0x1d   :  { %2065 = vmatpush3.bf16.msra.mxu1 %v2319_v27  ;;  %2038 = vmatprep.subr.bf16.mxu0 %v2320_v28  ;;  %v2377_v15 = vld [vmem:[%s3110_s1 + $0x2b8] sm:$0xff]   ;;  %v2382_v20 = vld [vmem:[%s3111_s0 + $0xa4] ss:$72 sps:$4 sm:$0xff]   ;;  %v2384_v21 = vld [vmem:[%s3111_s0 + $0xa0] ss:$72 sps:$4 sm:$0xff]  }
  0x1e   :  { %2066 = vmatprep.subr.bf16.mxu1 %v2321_v29  ;;  %v2386_v23 = vld [vmem:[%s3110_s1 + $0x2e8] sm:$0xff]   ;;  %v2392_v28 = vld [vmem:[%s3110_s1 + $0x260] sm:$0xff]   ;;  %v2397_v33 = vld [vmem:[%s3110_s1 + $0x2d8] sm:$0xff]  }
  0x1f   :  { %v2387_v24 = vld [vmem:[%s3111_s0 + $0xac] ss:$72 sps:$4 sm:$0xff]   ;;  %v2391_v27 = vld [vmem:[%s3111_s0 + $0xa8] ss:$72 sps:$4 sm:$0xff]   ;;  %v2393_v29 = vld [vmem:[%s3110_s1 + $0x2e0] sm:$0xff]  }
  0x20   :  { %2039 = vmatpush3.bf16.msra.mxu0 %v2322_v30  ;;  %v2389_v25 = vld [vmem:[%s3110_s1 + $0x228] sm:$0xff]   ;;  %v2394_v30 = vld [vmem:[%s3110_s1 + $0x220] sm:$0xff]   ;;  %v2399_v35 = vld [vmem:[%s3110_s1 + $0x298] sm:$0xff]  }
  0x21   :  { %2067 = vmatpush3.bf16.msra.mxu1 %v2323_v31  ;;  %2080 = vmatprep.subr.bf16.mxu0 %v2330_v36  ;;  %v2390_v26 = vld [vmem:[%s3110_s1 + $0x2a8] sm:$0xff]   ;;  %v2395_v31 = vld [vmem:[%s3110_s1 + $0x2a0] sm:$0xff]   ;;  %v2400_v36 = vld [vmem:[%s3110_s1 + $0x250] sm:$0xff]  }
  0x22   :  { %2108 = vmatprep.subr.bf16.mxu1 %v2331_v37  ;;  %v2401_v37 = vld [vmem:[%s3110_s1 + $0x2d0] sm:$0xff]  }
  0x23   :  { %1423 = vmatmul.mubr.bf16.vlgmr.msra.gmra.mxu0 %v2324_v32  ;;  %v2396_v32 = vld [vmem:[%s3110_s1 + $0x258] sm:$0xff]  }
  0x24   :  { %1472 = vmatmul.mubr.bf16.vlgmr.msra.gmra.mxu1 %v2327_v34  ;;  %2081 = vmatpush3.bf16.msra.mxu0 %v2332_v38  ;;  %v2398_v34 = vld [vmem:[%s3110_s1 + $0x218] sm:$0xff]   ;;  %v2402_v38 = vld [vmem:[%s3110_s1 + $0x210] sm:$0xff]  }
  0x25   :  { %2109 = vmatpush3.bf16.msra.mxu1 %v2333_v39  ;;  %2082 = vmatprep.subr.bf16.mxu0 %v2334_v40  ;;  %v2403_v39 = vld [vmem:[%s3110_s1 + $0x290] sm:$0xff]   ;;  %v2404_v40 = vld [vmem:[%s3110_s1 + $0x248] sm:$0xff]  }
  0x26   :  { %2110 = vmatprep.subr.bf16.mxu1 %v2335_v41  ;;  %1430 = vmatprep.mubr.bf16.mxu0 %v2346_v52  ;;  %v2405_v41 = vld [vmem:[%s3110_s1 + $0x2c8] sm:$0xff]   ;;  %v2418_v52 = vld [vmem:[%s3110_s1 + $0x378] sm:$0xff]  }
  0x27   :  { %1479 = vmatprep.mubr.bf16.mxu1 %v2353_v58  ;;  %v2424_v58 = vld [vmem:[%s3110_s1 + $0x330] sm:$0xff]  }
  0x28   :  { %2083 = vmatpush3.bf16.msra.mxu0 %v2336_v42  ;;  %v2406_v42 = vld [vmem:[%s3110_s1 + $0x208] sm:$0xff]  }
  0x29   :  { %2111 = vmatpush3.bf16.msra.mxu1 %v2337_v43  ;;  %2084 = vmatprep.subr.bf16.mxu0 %v2338_v44  ;;  %v2407_v43 = vld [vmem:[%s3110_s1 + $0x288] sm:$0xff]   ;;  %v2408_v44 = vld [vmem:[%s3110_s1 + $0x240] sm:$0xff]  }
  0x2a   :  { %2112 = vmatprep.subr.bf16.mxu1 %v2339_v45  ;;  %v2409_v45 = vld [vmem:[%s3110_s1 + $0x2c0] sm:$0xff]  }
  0x2b   :  { %1431 = vmatmul.mubr.bf16.gmra.mxu0 %v2350_v55  ;;  %v2421_v55 = vld [vmem:[%s3110_s1 + $0x3b8] sm:$0xff]  }
  0x2c   :  { %2085 = vmatpush3.bf16.msra.mxu0 %v2340_v46  ;;  %1480 = vmatmul.mubr.bf16.gmra.mxu1 %v2355_v59  ;;  %v2410_v46 = vld [vmem:[%s3110_s1 + $0x200] sm:$0xff]   ;;  %v2425_v59 = vld [vmem:[%s3110_s1 + $0x3b0] sm:$0xff]  }
  0x2d   :  { %2113 = vmatpush3.bf16.msra.mxu1 %v2341_v47  ;;  %2086 = vmatprep.subr.bf16.mxu0 %v2342_v48  ;;  %v2411_v47 = vld [vmem:[%s3110_s1 + $0x280] sm:$0xff]  }
  0x2e   :  { %2114 = vmatprep.subr.bf16.mxu1 %v2343_v49  ;;  %1520 = vmatprep.mubr.bf16.mxu0 %v2370_v9  ;;  %v2412_v48 = vld [vmem:[%s3111_s0 + $0x20] ss:$72 sps:$4 sm:$0xff]   ;;  %v2414_v49 = vld [vmem:[%s3111_s0 + $0x24] ss:$72 sps:$4 sm:$0xff]   ;;  %v2441_v9 = vld [vmem:[%s3110_s1 + $0x3d8] sm:$0xff]  }
  0x2f   :  { %1569 = vmatprep.mubr.bf16.mxu1 %v2373_v11  ;;  %v2443_v11 = vld [vmem:[%s3110_s1 + $0x398] sm:$0xff]  }
  0x30   :  { %2087 = vmatpush3.bf16.msra.mxu0 %v2344_v50  ;;  %v2415_v50 = vld [vmem:[%s3111_s0 + $0x28] ss:$72 sps:$4 sm:$0xff]  }
  0x31   :  { %2115 = vmatpush3.bf16.msra.mxu1 %v2345_v51  ;;  %2088 = vmatprep.subr.bf16.mxu0 %v2348_v53  ;;  %v2417_v51 = vld [vmem:[%s3111_s0 + $0x2c] ss:$72 sps:$4 sm:$0xff]   ;;  %v2419_v53 = vld [vmem:[%s3110_s1 + $0x3f8] sm:$0xff]  }
  0x32   :  { %2116 = vmatprep.subr.bf16.mxu1 %v2349_v54  ;;  %v2420_v54 = vld [vmem:[%s3110_s1 + $0x338] sm:$0xff]  }
  0x34   :  { %2089 = vmatpush3.bf16.msra.mxu0 %v2351_v56  ;;  %v2422_v56 = vld [vmem:[%s3110_s1 + $0x370] sm:$0xff]  }
  0x35   :  { %2117 = vmatpush3.bf16.msra.mxu1 %v2352_v57  ;;  %2090 = vmatprep.subr.bf16.mxu0 %v2356_v60  ;;  %v2423_v57 = vld [vmem:[%s3110_s1 + $0x3f0] sm:$0xff]  }
  0x36   :  { %2118 = vmatprep.subr.bf16.mxu1 %v2357_v61  ;;  %v2426_v60 = vld [vmem:[%s3111_s0 + $0xb4] ss:$72 sps:$4 sm:$0xff]   ;;  %v2428_v61 = vld [vmem:[%s3111_s0 + $0xb0] ss:$72 sps:$4 sm:$0xff]  }
  0x38   :  { %2091 = vmatpush3.bf16.msra.mxu0 %v2358_v62  ;;  %v2429_v62 = vld [vmem:[%s3110_s1 + $0x368] sm:$0xff]  }
  0x39   :  { %2119 = vmatpush3.bf16.msra.mxu1 %v2359_v63  ;;  %2092 = vmatprep.subr.bf16.mxu0 %v2360_v0  ;;  %v2430_v63 = vld [vmem:[%s3110_s1 + $0x3e8] sm:$0xff]   ;;  %v2431_v0 = vld [vmem:[%s3111_s0 + $0xbc] ss:$72 sps:$4 sm:$0xff]  }
  0x3a   :  { %2120 = vmatprep.subr.bf16.mxu1 %v2361_v1  ;;  %v2433_v1 = vld [vmem:[%s3110_s1 + $0x328] sm:$0xff]  }
  0x3c   :  { %2093 = vmatpush3.bf16.msra.mxu0 %v2362_v2  ;;  %v2434_v2 = vld [vmem:[%s3110_s1 + $0x3a8] sm:$0xff]  }
  0x3d   :  { %2121 = vmatpush3.bf16.msra.mxu1 %v2363_v3  ;;  %2094 = vmatprep.subr.bf16.mxu0 %v2364_v4  ;;  %v2435_v3 = vld [vmem:[%s3111_s0 + $0xb8] ss:$72 sps:$4 sm:$0xff]  }
  0x3e   :  { %2122 = vmatprep.subr.bf16.mxu1 %v2365_v5  ;;  %v2436_v4 = vld [vmem:[%s3110_s1 + $0x360] sm:$0xff]  }
  0x3f   :  { %v2437_v5 = vld [vmem:[%s3110_s1 + $0x3e0] sm:$0xff]  }
  0x40   :  { %2095 = vmatpush3.bf16.msra.mxu0 %v2366_v6  ;;  %v2438_v6 = vld [vmem:[%s3110_s1 + $0x320] sm:$0xff]  }
  0x41   :  { %2123 = vmatpush3.bf16.msra.mxu1 %v2367_v7  ;;  %2136 = vmatprep.subr.bf16.mxu0 %v2374_v12  ;;  %v2439_v7 = vld [vmem:[%s3110_s1 + $0x3a0] sm:$0xff]   ;;  %v2444_v12 = vld [vmem:[%s3110_s1 + $0x350] sm:$0xff]  }
  0x42   :  { %2164 = vmatprep.subr.bf16.mxu1 %v2375_v13  ;;  %v2445_v13 = vld [vmem:[%s3110_s1 + $0x3d0] sm:$0xff]  }
  0x43   :  { %1521 = vmatmul.mubr.bf16.vlgmr.msra.gmra.mxu0 %v2368_v8  ;;  %v2440_v8 = vld [vmem:[%s3110_s1 + $0x358] sm:$0xff]  }
  0x44   :  { %1570 = vmatmul.mubr.bf16.vlgmr.msra.gmra.mxu1 %v2371_v10  ;;  %2137 = vmatpush3.bf16.msra.mxu0 %v2376_v14  ;;  %v2442_v10 = vld [vmem:[%s3110_s1 + $0x318] sm:$0xff]   ;;  %v2446_v14 = vld [vmem:[%s3110_s1 + $0x310] sm:$0xff]  }
  0x45   :  { %2165 = vmatpush3.bf16.msra.mxu1 %v2377_v15  ;;  %2138 = vmatprep.subr.bf16.mxu0 %v2378_v16  ;;  %v2447_v15 = vld [vmem:[%s3110_s1 + $0x390] sm:$0xff]   ;;  %v2448_v16 = vld [vmem:[%s3110_s1 + $0x348] sm:$0xff]  }
  0x46   :  { %2166 = vmatprep.subr.bf16.mxu1 %v2379_v17  ;;  %1528 = vmatprep.mubr.bf16.mxu0 %v2382_v20  ;;  %v2449_v17 = vld [vmem:[%s3110_s1 + $0x3c8] sm:$0xff]   ;;  %v2452_v20 = vld [vmem:[%s3110_s1 + $0x340] sm:$0xff]  }
  0x47   :  { %1577 = vmatprep.mubr.bf16.mxu1 %v2387_v24  ;;  %v2456_v24 = vld [vmem:[%s3111_s0 + $0x30] ss:$72 sps:$4 sm:$0xff]  }
  0x48   :  { %2139 = vmatpush3.bf16.msra.mxu0 %v2380_v18  ;;  %v2450_v18 = vld [vmem:[%s3110_s1 + $0x308] sm:$0xff]  }
  0x49   :  { %2167 = vmatpush3.bf16.msra.mxu1 %v2381_v19  ;;  %2140 = vmatprep.subr.bf16.mxu0 %v2385_v22  ;;  %v2451_v19 = vld [vmem:[%s3110_s1 + $0x388] sm:$0xff]   ;;  %v2454_v22 = vld [vmem:[%s3110_s1 + $0x300] sm:$0xff]  }
  0x4a   :  { %2168 = vmatprep.subr.bf16.mxu1 %v2386_v23  ;;  %v2455_v23 = vld [vmem:[%s3110_s1 + $0x380] sm:$0xff]  }
  0x4b   :  { %1529 = vmatmul.mubr.bf16.gmra.mxu0 %v2384_v21  ;;  %v2453_v21 = vld [vmem:[%s3110_s1 + $0x3c0] sm:$0xff]  }
  0x4c   :  { %2141 = vmatpush3.bf16.msra.mxu0 %v2389_v25  ;;  %1578 = vmatmul.mubr.bf16.gmra.mxu1 %v2391_v27  ;;  %v2458_v25 = vld [vmem:[%s3111_s0 + $0x34] ss:$72 sps:$4 sm:$0xff]  }
  0x4d   :  { %2169 = vmatpush3.bf16.msra.mxu1 %v2390_v26  ;;  %2142 = vmatprep.subr.bf16.mxu0 %v2392_v28  ;;  %v2459_v26 = vld [vmem:[%s3111_s0 + $0x38] ss:$72 sps:$4 sm:$0xff]   ;;  %v2461_v27 = vld [vmem:[%s3111_s0 + $0x3c] ss:$72 sps:$4 sm:$0xff]  }
  0x4e   :  { %2170 = vmatprep.subr.bf16.mxu1 %v2393_v29  ;;  %1618 = vmatprep.mubr.bf16.mxu0 %v2414_v49  ;;  %v2462_v28 = vld [vmem:[%s3110_s1 + $0x478] sm:$0xff]   ;;  %v2483_v49 = vld [vmem:[%s3110_s1 + $0x400] sm:$0xff]  }
  0x4f   :  { %1667 = vmatprep.mubr.bf16.mxu1 %v2417_v51  ;;  %v2463_v29 = vld [vmem:[%s3110_s1 + $0x438] sm:$0xff]  }
  0x50   :  { %2143 = vmatpush3.bf16.msra.mxu0 %v2394_v30  ;;  %v2464_v30 = vld [vmem:[%s3110_s1 + $0x470] sm:$0xff]  }
  0x51   :  { %2171 = vmatpush3.bf16.msra.mxu1 %v2395_v31  ;;  %2144 = vmatprep.subr.bf16.mxu0 %v2396_v32  ;;  %v2465_v31 = vld [vmem:[%s3110_s1 + $0x430] sm:$0xff]   ;;  %v2466_v32 = vld [vmem:[%s3111_s0 + $0xc4] ss:$72 sps:$4 sm:$0xff]  }
  0x52   :  { %2172 = vmatprep.subr.bf16.mxu1 %v2397_v33  ;;  %v2468_v33 = vld [vmem:[%s3111_s0 + $0xc0] ss:$72 sps:$4 sm:$0xff]   ;;  %v2487_v51 = vld [vmem:[%s3111_s0 + $0xd0] ss:$72 sps:$4 sm:$0xff]  }
  0x54   :  { %2145 = vmatpush3.bf16.msra.mxu0 %v2398_v34  ;;  %v2469_v34 = vld [vmem:[%s3110_s1 + $0x468] sm:$0xff]  }
  0x55   :  { %2173 = vmatpush3.bf16.msra.mxu1 %v2399_v35  ;;  %2146 = vmatprep.subr.bf16.mxu0 %v2400_v36  ;;  %v2470_v35 = vld [vmem:[%s3111_s0 + $0xcc] ss:$72 sps:$4 sm:$0xff]  }
  0x56   :  { %2174 = vmatprep.subr.bf16.mxu1 %v2401_v37  ;;  %v2472_v36 = vld [vmem:[%s3110_s1 + $0x428] sm:$0xff]  }
  0x57   :  { %v2473_v37 = vld [vmem:[%s3111_s0 + $0xc8] ss:$72 sps:$4 sm:$0xff]  }
  0x58   :  { %2147 = vmatpush3.bf16.msra.mxu0 %v2402_v38  ;;  %v2474_v38 = vld [vmem:[%s3110_s1 + $0x460] sm:$0xff]  }
  0x59   :  { %2175 = vmatpush3.bf16.msra.mxu1 %v2403_v39  ;;  %2148 = vmatprep.subr.bf16.mxu0 %v2404_v40  ;;  %v2475_v39 = vld [vmem:[%s3110_s1 + $0x420] sm:$0xff]   ;;  %v2476_v40 = vld [vmem:[%s3110_s1 + $0x458] sm:$0xff]  }
  0x5a   :  { %2176 = vmatprep.subr.bf16.mxu1 %v2405_v41  ;;  %v2477_v41 = vld [vmem:[%s3110_s1 + $0x418] sm:$0xff]  }
  0x5c   :  { %2149 = vmatpush3.bf16.msra.mxu0 %v2406_v42  ;;  %v2478_v42 = vld [vmem:[%s3110_s1 + $0x450] sm:$0xff]  }
  0x5d   :  { %2177 = vmatpush3.bf16.msra.mxu1 %v2407_v43  ;;  %2150 = vmatprep.subr.bf16.mxu0 %v2408_v44  ;;  %v2479_v43 = vld [vmem:[%s3110_s1 + $0x410] sm:$0xff]   ;;  %v2486_v44 = vld [vmem:[%s3111_s0 + $0x44] ss:$72 sps:$4 sm:$0xff]  }
  0x5e   :  { %2178 = vmatprep.subr.bf16.mxu1 %v2409_v45  ;;  %v2480_v45 = vld [vmem:[%s3110_s1 + $0x448] sm:$0xff]  }
  0x60   :  { %2151 = vmatpush3.bf16.msra.mxu0 %v2410_v46  ;;  %v2489_v46 = vld [vmem:[%s3111_s0 + $0xd4] ss:$72 sps:$4 sm:$0xff]  }
  0x61   :  { %2179 = vmatpush3.bf16.msra.mxu1 %v2411_v47  ;;  %2192 = vmatprep.subr.bf16.mxu0 %v2418_v52  ;;  %v2481_v47 = vld [vmem:[%s3110_s1 + $0x408] sm:$0xff]  }
  0x62   :  { %2220 = vmatprep.subr.bf16.mxu1 %v2419_v53 }
  0x63   :  { %1619 = vmatmul.mubr.bf16.vlgmr.msra.gmra.mxu0 %v2412_v48  ;;  %v2482_v48 = vld [vmem:[%s3110_s1 + $0x440] sm:$0xff]  }
  0x64   :  { %1668 = vmatmul.mubr.bf16.vlgmr.msra.gmra.mxu1 %v2415_v50  ;;  %2193 = vmatpush3.bf16.msra.mxu0 %v2420_v54  ;;  %v2484_v50 = vld [vmem:[%s3111_s0 + $0x40] ss:$72 sps:$4 sm:$0xff]  }
  0x65   :  { %2221 = vmatpush3.bf16.msra.mxu1 %v2421_v55  ;;  %2194 = vmatprep.subr.bf16.mxu0 %v2422_v56 }
  0x66   :  { %2222 = vmatprep.subr.bf16.mxu1 %v2423_v57  ;;  %1626 = vmatprep.mubr.bf16.mxu0 %v2426_v60 }
  0x67   :  { %1675 = vmatprep.mubr.bf16.mxu1 %v2431_v0 }
  0x68   :  { %2195 = vmatpush3.bf16.msra.mxu0 %v2424_v58 }
  0x69   :  { %2223 = vmatpush3.bf16.msra.mxu1 %v2425_v59  ;;  %2196 = vmatprep.subr.bf16.mxu0 %v2429_v62 }
  0x6a   :  { %2224 = vmatprep.subr.bf16.mxu1 %v2430_v63 }
  0x6b   :  { %1627 = vmatmul.mubr.bf16.gmra.mxu0 %v2428_v61 }
  0x6c   :  { %2197 = vmatpush3.bf16.msra.mxu0 %v2433_v1  ;;  %1676 = vmatmul.mubr.bf16.gmra.mxu1 %v2435_v3 }
  0x6d   :  { %2225 = vmatpush3.bf16.msra.mxu1 %v2434_v2  ;;  %2198 = vmatprep.subr.bf16.mxu0 %v2436_v4 }
  0x6e   :  { %2226 = vmatprep.subr.bf16.mxu1 %v2437_v5  ;;  %1716 = vmatprep.mubr.bf16.mxu0 %v2458_v25 }
  0x6f   :  { %1765 = vmatprep.mubr.bf16.mxu1 %v2461_v27 }
  0x70   :  { %2199 = vmatpush3.bf16.msra.mxu0 %v2438_v6 }
  0x71   :  { %2227 = vmatpush3.bf16.msra.mxu1 %v2439_v7  ;;  %2200 = vmatprep.subr.bf16.mxu0 %v2440_v8 }
  0x72   :  { %2228 = vmatprep.subr.bf16.mxu1 %v2441_v9 }
  0x74   :  { %2201 = vmatpush3.bf16.msra.mxu0 %v2442_v10 }
  0x75   :  { %2229 = vmatpush3.bf16.msra.mxu1 %v2443_v11  ;;  %2202 = vmatprep.subr.bf16.mxu0 %v2444_v12 }
  0x76   :  { %2230 = vmatprep.subr.bf16.mxu1 %v2445_v13 }
  0x78   :  { %2203 = vmatpush3.bf16.msra.mxu0 %v2446_v14 }
  0x79   :  { %2231 = vmatpush3.bf16.msra.mxu1 %v2447_v15  ;;  %2204 = vmatprep.subr.bf16.mxu0 %v2448_v16 }
  0x7a   :  { %2232 = vmatprep.subr.bf16.mxu1 %v2449_v17 }
  0x7c   :  { %2205 = vmatpush3.bf16.msra.mxu0 %v2450_v18 }
  0x7d   :  { %2233 = vmatpush3.bf16.msra.mxu1 %v2451_v19  ;;  %2206 = vmatprep.subr.bf16.mxu0 %v2452_v20 }
  0x7e   :  { %2234 = vmatprep.subr.bf16.mxu1 %v2453_v21 }
  0x80   :  { %2207 = vmatpush3.bf16.msra.mxu0 %v2454_v22 }
  0x81   :  { %2235 = vmatpush3.bf16.msra.mxu1 %v2455_v23  ;;  %2248 = vmatprep.subr.bf16.mxu0 %v2462_v28 }
  0x82   :  { %2276 = vmatprep.subr.bf16.mxu1 %v2462_v28 }
  0x83   :  { %1717 = vmatmul.mubr.bf16.vlgmr.msra.gmra.mxu0 %v2456_v24 }
  0x84   :  { %1766 = vmatmul.mubr.bf16.vlgmr.msra.gmra.mxu1 %v2459_v26  ;;  %2249 = vmatpush3.bf16.msra.mxu0 %v2463_v29 }
  0x85   :  { %2284 = vmatpush3.bf16.msra.mxu1 %v2463_v29  ;;  %2250 = vmatprep.subr.bf16.mxu0 %v2464_v30 }
  0x86   :  { %2277 = vmatprep.subr.bf16.mxu1 %v2464_v30  ;;  %1724 = vmatprep.mubr.bf16.mxu0 %v2466_v32 }
  0x87   :  { %1773 = vmatprep.mubr.bf16.mxu1 %v2470_v35 }
  0x88   :  { %2251 = vmatpush3.bf16.msra.mxu0 %v2465_v31 }
  0x89   :  { %2285 = vmatpush3.bf16.msra.mxu1 %v2465_v31  ;;  %2252 = vmatprep.subr.bf16.mxu0 %v2469_v34 }
  0x8a   :  { %2278 = vmatprep.subr.bf16.mxu1 %v2469_v34 }
  0x8b   :  { %1725 = vmatmul.mubr.bf16.gmra.mxu0 %v2468_v33 }
  0x8c   :  { %2253 = vmatpush3.bf16.msra.mxu0 %v2472_v36  ;;  %1774 = vmatmul.mubr.bf16.gmra.mxu1 %v2473_v37 }
  0x8d   :  { %2286 = vmatpush3.bf16.msra.mxu1 %v2472_v36  ;;  %2254 = vmatprep.subr.bf16.mxu0 %v2474_v38 }
  0x8e   :  { %2279 = vmatprep.subr.bf16.mxu1 %v2474_v38  ;;  %1814 = vmatprep.mubr.bf16.mxu0 %v2486_v44 }
  0x8f   :  { %1822 = vmatprep.mubr.bf16.mxu1 %v2489_v46 }
  0x90   :  { %2255 = vmatpush3.bf16.msra.mxu0 %v2475_v39 }
  0x91   :  { %2287 = vmatpush3.bf16.msra.mxu1 %v2475_v39  ;;  %2256 = vmatprep.subr.bf16.mxu0 %v2476_v40 }
  0x92   :  { %2280 = vmatprep.subr.bf16.mxu1 %v2476_v40 }
  0x94   :  { %2257 = vmatpush3.bf16.msra.mxu0 %v2477_v41 }
  0x95   :  { %2288 = vmatpush3.bf16.msra.mxu1 %v2477_v41  ;;  %2258 = vmatprep.subr.bf16.mxu0 %v2478_v42 }
  0x96   :  { %2281 = vmatprep.subr.bf16.mxu1 %v2478_v42  ;;  %v1843_v42 = vld [vmem:[%s3112_s2] ss:$0 sm:$0xff] }
  0x98   :  { %2259 = vmatpush3.bf16.msra.mxu0 %v2479_v43 }
  0x99   :  { %2289 = vmatpush3.bf16.msra.mxu1 %v2479_v43  ;;  %2260 = vmatprep.subr.bf16.mxu0 %v2480_v45 }
  0x9a   :  { %2282 = vmatprep.subr.bf16.mxu1 %v2480_v45 }
  0x9c   :  { %2261 = vmatpush3.bf16.msra.mxu0 %v2481_v47 }
  0x9d   :  { %2290 = vmatpush3.bf16.msra.mxu1 %v2481_v47  ;;  %2262 = vmatprep.subr.bf16.mxu0 %v2482_v48 }
  0x9e   :  { %2283 = vmatprep.subr.bf16.mxu1 %v2482_v48 }
  0xa0   :  { %2263 = vmatpush3.bf16.msra.mxu0 %v2483_v49 }
  0xa1   :  { %2291 = vmatpush3.bf16.msra.mxu1 %v2483_v49 }
  0xa3   :  { %1815 = vmatmul.mubr.bf16.vlgmr.msra.gmra.mxu0 %v2484_v50 }
  0xa4   :  { %1823 = vmatmul.mubr.bf16.vlgmr.msra.gmra.mxu1 %v2487_v51 }
  0xe3   :  { %v2040_v52 = vpop.f32.mrf.mxu0 }
  0xe4   :  { %v2068_v54 = vpop.f32.mrf.mxu1 }
  0xe5   :  { %v2041_v53 = vpop.f32.mrf.mxu0 }
  0xe6   :  { %v2069_v56 = vpop.f32.mrf.mxu1  ;;  %v2042_v39 = vadd.f32 %v2041_v53, %v2040_v52 }
  0xe7   :  { %v2043_v55 = vpop.f32.mrf.mxu0  ;;  %v2070_v51 = vadd.f32 %v2069_v56, %v2068_v54 }
  0xe8   :  { %v3050_v59 = vpop.f32.mrf.mxu1  ;;  %v1425_v44 = vadd.f32 %v2042_v39, %v1843_v42 }
  0xe9   :  { %v2044_v57 = vpop.f32.mrf.mxu0 }
  0xea   :  { %v3052_v61 = vpop.f32.mrf.mxu1  ;;  %v2045_v45 = vadd.f32 %v2044_v57, %v2043_v55  ;;  %v1474_v52 = vadd.f32 %v2070_v51, %v1425_v44 }
  0xeb   :  { %v2046_v58 = vpop.f32.mrf.mxu0  ;;  %v2073_v55 = vadd.f32 %v3052_v61, %v3050_v59 }
  0xec   :  { %v2074_v62 = vpop.f32.mrf.mxu1  ;;  %v1428_v53 = vadd.f32 %v2045_v45, %v1843_v42 }
  0xed   :  { %v2047_v60 = vpop.f32.mrf.mxu0 }
  0xee   :  { %v2075_v0 = vpop.f32.mrf.mxu1  ;;  %v2048_v43 = vadd.f32 %v2047_v60, %v2046_v58  ;;  %v1477_v54 = vadd.f32 %v2073_v55, %v1428_v53 }
  0xef   :  { %v2049_v63 = vpop.f32.mrf.mxu0  ;;  %v2076_v49 = vadd.f32 %v2075_v0, %v2074_v62 }
  0xf0   :  { %v2077_v3 = vpop.f32.mrf.mxu1  ;;  %v1433_v48 = vadd.f32 %v2048_v43, %v1843_v42 }
  0xf1   :  { %v2050_v1 = vpop.f32.mrf.mxu0 }
  0xf2   :  { %v2078_v5 = vpop.f32.mrf.mxu1  ;;  %v2051_v50 = vadd.f32 %v2050_v1, %v2049_v63 }
 0x103   :  { %v2096_v2 = vpop.f32.mrf.mxu0 }
 0x104   :  { %v3054_v6 = vpop.f32.mrf.mxu1 }
 0x105   :  { %v2097_v4 = vpop.f32.mrf.mxu0 }
 0x106   :  { %v2125_v8 = vpop.f32.mrf.mxu1 }
 0x107   :  { %v2099_v7 = vpop.f32.mrf.mxu0  ;;  %v2126_v56 = vadd.f32 %v2125_v8, %v3054_v6 }
 0x108   :  { %v3056_v10 = vpop.f32.mrf.mxu1 }
 0x109   :  { %v2100_v9 = vpop.f32.mrf.mxu0 }
 0x10a   :  { %v3058_v12 = vpop.f32.mrf.mxu1  ;;  %v2101_v58 = vadd.f32 %v2100_v9, %v2099_v7 }
 0x10b   :  { %v2102_v11 = vpop.f32.mrf.mxu0  ;;  %v2129_v59 = vadd.f32 %v3058_v12, %v3056_v10 }
 0x10c   :  { %v2130_v14 = vpop.f32.mrf.mxu1 }
 0x10d   :  { %v2103_v13 = vpop.f32.mrf.mxu0 }
 0x10e   :  { %v2131_v16 = vpop.f32.mrf.mxu1 }
 0x10f   :  { %v2105_v15 = vpop.f32.mrf.mxu0  ;;  %v2132_v62 = vadd.f32 %v2131_v16, %v2130_v14 }
 0x110   :  { %v2133_v18 = vpop.f32.mrf.mxu1 }
 0x111   :  { %v2106_v17 = vpop.f32.mrf.mxu0 }
 0x112   :  { %v2134_v20 = vpop.f32.mrf.mxu1  ;;  %v2107_v63 = vadd.f32 %v2106_v17, %v2105_v15 }
 0x113   :  { %v2135_v43 = vadd.f32 %v2134_v20, %v2133_v18 }
 0x123   :  { %v2152_v19 = vpop.f32.mrf.mxu0 }
 0x124   :  { %v3060_v22 = vpop.f32.mrf.mxu1 }
 0x125   :  { %v2153_v21 = vpop.f32.mrf.mxu0 }
 0x126   :  { %v3062_v24 = vpop.f32.mrf.mxu1  ;;  %v2154_v0 = vadd.f32 %v2153_v21, %v2152_v19 }
 0x127   :  { %v2155_v23 = vpop.f32.mrf.mxu0  ;;  %3114 = vst [vmem:[#allocation2_spill] sm:$0xff] %v3062_v24  ;;  %v2079_v24 = vadd.f32 %v2078_v5, %v2077_v3 }
 0x128   :  { %v3064_v26 = vpop.f32.mrf.mxu1 }
 0x129   :  { %v2156_v25 = vpop.f32.mrf.mxu0  ;;  %3115 = vst [vmem:[#allocation3_spill] sm:$0xff] %v3064_v26 }
 0x12a   :  { %v3066_v28 = vpop.f32.mrf.mxu1  ;;  %v2157_v7 = vadd.f32 %v2156_v25, %v2155_v23 }
 0x12b   :  { %v2158_v27 = vpop.f32.mrf.mxu0  ;;  %3116 = vst [vmem:[#allocation4_spill] sm:$0xff] %v3066_v28  ;;  %v2104_v28 = vadd.f32 %v2103_v13, %v2102_v11  ;;  %v1526_v13 = vadd.f32 %v2101_v58, %v1477_v54 }
 0x12c   :  { %v2186_v30 = vpop.f32.mrf.mxu1 }
 0x12d   :  { %v2159_v29 = vpop.f32.mrf.mxu0  ;;  %v1575_v6 = vadd.f32 %v2129_v59, %v1526_v13 }
 0x12e   :  { %v2187_v32 = vpop.f32.mrf.mxu1  ;;  %v3121_v8 = vld [vmem:[#allocation2_spill] sm:$0xff] }
 0x12f   :  { %v2161_v31 = vpop.f32.mrf.mxu0  ;;  %v2188_v15 = vadd.f32 %v2187_v32, %v2186_v30  ;;  %v2182_v17 = vadd.f32 %v3121_v8, %v3060_v22 }
 0x130   :  { %v3068_v34 = vpop.f32.mrf.mxu1  ;;  %v3124_v25 = vld [vmem:[#allocation3_spill] sm:$0xff] }
 0x131   :  { %v2162_v33 = vpop.f32.mrf.mxu0  ;;  %3117 = vst [vmem:[#allocation5_spill] sm:$0xff] %v3068_v34  ;;  %v1436_v34 = vadd.f32 %v2051_v50, %v1843_v42 }
 0x132   :  { %v3070_v36 = vpop.f32.mrf.mxu1  ;;  %v2163_v16 = vadd.f32 %v2162_v33, %v2161_v31 }
 0x133   :  { %3118 = vst [vmem:[#allocation6_spill] sm:$0xff] %v3070_v36  ;;  %v1482_v36 = vadd.f32 %v2076_v49, %v1433_v48 }
 0x135   :  { %v1531_v39 = vadd.f32 %v2104_v28, %v1482_v36  ;;  %v3125_v36 = vld [vmem:[#allocation4_spill] sm:$0xff] }
 0x136   :  { %v2185_v30 = vadd.f32 %v3125_v36, %v3124_v25 }
 0x137   :  { %v1580_v3 = vadd.f32 %v2132_v62, %v1531_v39 }
 0x138   :  { %v3122_v10 = vld [vmem:[#allocation5_spill] sm:$0xff] }
 0x13a   :  { %v3123_v12 = vld [vmem:[#allocation6_spill] sm:$0xff] }
 0x13b   :  { %v2191_v23 = vadd.f32 %v3123_v12, %v3122_v10 }
 0x143   :  { %v2208_v35 = vpop.f32.mrf.mxu0 }
 0x144   :  { %v3072_v37 = vpop.f32.mrf.mxu1 }
 0x145   :  { %3119 = vst [vmem:[#allocation7_spill] sm:$0xff] %v3072_v37  ;;  %v2209_v38 = vpop.f32.mrf.mxu0  ;;  %v2098_v37 = vadd.f32 %v2097_v4, %v2096_v2  ;;  %v1485_v2 = vadd.f32 %v2079_v24, %v1436_v34  ;;  %v2160_v4 = vadd.f32 %v2159_v29, %v2158_v27  ;;  %v1624_v29 = vadd.f32 %v2157_v7, %v1575_v6 }
 0x146   :  { %v3074_v40 = vpop.f32.mrf.mxu1  ;;  %v2210_v19 = vadd.f32 %v2209_v38, %v2208_v35 }
 0x147   :  { %3120 = vst [vmem:[#allocation8_spill] sm:$0xff] %v3074_v40  ;;  %v2211_v41 = vpop.f32.mrf.mxu0  ;;  %v1523_v57 = vadd.f32 %v2098_v37, %v1474_v52  ;;  %v1534_v5 = vadd.f32 %v2107_v63, %v1485_v2  ;;  %v1629_v14 = vadd.f32 %v2160_v4, %v1580_v3  ;;  %v1673_v44 = vadd.f32 %v2185_v30, %v1624_v29 }
 0x148   :  { %v3079_v46 = vpop.f32.mrf.mxu1 }
 0x149   :  { %v2212_v47 = vpop.f32.mrf.mxu0  ;;  %v1572_v11 = vadd.f32 %v2126_v56, %v1523_v57  ;;  %v1583_v24 = vadd.f32 %v2135_v43, %v1534_v5  ;;  %v1678_v20 = vadd.f32 %v2188_v15, %v1629_v14 }
 0x14a   :  { %v3081_v40 = vpop.f32.mrf.mxu1  ;;  %v2213_v32 = vadd.f32 %v2212_v47, %v2211_v41 }
 0x14b   :  { %v2214_v26 = vpop.f32.mrf.mxu0  ;;  %v1621_v61 = vadd.f32 %v2154_v0, %v1572_v11  ;;  %v1632_v34 = vadd.f32 %v2163_v16, %v1583_v24 }
 0x14c   :  { %v2242_v60 = vpop.f32.mrf.mxu1  ;;  %v1722_v53 = vadd.f32 %v2213_v32, %v1673_v44 }
 0x14d   :  { %v2215_v1 = vpop.f32.mrf.mxu0  ;;  %v1670_v28 = vadd.f32 %v2182_v17, %v1621_v61  ;;  %v1681_v50 = vadd.f32 %v2191_v23, %v1632_v34 }
 0x14e   :  { %v2243_v42 = vpop.f32.mrf.mxu1  ;;  %v2216_v27 = vadd.f32 %v2215_v1, %v2214_v26  ;;  %v3126_v26 = vld [vmem:[#allocation7_spill] sm:$0xff]  ;;  %v3127_v45 = vld [vmem:[#allocation8_spill] sm:$0xff] }
 0x14f   :  { %v2217_v9 = vpop.f32.mrf.mxu0  ;;  %v1719_v31 = vadd.f32 %v2210_v19, %v1670_v28  ;;  %v2244_v22 = vadd.f32 %v2243_v42, %v2242_v60  ;;  %v2238_v48 = vadd.f32 %v3127_v45, %v3126_v26  ;;  %v2241_v60 = vadd.f32 %v3081_v40, %v3079_v46 }
 0x150   :  { %v2245_v21 = vpop.f32.mrf.mxu1  ;;  %v1727_v37 = vadd.f32 %v2216_v27, %v1678_v20 }
 0x151   :  { %v2218_v18 = vpop.f32.mrf.mxu0  ;;  %v1768_v52 = vadd.f32 %v2238_v48, %v1719_v31  ;;  %v1771_v1 = vadd.f32 %v2241_v60, %v1722_v53 }
 0x152   :  { %v2246_v33 = vpop.f32.mrf.mxu1  ;;  %v2219_v35 = vadd.f32 %v2218_v18, %v2217_v9  ;;  %v1776_v58 = vadd.f32 %v2244_v22, %v1727_v37 }
 0x153   :  { %v2247_v62 = vadd.f32 %v2246_v33, %v2245_v21 }
 0x154   :  { %v1730_v39 = vadd.f32 %v2219_v35, %v1681_v50 }
 0x156   :  { %v1779_v13 = vadd.f32 %v2247_v62, %v1730_v39 }
 0x163   :  { %v2264_v38 = vpop.f32.mrf.mxu0 }
 0x164   :  { %v2270_v49 = vpop.f32.mrf.mxu1 }
 0x165   :  { %v2265_v51 = vpop.f32.mrf.mxu0 }
 0x166   :  { %v2266_v55 = vadd.f32 %v2265_v51, %v2264_v38  ;;  %v2271_v57 = vpop.f32.mrf.mxu1 }
 0x167   :  { %v2272_v41 = vadd.f32 %v2271_v57, %v2270_v49  ;;  %v2267_v47 = vpop.f32.mrf.mxu0 }
 0x168   :  { %v1817_v63 = vadd.f32 %v2266_v55, %v1768_v52  ;;  %v2273_v54 = vpop.f32.mrf.mxu1 }
 0x169   :  { %v1825_v56 = vadd.f32 %v2272_v41, %v1776_v58  ;;  %v2268_v0 = vpop.f32.mrf.mxu0 }
 0x16a   :  { %v1831_v2 = vmax.f32 %v1817_v63, 0.0  ;;  %v2269_v4 = vadd.f32 %v2268_v0, %v2267_v47  ;;  %v2274_v11 = vpop.f32.mrf.mxu1 }
 0x16b   :  { %v1833_v42 = vmax.f32 %v1825_v56, 0.0  ;;  %v2275_v3 = vadd.f32 %v2274_v11, %v2273_v54 }
 0x16c   :  { %1835 = vst [vmem:[%s3113_s3] sm:$0xff] %v1831_v2  ;;  %v1820_v5 = vadd.f32 %v2269_v4, %v1771_v1 }
 0x16d   :  { %1837 = vst [vmem:[%s3113_s3 + $0x10] sm:$0xff] %v1833_v42  ;;  %v1828_v40 = vadd.f32 %v2275_v3, %v1779_v13 }
 0x16e   :  { %v1832_v46 = vmax.f32 %v1820_v5, 0.0 }
 0x16f   :  { %v1834_v43 = vmax.f32 %v1828_v40, 0.0 }
 0x170   :  { %1836 = vst [vmem:[%s3113_s3 + $0x8] sm:$0xff] %v1832_v46 }
 0x171   :  { %1838 = vst [vmem:[%s3113_s3 + $0x18] sm:$0xff] %v1834_v43 }

// kernel: conv_autoencoder_forward.14
= control target key start
LH: loop header
LB: loop body
LE: loop exit
PB: predicated region body
PF: predicated region fallthrough
CT: control target
= control target key end

     0   :  { %s5465_s1 = inlined_call_operand.vmem [shape: bf16[2304,128], index: 1, kind: input, shape index: {}]   ;;  %s5466_s0 = inlined_call_operand.vmem [shape: bf16[128,2304], index: 0, kind: input, shape index: {}]   ;;  %s5467_s2 = inlined_call_operand.vmem [shape: f32[1,128], index: 2, kind: input, shape index: {}]   ;;  %s5468_s3 = inlined_call_operand.vmem [shape: f32[128,128], index: 3, kind: output, shape index: {}]  }
   0x1   :  { %v3828_v0 = vld [vmem:[%s5465_s1 + $0x78] sm:$0xff]   ;;  %v3830_v2 = vld [vmem:[%s5465_s1 + $0x70] sm:$0xff]   ;;  %v3832_v4 = vld [vmem:[%s5465_s1 + $0x68] sm:$0xff]  }
   0x2   :  { %v3829_v1 = vld [vmem:[%s5465_s1 + $0x38] sm:$0xff]   ;;  %3236 = vmatprep.subr.bf16.mxu0 %v3828_v0  ;;  %3812 = vmatprep.subr.bf16.mxu1 %v3828_v0  ;;  %v3831_v3 = vld [vmem:[%s5465_s1 + $0x30] sm:$0xff]   ;;  %v3833_v5 = vld [vmem:[%s5465_s1 + $0x28] sm:$0xff]  }
   0x3   :  { %3237 = vmatpush3.bf16.msra.mxu0 %v3829_v1  ;;  %3820 = vmatpush3.bf16.msra.mxu1 %v3829_v1  ;;  %v3834_v6 = vld [vmem:[%s5465_s1 + $0x60] sm:$0xff]   ;;  %v3836_v8 = vld [vmem:[%s5465_s1 + $0x58] sm:$0xff]   ;;  %v3838_v10 = vld [vmem:[%s5465_s1 + $0x50] sm:$0xff]  }
   0x4   :  { %3238 = vmatprep.subr.bf16.mxu0 %v3830_v2  ;;  %3813 = vmatprep.subr.bf16.mxu1 %v3830_v2  ;;  %v3835_v7 = vld [vmem:[%s5465_s1 + $0x20] sm:$0xff]   ;;  %v3837_v9 = vld [vmem:[%s5465_s1 + $0x18] sm:$0xff]   ;;  %v3839_v13 = vld [vmem:[%s5465_s1 + $0x10] sm:$0xff]  }
   0x5   :  { %v3846_v11 = vld [vmem:[%s5466_s0 + $0x4] ss:$72 sps:$4 sm:$0xff]   ;;  %v3844_v18 = vld [vmem:[%s5466_s0] ss:$72 sps:$4 sm:$0xff]   ;;  %v3850_v20 = vld [vmem:[%s5465_s1 + $0xf8] sm:$0xff]  }
   0x6   :  { %v3849_v12 = vld [vmem:[%s5466_s0 + $0x244] ss:$72 sps:$4 sm:$0xff]   ;;  %2070 = vmatprep.mubr.bf16.mxu0 %v3846_v11  ;;  %v3847_v19 = vld [vmem:[%s5466_s0 + $0x240] ss:$72 sps:$4 sm:$0xff]   ;;  %v3851_v21 = vld [vmem:[%s5465_s1 + $0x178] sm:$0xff]  }
   0x7   :  { %3239 = vmatpush3.bf16.msra.mxu0 %v3831_v3  ;;  %3821 = vmatpush3.bf16.msra.mxu1 %v3831_v3  ;;  %v3840_v14 = vld [vmem:[%s5465_s1 + $0x48] sm:$0xff]   ;;  %v3842_v16 = vld [vmem:[%s5465_s1 + $0x40] sm:$0xff]   ;;  %v3852_v22 = vld [vmem:[%s5465_s1 + $0xb8] sm:$0xff]  }
   0x8   :  { %3240 = vmatprep.subr.bf16.mxu0 %v3832_v4  ;;  %3814 = vmatprep.subr.bf16.mxu1 %v3832_v4  ;;  %v3841_v15 = vld [vmem:[%s5465_s1 + $0x8] sm:$0xff]   ;;  %v3843_v17 = vld [vmem:[%s5465_s1] sm:$0xff]   ;;  %v3853_v23 = vld [vmem:[%s5465_s1 + $0x138] sm:$0xff]  }
   0x9   :  { %2102 = vmatprep.mubr.bf16.mxu1 %v3849_v12  ;;  %v3854_v24 = vld [vmem:[%s5465_s1 + $0xf0] sm:$0xff]   ;;  %v3864_v30 = vld [vmem:[%s5465_s1 + $0xe8] sm:$0xff]   ;;  %v3868_v36 = vld [vmem:[%s5465_s1 + $0xe0] sm:$0xff]  }
   0xa   :  { %v3855_v25 = vld [vmem:[%s5465_s1 + $0x170] sm:$0xff]   ;;  %v3865_v32 = vld [vmem:[%s5465_s1 + $0x168] sm:$0xff]   ;;  %v3869_v37 = vld [vmem:[%s5465_s1 + $0x160] sm:$0xff]  }
   0xb   :  { %3241 = vmatpush3.bf16.msra.mxu0 %v3833_v5  ;;  %3822 = vmatpush3.bf16.msra.mxu1 %v3833_v5  ;;  %v3858_v26 = vld [vmem:[%s5466_s0 + $0x94] ss:$72 sps:$4 sm:$0xff]   ;;  %v3862_v31 = vld [vmem:[%s5466_s0 + $0x90] ss:$72 sps:$4 sm:$0xff]   ;;  %v3866_v34 = vld [vmem:[%s5465_s1 + $0xa8] sm:$0xff]  }
   0xc   :  { %3242 = vmatprep.subr.bf16.mxu0 %v3834_v6  ;;  %3815 = vmatprep.subr.bf16.mxu1 %v3834_v6  ;;  %v3856_v27 = vld [vmem:[%s5465_s1 + $0xb0] sm:$0xff]   ;;  %v3867_v35 = vld [vmem:[%s5465_s1 + $0x128] sm:$0xff]   ;;  %v3870_v39 = vld [vmem:[%s5465_s1 + $0xa0] sm:$0xff]  }
   0xd   :  { %v3860_v28 = vld [vmem:[%s5466_s0 + $0x2d4] ss:$72 sps:$4 sm:$0xff]   ;;  %v3863_v33 = vld [vmem:[%s5466_s0 + $0x2d0] ss:$72 sps:$4 sm:$0xff]   ;;  %v3872_v38 = vld [vmem:[%s5466_s0 + $0x124] ss:$72 sps:$4 sm:$0xff]  }
   0xe   :  { %v3857_v29 = vld [vmem:[%s5465_s1 + $0x130] sm:$0xff]   ;;  %v3874_v40 = vld [vmem:[%s5466_s0 + $0x364] ss:$72 sps:$4 sm:$0xff]   ;;  %v3878_v42 = vld [vmem:[%s5465_s1 + $0xd8] sm:$0xff]  }
   0xf   :  { %3243 = vmatpush3.bf16.msra.mxu0 %v3835_v7  ;;  %3823 = vmatpush3.bf16.msra.mxu1 %v3835_v7  ;;  %v3871_v41 = vld [vmem:[%s5465_s1 + $0x120] sm:$0xff]   ;;  %v3879_v45 = vld [vmem:[%s5465_s1 + $0x158] sm:$0xff]   ;;  %v3882_v48 = vld [vmem:[%s5465_s1 + $0xd0] sm:$0xff]  }
  0x10   :  { %3244 = vmatprep.subr.bf16.mxu0 %v3836_v8  ;;  %3816 = vmatprep.subr.bf16.mxu1 %v3836_v8  ;;  %v3876_v43 = vld [vmem:[%s5466_s0 + $0x120] ss:$72 sps:$4 sm:$0xff]   ;;  %v3880_v46 = vld [vmem:[%s5465_s1 + $0x98] sm:$0xff]   ;;  %v3883_v49 = vld [vmem:[%s5465_s1 + $0x150] sm:$0xff]  }
  0x11   :  { %v3877_v44 = vld [vmem:[%s5466_s0 + $0x360] ss:$72 sps:$4 sm:$0xff]   ;;  %v3881_v47 = vld [vmem:[%s5465_s1 + $0x118] sm:$0xff]   ;;  %v3884_v52 = vld [vmem:[%s5465_s1 + $0x90] sm:$0xff]  }
  0x12   :  { %v3886_v50 = vld [vmem:[%s5466_s0 + $0x1b4] ss:$72 sps:$4 sm:$0xff]   ;;  %v3892_v54 = vld [vmem:[%s5465_s1 + $0xc8] sm:$0xff]   ;;  %v3890_v55 = vld [vmem:[%s5466_s0 + $0x1b0] ss:$72 sps:$4 sm:$0xff]  }
  0x13   :  { %3245 = vmatpush3.bf16.msra.mxu0 %v3837_v9  ;;  %3824 = vmatpush3.bf16.msra.mxu1 %v3837_v9  ;;  %v3888_v51 = vld [vmem:[%s5466_s0 + $0x3f4] ss:$72 sps:$4 sm:$0xff]   ;;  %v3891_v56 = vld [vmem:[%s5466_s0 + $0x3f0] ss:$72 sps:$4 sm:$0xff]   ;;  %v3893_v57 = vld [vmem:[%s5465_s1 + $0x148] sm:$0xff]  }
  0x14   :  { %3246 = vmatprep.subr.bf16.mxu0 %v3838_v10  ;;  %3817 = vmatprep.subr.bf16.mxu1 %v3838_v10  ;;  %v3885_v53 = vld [vmem:[%s5465_s1 + $0x110] sm:$0xff]   ;;  %v3894_v58 = vld [vmem:[%s5465_s1 + $0x88] sm:$0xff]   ;;  %v3896_v60 = vld [vmem:[%s5465_s1 + $0xc0] sm:$0xff]  }
  0x15   :  { %v3895_v59 = vld [vmem:[%s5465_s1 + $0x108] sm:$0xff]   ;;  %v3897_v61 = vld [vmem:[%s5465_s1 + $0x140] sm:$0xff]   ;;  %v3903_v2 = vld [vmem:[%s5466_s0 + $0x10] ss:$72 sps:$4 sm:$0xff]  }
  0x16   :  { %v3898_v62 = vld [vmem:[%s5465_s1 + $0x80] sm:$0xff]   ;;  %v3902_v0 = vld [vmem:[%s5466_s0 + $0xc] ss:$72 sps:$4 sm:$0xff]   ;;  %v3900_v1 = vld [vmem:[%s5466_s0 + $0x8] ss:$72 sps:$4 sm:$0xff]  }
  0x17   :  { %3247 = vmatpush3.bf16.msra.mxu0 %v3839_v13  ;;  %3825 = vmatpush3.bf16.msra.mxu1 %v3839_v13  ;;  %v3899_v63 = vld [vmem:[%s5465_s1 + $0x100] sm:$0xff]   ;;  %v3905_v3 = vld [vmem:[%s5466_s0 + $0x14] ss:$72 sps:$4 sm:$0xff]  }
  0x18   :  { %3248 = vmatprep.subr.bf16.mxu0 %v3840_v14  ;;  %3818 = vmatprep.subr.bf16.mxu1 %v3840_v14  ;;  %v3906_v4 = vld [vmem:[%s5465_s1 + $0x1f8] sm:$0xff]   ;;  %v3912_v9 = vld [vmem:[%s5466_s0 + $0xa4] ss:$72 sps:$4 sm:$0xff]   ;;  %v3915_v11 = vld [vmem:[%s5466_s0 + $0xa0] ss:$72 sps:$4 sm:$0xff]  }
  0x19   :  { %v3907_v5 = vld [vmem:[%s5465_s1 + $0x1b8] sm:$0xff]   ;;  %v3916_v12 = vld [vmem:[%s5465_s1 + $0x1f0] sm:$0xff]  }
  0x1a   :  { %v3908_v6 = vld [vmem:[%s5465_s1 + $0x278] sm:$0xff]   ;;  %v3917_v13 = vld [vmem:[%s5465_s1 + $0x1b0] sm:$0xff]  }
  0x1b   :  { %3249 = vmatpush3.bf16.msra.mxu0 %v3841_v15  ;;  %3826 = vmatpush3.bf16.msra.mxu1 %v3841_v15  ;;  %v3909_v7 = vld [vmem:[%s5465_s1 + $0x238] sm:$0xff]   ;;  %v3918_v14 = vld [vmem:[%s5465_s1 + $0x270] sm:$0xff]  }
  0x1c   :  { %3250 = vmatprep.subr.bf16.mxu0 %v3842_v16  ;;  %3819 = vmatprep.subr.bf16.mxu1 %v3842_v16  ;;  %v3910_v8 = vld [vmem:[%s5466_s0 + $0x9c] ss:$72 sps:$4 sm:$0xff]   ;;  %v3914_v10 = vld [vmem:[%s5466_s0 + $0x98] ss:$72 sps:$4 sm:$0xff]   ;;  %v3919_v15 = vld [vmem:[%s5465_s1 + $0x230] sm:$0xff]  }
  0x1d   :  { %v3920_v16 = vld [vmem:[%s5466_s0 + $0x12c] ss:$72 sps:$4 sm:$0xff]  }
  0x1f   :  { %3251 = vmatpush3.bf16.msra.mxu0 %v3843_v17  ;;  %3827 = vmatpush3.bf16.msra.mxu1 %v3843_v17  ;;  %v3922_v17 = vld [vmem:[%s5466_s0 + $0x134] ss:$72 sps:$4 sm:$0xff]  }
  0x20   :  { %3300 = vmatprep.subr.bf16.mxu1 %v3850_v20  ;;  %3364 = vmatprep.subr.bf16.mxu0 %v3851_v21  ;;  %v3925_v20 = vld [vmem:[%s5466_s0 + $0x130] ss:$72 sps:$4 sm:$0xff]   ;;  %v3927_v21 = vld [vmem:[%s5465_s1 + $0x1a8] sm:$0xff]  }
  0x22   :  { %2071 = vmatmul.mubr.bf16.vlgmr.msra.gmra.mxu0 %v3844_v18  ;;  %2103 = vmatmul.mubr.bf16.vlgmr.msra.gmra.mxu1 %v3847_v19  ;;  %v3926_v18 = vld [vmem:[%s5465_s1 + $0x1e8] sm:$0xff]  }
  0x23   :  { %3301 = vmatpush3.bf16.msra.mxu1 %v3852_v22  ;;  %3365 = vmatpush3.bf16.msra.mxu0 %v3853_v23  ;;  %v3924_v19 = vld [vmem:[%s5466_s0 + $0x128] ss:$72 sps:$4 sm:$0xff]  }
  0x24   :  { %3302 = vmatprep.subr.bf16.mxu1 %v3854_v24  ;;  %3366 = vmatprep.subr.bf16.mxu0 %v3855_v25  ;;  %v3928_v22 = vld [vmem:[%s5465_s1 + $0x268] sm:$0xff]   ;;  %v3930_v24 = vld [vmem:[%s5466_s0 + $0x1bc] ss:$72 sps:$4 sm:$0xff]  }
  0x25   :  { %2078 = vmatprep.mubr.bf16.mxu0 %v3858_v26  ;;  %2110 = vmatprep.mubr.bf16.mxu1 %v3860_v28  ;;  %v3929_v23 = vld [vmem:[%s5465_s1 + $0x228] sm:$0xff]   ;;  %v3936_v26 = vld [vmem:[%s5465_s1 + $0x1e0] sm:$0xff]  }
  0x26   :  { %v3932_v25 = vld [vmem:[%s5466_s0 + $0x1c4] ss:$72 sps:$4 sm:$0xff]   ;;  %v3934_v28 = vld [vmem:[%s5466_s0 + $0x1b8] ss:$72 sps:$4 sm:$0xff]  }
  0x27   :  { %3303 = vmatpush3.bf16.msra.mxu1 %v3856_v27  ;;  %3367 = vmatpush3.bf16.msra.mxu0 %v3857_v29  ;;  %v3937_v27 = vld [vmem:[%s5465_s1 + $0x1a0] sm:$0xff]  }
  0x28   :  { %3304 = vmatprep.subr.bf16.mxu1 %v3864_v30  ;;  %3368 = vmatprep.subr.bf16.mxu0 %v3865_v32  ;;  %v3938_v29 = vld [vmem:[%s5465_s1 + $0x260] sm:$0xff]   ;;  %v3940_v32 = vld [vmem:[%s5466_s0 + $0x24c] ss:$72 sps:$4 sm:$0xff]  }
  0x29   :  { %v3939_v30 = vld [vmem:[%s5465_s1 + $0x220] sm:$0xff]  }
  0x2a   :  { %2079 = vmatmul.mubr.bf16.gmra.mxu0 %v3862_v31  ;;  %2111 = vmatmul.mubr.bf16.gmra.mxu1 %v3863_v33  ;;  %v3935_v31 = vld [vmem:[%s5466_s0 + $0x1c0] ss:$72 sps:$4 sm:$0xff]   ;;  %v3942_v33 = vld [vmem:[%s5466_s0 + $0x254] ss:$72 sps:$4 sm:$0xff]  }
  0x2b   :  { %3305 = vmatpush3.bf16.msra.mxu1 %v3866_v34  ;;  %3369 = vmatpush3.bf16.msra.mxu0 %v3867_v35  ;;  %v3946_v34 = vld [vmem:[%s5465_s1 + $0x1d8] sm:$0xff]  }
  0x2c   :  { %3306 = vmatprep.subr.bf16.mxu1 %v3868_v36  ;;  %3370 = vmatprep.subr.bf16.mxu0 %v3869_v37  ;;  %v3947_v35 = vld [vmem:[%s5465_s1 + $0x198] sm:$0xff]  }
  0x2d   :  { %2086 = vmatprep.mubr.bf16.mxu0 %v3872_v38  ;;  %2118 = vmatprep.mubr.bf16.mxu1 %v3874_v40  ;;  %v3948_v36 = vld [vmem:[%s5465_s1 + $0x258] sm:$0xff]   ;;  %v3944_v38 = vld [vmem:[%s5466_s0 + $0x248] ss:$72 sps:$4 sm:$0xff]  }
  0x2e   :  { %v3949_v37 = vld [vmem:[%s5465_s1 + $0x218] sm:$0xff]  }
  0x2f   :  { %3307 = vmatpush3.bf16.msra.mxu1 %v3870_v39  ;;  %3371 = vmatpush3.bf16.msra.mxu0 %v3871_v41  ;;  %v3945_v39 = vld [vmem:[%s5466_s0 + $0x250] ss:$72 sps:$4 sm:$0xff]   ;;  %v3950_v40 = vld [vmem:[%s5466_s0 + $0x2dc] ss:$72 sps:$4 sm:$0xff]  }
  0x30   :  { %3308 = vmatprep.subr.bf16.mxu1 %v3878_v42  ;;  %3372 = vmatprep.subr.bf16.mxu0 %v3879_v45  ;;  %v3952_v41 = vld [vmem:[%s5466_s0 + $0x2e4] ss:$72 sps:$4 sm:$0xff]   ;;  %v3956_v42 = vld [vmem:[%s5465_s1 + $0x1d0] sm:$0xff]  }
  0x31   :  { %v3959_v45 = vld [vmem:[%s5465_s1 + $0x210] sm:$0xff]  }
  0x32   :  { %2087 = vmatmul.mubr.bf16.gmra.mxu0 %v3876_v43  ;;  %2119 = vmatmul.mubr.bf16.gmra.mxu1 %v3877_v44  ;;  %v3957_v43 = vld [vmem:[%s5465_s1 + $0x190] sm:$0xff]  }
  0x33   :  { %3309 = vmatpush3.bf16.msra.mxu1 %v3880_v46  ;;  %3373 = vmatpush3.bf16.msra.mxu0 %v3881_v47  ;;  %v3958_v44 = vld [vmem:[%s5465_s1 + $0x250] sm:$0xff]   ;;  %v3954_v46 = vld [vmem:[%s5466_s0 + $0x2d8] ss:$72 sps:$4 sm:$0xff]  }
  0x34   :  { %3310 = vmatprep.subr.bf16.mxu1 %v3882_v48  ;;  %3374 = vmatprep.subr.bf16.mxu0 %v3883_v49  ;;  %v3955_v47 = vld [vmem:[%s5466_s0 + $0x2e0] ss:$72 sps:$4 sm:$0xff]   ;;  %v3960_v48 = vld [vmem:[%s5466_s0 + $0x36c] ss:$72 sps:$4 sm:$0xff]  }
  0x35   :  { %2094 = vmatprep.mubr.bf16.mxu0 %v3886_v50  ;;  %2126 = vmatprep.mubr.bf16.mxu1 %v3888_v51  ;;  %v3962_v49 = vld [vmem:[%s5466_s0 + $0x374] ss:$72 sps:$4 sm:$0xff]   ;;  %v3966_v50 = vld [vmem:[%s5465_s1 + $0x1c8] sm:$0xff]  }
  0x36   :  { %v3967_v51 = vld [vmem:[%s5465_s1 + $0x188] sm:$0xff]  }
  0x37   :  { %3311 = vmatpush3.bf16.msra.mxu1 %v3884_v52  ;;  %3375 = vmatpush3.bf16.msra.mxu0 %v3885_v53  ;;  %v3968_v52 = vld [vmem:[%s5465_s1 + $0x248] sm:$0xff]  }
  0x38   :  { %3312 = vmatprep.subr.bf16.mxu1 %v3892_v54  ;;  %3376 = vmatprep.subr.bf16.mxu0 %v3893_v57  ;;  %v3969_v53 = vld [vmem:[%s5465_s1 + $0x208] sm:$0xff]   ;;  %v3970_v57 = vld [vmem:[%s5466_s0 + $0x3fc] ss:$72 sps:$4 sm:$0xff]  }
  0x39   :  { %v3964_v54 = vld [vmem:[%s5466_s0 + $0x368] ss:$72 sps:$4 sm:$0xff]  }
  0x3a   :  { %2095 = vmatmul.mubr.bf16.gmra.mxu0 %v3890_v55  ;;  %2127 = vmatmul.mubr.bf16.gmra.mxu1 %v3891_v56  ;;  %v3965_v55 = vld [vmem:[%s5466_s0 + $0x370] ss:$72 sps:$4 sm:$0xff]   ;;  %v3976_v56 = vld [vmem:[%s5465_s1 + $0x1c0] sm:$0xff]  }
  0x3b   :  { %3313 = vmatpush3.bf16.msra.mxu1 %v3894_v58  ;;  %3377 = vmatpush3.bf16.msra.mxu0 %v3895_v59  ;;  %v3972_v58 = vld [vmem:[%s5466_s0 + $0x404] ss:$72 sps:$4 sm:$0xff]  }
  0x3c   :  { %3314 = vmatprep.subr.bf16.mxu1 %v3896_v60  ;;  %3378 = vmatprep.subr.bf16.mxu0 %v3897_v61  ;;  %v3977_v59 = vld [vmem:[%s5465_s1 + $0x180] sm:$0xff]  }
  0x3d   :  { %2167 = vmatprep.mubr.bf16.mxu1 %v3902_v0  ;;  %2264 = vmatprep.mubr.bf16.mxu0 %v3905_v3  ;;  %v3978_v60 = vld [vmem:[%s5465_s1 + $0x240] sm:$0xff]  }
  0x3e   :  { %v3979_v61 = vld [vmem:[%s5465_s1 + $0x200] sm:$0xff]  }
  0x3f   :  { %3315 = vmatpush3.bf16.msra.mxu1 %v3898_v62  ;;  %3379 = vmatpush3.bf16.msra.mxu0 %v3899_v63  ;;  %v3986_v62 = vld [vmem:[%s5465_s1 + $0x2f8] sm:$0xff]   ;;  %v3975_v0 = vld [vmem:[%s5466_s0 + $0x400] ss:$72 sps:$4 sm:$0xff]   ;;  %v3985_v3 = vld [vmem:[%s5466_s0 + $0x24] ss:$72 sps:$4 sm:$0xff]  }
  0x40   :  { %3428 = vmatprep.subr.bf16.mxu1 %v3906_v4  ;;  %3492 = vmatprep.subr.bf16.mxu0 %v3908_v6  ;;  %v3974_v63 = vld [vmem:[%s5466_s0 + $0x3f8] ss:$72 sps:$4 sm:$0xff]  }
  0x41   :  { %v3980_v4 = vld [vmem:[%s5466_s0 + $0x18] ss:$72 sps:$4 sm:$0xff]  }
  0x42   :  { %2168 = vmatmul.mubr.bf16.vlgmr.msra.gmra.mxu1 %v3900_v1  ;;  %2265 = vmatmul.mubr.bf16.vlgmr.msra.gmra.mxu0 %v3903_v2  ;;  %v3988_v1 = vld [vmem:[%s5465_s1 + $0x378] sm:$0xff]  }
  0x43   :  { %3429 = vmatpush3.bf16.msra.mxu1 %v3907_v5  ;;  %3493 = vmatpush3.bf16.msra.mxu0 %v3909_v7  ;;  %v3982_v2 = vld [vmem:[%s5466_s0 + $0x1c] ss:$72 sps:$4 sm:$0xff]   ;;  %v3983_v5 = vld [vmem:[%s5466_s0 + $0x20] ss:$72 sps:$4 sm:$0xff]  }
  0x44   :  { %2175 = vmatprep.mubr.bf16.mxu1 %v3910_v8  ;;  %2272 = vmatprep.mubr.bf16.mxu0 %v3912_v9  ;;  %v3987_v6 = vld [vmem:[%s5465_s1 + $0x2b8] sm:$0xff]   ;;  %v3990_v8 = vld [vmem:[%s5466_s0 + $0xac] ss:$72 sps:$4 sm:$0xff]  }
  0x45   :  { %3430 = vmatprep.subr.bf16.mxu1 %v3916_v12  ;;  %3494 = vmatprep.subr.bf16.mxu0 %v3918_v14  ;;  %v3989_v7 = vld [vmem:[%s5465_s1 + $0x338] sm:$0xff]   ;;  %v3998_v12 = vld [vmem:[%s5465_s1 + $0x370] sm:$0xff]   ;;  %v4006_v14 = vld [vmem:[%s5465_s1 + $0x2e8] sm:$0xff]  }
  0x46   :  { %v3992_v9 = vld [vmem:[%s5466_s0 + $0xb4] ss:$72 sps:$4 sm:$0xff]  }
  0x47   :  { %3431 = vmatpush3.bf16.msra.mxu1 %v3917_v13  ;;  %3495 = vmatpush3.bf16.msra.mxu0 %v3919_v15  ;;  %v3999_v13 = vld [vmem:[%s5465_s1 + $0x330] sm:$0xff]  }
  0x48   :  { %3432 = vmatprep.subr.bf16.mxu1 %v3926_v18  ;;  %3496 = vmatprep.subr.bf16.mxu0 %v3928_v22  ;;  %v3994_v15 = vld [vmem:[%s5466_s0 + $0xa8] ss:$72 sps:$4 sm:$0xff]   ;;  %v4000_v18 = vld [vmem:[%s5466_s0 + $0x13c] ss:$72 sps:$4 sm:$0xff]  }
  0x49   :  { %v4016_v22 = vld [vmem:[%s5465_s1 + $0x2e0] sm:$0xff]  }
  0x4a   :  { %2176 = vmatmul.mubr.bf16.gmra.mxu1 %v3914_v10  ;;  %2273 = vmatmul.mubr.bf16.gmra.mxu0 %v3915_v11  ;;  %v3996_v10 = vld [vmem:[%s5465_s1 + $0x2f0] sm:$0xff]  }
  0x4b   :  { %2183 = vmatprep.mubr.bf16.mxu1 %v3920_v16  ;;  %2280 = vmatprep.mubr.bf16.mxu0 %v3922_v17  ;;  %v3997_v11 = vld [vmem:[%s5465_s1 + $0x2b0] sm:$0xff]   ;;  %v4008_v17 = vld [vmem:[%s5465_s1 + $0x368] sm:$0xff]  }
  0x4c   :  { %3433 = vmatpush3.bf16.msra.mxu1 %v3927_v21  ;;  %3497 = vmatpush3.bf16.msra.mxu0 %v3929_v23  ;;  %v3995_v16 = vld [vmem:[%s5466_s0 + $0xb0] ss:$72 sps:$4 sm:$0xff]   ;;  %v4009_v21 = vld [vmem:[%s5465_s1 + $0x328] sm:$0xff]   ;;  %v4018_v23 = vld [vmem:[%s5465_s1 + $0x360] sm:$0xff]  }
  0x4d   :  { %3434 = vmatprep.subr.bf16.mxu1 %v3936_v26  ;;  %3498 = vmatprep.subr.bf16.mxu0 %v3938_v29  ;;  %v4017_v26 = vld [vmem:[%s5465_s1 + $0x2a0] sm:$0xff]   ;;  %v4012_v29 = vld [vmem:[%s5466_s0 + $0x1d4] ss:$72 sps:$4 sm:$0xff]  }
  0x50   :  { %3435 = vmatpush3.bf16.msra.mxu1 %v3937_v27  ;;  %3499 = vmatpush3.bf16.msra.mxu0 %v3939_v30  ;;  %v4019_v27 = vld [vmem:[%s5465_s1 + $0x320] sm:$0xff]   ;;  %v4026_v30 = vld [vmem:[%s5465_s1 + $0x2d8] sm:$0xff]  }
  0x51   :  { %3436 = vmatprep.subr.bf16.mxu1 %v3946_v34  ;;  %3500 = vmatprep.subr.bf16.mxu0 %v3948_v36  ;;  %v4014_v34 = vld [vmem:[%s5466_s0 + $0x1c8] ss:$72 sps:$4 sm:$0xff]  }
  0x52   :  { %2184 = vmatmul.mubr.bf16.gmra.mxu1 %v3924_v19  ;;  %2281 = vmatmul.mubr.bf16.gmra.mxu0 %v3925_v20  ;;  %v4002_v19 = vld [vmem:[%s5466_s0 + $0x144] ss:$72 sps:$4 sm:$0xff]   ;;  %v4036_v36 = vld [vmem:[%s5465_s1 + $0x2d0] sm:$0xff]  }
  0x53   :  { %2191 = vmatprep.mubr.bf16.mxu1 %v3930_v24  ;;  %2288 = vmatprep.mubr.bf16.mxu0 %v3932_v25  ;;  %v4007_v20 = vld [vmem:[%s5465_s1 + $0x2a8] sm:$0xff]   ;;  %v4004_v24 = vld [vmem:[%s5466_s0 + $0x138] ss:$72 sps:$4 sm:$0xff]  }
  0x54   :  { %3437 = vmatpush3.bf16.msra.mxu1 %v3947_v35  ;;  %3501 = vmatpush3.bf16.msra.mxu0 %v3949_v37  ;;  %v4005_v25 = vld [vmem:[%s5466_s0 + $0x140] ss:$72 sps:$4 sm:$0xff]   ;;  %v4015_v35 = vld [vmem:[%s5466_s0 + $0x1d0] ss:$72 sps:$4 sm:$0xff]   ;;  %v4020_v37 = vld [vmem:[%s5466_s0 + $0x25c] ss:$72 sps:$4 sm:$0xff]  }
  0x55   :  { %3438 = vmatprep.subr.bf16.mxu1 %v3956_v42  ;;  %3502 = vmatprep.subr.bf16.mxu0 %v3958_v44  ;;  %v4046_v42 = vld [vmem:[%s5465_s1 + $0x2c8] sm:$0xff]  }
  0x56   :  { %v4025_v44 = vld [vmem:[%s5466_s0 + $0x260] ss:$72 sps:$4 sm:$0xff]  }
  0x58   :  { %3439 = vmatpush3.bf16.msra.mxu1 %v3957_v43  ;;  %3503 = vmatpush3.bf16.msra.mxu0 %v3959_v45  ;;  %v4024_v43 = vld [vmem:[%s5466_s0 + $0x258] ss:$72 sps:$4 sm:$0xff]   ;;  %v4047_v45 = vld [vmem:[%s5465_s1 + $0x288] sm:$0xff]  }
  0x59   :  { %3440 = vmatprep.subr.bf16.mxu1 %v3966_v50  ;;  %3504 = vmatprep.subr.bf16.mxu0 %v3968_v52  ;;  %v4056_v50 = vld [vmem:[%s5465_s1 + $0x2c0] sm:$0xff]  }
  0x5a   :  { %2192 = vmatmul.mubr.bf16.gmra.mxu1 %v3934_v28  ;;  %2289 = vmatmul.mubr.bf16.gmra.mxu0 %v3935_v31  ;;  %v4010_v28 = vld [vmem:[%s5466_s0 + $0x1cc] ss:$72 sps:$4 sm:$0xff]   ;;  %v4027_v31 = vld [vmem:[%s5465_s1 + $0x298] sm:$0xff]   ;;  %v4058_v52 = vld [vmem:[%s5465_s1 + $0x340] sm:$0xff]  }
  0x5b   :  { %2199 = vmatprep.mubr.bf16.mxu1 %v3940_v32  ;;  %2296 = vmatprep.mubr.bf16.mxu0 %v3942_v33  ;;  %v4028_v32 = vld [vmem:[%s5465_s1 + $0x358] sm:$0xff]  }
  0x5c   :  { %3441 = vmatpush3.bf16.msra.mxu1 %v3967_v51  ;;  %3505 = vmatpush3.bf16.msra.mxu0 %v3969_v53  ;;  %v4029_v33 = vld [vmem:[%s5465_s1 + $0x318] sm:$0xff]   ;;  %v4057_v51 = vld [vmem:[%s5465_s1 + $0x280] sm:$0xff]  }
  0x5d   :  { %3442 = vmatprep.subr.bf16.mxu1 %v3976_v56  ;;  %3506 = vmatprep.subr.bf16.mxu0 %v3978_v60  ;;  %v4059_v53 = vld [vmem:[%s5465_s1 + $0x300] sm:$0xff]  }
  0x5e   :  { %v4040_v56 = vld [vmem:[%s5466_s0 + $0x37c] ss:$72 sps:$4 sm:$0xff]   ;;  %v4044_v60 = vld [vmem:[%s5466_s0 + $0x378] ss:$72 sps:$4 sm:$0xff]  }
  0x60   :  { %3443 = vmatpush3.bf16.msra.mxu1 %v3977_v59  ;;  %3507 = vmatpush3.bf16.msra.mxu0 %v3979_v61  ;;  %v4068_v59 = vld [vmem:[%s5465_s1 + $0x478] sm:$0xff]   ;;  %v4045_v61 = vld [vmem:[%s5466_s0 + $0x380] ss:$72 sps:$4 sm:$0xff]  }
  0x61   :  { %3556 = vmatprep.subr.bf16.mxu1 %v3986_v62  ;;  %3620 = vmatprep.subr.bf16.mxu0 %v3988_v1  ;;  %v4050_v62 = vld [vmem:[%s5466_s0 + $0x40c] ss:$72 sps:$4 sm:$0xff]   ;;  %v4055_v1 = vld [vmem:[%s5466_s0 + $0x410] ss:$72 sps:$4 sm:$0xff]  }
  0x62   :  { %2200 = vmatmul.mubr.bf16.gmra.mxu1 %v3944_v38  ;;  %2297 = vmatmul.mubr.bf16.gmra.mxu0 %v3945_v39  ;;  %v4022_v38 = vld [vmem:[%s5466_s0 + $0x264] ss:$72 sps:$4 sm:$0xff]   ;;  %v4037_v39 = vld [vmem:[%s5465_s1 + $0x290] sm:$0xff]  }
  0x63   :  { %2207 = vmatprep.mubr.bf16.mxu1 %v3950_v40  ;;  %2304 = vmatprep.mubr.bf16.mxu0 %v3952_v41  ;;  %v4038_v40 = vld [vmem:[%s5465_s1 + $0x350] sm:$0xff]  }
  0x64   :  { %v4039_v41 = vld [vmem:[%s5465_s1 + $0x310] sm:$0xff]  }
  0x6a   :  { %2208 = vmatmul.mubr.bf16.gmra.mxu1 %v3954_v46  ;;  %2305 = vmatmul.mubr.bf16.gmra.mxu0 %v3955_v47  ;;  %v4030_v46 = vld [vmem:[%s5466_s0 + $0x2ec] ss:$72 sps:$4 sm:$0xff]  }
  0x6b   :  { %2215 = vmatprep.mubr.bf16.mxu1 %v3960_v48  ;;  %2312 = vmatprep.mubr.bf16.mxu0 %v3962_v49  ;;  %v4048_v47 = vld [vmem:[%s5465_s1 + $0x348] sm:$0xff]   ;;  %v4032_v49 = vld [vmem:[%s5466_s0 + $0x2f4] ss:$72 sps:$4 sm:$0xff]  }
  0x6c   :  { %v4049_v48 = vld [vmem:[%s5465_s1 + $0x308] sm:$0xff]  }
  0x72   :  { %2216 = vmatmul.mubr.bf16.gmra.mxu1 %v3964_v54  ;;  %2313 = vmatmul.mubr.bf16.gmra.mxu0 %v3965_v55  ;;  %v4034_v54 = vld [vmem:[%s5466_s0 + $0x2e8] ss:$72 sps:$4 sm:$0xff]  }
  0x73   :  { %2223 = vmatprep.mubr.bf16.mxu1 %v3970_v57  ;;  %2320 = vmatprep.mubr.bf16.mxu0 %v3972_v58  ;;  %v4035_v55 = vld [vmem:[%s5466_s0 + $0x2f0] ss:$72 sps:$4 sm:$0xff]   ;;  %v4042_v57 = vld [vmem:[%s5466_s0 + $0x384] ss:$72 sps:$4 sm:$0xff]  }
  0x74   :  { %v4066_v58 = vld [vmem:[%s5465_s1 + $0x3f8] sm:$0xff]  }
  0x7a   :  { %2224 = vmatmul.mubr.bf16.gmra.mxu1 %v3974_v63  ;;  %2321 = vmatmul.mubr.bf16.gmra.mxu0 %v3975_v0  ;;  %v4052_v63 = vld [vmem:[%s5466_s0 + $0x414] ss:$72 sps:$4 sm:$0xff]   ;;  %v4054_v0 = vld [vmem:[%s5466_s0 + $0x408] ss:$72 sps:$4 sm:$0xff]  }
  0x7b   :  { %2361 = vmatprep.mubr.bf16.mxu1 %v3982_v2  ;;  %2458 = vmatprep.mubr.bf16.mxu0 %v3985_v3  ;;  %v4062_v2 = vld [vmem:[%s5466_s0 + $0x2c] ss:$72 sps:$4 sm:$0xff]  }
  0x7c   :  { %v4065_v3 = vld [vmem:[%s5466_s0 + $0x34] ss:$72 sps:$4 sm:$0xff]  }
  0x82   :  { %2362 = vmatmul.mubr.bf16.vlgmr.msra.gmra.mxu1 %v3980_v4  ;;  %2459 = vmatmul.mubr.bf16.vlgmr.msra.gmra.mxu0 %v3983_v5  ;;  %v4060_v4 = vld [vmem:[%s5466_s0 + $0x28] ss:$72 sps:$4 sm:$0xff]  }
  0x83   :  { %3557 = vmatpush3.bf16.msra.mxu1 %v3987_v6  ;;  %3621 = vmatpush3.bf16.msra.mxu0 %v3989_v7  ;;  %v4063_v5 = vld [vmem:[%s5466_s0 + $0x30] ss:$72 sps:$4 sm:$0xff]  }
  0x84   :  { %2369 = vmatprep.mubr.bf16.mxu1 %v3990_v8  ;;  %2466 = vmatprep.mubr.bf16.mxu0 %v3992_v9  ;;  %v4067_v6 = vld [vmem:[%s5465_s1 + $0x3b8] sm:$0xff]   ;;  %v4072_v9 = vld [vmem:[%s5466_s0 + $0xc4] ss:$72 sps:$4 sm:$0xff]  }
  0x85   :  { %3558 = vmatprep.subr.bf16.mxu1 %v3996_v10  ;;  %3622 = vmatprep.subr.bf16.mxu0 %v3998_v12  ;;  %v4069_v7 = vld [vmem:[%s5465_s1 + $0x438] sm:$0xff]   ;;  %v4076_v10 = vld [vmem:[%s5465_s1 + $0x3f0] sm:$0xff]  }
  0x86   :  { %v4070_v8 = vld [vmem:[%s5466_s0 + $0xbc] ss:$72 sps:$4 sm:$0xff]   ;;  %v4077_v12 = vld [vmem:[%s5465_s1 + $0x3b0] sm:$0xff]  }
  0x87   :  { %3559 = vmatpush3.bf16.msra.mxu1 %v3997_v11  ;;  %3623 = vmatpush3.bf16.msra.mxu0 %v3999_v13  ;;  %v4078_v11 = vld [vmem:[%s5465_s1 + $0x470] sm:$0xff]  }
  0x88   :  { %3560 = vmatprep.subr.bf16.mxu1 %v4006_v14  ;;  %3624 = vmatprep.subr.bf16.mxu0 %v4008_v17  ;;  %v4079_v13 = vld [vmem:[%s5465_s1 + $0x430] sm:$0xff]   ;;  %v4074_v14 = vld [vmem:[%s5466_s0 + $0xb8] ss:$72 sps:$4 sm:$0xff]   ;;  %v4088_v17 = vld [vmem:[%s5465_s1 + $0x468] sm:$0xff]  }
  0x8a   :  { %2370 = vmatmul.mubr.bf16.gmra.mxu1 %v3994_v15  ;;  %2467 = vmatmul.mubr.bf16.gmra.mxu0 %v3995_v16  ;;  %v4075_v15 = vld [vmem:[%s5466_s0 + $0xc0] ss:$72 sps:$4 sm:$0xff]  }
  0x8b   :  { %2377 = vmatprep.mubr.bf16.mxu1 %v4000_v18  ;;  %2474 = vmatprep.mubr.bf16.mxu0 %v4002_v19  ;;  %v4086_v16 = vld [vmem:[%s5465_s1 + $0x3e8] sm:$0xff]   ;;  %v4082_v19 = vld [vmem:[%s5466_s0 + $0x154] ss:$72 sps:$4 sm:$0xff]  }
  0x8c   :  { %3561 = vmatpush3.bf16.msra.mxu1 %v4007_v20  ;;  %3625 = vmatpush3.bf16.msra.mxu0 %v4009_v21  ;;  %v4080_v18 = vld [vmem:[%s5466_s0 + $0x14c] ss:$72 sps:$4 sm:$0xff]  }
  0x8d   :  { %3562 = vmatprep.subr.bf16.mxu1 %v4016_v22  ;;  %3626 = vmatprep.subr.bf16.mxu0 %v4018_v23  ;;  %v4087_v20 = vld [vmem:[%s5465_s1 + $0x3a8] sm:$0xff]   ;;  %v4096_v22 = vld [vmem:[%s5465_s1 + $0x3e0] sm:$0xff]  }
  0x8e   :  { %v4089_v21 = vld [vmem:[%s5465_s1 + $0x428] sm:$0xff]   ;;  %v4098_v23 = vld [vmem:[%s5465_s1 + $0x460] sm:$0xff]  }
  0x90   :  { %3563 = vmatpush3.bf16.msra.mxu1 %v4017_v26  ;;  %3627 = vmatpush3.bf16.msra.mxu0 %v4019_v27  ;;  %v4084_v26 = vld [vmem:[%s5466_s0 + $0x148] ss:$72 sps:$4 sm:$0xff]  }
  0x91   :  { %3564 = vmatprep.subr.bf16.mxu1 %v4026_v30  ;;  %3628 = vmatprep.subr.bf16.mxu0 %v4028_v32  ;;  %v4085_v27 = vld [vmem:[%s5466_s0 + $0x150] ss:$72 sps:$4 sm:$0xff]  }
  0x92   :  { %2378 = vmatmul.mubr.bf16.gmra.mxu1 %v4004_v24  ;;  %2475 = vmatmul.mubr.bf16.gmra.mxu0 %v4005_v25  ;;  %v4097_v24 = vld [vmem:[%s5465_s1 + $0x3a0] sm:$0xff]   ;;  %v4108_v30 = vld [vmem:[%s5465_s1 + $0x458] sm:$0xff]  }
  0x93   :  { %2385 = vmatprep.mubr.bf16.mxu1 %v4010_v28  ;;  %2482 = vmatprep.mubr.bf16.mxu0 %v4012_v29  ;;  %v4099_v25 = vld [vmem:[%s5465_s1 + $0x420] sm:$0xff]   ;;  %v4106_v28 = vld [vmem:[%s5465_s1 + $0x3d8] sm:$0xff]  }
  0x94   :  { %3565 = vmatpush3.bf16.msra.mxu1 %v4027_v31  ;;  %3629 = vmatpush3.bf16.msra.mxu0 %v4029_v33  ;;  %v4090_v29 = vld [vmem:[%s5466_s0 + $0x1dc] ss:$72 sps:$4 sm:$0xff]  }
  0x95   :  { %3566 = vmatprep.subr.bf16.mxu1 %v4036_v36  ;;  %3630 = vmatprep.subr.bf16.mxu0 %v4038_v40  ;;  %v4092_v31 = vld [vmem:[%s5466_s0 + $0x1e4] ss:$72 sps:$4 sm:$0xff]   ;;  %v4107_v32 = vld [vmem:[%s5465_s1 + $0x398] sm:$0xff]   ;;  %v4117_v36 = vld [vmem:[%s5465_s1 + $0x390] sm:$0xff]  }
  0x96   :  { %v4109_v33 = vld [vmem:[%s5465_s1 + $0x418] sm:$0xff]   ;;  %v4126_v40 = vld [vmem:[%s5465_s1 + $0x3c8] sm:$0xff]  }
  0x98   :  { %3567 = vmatpush3.bf16.msra.mxu1 %v4037_v39  ;;  %3631 = vmatpush3.bf16.msra.mxu0 %v4039_v41  ;;  %v4095_v39 = vld [vmem:[%s5466_s0 + $0x1e0] ss:$72 sps:$4 sm:$0xff]  }
  0x99   :  { %3568 = vmatprep.subr.bf16.mxu1 %v4046_v42  ;;  %3632 = vmatprep.subr.bf16.mxu0 %v4048_v47  ;;  %v4128_v41 = vld [vmem:[%s5465_s1 + $0x448] sm:$0xff]   ;;  %v4138_v47 = vld [vmem:[%s5465_s1 + $0x440] sm:$0xff]  }
  0x9a   :  { %2386 = vmatmul.mubr.bf16.gmra.mxu1 %v4014_v34  ;;  %2483 = vmatmul.mubr.bf16.gmra.mxu0 %v4015_v35  ;;  %v4116_v34 = vld [vmem:[%s5465_s1 + $0x3d0] sm:$0xff]  }
  0x9b   :  { %2393 = vmatprep.mubr.bf16.mxu1 %v4020_v37  ;;  %2490 = vmatprep.mubr.bf16.mxu0 %v4022_v38  ;;  %v4118_v35 = vld [vmem:[%s5465_s1 + $0x450] sm:$0xff]   ;;  %v4094_v38 = vld [vmem:[%s5466_s0 + $0x1d8] ss:$72 sps:$4 sm:$0xff]  }
  0x9c   :  { %3569 = vmatpush3.bf16.msra.mxu1 %v4047_v45  ;;  %3633 = vmatpush3.bf16.msra.mxu0 %v4049_v48  ;;  %v4119_v37 = vld [vmem:[%s5465_s1 + $0x410] sm:$0xff]   ;;  %v4129_v45 = vld [vmem:[%s5465_s1 + $0x408] sm:$0xff]   ;;  %v4137_v48 = vld [vmem:[%s5465_s1 + $0x380] sm:$0xff]  }
  0x9d   :  { %3570 = vmatprep.subr.bf16.mxu1 %v4056_v50  ;;  %3634 = vmatprep.subr.bf16.mxu0 %v4058_v52  ;;  %v4100_v42 = vld [vmem:[%s5466_s0 + $0x26c] ss:$72 sps:$4 sm:$0xff]   ;;  %v4104_v50 = vld [vmem:[%s5466_s0 + $0x268] ss:$72 sps:$4 sm:$0xff]   ;;  %v4110_v52 = vld [vmem:[%s5466_s0 + $0x2fc] ss:$72 sps:$4 sm:$0xff]  }
  0xa0   :  { %3571 = vmatpush3.bf16.msra.mxu1 %v4057_v51  ;;  %3635 = vmatpush3.bf16.msra.mxu0 %v4059_v53  ;;  %v4105_v51 = vld [vmem:[%s5466_s0 + $0x270] ss:$72 sps:$4 sm:$0xff]   ;;  %v4112_v53 = vld [vmem:[%s5466_s0 + $0x304] ss:$72 sps:$4 sm:$0xff]  }
  0xa1   :  { %3684 = vmatprep.subr.bf16.mxu1 %v4066_v58  ;;  %3748 = vmatprep.subr.bf16.mxu0 %v4068_v59 }
  0xa2   :  { %2394 = vmatmul.mubr.bf16.gmra.mxu1 %v4024_v43  ;;  %2491 = vmatmul.mubr.bf16.gmra.mxu0 %v4025_v44  ;;  %v4102_v43 = vld [vmem:[%s5466_s0 + $0x274] ss:$72 sps:$4 sm:$0xff]   ;;  %v4127_v44 = vld [vmem:[%s5465_s1 + $0x388] sm:$0xff]  }
  0xa3   :  { %2401 = vmatprep.mubr.bf16.mxu1 %v4030_v46  ;;  %2498 = vmatprep.mubr.bf16.mxu0 %v4032_v49  ;;  %v4136_v46 = vld [vmem:[%s5465_s1 + $0x3c0] sm:$0xff]  }
  0xa4   :  { %v4139_v49 = vld [vmem:[%s5465_s1 + $0x400] sm:$0xff]  }
  0xaa   :  { %2402 = vmatmul.mubr.bf16.gmra.mxu1 %v4034_v54  ;;  %2499 = vmatmul.mubr.bf16.gmra.mxu0 %v4035_v55 }
  0xab   :  { %2409 = vmatprep.mubr.bf16.mxu1 %v4040_v56  ;;  %2506 = vmatprep.mubr.bf16.mxu0 %v4042_v57 }
  0xb2   :  { %2410 = vmatmul.mubr.bf16.gmra.mxu1 %v4044_v60  ;;  %2507 = vmatmul.mubr.bf16.gmra.mxu0 %v4045_v61  ;;  %v4114_v60 = vld [vmem:[%s5466_s0 + $0x2f8] ss:$72 sps:$4 sm:$0xff]  }
  0xb3   :  { %2417 = vmatprep.mubr.bf16.mxu1 %v4050_v62  ;;  %2514 = vmatprep.mubr.bf16.mxu0 %v4052_v63  ;;  %v4115_v63 = vld [vmem:[%s5466_s0 + $0x300] ss:$72 sps:$4 sm:$0xff]  }
  0xba   :  { %2418 = vmatmul.mubr.bf16.gmra.mxu1 %v4054_v0  ;;  %2515 = vmatmul.mubr.bf16.gmra.mxu0 %v4055_v1  ;;  %v4120_v0 = vld [vmem:[%s5466_s0 + $0x38c] ss:$72 sps:$4 sm:$0xff]  }
  0xbb   :  { %2555 = vmatprep.mubr.bf16.mxu1 %v4062_v2  ;;  %2652 = vmatprep.mubr.bf16.mxu0 %v4065_v3  ;;  %v4122_v1 = vld [vmem:[%s5466_s0 + $0x394] ss:$72 sps:$4 sm:$0xff]  }
  0xc2   :  { %2556 = vmatmul.mubr.bf16.vlgmr.msra.gmra.mxu1 %v4060_v4  ;;  %2653 = vmatmul.mubr.bf16.vlgmr.msra.gmra.mxu0 %v4063_v5 }
  0xc3   :  { %3685 = vmatpush3.bf16.msra.mxu1 %v4067_v6  ;;  %3749 = vmatpush3.bf16.msra.mxu0 %v4069_v7 }
  0xc4   :  { %2563 = vmatprep.mubr.bf16.mxu1 %v4070_v8  ;;  %2660 = vmatprep.mubr.bf16.mxu0 %v4072_v9 }
  0xc5   :  { %3686 = vmatprep.subr.bf16.mxu1 %v4076_v10  ;;  %3750 = vmatprep.subr.bf16.mxu0 %v4078_v11 }
  0xc7   :  { %3687 = vmatpush3.bf16.msra.mxu1 %v4077_v12  ;;  %3751 = vmatpush3.bf16.msra.mxu0 %v4079_v13  ;;  %v4124_v12 = vld [vmem:[%s5466_s0 + $0x388] ss:$72 sps:$4 sm:$0xff]  }
  0xc8   :  { %3688 = vmatprep.subr.bf16.mxu1 %v4086_v16  ;;  %3752 = vmatprep.subr.bf16.mxu0 %v4088_v17  ;;  %v4130_v16 = vld [vmem:[%s5466_s0 + $0x41c] ss:$72 sps:$4 sm:$0xff]  }
  0xc9   :  { %v4132_v17 = vld [vmem:[%s5466_s0 + $0x424] ss:$72 sps:$4 sm:$0xff]  }
  0xca   :  { %2564 = vmatmul.mubr.bf16.gmra.mxu1 %v4074_v14  ;;  %2661 = vmatmul.mubr.bf16.gmra.mxu0 %v4075_v15  ;;  %v4125_v15 = vld [vmem:[%s5466_s0 + $0x390] ss:$72 sps:$4 sm:$0xff]  }
  0xcb   :  { %2571 = vmatprep.mubr.bf16.mxu1 %v4080_v18  ;;  %2668 = vmatprep.mubr.bf16.mxu0 %v4082_v19 }
  0xcc   :  { %3689 = vmatpush3.bf16.msra.mxu1 %v4087_v20  ;;  %3753 = vmatpush3.bf16.msra.mxu0 %v4089_v21 }
  0xcd   :  { %3690 = vmatprep.subr.bf16.mxu1 %v4096_v22  ;;  %3754 = vmatprep.subr.bf16.mxu0 %v4098_v23 }
  0xd0   :  { %3691 = vmatpush3.bf16.msra.mxu1 %v4097_v24  ;;  %3755 = vmatpush3.bf16.msra.mxu0 %v4099_v25 }
  0xd1   :  { %3692 = vmatprep.subr.bf16.mxu1 %v4106_v28  ;;  %3756 = vmatprep.subr.bf16.mxu0 %v4108_v30  ;;  %v4134_v30 = vld [vmem:[%s5466_s0 + $0x418] ss:$72 sps:$4 sm:$0xff]  }
  0xd2   :  { %2572 = vmatmul.mubr.bf16.gmra.mxu1 %v4084_v26  ;;  %2669 = vmatmul.mubr.bf16.gmra.mxu0 %v4085_v27 }
  0xd3   :  { %2579 = vmatprep.mubr.bf16.mxu1 %v4090_v29  ;;  %2676 = vmatprep.mubr.bf16.mxu0 %v4092_v31  ;;  %v4135_v31 = vld [vmem:[%s5466_s0 + $0x420] ss:$72 sps:$4 sm:$0xff]  }
  0xd4   :  { %3693 = vmatpush3.bf16.msra.mxu1 %v4107_v32  ;;  %3757 = vmatpush3.bf16.msra.mxu0 %v4109_v33  ;;  %v4142_v32 = vld [vmem:[%s5466_s0 + $0x3c] ss:$72 sps:$4 sm:$0xff]  }
  0xd5   :  { %3694 = vmatprep.subr.bf16.mxu1 %v4116_v34  ;;  %3758 = vmatprep.subr.bf16.mxu0 %v4118_v35  ;;  %v4145_v33 = vld [vmem:[%s5466_s0 + $0x44] ss:$72 sps:$4 sm:$0xff]  }
  0xd8   :  { %3695 = vmatpush3.bf16.msra.mxu1 %v4117_v36  ;;  %3759 = vmatpush3.bf16.msra.mxu0 %v4119_v37 }
  0xd9   :  { %3696 = vmatprep.subr.bf16.mxu1 %v4126_v40  ;;  %3760 = vmatprep.subr.bf16.mxu0 %v4128_v41 }
  0xda   :  { %2580 = vmatmul.mubr.bf16.gmra.mxu1 %v4094_v38  ;;  %2677 = vmatmul.mubr.bf16.gmra.mxu0 %v4095_v39 }
  0xdb   :  { %2587 = vmatprep.mubr.bf16.mxu1 %v4100_v42  ;;  %2684 = vmatprep.mubr.bf16.mxu0 %v4102_v43 }
  0xdc   :  { %3697 = vmatpush3.bf16.msra.mxu1 %v4127_v44  ;;  %3761 = vmatpush3.bf16.msra.mxu0 %v4129_v45 }
  0xdd   :  { %3698 = vmatprep.subr.bf16.mxu1 %v4136_v46  ;;  %3762 = vmatprep.subr.bf16.mxu0 %v4138_v47  ;;  %v4140_v46 = vld [vmem:[%s5466_s0 + $0x38] ss:$72 sps:$4 sm:$0xff]  }
  0xde   :  { %v4143_v47 = vld [vmem:[%s5466_s0 + $0x40] ss:$72 sps:$4 sm:$0xff]  }
  0xe0   :  { %3699 = vmatpush3.bf16.msra.mxu1 %v4137_v48  ;;  %3763 = vmatpush3.bf16.msra.mxu0 %v4139_v49  ;;  %v4148_v48 = vld [vmem:[%s5466_s0 + $0xcc] ss:$72 sps:$4 sm:$0xff]  }
  0xe1   :  { %v4151_v49 = vld [vmem:[%s5466_s0 + $0xd4] ss:$72 sps:$4 sm:$0xff]  }
  0xe2   :  { %v3252_v54 = vpop.f32.mrf.mxu0  ;;  %v3276_v55 = vpop.f32.mrf.mxu1  ;;  %2588 = vmatmul.mubr.bf16.gmra.mxu1 %v4104_v50  ;;  %2685 = vmatmul.mubr.bf16.gmra.mxu0 %v4105_v51 }
  0xe3   :  { %2595 = vmatprep.mubr.bf16.mxu1 %v4110_v52  ;;  %2692 = vmatprep.mubr.bf16.mxu0 %v4112_v53 }
  0xe4   :  { %v3253_v56 = vpop.f32.mrf.mxu0  ;;  %v3277_v57 = vpop.f32.mrf.mxu1 }
  0xe5   :  { %v4946_v58 = vadd.f32 %v3253_v56, %v3252_v54  ;;  %v4948_v59 = vadd.f32 %v3277_v57, %v3276_v55  ;;  %v5029_v54 = vld [vmem:[%s5467_s2] ss:$0 sm:$0xff] }
  0xe6   :  { %v3255_v61 = vpop.f32.mrf.mxu0  ;;  %v3279_v62 = vpop.f32.mrf.mxu1 }
  0xe8   :  { %v3256_v2 = vpop.f32.mrf.mxu0  ;;  %v3280_v3 = vpop.f32.mrf.mxu1 }
  0xe9   :  { %v4962_v4 = vadd.f32 %v3256_v2, %v3255_v61  ;;  %v4964_v5 = vadd.f32 %v3280_v3, %v3279_v62  ;;  %v2073_v61 = vadd.f32 %v4946_v58, %v5029_v54  ;;  %v4146_v2 = vld [vmem:[%s5466_s0 + $0xc8] ss:$72 sps:$4 sm:$0xff]   ;;  %v4157_v58 = vld [vmem:[%s5466_s0 + $0x164] ss:$72 sps:$4 sm:$0xff]  }
  0xea   :  { %v3258_v6 = vpop.f32.mrf.mxu0  ;;  %v3282_v7 = vpop.f32.mrf.mxu1  ;;  %2596 = vmatmul.mubr.bf16.gmra.mxu1 %v4114_v60  ;;  %2693 = vmatmul.mubr.bf16.gmra.mxu0 %v4115_v63  ;;  %v4149_v3 = vld [vmem:[%s5466_s0 + $0xd0] ss:$72 sps:$4 sm:$0xff]  }
  0xeb   :  { %2603 = vmatprep.mubr.bf16.mxu1 %v4120_v0  ;;  %2700 = vmatprep.mubr.bf16.mxu0 %v4122_v1 }
  0xec   :  { %v3259_v8 = vpop.f32.mrf.mxu0  ;;  %v3283_v9 = vpop.f32.mrf.mxu1 }
  0xed   :  { %v4966_v10 = vadd.f32 %v3259_v8, %v3258_v6  ;;  %v4968_v11 = vadd.f32 %v3283_v9, %v3282_v7  ;;  %v4154_v7 = vld [vmem:[%s5466_s0 + $0x15c] ss:$72 sps:$4 sm:$0xff]  }
  0xee   :  { %v3261_v13 = vpop.f32.mrf.mxu0  ;;  %v3285_v14 = vpop.f32.mrf.mxu1 }
  0xf0   :  { %v3262_v18 = vpop.f32.mrf.mxu0  ;;  %v3286_v19 = vpop.f32.mrf.mxu1 }
  0xf1   :  { %v4982_v20 = vadd.f32 %v3262_v18, %v3261_v13  ;;  %v4984_v21 = vadd.f32 %v3286_v19, %v3285_v14 }
  0xf2   :  { %v3264_v22 = vpop.f32.mrf.mxu0  ;;  %v3288_v23 = vpop.f32.mrf.mxu1  ;;  %2604 = vmatmul.mubr.bf16.gmra.mxu1 %v4124_v12  ;;  %2701 = vmatmul.mubr.bf16.gmra.mxu0 %v4125_v15  ;;  %v2076_v12 = vadd.f32 %v4962_v4, %v5029_v54 }
  0xf3   :  { %2611 = vmatprep.mubr.bf16.mxu1 %v4130_v16  ;;  %2708 = vmatprep.mubr.bf16.mxu0 %v4132_v17 }
  0xf4   :  { %v3265_v24 = vpop.f32.mrf.mxu0  ;;  %v3289_v25 = vpop.f32.mrf.mxu1 }
  0xf5   :  { %v4986_v26 = vadd.f32 %v3265_v24, %v3264_v22  ;;  %v4988_v27 = vadd.f32 %v3289_v25, %v3288_v23  ;;  %v2081_v23 = vadd.f32 %v4966_v10, %v5029_v54  ;;  %v4163_v10 = vld [vmem:[%s5466_s0 + $0x1f4] ss:$72 sps:$4 sm:$0xff]  }
  0xf6   :  { %v3267_v28 = vpop.f32.mrf.mxu0  ;;  %v3291_v29 = vpop.f32.mrf.mxu1 }
  0xf8   :  { %v3268_v34 = vpop.f32.mrf.mxu0  ;;  %v3292_v35 = vpop.f32.mrf.mxu1 }
  0xf9   :  { %v5002_v36 = vadd.f32 %v3268_v34, %v3267_v28  ;;  %v5004_v37 = vadd.f32 %v3292_v35, %v3291_v29 }
  0xfa   :  { %v3270_v38 = vpop.f32.mrf.mxu0  ;;  %v3294_v39 = vpop.f32.mrf.mxu1  ;;  %2612 = vmatmul.mubr.bf16.gmra.mxu1 %v4134_v30  ;;  %2709 = vmatmul.mubr.bf16.gmra.mxu0 %v4135_v31  ;;  %v4152_v30 = vld [vmem:[%s5466_s0 + $0x158] ss:$72 sps:$4 sm:$0xff]  }
  0xfb   :  { %2749 = vmatprep.mubr.bf16.mxu1 %v4142_v32  ;;  %2846 = vmatprep.mubr.bf16.mxu0 %v4145_v33  ;;  %v4155_v31 = vld [vmem:[%s5466_s0 + $0x160] ss:$72 sps:$4 sm:$0xff]   ;;  %v4160_v33 = vld [vmem:[%s5466_s0 + $0x1ec] ss:$72 sps:$4 sm:$0xff]  }
  0xfc   :  { %v3271_v40 = vpop.f32.mrf.mxu0  ;;  %v3295_v41 = vpop.f32.mrf.mxu1 }
  0xfd   :  { %v5006_v42 = vadd.f32 %v3271_v40, %v3270_v38  ;;  %v5008_v43 = vadd.f32 %v3295_v41, %v3294_v39  ;;  %v2084_v38 = vadd.f32 %v4982_v20, %v5029_v54 }
  0xfe   :  { %v3273_v44 = vpop.f32.mrf.mxu0  ;;  %v3297_v45 = vpop.f32.mrf.mxu1 }
 0x100   :  { %v3274_v50 = vpop.f32.mrf.mxu0  ;;  %v3298_v51 = vpop.f32.mrf.mxu1 }
 0x101   :  { %v5022_v52 = vadd.f32 %v3274_v50, %v3273_v44  ;;  %v5024_v53 = vadd.f32 %v3298_v51, %v3297_v45 }
 0x102   :  { %v3316_v55 = vpop.f32.mrf.mxu1  ;;  %v3380_v56 = vpop.f32.mrf.mxu0  ;;  %2750 = vmatmul.mubr.bf16.vlgmr.msra.gmra.mxu1 %v4140_v46  ;;  %2847 = vmatmul.mubr.bf16.vlgmr.msra.gmra.mxu0 %v4143_v47 }
 0x103   :  { %2757 = vmatprep.mubr.bf16.mxu1 %v4148_v48  ;;  %2854 = vmatprep.mubr.bf16.mxu0 %v4151_v49  ;;  %v2089_v49 = vadd.f32 %v4986_v26, %v5029_v54  ;;  %v4169_v26 = vld [vmem:[%s5466_s0 + $0x284] ss:$72 sps:$4 sm:$0xff]  }
 0x104   :  { %v3317_v57 = vpop.f32.mrf.mxu1  ;;  %v3381_v60 = vpop.f32.mrf.mxu0 }
 0x105   :  { %v3318_v62 = vadd.f32 %v3317_v57, %v3316_v55  ;;  %v3382_v63 = vadd.f32 %v3381_v60, %v3380_v56  ;;  %v4158_v57 = vld [vmem:[%s5466_s0 + $0x1e8] ss:$72 sps:$4 sm:$0xff]  }
 0x106   :  { %v3319_v0 = vpop.f32.mrf.mxu1  ;;  %v3383_v1 = vpop.f32.mrf.mxu0  ;;  %v4161_v60 = vld [vmem:[%s5466_s0 + $0x1f0] ss:$72 sps:$4 sm:$0xff]  }
 0x107   :  { %v2170_v6 = vadd.f32 %v3318_v62, %v2073_v61  ;;  %v4166_v62 = vld [vmem:[%s5466_s0 + $0x27c] ss:$72 sps:$4 sm:$0xff]  }
 0x108   :  { %v3320_v8 = vpop.f32.mrf.mxu1  ;;  %v3384_v9 = vpop.f32.mrf.mxu0 }
 0x109   :  { %v5047_v13 = vadd.f32 %v3382_v63, %v2170_v6  ;;  %v3321_v14 = vadd.f32 %v3320_v8, %v3319_v0  ;;  %v3385_v15 = vadd.f32 %v3384_v9, %v3383_v1  ;;  %v2092_v1 = vadd.f32 %v5002_v36, %v5029_v54 }
 0x10a   :  { %v3322_v16 = vpop.f32.mrf.mxu1  ;;  %v3386_v17 = vpop.f32.mrf.mxu0  ;;  %2758 = vmatmul.mubr.bf16.gmra.mxu1 %v4146_v2  ;;  %2855 = vmatmul.mubr.bf16.gmra.mxu0 %v4149_v3 }
 0x10b   :  { %v2173_v18 = vadd.f32 %v3321_v14, %v2076_v12  ;;  %2765 = vmatprep.mubr.bf16.mxu1 %v4154_v7  ;;  %2862 = vmatprep.mubr.bf16.mxu0 %v4157_v58  ;;  %v2097_v14 = vadd.f32 %v5006_v42, %v5029_v54  ;;  %v4175_v42 = vld [vmem:[%s5466_s0 + $0x314] ss:$72 sps:$4 sm:$0xff]  }
 0x10c   :  { %v3323_v19 = vpop.f32.mrf.mxu1  ;;  %v3387_v22 = vpop.f32.mrf.mxu0 }
 0x10d   :  { %v5051_v24 = vadd.f32 %v3385_v15, %v2173_v18  ;;  %v3324_v25 = vadd.f32 %v3323_v19, %v3322_v16  ;;  %v3388_v4 = vadd.f32 %v3387_v22, %v3386_v17  ;;  %v4164_v19 = vld [vmem:[%s5466_s0 + $0x278] ss:$72 sps:$4 sm:$0xff]  }
 0x10e   :  { %v3325_v28 = vpop.f32.mrf.mxu1  ;;  %v3389_v29 = vpop.f32.mrf.mxu0  ;;  %v4167_v22 = vld [vmem:[%s5466_s0 + $0x280] ss:$72 sps:$4 sm:$0xff]  }
 0x10f   :  { %v2178_v32 = vadd.f32 %v3324_v25, %v2081_v23  ;;  %v4172_v25 = vld [vmem:[%s5466_s0 + $0x30c] ss:$72 sps:$4 sm:$0xff]  }
 0x110   :  { %v3326_v34 = vpop.f32.mrf.mxu1  ;;  %v3390_v35 = vpop.f32.mrf.mxu0 }
 0x111   :  { %v5067_v39 = vadd.f32 %v3388_v4, %v2178_v32  ;;  %v3327_v40 = vadd.f32 %v3326_v34, %v3325_v28  ;;  %v3391_v41 = vadd.f32 %v3390_v35, %v3389_v29  ;;  %v2100_v29 = vadd.f32 %v5022_v52, %v5029_v54 }
 0x112   :  { %v3328_v44 = vpop.f32.mrf.mxu1  ;;  %v3392_v45 = vpop.f32.mrf.mxu0  ;;  %2766 = vmatmul.mubr.bf16.gmra.mxu1 %v4152_v30  ;;  %2863 = vmatmul.mubr.bf16.gmra.mxu0 %v4155_v31 }
 0x113   :  { %v2181_v46 = vadd.f32 %v3327_v40, %v2084_v38  ;;  %2773 = vmatprep.mubr.bf16.mxu1 %v4160_v33  ;;  %2870 = vmatprep.mubr.bf16.mxu0 %v4163_v10  ;;  %v2105_v40 = vadd.f32 %v4948_v59, %v5029_v54  ;;  %v4181_v59 = vld [vmem:[%s5466_s0 + $0x3a4] ss:$72 sps:$4 sm:$0xff]  }
 0x114   :  { %v3329_v47 = vpop.f32.mrf.mxu1  ;;  %v3393_v48 = vpop.f32.mrf.mxu0 }
 0x115   :  { %v5071_v50 = vadd.f32 %v3391_v41, %v2181_v46  ;;  %v3330_v51 = vadd.f32 %v3329_v47, %v3328_v44  ;;  %v3394_v20 = vadd.f32 %v3393_v48, %v3392_v45  ;;  %v4170_v47 = vld [vmem:[%s5466_s0 + $0x308] ss:$72 sps:$4 sm:$0xff]  }
 0x116   :  { %v3331_v55 = vpop.f32.mrf.mxu1  ;;  %v3395_v56 = vpop.f32.mrf.mxu0  ;;  %v4173_v48 = vld [vmem:[%s5466_s0 + $0x310] ss:$72 sps:$4 sm:$0xff]  }
 0x117   :  { %v2186_v61 = vadd.f32 %v3330_v51, %v2089_v49  ;;  %v4178_v51 = vld [vmem:[%s5466_s0 + $0x39c] ss:$72 sps:$4 sm:$0xff]  }
 0x118   :  { %v3332_v63 = vpop.f32.mrf.mxu1  ;;  %v3396_v0 = vpop.f32.mrf.mxu0 }
 0x119   :  { %v5087_v2 = vadd.f32 %v3394_v20, %v2186_v61  ;;  %v3333_v3 = vadd.f32 %v3332_v63, %v3331_v55  ;;  %v3397_v6 = vadd.f32 %v3396_v0, %v3395_v56  ;;  %v2108_v56 = vadd.f32 %v4964_v5, %v5029_v54 }
 0x11a   :  { %v3334_v7 = vpop.f32.mrf.mxu1  ;;  %v3398_v58 = vpop.f32.mrf.mxu0  ;;  %2774 = vmatmul.mubr.bf16.gmra.mxu1 %v4158_v57  ;;  %2871 = vmatmul.mubr.bf16.gmra.mxu0 %v4161_v60 }
 0x11b   :  { %v2189_v8 = vadd.f32 %v3333_v3, %v2092_v1  ;;  %2781 = vmatprep.mubr.bf16.mxu1 %v4166_v62  ;;  %2878 = vmatprep.mubr.bf16.mxu0 %v4169_v26  ;;  %v2113_v3 = vadd.f32 %v4968_v11, %v5029_v54  ;;  %v4187_v11 = vld [vmem:[%s5466_s0 + $0x434] ss:$72 sps:$4 sm:$0xff]  }
 0x11c   :  { %v3335_v9 = vpop.f32.mrf.mxu1  ;;  %v3399_v12 = vpop.f32.mrf.mxu0 }
 0x11d   :  { %v5091_v15 = vadd.f32 %v3397_v6, %v2189_v8  ;;  %v3336_v16 = vadd.f32 %v3335_v9, %v3334_v7  ;;  %v3400_v36 = vadd.f32 %v3399_v12, %v3398_v58  ;;  %v4176_v9 = vld [vmem:[%s5466_s0 + $0x398] ss:$72 sps:$4 sm:$0xff]  }
 0x11e   :  { %v3337_v17 = vpop.f32.mrf.mxu1  ;;  %v3401_v18 = vpop.f32.mrf.mxu0  ;;  %v4179_v12 = vld [vmem:[%s5466_s0 + $0x3a0] ss:$72 sps:$4 sm:$0xff]  }
 0x11f   :  { %v2194_v23 = vadd.f32 %v3336_v16, %v2097_v14  ;;  %v4184_v16 = vld [vmem:[%s5466_s0 + $0x42c] ss:$72 sps:$4 sm:$0xff]  }
 0x120   :  { %v3338_v4 = vpop.f32.mrf.mxu1  ;;  %v3402_v28 = vpop.f32.mrf.mxu0 }
 0x121   :  { %v5107_v30 = vadd.f32 %v3400_v36, %v2194_v23  ;;  %v3339_v31 = vadd.f32 %v3338_v4, %v3337_v17  ;;  %v3403_v32 = vadd.f32 %v3402_v28, %v3401_v18  ;;  %v2116_v18 = vadd.f32 %v4984_v21, %v5029_v54 }
 0x122   :  { %v3340_v33 = vpop.f32.mrf.mxu1  ;;  %v3404_v10 = vpop.f32.mrf.mxu0  ;;  %2782 = vmatmul.mubr.bf16.gmra.mxu1 %v4164_v19  ;;  %2879 = vmatmul.mubr.bf16.gmra.mxu0 %v4167_v22 }
 0x123   :  { %v2197_v34 = vadd.f32 %v3339_v31, %v2100_v29  ;;  %2789 = vmatprep.mubr.bf16.mxu1 %v4172_v25  ;;  %2886 = vmatprep.mubr.bf16.mxu0 %v4175_v42  ;;  %v2121_v31 = vadd.f32 %v4988_v27, %v5029_v54  ;;  %v2124_v27 = vadd.f32 %v5004_v37, %v5029_v54 }
 0x124   :  { %v3341_v35 = vpop.f32.mrf.mxu1  ;;  %v3405_v38 = vpop.f32.mrf.mxu0 }
 0x125   :  { %v5111_v41 = vadd.f32 %v3403_v32, %v2197_v34  ;;  %v3342_v44 = vadd.f32 %v3341_v35, %v3340_v33  ;;  %v3406_v52 = vadd.f32 %v3405_v38, %v3404_v10  ;;  %v4182_v35 = vld [vmem:[%s5466_s0 + $0x428] ss:$72 sps:$4 sm:$0xff]  }
 0x126   :  { %v3343_v45 = vpop.f32.mrf.mxu1  ;;  %v3407_v46 = vpop.f32.mrf.mxu0  ;;  %v4185_v38 = vld [vmem:[%s5466_s0 + $0x430] ss:$72 sps:$4 sm:$0xff]  }
 0x127   :  { %v2202_v49 = vadd.f32 %v3342_v44, %v2105_v40 }
 0x128   :  { %v3344_v20 = vpop.f32.mrf.mxu1  ;;  %v3408_v55 = vpop.f32.mrf.mxu0 }
 0x129   :  { %v5127_v57 = vadd.f32 %v3406_v52, %v2202_v49  ;;  %v3345_v60 = vadd.f32 %v3344_v20, %v3343_v45  ;;  %v3409_v61 = vadd.f32 %v3408_v55, %v3407_v46  ;;  %v2129_v55 = vadd.f32 %v5008_v43, %v5029_v54 }
 0x12a   :  { %v3346_v62 = vpop.f32.mrf.mxu1  ;;  %v3410_v26 = vpop.f32.mrf.mxu0  ;;  %2790 = vmatmul.mubr.bf16.gmra.mxu1 %v4170_v47  ;;  %2887 = vmatmul.mubr.bf16.gmra.mxu0 %v4173_v48 }
 0x12b   :  { %v2205_v63 = vadd.f32 %v3345_v60, %v2108_v56  ;;  %2797 = vmatprep.mubr.bf16.mxu1 %v4178_v51  ;;  %2894 = vmatprep.mubr.bf16.mxu0 %v4181_v59 }
 0x12c   :  { %v3347_v0 = vpop.f32.mrf.mxu1  ;;  %v3411_v1 = vpop.f32.mrf.mxu0 }
 0x12d   :  { %v5131_v6 = vadd.f32 %v3409_v61, %v2205_v63  ;;  %v3348_v7 = vadd.f32 %v3347_v0, %v3346_v62  ;;  %v3412_v5 = vadd.f32 %v3411_v1, %v3410_v26  ;;  %v2132_v1 = vadd.f32 %v5024_v53, %v5029_v54 }
 0x12e   :  { %v3349_v58 = vpop.f32.mrf.mxu1  ;;  %v3413_v8 = vpop.f32.mrf.mxu0 }
 0x12f   :  { %v2210_v14 = vadd.f32 %v3348_v7, %v2113_v3 }
 0x130   :  { %v3350_v36 = vpop.f32.mrf.mxu1  ;;  %v3414_v17 = vpop.f32.mrf.mxu0 }
 0x131   :  { %v5147_v19 = vadd.f32 %v3412_v5, %v2210_v14  ;;  %v3351_v22 = vadd.f32 %v3350_v36, %v3349_v58  ;;  %v3415_v23 = vadd.f32 %v3414_v17, %v3413_v8 }
 0x132   :  { %v3352_v25 = vpop.f32.mrf.mxu1  ;;  %v3416_v42 = vpop.f32.mrf.mxu0  ;;  %2798 = vmatmul.mubr.bf16.gmra.mxu1 %v4176_v9  ;;  %2895 = vmatmul.mubr.bf16.gmra.mxu0 %v4179_v12 }
 0x133   :  { %v2213_v4 = vadd.f32 %v3351_v22, %v2116_v18  ;;  %2805 = vmatprep.mubr.bf16.mxu1 %v4184_v16  ;;  %2902 = vmatprep.mubr.bf16.mxu0 %v4187_v11 }
 0x134   :  { %v3353_v28 = vpop.f32.mrf.mxu1  ;;  %v3417_v29 = vpop.f32.mrf.mxu0 }
 0x135   :  { %v5151_v32 = vadd.f32 %v3415_v23, %v2213_v4  ;;  %v3354_v33 = vadd.f32 %v3353_v28, %v3352_v25  ;;  %v3418_v21 = vadd.f32 %v3417_v29, %v3416_v42 }
 0x136   :  { %v3355_v10 = vpop.f32.mrf.mxu1  ;;  %v3419_v34 = vpop.f32.mrf.mxu0 }
 0x137   :  { %v2218_v40 = vadd.f32 %v3354_v33, %v2121_v31 }
 0x138   :  { %v3356_v44 = vpop.f32.mrf.mxu1  ;;  %v3420_v52 = vpop.f32.mrf.mxu0 }
 0x139   :  { %v5161_v45 = vadd.f32 %v3418_v21, %v2218_v40  ;;  %v3357_v46 = vadd.f32 %v3356_v44, %v3355_v10  ;;  %v3421_v47 = vadd.f32 %v3420_v52, %v3419_v34 }
 0x13a   :  { %v3358_v48 = vpop.f32.mrf.mxu1  ;;  %v3422_v49 = vpop.f32.mrf.mxu0  ;;  %2806 = vmatmul.mubr.bf16.gmra.mxu1 %v4182_v35  ;;  %2903 = vmatmul.mubr.bf16.gmra.mxu0 %v4185_v38 }
 0x13b   :  { %v2221_v51 = vadd.f32 %v3357_v46, %v2124_v27 }
 0x13c   :  { %v3359_v59 = vpop.f32.mrf.mxu1  ;;  %v3423_v20 = vpop.f32.mrf.mxu0 }
 0x13d   :  { %v5165_v56 = vadd.f32 %v3421_v47, %v2221_v51  ;;  %v3360_v60 = vadd.f32 %v3359_v59, %v3358_v48  ;;  %v3424_v61 = vadd.f32 %v3423_v20, %v3422_v49 }
 0x13e   :  { %v3361_v62 = vpop.f32.mrf.mxu1  ;;  %v3425_v37 = vpop.f32.mrf.mxu0 }
 0x13f   :  { %v2226_v26 = vadd.f32 %v3360_v60, %v2129_v55 }
 0x140   :  { %v3362_v63 = vpop.f32.mrf.mxu1  ;;  %v3426_v0 = vpop.f32.mrf.mxu0 }
 0x141   :  { %v5169_v3 = vadd.f32 %v3424_v61, %v2226_v26  ;;  %v3363_v7 = vadd.f32 %v3362_v63, %v3361_v62  ;;  %v3427_v5 = vadd.f32 %v3426_v0, %v3425_v37 }
 0x142   :  { %v3444_v58 = vpop.f32.mrf.mxu1  ;;  %v3508_v8 = vpop.f32.mrf.mxu0 }
 0x143   :  { %v2229_v9 = vadd.f32 %v3363_v7, %v2132_v1 }
 0x144   :  { %v3445_v43 = vpop.f32.mrf.mxu1  ;;  %v3509_v12 = vpop.f32.mrf.mxu0 }
 0x145   :  { %v5171_v14 = vadd.f32 %v3427_v5, %v2229_v9  ;;  %v3446_v16 = vadd.f32 %v3445_v43, %v3444_v58  ;;  %v3510_v11 = vadd.f32 %v3509_v12, %v3508_v8 }
 0x146   :  { %v3447_v36 = vpop.f32.mrf.mxu1  ;;  %v3511_v17 = vpop.f32.mrf.mxu0 }
 0x147   :  { %v2364_v18 = vadd.f32 %v3446_v16, %v5047_v13 }
 0x148   :  { %v3448_v22 = vpop.f32.mrf.mxu1  ;;  %v3512_v23 = vpop.f32.mrf.mxu0 }
 0x149   :  { %v5174_v53 = vadd.f32 %v3510_v11, %v2364_v18  ;;  %v3449_v54 = vadd.f32 %v3448_v22, %v3447_v36  ;;  %v3513_v25 = vadd.f32 %v3512_v23, %v3511_v17 }
 0x14a   :  { %v3450_v42 = vpop.f32.mrf.mxu1  ;;  %v3514_v4 = vpop.f32.mrf.mxu0 }
 0x14b   :  { %v2367_v28 = vadd.f32 %v3449_v54, %v5051_v24 }
 0x14c   :  { %v3451_v29 = vpop.f32.mrf.mxu1  ;;  %v3515_v31 = vpop.f32.mrf.mxu0 }
 0x14d   :  { %v5177_v33 = vadd.f32 %v3513_v25, %v2367_v28  ;;  %v3452_v21 = vadd.f32 %v3451_v29, %v3450_v42  ;;  %v3516_v10 = vadd.f32 %v3515_v31, %v3514_v4 }
 0x14e   :  { %v3453_v34 = vpop.f32.mrf.mxu1  ;;  %v3517_v35 = vpop.f32.mrf.mxu0 }
 0x14f   :  { %v2372_v13 = vadd.f32 %v3452_v21, %v5067_v39 }
 0x150   :  { %v3454_v38 = vpop.f32.mrf.mxu1  ;;  %v3518_v40 = vpop.f32.mrf.mxu0 }
 0x151   :  { %v5180_v44 = vadd.f32 %v3516_v10, %v2372_v13  ;;  %v3455_v52 = vadd.f32 %v3454_v38, %v3453_v34  ;;  %v3519_v27 = vadd.f32 %v3518_v40, %v3517_v35 }
 0x152   :  { %v3456_v46 = vpop.f32.mrf.mxu1  ;;  %v3520_v47 = vpop.f32.mrf.mxu0 }
 0x153   :  { %v2375_v24 = vadd.f32 %v3455_v52, %v5071_v50 }
 0x154   :  { %v3457_v48 = vpop.f32.mrf.mxu1  ;;  %v3521_v49 = vpop.f32.mrf.mxu0 }
 0x155   :  { %v5183_v51 = vadd.f32 %v3519_v27, %v2375_v24  ;;  %v3458_v59 = vadd.f32 %v3457_v48, %v3456_v46  ;;  %v3522_v20 = vadd.f32 %v3521_v49, %v3520_v47 }
 0x156   :  { %v3459_v55 = vpop.f32.mrf.mxu1  ;;  %v3523_v60 = vpop.f32.mrf.mxu0 }
 0x157   :  { %v2380_v39 = vadd.f32 %v3458_v59, %v5087_v2 }
 0x158   :  { %v3460_v61 = vpop.f32.mrf.mxu1  ;;  %v3524_v62 = vpop.f32.mrf.mxu0 }
 0x159   :  { %v5186_v37 = vadd.f32 %v3522_v20, %v2380_v39  ;;  %v3461_v26 = vadd.f32 %v3460_v61, %v3459_v55  ;;  %v3525_v63 = vadd.f32 %v3524_v62, %v3523_v60 }
 0x15a   :  { %v3462_v0 = vpop.f32.mrf.mxu1  ;;  %v3526_v1 = vpop.f32.mrf.mxu0 }
 0x15b   :  { %v2383_v50 = vadd.f32 %v3461_v26, %v5091_v15 }
 0x15c   :  { %v3463_v7 = vpop.f32.mrf.mxu1  ;;  %v3527_v5 = vpop.f32.mrf.mxu0 }
 0x15d   :  { %v5189_v58 = vadd.f32 %v3525_v63, %v2383_v50  ;;  %v3464_v8 = vadd.f32 %v3463_v7, %v3462_v0  ;;  %v3528_v9 = vadd.f32 %v3527_v5, %v3526_v1 }
 0x15e   :  { %v3465_v43 = vpop.f32.mrf.mxu1  ;;  %v3529_v12 = vpop.f32.mrf.mxu0 }
 0x15f   :  { %v2388_v2 = vadd.f32 %v3464_v8, %v5107_v30 }
 0x160   :  { %v3466_v16 = vpop.f32.mrf.mxu1  ;;  %v3530_v11 = vpop.f32.mrf.mxu0 }
 0x161   :  { %v5192_v36 = vadd.f32 %v3528_v9, %v2388_v2  ;;  %v3467_v17 = vadd.f32 %v3466_v16, %v3465_v43  ;;  %v3531_v18 = vadd.f32 %v3530_v11, %v3529_v12 }
 0x162   :  { %v3468_v22 = vpop.f32.mrf.mxu1  ;;  %v3532_v23 = vpop.f32.mrf.mxu0 }
 0x163   :  { %v2391_v15 = vadd.f32 %v3467_v17, %v5111_v41 }
 0x164   :  { %v3469_v54 = vpop.f32.mrf.mxu1  ;;  %v3533_v25 = vpop.f32.mrf.mxu0 }
 0x165   :  { %v5195_v42 = vadd.f32 %v3531_v18, %v2391_v15  ;;  %v3470_v4 = vadd.f32 %v3469_v54, %v3468_v22  ;;  %v3534_v28 = vadd.f32 %v3533_v25, %v3532_v23 }
 0x166   :  { %v3471_v29 = vpop.f32.mrf.mxu1  ;;  %v3535_v31 = vpop.f32.mrf.mxu0 }
 0x167   :  { %v2396_v30 = vadd.f32 %v3470_v4, %v5127_v57 }
 0x168   :  { %v3472_v21 = vpop.f32.mrf.mxu1  ;;  %v3536_v10 = vpop.f32.mrf.mxu0 }
 0x169   :  { %v5198_v34 = vadd.f32 %v3534_v28, %v2396_v30  ;;  %v3473_v35 = vadd.f32 %v3472_v21, %v3471_v29  ;;  %v3537_v13 = vadd.f32 %v3536_v10, %v3535_v31 }
 0x16a   :  { %v3474_v38 = vpop.f32.mrf.mxu1  ;;  %v3538_v40 = vpop.f32.mrf.mxu0 }
 0x16b   :  { %v2399_v41 = vadd.f32 %v3473_v35, %v5131_v6 }
 0x16c   :  { %v3475_v52 = vpop.f32.mrf.mxu1  ;;  %v3539_v27 = vpop.f32.mrf.mxu0 }
 0x16d   :  { %v5201_v46 = vadd.f32 %v3537_v13, %v2399_v41  ;;  %v3476_v47 = vadd.f32 %v3475_v52, %v3474_v38  ;;  %v3540_v24 = vadd.f32 %v3539_v27, %v3538_v40 }
 0x16e   :  { %v3477_v48 = vpop.f32.mrf.mxu1  ;;  %v3541_v49 = vpop.f32.mrf.mxu0 }
 0x16f   :  { %v2404_v57 = vadd.f32 %v3476_v47, %v5147_v19 }
 0x170   :  { %v3478_v59 = vpop.f32.mrf.mxu1  ;;  %v3542_v20 = vpop.f32.mrf.mxu0 }
 0x171   :  { %v5204_v55 = vadd.f32 %v3540_v24, %v2404_v57  ;;  %v3479_v60 = vadd.f32 %v3478_v59, %v3477_v48  ;;  %v3543_v39 = vadd.f32 %v3542_v20, %v3541_v49 }
 0x172   :  { %v3480_v61 = vpop.f32.mrf.mxu1  ;;  %v3544_v62 = vpop.f32.mrf.mxu0 }
 0x173   :  { %5469 = vst [vmem:[#allocation2_spill] sm:$0xff] %v5204_v55  ;;  %v2407_v6 = vadd.f32 %v3479_v60, %v5151_v32 }
 0x174   :  { %v3481_v26 = vpop.f32.mrf.mxu1  ;;  %v3545_v63 = vpop.f32.mrf.mxu0 }
 0x175   :  { %v5207_v0 = vadd.f32 %v3543_v39, %v2407_v6  ;;  %v3482_v1 = vadd.f32 %v3481_v26, %v3480_v61  ;;  %v3546_v50 = vadd.f32 %v3545_v63, %v3544_v62 }
 0x176   :  { %v3483_v7 = vpop.f32.mrf.mxu1  ;;  %v3547_v5 = vpop.f32.mrf.mxu0 }
 0x177   :  { %5470 = vst [vmem:[#allocation3_spill] sm:$0xff] %v5207_v0  ;;  %v2412_v19 = vadd.f32 %v3482_v1, %v5161_v45 }
 0x178   :  { %v3484_v8 = vpop.f32.mrf.mxu1  ;;  %v3548_v9 = vpop.f32.mrf.mxu0 }
 0x179   :  { %v5210_v43 = vadd.f32 %v3546_v50, %v2412_v19  ;;  %v3485_v12 = vadd.f32 %v3484_v8, %v3483_v7  ;;  %v3549_v2 = vadd.f32 %v3548_v9, %v3547_v5 }
 0x17a   :  { %v3486_v16 = vpop.f32.mrf.mxu1  ;;  %v3550_v11 = vpop.f32.mrf.mxu0 }
 0x17b   :  { %5471 = vst [vmem:[#allocation4_spill] sm:$0xff] %v5210_v43  ;;  %v2415_v32 = vadd.f32 %v3485_v12, %v5165_v56 }
 0x17c   :  { %v3487_v17 = vpop.f32.mrf.mxu1  ;;  %v3551_v18 = vpop.f32.mrf.mxu0 }
 0x17d   :  { %v5213_v22 = vadd.f32 %v3549_v2, %v2415_v32  ;;  %v3488_v23 = vadd.f32 %v3487_v17, %v3486_v16  ;;  %v3552_v15 = vadd.f32 %v3551_v18, %v3550_v11 }
 0x17e   :  { %v3489_v54 = vpop.f32.mrf.mxu1  ;;  %v3553_v25 = vpop.f32.mrf.mxu0 }
 0x17f   :  { %5472 = vst [vmem:[#allocation5_spill] sm:$0xff] %v5213_v22  ;;  %v2420_v45 = vadd.f32 %v3488_v23, %v5169_v3 }
 0x180   :  { %v3490_v4 = vpop.f32.mrf.mxu1  ;;  %v3554_v28 = vpop.f32.mrf.mxu0 }
 0x181   :  { %v5216_v29 = vadd.f32 %v3552_v15, %v2420_v45  ;;  %v3491_v31 = vadd.f32 %v3490_v4, %v3489_v54  ;;  %v3555_v30 = vadd.f32 %v3554_v28, %v3553_v25 }
 0x182   :  { %v3572_v21 = vpop.f32.mrf.mxu1  ;;  %v5218_v10 = vpop.f32.mrf.mxu0 }
 0x183   :  { %5473 = vst [vmem:[#allocation6_spill] sm:$0xff] %v5216_v29  ;;  %v2423_v56 = vadd.f32 %v3491_v31, %v5171_v14 }
 0x184   :  { %v3573_v35 = vpop.f32.mrf.mxu1  ;;  %v5221_v13 = vpop.f32.mrf.mxu0 }
 0x185   :  { %v5223_v38 = vadd.f32 %v3555_v30, %v2423_v56 }
 0x186   :  { %v3575_v40 = vpop.f32.mrf.mxu1  ;;  %v5225_v41 = vpop.f32.mrf.mxu0 }
 0x187   :  { %5474 = vst [vmem:[#allocation7_spill] sm:$0xff] %v5223_v38 }
 0x188   :  { %v3576_v3 = vpop.f32.mrf.mxu1  ;;  %v5227_v52 = vpop.f32.mrf.mxu0 }
 0x18a   :  { %v5229_v27 = vpop.f32.mrf.mxu1  ;;  %v5231_v47 = vpop.f32.mrf.mxu0 }
 0x18c   :  { %v5233_v24 = vpop.f32.mrf.mxu1  ;;  %v5235_v48 = vpop.f32.mrf.mxu0 }
 0x18e   :  { %v5237_v14 = vpop.f32.mrf.mxu1  ;;  %v5239_v49 = vpop.f32.mrf.mxu0 }
 0x190   :  { %v5241_v57 = vpop.f32.mrf.mxu1  ;;  %v5243_v59 = vpop.f32.mrf.mxu0 }
 0x192   :  { %v5245_v20 = vpop.f32.mrf.mxu1  ;;  %v5247_v60 = vpop.f32.mrf.mxu0 }
 0x194   :  { %v5249_v39 = vpop.f32.mrf.mxu1  ;;  %v5251_v61 = vpop.f32.mrf.mxu0 }
 0x196   :  { %v5253_v62 = vpop.f32.mrf.mxu1  ;;  %v5255_v6 = vpop.f32.mrf.mxu0 }
 0x198   :  { %v5257_v26 = vpop.f32.mrf.mxu1  ;;  %v5259_v63 = vpop.f32.mrf.mxu0 }
 0x19a   :  { %v5261_v1 = vpop.f32.mrf.mxu1  ;;  %v5263_v50 = vpop.f32.mrf.mxu0 }
 0x19c   :  { %v5265_v7 = vpop.f32.mrf.mxu1  ;;  %v5267_v5 = vpop.f32.mrf.mxu0 }
 0x19e   :  { %v5269_v19 = vpop.f32.mrf.mxu1  ;;  %v5271_v8 = vpop.f32.mrf.mxu0 }
 0x1a0   :  { %v5273_v9 = vpop.f32.mrf.mxu1  ;;  %v5275_v12 = vpop.f32.mrf.mxu0 }
 0x1a2   :  { %v5277_v2 = vpop.f32.mrf.mxu1  ;;  %v5279_v16 = vpop.f32.mrf.mxu0 }
 0x1a4   :  { %v5281_v11 = vpop.f32.mrf.mxu1  ;;  %v5283_v32 = vpop.f32.mrf.mxu0 }
 0x1a6   :  { %v5285_v17 = vpop.f32.mrf.mxu1  ;;  %v5287_v18 = vpop.f32.mrf.mxu0 }
 0x1a7   :  { %5475 = vst [vmem:[#allocation8_spill] sm:$0xff] %v5287_v18 }
 0x1a8   :  { %v5289_v23 = vpop.f32.mrf.mxu1  ;;  %v5291_v15 = vpop.f32.mrf.mxu0 }
 0x1a9   :  { %5476 = vst [vmem:[#allocation9_spill] sm:$0xff] %v5291_v15 }
 0x1aa   :  { %v5293_v54 = vpop.f32.mrf.mxu1  ;;  %v5295_v25 = vpop.f32.mrf.mxu0 }
 0x1ab   :  { %5477 = vst [vmem:[#allocation10_spill] sm:$0xff] %v5295_v25 }
 0x1ac   :  { %v5297_v45 = vpop.f32.mrf.mxu1  ;;  %v5299_v4 = vpop.f32.mrf.mxu0 }
 0x1ad   :  { %5478 = vst [vmem:[#allocation11_spill] sm:$0xff] %v5299_v4 }
 0x1ae   :  { %v5301_v28 = vpop.f32.mrf.mxu1  ;;  %v5303_v31 = vpop.f32.mrf.mxu0 }
 0x1af   :  { %5479 = vst [vmem:[#allocation12_spill] sm:$0xff] %v5301_v28  ;;  %5480 = vst [vmem:[#allocation13_spill] sm:$0xff] %v5303_v31 }
 0x1b0   :  { %v5305_v30 = vpop.f32.mrf.mxu1  ;;  %v5307_v56 = vpop.f32.mrf.mxu0 }
 0x1b1   :  { %5481 = vst [vmem:[#allocation14_spill] sm:$0xff] %v5305_v30  ;;  %5482 = vst [vmem:[#allocation15_spill] sm:$0xff] %v5307_v56 }
 0x1b2   :  { %v5309_v38 = vpop.f32.mrf.mxu1  ;;  %v5311_v29 = vpop.f32.mrf.mxu0 }
 0x1b3   :  { %5483 = vst [vmem:[#allocation16_spill] sm:$0xff] %v5309_v38  ;;  %5484 = vst [vmem:[#allocation17_spill] sm:$0xff] %v5311_v29  ;;  %v3574_v29 = vadd.f32 %v3573_v35, %v3572_v21 }
 0x1b4   :  { %v5313_v22 = vpop.f32.mrf.mxu1  ;;  %v5315_v43 = vpop.f32.mrf.mxu0 }
 0x1b5   :  { %5485 = vst [vmem:[#allocation18_spill] sm:$0xff] %v5313_v22  ;;  %5486 = vst [vmem:[#allocation19_spill] sm:$0xff] %v5315_v43 }
 0x1b6   :  { %v5317_v0 = vpop.f32.mrf.mxu1  ;;  %v5319_v25 = vpop.f32.mrf.mxu0 }
 0x1b7   :  { %5487 = vst [vmem:[#allocation20_spill] sm:$0xff] %v5317_v0  ;;  %5488 = vst [vmem:[#allocation21_spill] sm:$0xff] %v5319_v25  ;;  %v3577_v0 = vadd.f32 %v3576_v3, %v3575_v40  ;;  %v3641_v3 = vadd.f32 %v5227_v52, %v5225_v41 }
 0x1b8   :  { %v5321_v4 = vpop.f32.mrf.mxu1  ;;  %v5323_v28 = vpop.f32.mrf.mxu0 }
 0x1b9   :  { %5489 = vst [vmem:[#allocation22_spill] sm:$0xff] %v5321_v4  ;;  %5490 = vst [vmem:[#allocation23_spill] sm:$0xff] %v5323_v28  ;;  %v2558_v28 = vadd.f32 %v3574_v29, %v5174_v53 }
 0x1ba   :  { %v5325_v31 = vpop.f32.mrf.mxu1  ;;  %v5327_v30 = vpop.f32.mrf.mxu0 }
 0x1bb   :  { %5491 = vst [vmem:[#allocation24_spill] sm:$0xff] %v5325_v31  ;;  %5492 = vst [vmem:[#allocation25_spill] sm:$0xff] %v5327_v30  ;;  %v3638_v30 = vadd.f32 %v5221_v13, %v5218_v10 }
 0x1bc   :  { %v5329_v56 = vpop.f32.mrf.mxu1  ;;  %v5331_v38 = vpop.f32.mrf.mxu0 }
 0x1bd   :  { %5493 = vst [vmem:[#allocation26_spill] sm:$0xff] %v5329_v56  ;;  %5494 = vst [vmem:[#allocation27_spill] sm:$0xff] %v5331_v38  ;;  %v2561_v56 = vadd.f32 %v3577_v0, %v5177_v33  ;;  %v2655_v35 = vadd.f32 %v3638_v30, %v2558_v28  ;;  %v3583_v33 = vadd.f32 %v5241_v57, %v5237_v14 }
 0x1be   :  { %v5333_v22 = vpop.f32.mrf.mxu1  ;;  %v5335_v43 = vpop.f32.mrf.mxu0 }
 0x1bf   :  { %5495 = vst [vmem:[#allocation28_spill] sm:$0xff] %v5333_v22  ;;  %5496 = vst [vmem:[#allocation29_spill] sm:$0xff] %v5335_v43  ;;  %v3580_v43 = vadd.f32 %v5233_v24, %v5229_v27  ;;  %v2658_v22 = vadd.f32 %v3641_v3, %v2561_v56 }
 0x1c0   :  { %v5337_v55 = vpop.f32.mrf.mxu1  ;;  %v5339_v25 = vpop.f32.mrf.mxu0 }
 0x1c1   :  { %5497 = vst [vmem:[#allocation30_spill] sm:$0xff] %v5337_v55  ;;  %5498 = vst [vmem:[#allocation31_spill] sm:$0xff] %v5339_v25  ;;  %v2566_v10 = vadd.f32 %v3580_v43, %v5180_v44  ;;  %v2569_v44 = vadd.f32 %v3583_v33, %v5183_v51  ;;  %v3589_v51 = vadd.f32 %v5257_v26, %v5253_v62 }
 0x1c2   :  { %v3700_v4 = vpop.f32.mrf.mxu1  ;;  %v3764_v31 = vpop.f32.mrf.mxu0  ;;  %v3592_v62 = vadd.f32 %v5265_v7, %v5261_v1 }
 0x1c4   :  { %v3701_v38 = vpop.f32.mrf.mxu1  ;;  %v3765_v21 = vpop.f32.mrf.mxu0  ;;  %v2582_v7 = vadd.f32 %v3592_v62, %v5192_v36  ;;  %v3598_v36 = vadd.f32 %v5281_v11, %v5277_v2  ;;  %v3601_v2 = vadd.f32 %v5289_v23, %v5285_v17 }
 0x1c5   :  { %v3702_v40 = vadd.f32 %v3701_v38, %v3700_v4  ;;  %v3766_v29 = vadd.f32 %v3765_v21, %v3764_v31  ;;  %v3644_v38 = vadd.f32 %v5235_v48, %v5231_v47  ;;  %v3586_v4 = vadd.f32 %v5249_v39, %v5245_v20 }
 0x1c6   :  { %v3703_v25 = vpop.f32.mrf.mxu1  ;;  %v3767_v55 = vpop.f32.mrf.mxu0  ;;  %v2593_v23 = vadd.f32 %v3601_v2, %v5201_v46  ;;  %v5502_v46 = vld [vmem:[#allocation12_spill] sm:$0xff] }
 0x1c7   :  { %v2752_v53 = vadd.f32 %v3702_v40, %v2655_v35  ;;  %v2663_v56 = vadd.f32 %v3644_v38, %v2566_v10  ;;  %v2574_v20 = vadd.f32 %v3586_v4, %v5186_v37 }
 0x1c8   :  { %v3704_v15 = vpop.f32.mrf.mxu1  ;;  %v3768_v18 = vpop.f32.mrf.mxu0 }
 0x1c9   :  { %v2849_v0 = vadd.f32 %v3766_v29, %v2752_v53  ;;  %v3705_v13 = vadd.f32 %v3704_v15, %v3703_v25  ;;  %v3769_v24 = vadd.f32 %v3768_v18, %v3767_v55 }
 0x1ca   :  { %v3706_v28 = vpop.f32.mrf.mxu1  ;;  %v3770_v27 = vpop.f32.mrf.mxu0 }
 0x1cb   :  { %v2911_v41 = vmax.f32 %v2849_v0, 0.0  ;;  %v2755_v52 = vadd.f32 %v3705_v13, %v2658_v22  ;;  %v3647_v22 = vadd.f32 %v5243_v59, %v5239_v49  ;;  %v3650_v49 = vadd.f32 %v5251_v61, %v5247_v60 }
 0x1cc   :  { %v3707_v31 = vpop.f32.mrf.mxu1  ;;  %v3771_v30 = vpop.f32.mrf.mxu0  ;;  %v2577_v0 = vadd.f32 %v3589_v51, %v5189_v58  ;;  %v3595_v58 = vadd.f32 %v5273_v9, %v5269_v19 }
 0x1cd   :  { %2927 = vst [vmem:[%s5468_s3] sm:$0xff] %v2911_v41  ;;  %v2852_v43 = vadd.f32 %v3769_v24, %v2755_v52  ;;  %v3708_v14 = vadd.f32 %v3707_v31, %v3706_v28  ;;  %v3772_v48 = vadd.f32 %v3771_v30, %v3770_v27  ;;  %v2666_v25 = vadd.f32 %v3647_v22, %v2569_v44 }
 0x1ce   :  { %v3709_v57 = vpop.f32.mrf.mxu1  ;;  %v3773_v15 = vpop.f32.mrf.mxu0  ;;  %v2671_v29 = vadd.f32 %v3650_v49, %v2574_v20  ;;  %v3653_v28 = vadd.f32 %v5259_v63, %v5255_v6  ;;  %v3656_v6 = vadd.f32 %v5267_v5, %v5263_v50  ;;  %v2585_v19 = vadd.f32 %v3595_v58, %v5195_v42  ;;  %v5504_v58 = vld [vmem:[#allocation10_spill] sm:$0xff] }
 0x1cf   :  { %v2912_v55 = vmax.f32 %v2852_v43, 0.0  ;;  %v2760_v47 = vadd.f32 %v3708_v14, %v2663_v56  ;;  %v3659_v50 = vadd.f32 %v5275_v12, %v5271_v8 }
 0x1d0   :  { %v3710_v39 = vpop.f32.mrf.mxu1  ;;  %v3774_v18 = vpop.f32.mrf.mxu0  ;;  %v2674_v1 = vadd.f32 %v3653_v28, %v2577_v0  ;;  %v5503_v28 = vld [vmem:[#allocation14_spill] sm:$0xff] }
 0x1d1   :  { %2928 = vst [vmem:[%s5468_s3 + $0x8] sm:$0xff] %v2912_v55  ;;  %v2857_v21 = vadd.f32 %v3772_v48, %v2760_v47  ;;  %v3711_v35 = vadd.f32 %v3710_v39, %v3709_v57  ;;  %v3775_v37 = vadd.f32 %v3774_v18, %v3773_v15  ;;  %v2679_v57 = vadd.f32 %v3656_v6, %v2582_v7 }
 0x1d2   :  { %v3712_v59 = vpop.f32.mrf.mxu1  ;;  %v3776_v40 = vpop.f32.mrf.mxu0  ;;  %v2682_v20 = vadd.f32 %v3659_v50, %v2585_v19  ;;  %v5507_v19 = vld [vmem:[#allocation16_spill] sm:$0xff]  ;;  %v5509_v50 = vld [vmem:[#allocation13_spill] sm:$0xff] }
 0x1d3   :  { %v2913_v3 = vmax.f32 %v2857_v21, 0.0  ;;  %v2763_v53 = vadd.f32 %v3711_v35, %v2666_v25  ;;  %v2590_v25 = vadd.f32 %v3598_v36, %v5198_v34  ;;  %v3662_v21 = vadd.f32 %v5283_v32, %v5279_v16  ;;  %v5499_v16 = vld [vmem:[#allocation8_spill] sm:$0xff]  ;;  %v5500_v32 = vld [vmem:[#allocation9_spill] sm:$0xff] }
 0x1d4   :  { %v3713_v10 = vpop.f32.mrf.mxu1  ;;  %v3777_v33 = vpop.f32.mrf.mxu0  ;;  %v3604_v34 = vadd.f32 %v5297_v45, %v5293_v54  ;;  %v5501_v54 = vld [vmem:[#allocation2_spill] sm:$0xff] }
 0x1d5   :  { %2929 = vst [vmem:[%s5468_s3 + $0x10] sm:$0xff] %v2913_v3  ;;  %v2860_v26 = vadd.f32 %v3775_v37, %v2763_v53  ;;  %v3714_v13 = vadd.f32 %v3713_v10, %v3712_v59  ;;  %v3778_v41 = vadd.f32 %v3777_v33, %v3776_v40  ;;  %v2687_v17 = vadd.f32 %v3662_v21, %v2590_v25 }
 0x1d6   :  { %v3715_v60 = vpop.f32.mrf.mxu1  ;;  %v3779_v61 = vpop.f32.mrf.mxu0  ;;  %v3665_v33 = vadd.f32 %v5500_v32, %v5499_v16  ;;  %v2598_v45 = vadd.f32 %v3604_v34, %v5501_v54  ;;  %v5515_v34 = vld [vmem:[#allocation19_spill] sm:$0xff]  ;;  %v5517_v32 = vld [vmem:[#allocation24_spill] sm:$0xff]  ;;  %v5519_v54 = vld [vmem:[#allocation21_spill] sm:$0xff] }
 0x1d7   :  { %v2914_v27 = vmax.f32 %v2860_v26, 0.0  ;;  %v2768_v38 = vadd.f32 %v3714_v13, %v2671_v29 }
 0x1d8   :  { %v3716_v52 = vpop.f32.mrf.mxu1  ;;  %v3780_v24 = vpop.f32.mrf.mxu0 }
 0x1d9   :  { %2930 = vst [vmem:[%s5468_s3 + $0x18] sm:$0xff] %v2914_v27  ;;  %v2865_v4 = vadd.f32 %v3778_v41, %v2768_v38  ;;  %v3717_v31 = vadd.f32 %v3716_v52, %v3715_v60  ;;  %v3781_v43 = vadd.f32 %v3780_v24, %v3779_v61  ;;  %v2690_v61 = vadd.f32 %v3665_v33, %v2593_v23  ;;  %v5505_v52 = vld [vmem:[#allocation11_spill] sm:$0xff]  ;;  %v5518_v33 = vld [vmem:[#allocation26_spill] sm:$0xff] }
 0x1da   :  { %v3718_v30 = vpop.f32.mrf.mxu1  ;;  %v3782_v56 = vpop.f32.mrf.mxu0  ;;  %v3607_v27 = vadd.f32 %v5503_v28, %v5502_v46  ;;  %v3668_v24 = vadd.f32 %v5505_v52, %v5504_v58  ;;  %v5521_v52 = vld [vmem:[#allocation6_spill] sm:$0xff] }
 0x1db   :  { %v2915_v63 = vmax.f32 %v2865_v4, 0.0  ;;  %v2771_v44 = vadd.f32 %v3717_v31, %v2674_v1 }
 0x1dc   :  { %v3719_v9 = vpop.f32.mrf.mxu1  ;;  %v3783_v14 = vpop.f32.mrf.mxu0 }
 0x1dd   :  { %2931 = vst [vmem:[%s5468_s3 + $0x20] sm:$0xff] %v2915_v63  ;;  %v2868_v15 = vadd.f32 %v3781_v43, %v2771_v44  ;;  %v3720_v22 = vadd.f32 %v3719_v9, %v3718_v30  ;;  %v3784_v42 = vadd.f32 %v3783_v14, %v3782_v56  ;;  %v2695_v56 = vadd.f32 %v3668_v24, %v2598_v45  ;;  %v5506_v44 = vld [vmem:[#allocation3_spill] sm:$0xff]  ;;  %v5508_v9 = vld [vmem:[#allocation18_spill] sm:$0xff] }
 0x1de   :  { %v3721_v5 = vpop.f32.mrf.mxu1  ;;  %v3785_v55 = vpop.f32.mrf.mxu0  ;;  %v2601_v43 = vadd.f32 %v3607_v27, %v5506_v44  ;;  %v3610_v14 = vadd.f32 %v5508_v9, %v5507_v19  ;;  %v5520_v45 = vld [vmem:[#allocation23_spill] sm:$0xff] }
 0x1df   :  { %v2916_v47 = vmax.f32 %v2868_v15, 0.0  ;;  %v2776_v48 = vadd.f32 %v3720_v22, %v2679_v57  ;;  %v5525_v44 = vld [vmem:[#allocation27_spill] sm:$0xff] }
 0x1e0   :  { %v3722_v39 = vpop.f32.mrf.mxu1  ;;  %v3786_v18 = vpop.f32.mrf.mxu0 }
 0x1e1   :  { %2932 = vst [vmem:[%s5468_s3 + $0x28] sm:$0xff] %v2916_v47  ;;  %v2873_v11 = vadd.f32 %v3784_v42, %v2776_v48  ;;  %v3723_v51 = vadd.f32 %v3722_v39, %v3721_v5  ;;  %v3787_v59 = vadd.f32 %v3786_v18, %v3785_v55  ;;  %v5510_v5 = vld [vmem:[#allocation15_spill] sm:$0xff]  ;;  %v5512_v39 = vld [vmem:[#allocation22_spill] sm:$0xff] }
 0x1e2   :  { %v3724_v8 = vpop.f32.mrf.mxu1  ;;  %v3788_v12 = vpop.f32.mrf.mxu0  ;;  %v3671_v55 = vadd.f32 %v5510_v5, %v5509_v50 }
 0x1e3   :  { %v2917_v35 = vmax.f32 %v2873_v11, 0.0  ;;  %v2779_v49 = vadd.f32 %v3723_v51, %v2682_v20  ;;  %v5511_v20 = vld [vmem:[#allocation20_spill] sm:$0xff] }
 0x1e4   :  { %v3725_v40 = vpop.f32.mrf.mxu1  ;;  %v3789_v3 = vpop.f32.mrf.mxu0  ;;  %v3613_v18 = vadd.f32 %v5512_v39, %v5511_v20  ;;  %v2698_v11 = vadd.f32 %v3671_v55, %v2601_v43  ;;  %v5513_v51 = vld [vmem:[#allocation4_spill] sm:$0xff]  ;;  %v5528_v20 = vld [vmem:[#allocation31_spill] sm:$0xff] }
 0x1e5   :  { %2933 = vst [vmem:[%s5468_s3 + $0x30] sm:$0xff] %v2917_v35  ;;  %v2876_v53 = vadd.f32 %v3787_v59, %v2779_v49  ;;  %v3726_v37 = vadd.f32 %v3725_v40, %v3724_v8  ;;  %v3790_v26 = vadd.f32 %v3789_v3, %v3788_v12  ;;  %v2606_v8 = vadd.f32 %v3610_v14, %v5513_v51  ;;  %v5514_v59 = vld [vmem:[#allocation17_spill] sm:$0xff] }
 0x1e6   :  { %v3727_v29 = vpop.f32.mrf.mxu1  ;;  %v3791_v10 = vpop.f32.mrf.mxu0  ;;  %v3674_v40 = vadd.f32 %v5515_v34, %v5514_v59 }
 0x1e7   :  { %v2918_v0 = vmax.f32 %v2876_v53, 0.0  ;;  %v2784_v62 = vadd.f32 %v3726_v37, %v2687_v17  ;;  %v5516_v53 = vld [vmem:[#allocation5_spill] sm:$0xff] }
 0x1e8   :  { %v3728_v13 = vpop.f32.mrf.mxu1  ;;  %v3792_v60 = vpop.f32.mrf.mxu0  ;;  %v2609_v37 = vadd.f32 %v3613_v18, %v5516_v53  ;;  %v2703_v16 = vadd.f32 %v3674_v40, %v2606_v8 }
 0x1e9   :  { %2934 = vst [vmem:[%s5468_s3 + $0x38] sm:$0xff] %v2918_v0  ;;  %v2881_v38 = vadd.f32 %v3790_v26, %v2784_v62  ;;  %v3729_v41 = vadd.f32 %v3728_v13, %v3727_v29  ;;  %v3793_v30 = vadd.f32 %v3792_v60, %v3791_v10  ;;  %v3616_v0 = vadd.f32 %v5518_v33, %v5517_v32 }
 0x1ea   :  { %v3730_v1 = vpop.f32.mrf.mxu1  ;;  %v3794_v7 = vpop.f32.mrf.mxu0  ;;  %v3677_v13 = vadd.f32 %v5520_v45, %v5519_v54 }
 0x1eb   :  { %v2919_v4 = vmax.f32 %v2881_v38, 0.0  ;;  %v2787_v31 = vadd.f32 %v3729_v41, %v2690_v61  ;;  %v2614_v24 = vadd.f32 %v3616_v0, %v5521_v52 }
 0x1ec   :  { %v3731_v6 = vpop.f32.mrf.mxu1  ;;  %v3795_v63 = vpop.f32.mrf.mxu0  ;;  %v2706_v38 = vadd.f32 %v3677_v13, %v2609_v37 }
 0x1ed   :  { %2935 = vst [vmem:[%s5468_s3 + $0x40] sm:$0xff] %v2919_v4  ;;  %v2884_v57 = vadd.f32 %v3793_v30, %v2787_v31  ;;  %v3732_v36 = vadd.f32 %v3731_v6, %v3730_v1  ;;  %v3796_v42 = vadd.f32 %v3795_v63, %v3794_v7  ;;  %v5522_v1 = vld [vmem:[#allocation28_spill] sm:$0xff]  ;;  %v5523_v7 = vld [vmem:[#allocation30_spill] sm:$0xff]  ;;  %v5524_v63 = vld [vmem:[#allocation25_spill] sm:$0xff] }
 0x1ee   :  { %v3733_v15 = vpop.f32.mrf.mxu1  ;;  %v3797_v22 = vpop.f32.mrf.mxu0  ;;  %v3619_v4 = vadd.f32 %v5523_v7, %v5522_v1  ;;  %v3680_v43 = vadd.f32 %v5525_v44, %v5524_v63 }
 0x1ef   :  { %v2920_v47 = vmax.f32 %v2884_v57, 0.0  ;;  %v2792_v48 = vadd.f32 %v3732_v36, %v2695_v56 }
 0x1f0   :  { %v3734_v25 = vpop.f32.mrf.mxu1  ;;  %v3798_v2 = vpop.f32.mrf.mxu0 }
 0x1f1   :  { %2936 = vst [vmem:[%s5468_s3 + $0x48] sm:$0xff] %v2920_v47  ;;  %v2889_v12 = vadd.f32 %v3796_v42, %v2792_v48  ;;  %v3735_v21 = vadd.f32 %v3734_v25, %v3733_v15  ;;  %v3799_v23 = vadd.f32 %v3798_v2, %v3797_v22  ;;  %v2711_v15 = vadd.f32 %v3680_v43, %v2614_v24  ;;  %v5526_v22 = vld [vmem:[#allocation7_spill] sm:$0xff]  ;;  %v5527_v42 = vld [vmem:[#allocation29_spill] sm:$0xff] }
 0x1f2   :  { %v3736_v35 = vpop.f32.mrf.mxu1  ;;  %v3800_v49 = vpop.f32.mrf.mxu0  ;;  %v2617_v50 = vadd.f32 %v3619_v4, %v5526_v22  ;;  %v3683_v39 = vadd.f32 %v5528_v20, %v5527_v42 }
 0x1f3   :  { %v2921_v3 = vmax.f32 %v2889_v12, 0.0  ;;  %v2795_v17 = vadd.f32 %v3735_v21, %v2698_v11 }
 0x1f4   :  { %v3737_v29 = vpop.f32.mrf.mxu1  ;;  %v3801_v10 = vpop.f32.mrf.mxu0  ;;  %v2714_v8 = vadd.f32 %v3683_v39, %v2617_v50 }
 0x1f5   :  { %2937 = vst [vmem:[%s5468_s3 + $0x50] sm:$0xff] %v2921_v3  ;;  %v2892_v62 = vadd.f32 %v3799_v23, %v2795_v17  ;;  %v3738_v26 = vadd.f32 %v3737_v29, %v3736_v35  ;;  %v3802_v27 = vadd.f32 %v3801_v10, %v3800_v49 }
 0x1f6   :  { %v3739_v60 = vpop.f32.mrf.mxu1  ;;  %v3803_v61 = vpop.f32.mrf.mxu0 }
 0x1f7   :  { %v2922_v46 = vmax.f32 %v2892_v62, 0.0  ;;  %v2800_v28 = vadd.f32 %v3738_v26, %v2703_v16 }
 0x1f8   :  { %v3740_v41 = vpop.f32.mrf.mxu1  ;;  %v3804_v58 = vpop.f32.mrf.mxu0 }
 0x1f9   :  { %2938 = vst [vmem:[%s5468_s3 + $0x58] sm:$0xff] %v2922_v46  ;;  %v2897_v31 = vadd.f32 %v3802_v27, %v2800_v28  ;;  %v3741_v30 = vadd.f32 %v3740_v41, %v3739_v60  ;;  %v3805_v14 = vadd.f32 %v3804_v58, %v3803_v61 }
 0x1fa   :  { %v3742_v56 = vpop.f32.mrf.mxu1  ;;  %v3806_v6 = vpop.f32.mrf.mxu0 }
 0x1fb   :  { %v2923_v19 = vmax.f32 %v2897_v31, 0.0  ;;  %v2803_v9 = vadd.f32 %v3741_v30, %v2706_v38 }
 0x1fc   :  { %v3743_v57 = vpop.f32.mrf.mxu1  ;;  %v3807_v36 = vpop.f32.mrf.mxu0 }
 0x1fd   :  { %2939 = vst [vmem:[%s5468_s3 + $0x60] sm:$0xff] %v2923_v19  ;;  %v2900_v5 = vadd.f32 %v3805_v14, %v2803_v9  ;;  %v3744_v55 = vadd.f32 %v3743_v57, %v3742_v56  ;;  %v3808_v2 = vadd.f32 %v3807_v36, %v3806_v6 }
 0x1fe   :  { %v3745_v47 = vpop.f32.mrf.mxu1  ;;  %v3809_v48 = vpop.f32.mrf.mxu0 }
 0x1ff   :  { %v2924_v18 = vmax.f32 %v2900_v5, 0.0  ;;  %v2808_v25 = vadd.f32 %v3744_v55, %v2711_v15 }
 0x200   :  { %v3746_v11 = vpop.f32.mrf.mxu1  ;;  %v3810_v51 = vpop.f32.mrf.mxu0 }
 0x201   :  { %2940 = vst [vmem:[%s5468_s3 + $0x68] sm:$0xff] %v2924_v18  ;;  %v2905_v12 = vadd.f32 %v3808_v2, %v2808_v25  ;;  %v3747_v21 = vadd.f32 %v3746_v11, %v3745_v47  ;;  %v3811_v59 = vadd.f32 %v3810_v51, %v3809_v48 }
 0x203   :  { %v2925_v35 = vmax.f32 %v2905_v12, 0.0  ;;  %v2811_v49 = vadd.f32 %v3747_v21, %v2714_v8 }
 0x205   :  { %2941 = vst [vmem:[%s5468_s3 + $0x70] sm:$0xff] %v2925_v35  ;;  %v2908_v34 = vadd.f32 %v3811_v59, %v2811_v49 }
 0x207   :  { %v2926_v40 = vmax.f32 %v2908_v34, 0.0 }
 0x209   :  { %2942 = vst [vmem:[%s5468_s3 + $0x78] sm:$0xff] %v2926_v40 }

// kernel: conv_autoencoder_forward.15
= control target key start
LH: loop header
LB: loop body
LE: loop exit
PB: predicated region body
PF: predicated region fallthrough
CT: control target
= control target key end

     0   :  { %s3663_s12 = smov 0   ;;  %s4531_s0 = inlined_call_operand.vmem [shape: bf16[512,1152], index: 0, kind: input, shape index: {}]   ;;  %s4532_s1 = inlined_call_operand.vmem [shape: bf16[1152,128], index: 1, kind: input, shape index: {}]   ;;  %s4533_s2 = inlined_call_operand.vmem [shape: f32[1,128], index: 2, kind: input, shape index: {}]   ;;  %s4534_s3 = inlined_call_operand.vmem [shape: f32[512,128], index: 3, kind: output, shape index: {}]  }
   0x1 LB: > { %s2582_s13 = sadd.s32 4294967295, %s3641_s12   ;;  %p2586_p0 = scmp.ge.s32.totalorder %s3641_s12, 1  ;;  %s3641_s12 = sphi %s3663_s12, %s13_s12  }
   0x2   : > { %p139_p1 = scmp.lt.s32.totalorder %s3641_s12, 3 }
   0x4   : > { %p140_p2 = pnand %p2586_p0, %p139_p1 }
   0x6   : > { %143 = sbr.rel (%p140_p2) target bundleno = 532 (0x214), region = 32 }
   0xb   : > { %v3355_v0 = vld [vmem:[%s4532_s1 + $0x78] sm:$0xff]   ;;  %s2587_s16 = sshll.u32 %s2582_s13, 5  ;;  %v3357_v2 = vld [vmem:[%s4532_s1 + $0x70] sm:$0xff]   ;;  %v3359_v4 = vld [vmem:[%s4532_s1 + $0x68] sm:$0xff]  }
   0xc   : > { %v3356_v1 = vld [vmem:[%s4532_s1 + $0x38] sm:$0xff]   ;;  %2810 = vmatprep.subr.bf16.mxu0 %v3355_v0  ;;  %3330 = vmatprep.subr.bf16.mxu1 %v3355_v0  ;;  %p165_p3 = scmp.lt.s32.totalorder %s2587_s16, 63  ;;  %v3358_v3 = vld [vmem:[%s4532_s1 + $0x30] sm:$0xff]   ;;  %v3360_v5 = vld [vmem:[%s4532_s1 + $0x28] sm:$0xff]  }
   0xd   : > { %2811 = vmatpush3.bf16.msra.mxu0 %v3356_v1  ;;  %3338 = vmatpush3.bf16.msra.mxu1 %v3356_v1  ;;  %v3361_v6 = vld [vmem:[%s4532_s1 + $0x60] sm:$0xff]   ;;  %v3363_v8 = vld [vmem:[%s4532_s1 + $0x58] sm:$0xff]   ;;  %v3365_v10 = vld [vmem:[%s4532_s1 + $0x50] sm:$0xff]  }
   0xe   : > { %2812 = vmatprep.subr.bf16.mxu0 %v3357_v2  ;;  %3331 = vmatprep.subr.bf16.mxu1 %v3357_v2  ;;  %s4556_s16 = smov (!%p165_p3, %s2587_s16), 63  ;;  %v3362_v7 = vld [vmem:[%s4532_s1 + $0x20] sm:$0xff]   ;;  %v3364_v9 = vld [vmem:[%s4532_s1 + $0x18] sm:$0xff]   ;;  %v3366_v13 = vld [vmem:[%s4532_s1 + $0x10] sm:$0xff]  }
   0xf   : > { %s3346_s29 = smul.u32 36, %s4556_s16  ;;  %v3367_v14 = vld [vmem:[%s4532_s1 + $0x48] sm:$0xff]   ;;  %v3369_v16 = vld [vmem:[%s4532_s1 + $0x40] sm:$0xff]   ;;  %v3377_v18 = vld [vmem:[%s4532_s1 + $0xf8] sm:$0xff]  }
  0x10   : > { %v3368_v15 = vld [vmem:[%s4532_s1 + $0x8] sm:$0xff]   ;;  %v3370_v17 = vld [vmem:[%s4532_s1] sm:$0xff]   ;;  %v3380_v21 = vld [vmem:[%s4532_s1 + $0x178] sm:$0xff]  }
  0x11   : > { %2813 = vmatpush3.bf16.msra.mxu0 %v3358_v3  ;;  %3339 = vmatpush3.bf16.msra.mxu1 %v3358_v3  ;;  %s3704_s9 = scalar_lea.vmem %s4531_s0, %s3346_s29  ;;  %v3378_v22 = vld [vmem:[%s4532_s1 + $0xb8] sm:$0xff]   ;;  %v3379_v23 = vld [vmem:[%s4532_s1 + $0xf0] sm:$0xff]   ;;  %v3389_v31 = vld [vmem:[%s4532_s1 + $0xe8] sm:$0xff]  }
  0x12   : > { %2814 = vmatprep.subr.bf16.mxu0 %v3359_v4  ;;  %3332 = vmatprep.subr.bf16.mxu1 %v3359_v4  ;;  %v3373_v11 = vld [vmem:[%s3704_s9 + $0x4] ss:$36 sps:$4 sm:$0xff]   ;;  %v3382_v24 = vld [vmem:[%s4532_s1 + $0x138] sm:$0xff]   ;;  %v3383_v25 = vld [vmem:[%s3704_s9 + $0x4c] ss:$36 sps:$4 sm:$0xff]  }
  0x13   : > { %v3376_v12 = vld [vmem:[%s3704_s9 + $0x364] ss:$36 sps:$4 sm:$0xff]   ;;  %1689 = vmatprep.mubr.bf16.mxu0 %v3373_v11  ;;  %v3385_v26 = vld [vmem:[%s3704_s9 + $0x3ac] ss:$36 sps:$4 sm:$0xff]   ;;  %v3393_v35 = vld [vmem:[%s3704_s9 + $0x94] ss:$36 sps:$4 sm:$0xff]  }
  0x14   : > { %1785 = vmatprep.mubr.bf16.mxu1 %v3376_v12  ;;  %v3371_v19 = vld [vmem:[%s3704_s9] ss:$36 sps:$4 sm:$0xff]   ;;  %v3381_v27 = vld [vmem:[%s4532_s1 + $0xb0] sm:$0xff]   ;;  %v3387_v29 = vld [vmem:[%s3704_s9 + $0x48] ss:$36 sps:$4 sm:$0xff]  }
  0x15   : > { %2815 = vmatpush3.bf16.msra.mxu0 %v3360_v5  ;;  %3340 = vmatpush3.bf16.msra.mxu1 %v3360_v5  ;;  %v3374_v20 = vld [vmem:[%s3704_s9 + $0x360] ss:$36 sps:$4 sm:$0xff]   ;;  %v3400_v28 = vld [vmem:[%s4532_s1 + $0x170] sm:$0xff]   ;;  %v3388_v30 = vld [vmem:[%s3704_s9 + $0x3a8] ss:$36 sps:$4 sm:$0xff]  }
  0x16   : > { %2816 = vmatprep.subr.bf16.mxu0 %v3361_v6  ;;  %3333 = vmatprep.subr.bf16.mxu1 %v3361_v6  ;;  %v3390_v32 = vld [vmem:[%s4532_s1 + $0xa8] sm:$0xff]   ;;  %v3402_v33 = vld [vmem:[%s4532_s1 + $0x130] sm:$0xff]   ;;  %v3391_v34 = vld [vmem:[%s4532_s1 + $0xe0] sm:$0xff]  }
  0x17   : > { %v3395_v36 = vld [vmem:[%s3704_s9 + $0x3f4] ss:$36 sps:$4 sm:$0xff]   ;;  %v3392_v37 = vld [vmem:[%s4532_s1 + $0xa0] sm:$0xff]   ;;  %v3414_v43 = vld [vmem:[%s4532_s1 + $0x168] sm:$0xff]  }
  0x18   : > { %v3397_v38 = vld [vmem:[%s3704_s9 + $0x90] ss:$36 sps:$4 sm:$0xff]   ;;  %v3399_v40 = vld [vmem:[%s4532_s1 + $0xd8] sm:$0xff]   ;;  %v3416_v46 = vld [vmem:[%s4532_s1 + $0x128] sm:$0xff]  }
  0x19   : > { %2817 = vmatpush3.bf16.msra.mxu0 %v3362_v7  ;;  %3341 = vmatpush3.bf16.msra.mxu1 %v3362_v7  ;;  %v3398_v39 = vld [vmem:[%s3704_s9 + $0x3f0] ss:$36 sps:$4 sm:$0xff]   ;;  %v3401_v41 = vld [vmem:[%s4532_s1 + $0x98] sm:$0xff]   ;;  %v3411_v48 = vld [vmem:[%s4532_s1 + $0xc8] sm:$0xff]  }
  0x1a   : > { %2818 = vmatprep.subr.bf16.mxu0 %v3363_v8  ;;  %3334 = vmatprep.subr.bf16.mxu1 %v3363_v8  ;;  %v3403_v42 = vld [vmem:[%s4532_s1 + $0xd0] sm:$0xff]   ;;  %v3405_v44 = vld [vmem:[%s3704_s9 + $0xdc] ss:$36 sps:$4 sm:$0xff]   ;;  %v3412_v51 = vld [vmem:[%s4532_s1 + $0x88] sm:$0xff]  }
  0x1b   : > { %v3407_v45 = vld [vmem:[%s3704_s9 + $0x43c] ss:$36 sps:$4 sm:$0xff]   ;;  %v3404_v47 = vld [vmem:[%s4532_s1 + $0x90] sm:$0xff]   ;;  %v3417_v53 = vld [vmem:[%s3704_s9 + $0x124] ss:$36 sps:$4 sm:$0xff]  }
  0x1c   : > { %v3409_v49 = vld [vmem:[%s3704_s9 + $0xd8] ss:$36 sps:$4 sm:$0xff]   ;;  %v3413_v52 = vld [vmem:[%s4532_s1 + $0xc0] sm:$0xff]   ;;  %v3421_v54 = vld [vmem:[%s3704_s9 + $0xc] ss:$36 sps:$4 sm:$0xff]  }
  0x1d   : > { %2819 = vmatpush3.bf16.msra.mxu0 %v3364_v9  ;;  %3342 = vmatpush3.bf16.msra.mxu1 %v3364_v9  ;;  %v3410_v50 = vld [vmem:[%s3704_s9 + $0x438] ss:$36 sps:$4 sm:$0xff]   ;;  %v3431_v55 = vld [vmem:[%s4532_s1 + $0x160] sm:$0xff]   ;;  %v3419_v58 = vld [vmem:[%s3704_s9 + $0x8] ss:$36 sps:$4 sm:$0xff]  }
  0x1e   : > { %2820 = vmatprep.subr.bf16.mxu0 %v3365_v10  ;;  %3335 = vmatprep.subr.bf16.mxu1 %v3365_v10  ;;  %v3432_v56 = vld [vmem:[%s4532_s1 + $0x120] sm:$0xff]   ;;  %v3423_v60 = vld [vmem:[%s4532_s1 + $0x1f8] sm:$0xff]   ;;  %v3425_v62 = vld [vmem:[%s3704_s9 + $0x16c] ss:$36 sps:$4 sm:$0xff]  }
  0x1f   : > { %v3415_v57 = vld [vmem:[%s4532_s1 + $0x80] sm:$0xff]   ;;  %v3424_v61 = vld [vmem:[%s4532_s1 + $0x1b8] sm:$0xff]   ;;  %v3439_v1 = vld [vmem:[%s4532_s1 + $0x1f0] sm:$0xff]  }
  0x20   : > { %v3422_v59 = vld [vmem:[%s3704_s9 + $0x120] ss:$36 sps:$4 sm:$0xff]   ;;  %v3427_v63 = vld [vmem:[%s3704_s9 + $0x54] ss:$36 sps:$4 sm:$0xff]   ;;  %v3429_v4 = vld [vmem:[%s3704_s9 + $0x168] ss:$36 sps:$4 sm:$0xff]  }
  0x21   : > { %2821 = vmatpush3.bf16.msra.mxu0 %v3366_v13  ;;  %3343 = vmatpush3.bf16.msra.mxu1 %v3366_v13  ;;  %v3441_v0 = vld [vmem:[%s4532_s1 + $0x158] sm:$0xff]   ;;  %v3440_v3 = vld [vmem:[%s4532_s1 + $0x1b0] sm:$0xff]   ;;  %v3456_v9 = vld [vmem:[%s4532_s1 + $0x1e8] sm:$0xff]  }
  0x22   : > { %2822 = vmatprep.subr.bf16.mxu0 %v3367_v14  ;;  %3336 = vmatprep.subr.bf16.mxu1 %v3367_v14  ;;  %v3442_v2 = vld [vmem:[%s4532_s1 + $0x118] sm:$0xff]   ;;  %v3430_v5 = vld [vmem:[%s3704_s9 + $0x50] ss:$36 sps:$4 sm:$0xff]   ;;  %v3458_v11 = vld [vmem:[%s4532_s1 + $0x1a8] sm:$0xff]  }
  0x23   : > { %v3433_v6 = vld [vmem:[%s3704_s9 + $0x1b4] ss:$36 sps:$4 sm:$0xff]   ;;  %v3435_v7 = vld [vmem:[%s3704_s9 + $0x9c] ss:$36 sps:$4 sm:$0xff]  }
  0x24   : > { %v3455_v8 = vld [vmem:[%s4532_s1 + $0x150] sm:$0xff]   ;;  %v3438_v13 = vld [vmem:[%s3704_s9 + $0x98] ss:$36 sps:$4 sm:$0xff]  }
  0x25   : > { %2823 = vmatpush3.bf16.msra.mxu0 %v3368_v15  ;;  %3344 = vmatpush3.bf16.msra.mxu1 %v3368_v15  ;;  %v3457_v10 = vld [vmem:[%s4532_s1 + $0x110] sm:$0xff]   ;;  %v3443_v14 = vld [vmem:[%s3704_s9 + $0x1fc] ss:$36 sps:$4 sm:$0xff]   ;;  %v3465_v15 = vld [vmem:[%s4532_s1 + $0x148] sm:$0xff]  }
  0x26   : > { %2824 = vmatprep.subr.bf16.mxu0 %v3369_v16  ;;  %3337 = vmatprep.subr.bf16.mxu1 %v3369_v16  ;;  %v3437_v12 = vld [vmem:[%s3704_s9 + $0x1b0] ss:$36 sps:$4 sm:$0xff]   ;;  %v3466_v16 = vld [vmem:[%s4532_s1 + $0x108] sm:$0xff]  }
  0x29   : > { %2825 = vmatpush3.bf16.msra.mxu0 %v3370_v17  ;;  %3345 = vmatpush3.bf16.msra.mxu1 %v3370_v17  ;;  %v3445_v17 = vld [vmem:[%s3704_s9 + $0xe4] ss:$36 sps:$4 sm:$0xff]  }
  0x2a   : > { %2922 = vmatprep.subr.bf16.mxu1 %v3377_v18  ;;  %3034 = vmatprep.subr.bf16.mxu0 %v3380_v21  ;;  %v3473_v18 = vld [vmem:[%s4532_s1 + $0x1e0] sm:$0xff]  }
  0x2b   : > { %v3448_v21 = vld [vmem:[%s3704_s9 + $0xe0] ss:$36 sps:$4 sm:$0xff]  }
  0x2c   : > { %1690 = vmatmul.mubr.bf16.vlgmr.msra.gmra.mxu0 %v3371_v19  ;;  %1786 = vmatmul.mubr.bf16.vlgmr.msra.gmra.mxu1 %v3374_v20  ;;  %v3474_v19 = vld [vmem:[%s4532_s1 + $0x1a0] sm:$0xff]   ;;  %v3447_v20 = vld [vmem:[%s3704_s9 + $0x1f8] ss:$36 sps:$4 sm:$0xff]  }
  0x2d   : > { %2923 = vmatpush3.bf16.msra.mxu1 %v3378_v22  ;;  %3035 = vmatpush3.bf16.msra.mxu0 %v3382_v24  ;;  %v3449_v22 = vld [vmem:[%s3704_s9 + $0x244] ss:$36 sps:$4 sm:$0xff]  }
  0x2e   : > { %2924 = vmatprep.subr.bf16.mxu1 %v3379_v23  ;;  %1697 = vmatprep.mubr.bf16.mxu0 %v3383_v25  ;;  %v3451_v23 = vld [vmem:[%s3704_s9 + $0x12c] ss:$36 sps:$4 sm:$0xff]   ;;  %v3481_v24 = vld [vmem:[%s4532_s1 + $0x140] sm:$0xff]  }
  0x2f   : > { %1793 = vmatprep.mubr.bf16.mxu1 %v3385_v26  ;;  %3036 = vmatprep.subr.bf16.mxu0 %v3400_v28  ;;  %v3482_v25 = vld [vmem:[%s4532_s1 + $0x100] sm:$0xff]   ;;  %v3489_v26 = vld [vmem:[%s4532_s1 + $0x1d8] sm:$0xff]  }
  0x30   : > { %v3490_v28 = vld [vmem:[%s4532_s1 + $0x198] sm:$0xff]  }
  0x31   : > { %2925 = vmatpush3.bf16.msra.mxu1 %v3381_v27  ;;  %3037 = vmatpush3.bf16.msra.mxu0 %v3402_v33  ;;  %v3453_v27 = vld [vmem:[%s3704_s9 + $0x240] ss:$36 sps:$4 sm:$0xff]   ;;  %v3504_v33 = vld [vmem:[%s4532_s1 + $0x1d0] sm:$0xff]  }
  0x32   : > { %2926 = vmatprep.subr.bf16.mxu1 %v3389_v31  ;;  %3038 = vmatprep.subr.bf16.mxu0 %v3414_v43  ;;  %v3459_v31 = vld [vmem:[%s3704_s9 + $0x28c] ss:$36 sps:$4 sm:$0xff]   ;;  %v3475_v43 = vld [vmem:[%s3704_s9 + $0x31c] ss:$36 sps:$4 sm:$0xff]  }
  0x34   : > { %1698 = vmatmul.mubr.bf16.gmra.mxu0 %v3387_v29  ;;  %1794 = vmatmul.mubr.bf16.gmra.mxu1 %v3388_v30  ;;  %v3491_v29 = vld [vmem:[%s4532_s1 + $0x238] sm:$0xff]   ;;  %v3454_v30 = vld [vmem:[%s3704_s9 + $0x128] ss:$36 sps:$4 sm:$0xff]  }
  0x35   : > { %2927 = vmatpush3.bf16.msra.mxu1 %v3390_v32  ;;  %1705 = vmatprep.mubr.bf16.mxu0 %v3393_v35  ;;  %v3461_v32 = vld [vmem:[%s3704_s9 + $0x174] ss:$36 sps:$4 sm:$0xff]  }
  0x36   : > { %2928 = vmatprep.subr.bf16.mxu1 %v3391_v34  ;;  %1801 = vmatprep.mubr.bf16.mxu1 %v3395_v36  ;;  %v3463_v34 = vld [vmem:[%s3704_s9 + $0x288] ss:$36 sps:$4 sm:$0xff]   ;;  %v3505_v35 = vld [vmem:[%s4532_s1 + $0x190] sm:$0xff]  }
  0x37   : > { %3039 = vmatpush3.bf16.msra.mxu0 %v3416_v46  ;;  %v3464_v36 = vld [vmem:[%s3704_s9 + $0x170] ss:$36 sps:$4 sm:$0xff]   ;;  %v3480_v46 = vld [vmem:[%s3704_s9 + $0x200] ss:$36 sps:$4 sm:$0xff]  }
  0x38   : > { %3040 = vmatprep.subr.bf16.mxu0 %v3431_v55  ;;  %v3506_v55 = vld [vmem:[%s4532_s1 + $0x230] sm:$0xff]  }
  0x39   : > { %2929 = vmatpush3.bf16.msra.mxu1 %v3392_v37  ;;  %v3467_v37 = vld [vmem:[%s3704_s9 + $0x2d4] ss:$36 sps:$4 sm:$0xff]  }
  0x3a   : > { %2930 = vmatprep.subr.bf16.mxu1 %v3399_v40  ;;  %v3472_v40 = vld [vmem:[%s3704_s9 + $0x1b8] ss:$36 sps:$4 sm:$0xff]  }
  0x3b   : > { %3041 = vmatpush3.bf16.msra.mxu0 %v3432_v56  ;;  %v3521_v56 = vld [vmem:[%s4532_s1 + $0x228] sm:$0xff]  }
  0x3c   : > { %1706 = vmatmul.mubr.bf16.gmra.mxu0 %v3397_v38  ;;  %1802 = vmatmul.mubr.bf16.gmra.mxu1 %v3398_v39  ;;  %v3469_v38 = vld [vmem:[%s3704_s9 + $0x1bc] ss:$36 sps:$4 sm:$0xff]   ;;  %v3471_v39 = vld [vmem:[%s3704_s9 + $0x2d0] ss:$36 sps:$4 sm:$0xff]  }
  0x3d   : > { %2931 = vmatpush3.bf16.msra.mxu1 %v3401_v41  ;;  %1713 = vmatprep.mubr.bf16.mxu0 %v3405_v44  ;;  %v3519_v41 = vld [vmem:[%s4532_s1 + $0x1c8] sm:$0xff]  }
  0x3e   : > { %2932 = vmatprep.subr.bf16.mxu1 %v3403_v42  ;;  %1809 = vmatprep.mubr.bf16.mxu1 %v3407_v45  ;;  %v3520_v42 = vld [vmem:[%s4532_s1 + $0x188] sm:$0xff]   ;;  %v3479_v45 = vld [vmem:[%s3704_s9 + $0x318] ss:$36 sps:$4 sm:$0xff]  }
  0x3f   : > { %3042 = vmatprep.subr.bf16.mxu0 %v3441_v0  ;;  %v3477_v44 = vld [vmem:[%s3704_s9 + $0x204] ss:$36 sps:$4 sm:$0xff]  }
  0x40   : > { %3043 = vmatpush3.bf16.msra.mxu0 %v3442_v2  ;;  %v3503_v0 = vld [vmem:[%s3704_s9 + $0xa0] ss:$36 sps:$4 sm:$0xff]   ;;  %v3509_v2 = vld [vmem:[%s3704_s9 + $0xec] ss:$36 sps:$4 sm:$0xff]  }
  0x41   : > { %2933 = vmatpush3.bf16.msra.mxu1 %v3404_v47  ;;  %3044 = vmatprep.subr.bf16.mxu0 %v3455_v8  ;;  %v3534_v47 = vld [vmem:[%s4532_s1 + $0x1c0] sm:$0xff]   ;;  %v3515_v8 = vld [vmem:[%s3704_s9 + $0x134] ss:$36 sps:$4 sm:$0xff]  }
  0x42   : > { %2934 = vmatprep.subr.bf16.mxu1 %v3411_v48  ;;  %v3535_v48 = vld [vmem:[%s4532_s1 + $0x180] sm:$0xff]  }
  0x44   : > { %1714 = vmatmul.mubr.bf16.gmra.mxu0 %v3409_v49  ;;  %1810 = vmatmul.mubr.bf16.gmra.mxu1 %v3410_v50  ;;  %v3483_v49 = vld [vmem:[%s3704_s9 + $0x24c] ss:$36 sps:$4 sm:$0xff]   ;;  %v3487_v50 = vld [vmem:[%s3704_s9 + $0x14] ss:$36 sps:$4 sm:$0xff]  }
  0x45   : > { %2935 = vmatpush3.bf16.msra.mxu1 %v3412_v51  ;;  %1721 = vmatprep.mubr.bf16.mxu0 %v3417_v53  ;;  %v3485_v51 = vld [vmem:[%s3704_s9 + $0x10] ss:$36 sps:$4 sm:$0xff]  }
  0x46   : > { %2936 = vmatprep.subr.bf16.mxu1 %v3413_v52  ;;  %1850 = vmatprep.mubr.bf16.mxu1 %v3421_v54  ;;  %v3488_v52 = vld [vmem:[%s3704_s9 + $0x248] ss:$36 sps:$4 sm:$0xff]   ;;  %v3492_v53 = vld [vmem:[%s3704_s9 + $0x294] ss:$36 sps:$4 sm:$0xff]   ;;  %v3494_v54 = vld [vmem:[%s3704_s9 + $0x5c] ss:$36 sps:$4 sm:$0xff]  }
  0x47   : > { %3045 = vmatpush3.bf16.msra.mxu0 %v3457_v10  ;;  %v3517_v10 = vld [vmem:[%s3704_s9 + $0x368] ss:$36 sps:$4 sm:$0xff]  }
  0x48   : > { %3046 = vmatprep.subr.bf16.mxu0 %v3465_v15  ;;  %v3527_v15 = vld [vmem:[%s3704_s9 + $0x178] ss:$36 sps:$4 sm:$0xff]  }
  0x49   : > { %2937 = vmatpush3.bf16.msra.mxu1 %v3415_v57  ;;  %v3496_v57 = vld [vmem:[%s3704_s9 + $0x290] ss:$36 sps:$4 sm:$0xff]  }
  0x4a   : > { %3146 = vmatprep.subr.bf16.mxu1 %v3423_v60  ;;  %v3500_v60 = vld [vmem:[%s3704_s9 + $0xa4] ss:$36 sps:$4 sm:$0xff]  }
  0x4b   : > { %3047 = vmatpush3.bf16.msra.mxu0 %v3466_v16  ;;  %v3528_v16 = vld [vmem:[%s3704_s9 + $0x3fc] ss:$36 sps:$4 sm:$0xff]  }
  0x4c   : > { %1722 = vmatmul.mubr.bf16.gmra.mxu0 %v3422_v59  ;;  %1851 = vmatmul.mubr.bf16.vlgmr.msra.gmra.mxu1 %v3419_v58  ;;  %v3497_v58 = vld [vmem:[%s3704_s9 + $0x58] ss:$36 sps:$4 sm:$0xff]  }
  0x4d   : > { %3147 = vmatpush3.bf16.msra.mxu1 %v3424_v61  ;;  %1729 = vmatprep.mubr.bf16.mxu0 %v3425_v62  ;;  %v3498_v59 = vld [vmem:[%s3704_s9 + $0x2dc] ss:$36 sps:$4 sm:$0xff]  }
  0x4e   : > { %1858 = vmatprep.mubr.bf16.mxu1 %v3427_v63  ;;  %3148 = vmatprep.subr.bf16.mxu1 %v3439_v1  ;;  %v3536_v61 = vld [vmem:[%s4532_s1 + $0x220] sm:$0xff]   ;;  %v3502_v62 = vld [vmem:[%s3704_s9 + $0x2d8] ss:$36 sps:$4 sm:$0xff]  }
  0x4f   : > { %3048 = vmatprep.subr.bf16.mxu0 %v3481_v24  ;;  %v3549_v63 = vld [vmem:[%s4532_s1 + $0x218] sm:$0xff]   ;;  %v3507_v1 = vld [vmem:[%s3704_s9 + $0x324] ss:$36 sps:$4 sm:$0xff]  }
  0x50   : > { %3049 = vmatpush3.bf16.msra.mxu0 %v3482_v25  ;;  %v3543_v24 = vld [vmem:[%s3704_s9 + $0x254] ss:$36 sps:$4 sm:$0xff]   ;;  %v3547_v25 = vld [vmem:[%s3704_s9 + $0x1c] ss:$36 sps:$4 sm:$0xff]  }
  0x51   : > { %3149 = vmatpush3.bf16.msra.mxu1 %v3440_v3  ;;  %3282 = vmatprep.subr.bf16.mxu0 %v3491_v29  ;;  %v3562_v3 = vld [vmem:[%s4532_s1 + $0x210] sm:$0xff]  }
  0x52   : > { %3150 = vmatprep.subr.bf16.mxu1 %v3456_v9  ;;  %v3588_v9 = vld [vmem:[%s4532_s1 + $0x200] sm:$0xff]  }
  0x54   : > { %1730 = vmatmul.mubr.bf16.gmra.mxu0 %v3429_v4  ;;  %1859 = vmatmul.mubr.bf16.gmra.mxu1 %v3430_v5  ;;  %v3511_v4 = vld [vmem:[%s3704_s9 + $0x320] ss:$36 sps:$4 sm:$0xff]   ;;  %v3575_v5 = vld [vmem:[%s4532_s1 + $0x208] sm:$0xff]  }
  0x55   : > { %1737 = vmatprep.mubr.bf16.mxu0 %v3433_v6  ;;  %1866 = vmatprep.mubr.bf16.mxu1 %v3435_v7  ;;  %v3512_v6 = vld [vmem:[%s3704_s9 + $0xe8] ss:$36 sps:$4 sm:$0xff]  }
  0x56   : > { %3151 = vmatpush3.bf16.msra.mxu1 %v3458_v11  ;;  %v3513_v7 = vld [vmem:[%s3704_s9 + $0x36c] ss:$36 sps:$4 sm:$0xff]  }
  0x57   : > { %3152 = vmatprep.subr.bf16.mxu1 %v3473_v18  ;;  %v3518_v11 = vld [vmem:[%s3704_s9 + $0x130] ss:$36 sps:$4 sm:$0xff]   ;;  %v3532_v18 = vld [vmem:[%s3704_s9 + $0x3f8] ss:$36 sps:$4 sm:$0xff]  }
  0x5a   : > { %3153 = vmatpush3.bf16.msra.mxu1 %v3474_v19  ;;  %v3533_v19 = vld [vmem:[%s3704_s9 + $0x1c0] ss:$36 sps:$4 sm:$0xff]  }
  0x5b   : > { %3154 = vmatprep.subr.bf16.mxu1 %v3489_v26  ;;  %v3545_v26 = vld [vmem:[%s3704_s9 + $0x18] ss:$36 sps:$4 sm:$0xff]  }
  0x5c   : > { %1738 = vmatmul.mubr.bf16.gmra.mxu0 %v3437_v12  ;;  %1867 = vmatmul.mubr.bf16.gmra.mxu1 %v3438_v13  ;;  %v3522_v12 = vld [vmem:[%s3704_s9 + $0x3b4] ss:$36 sps:$4 sm:$0xff]   ;;  %v3524_v13 = vld [vmem:[%s3704_s9 + $0x17c] ss:$36 sps:$4 sm:$0xff]  }
  0x5d   : > { %1745 = vmatprep.mubr.bf16.mxu0 %v3443_v14  ;;  %1874 = vmatprep.mubr.bf16.mxu1 %v3445_v17  ;;  %v3526_v14 = vld [vmem:[%s3704_s9 + $0x3b0] ss:$36 sps:$4 sm:$0xff]   ;;  %v3530_v17 = vld [vmem:[%s3704_s9 + $0x1c4] ss:$36 sps:$4 sm:$0xff]  }
  0x5e   : > { %3155 = vmatpush3.bf16.msra.mxu1 %v3490_v28  ;;  %v3550_v28 = vld [vmem:[%s3704_s9 + $0x29c] ss:$36 sps:$4 sm:$0xff]  }
  0x5f   : > { %3156 = vmatprep.subr.bf16.mxu1 %v3504_v33  ;;  %v3558_v33 = vld [vmem:[%s3704_s9 + $0xac] ss:$36 sps:$4 sm:$0xff]  }
  0x62   : > { %3157 = vmatpush3.bf16.msra.mxu1 %v3505_v35  ;;  %v3561_v35 = vld [vmem:[%s3704_s9 + $0xa8] ss:$36 sps:$4 sm:$0xff]  }
  0x63   : > { %3158 = vmatprep.subr.bf16.mxu1 %v3519_v41  ;;  %v3571_v41 = vld [vmem:[%s3704_s9 + $0x13c] ss:$36 sps:$4 sm:$0xff]  }
  0x64   : > { %1746 = vmatmul.mubr.bf16.gmra.mxu0 %v3447_v20  ;;  %1875 = vmatmul.mubr.bf16.gmra.mxu1 %v3448_v21  ;;  %v3537_v20 = vld [vmem:[%s3704_s9 + $0x444] ss:$36 sps:$4 sm:$0xff]   ;;  %v3539_v21 = vld [vmem:[%s3704_s9 + $0x20c] ss:$36 sps:$4 sm:$0xff]  }
  0x65   : > { %1753 = vmatprep.mubr.bf16.mxu0 %v3449_v22  ;;  %1882 = vmatprep.mubr.bf16.mxu1 %v3451_v23  ;;  %v3541_v22 = vld [vmem:[%s3704_s9 + $0x440] ss:$36 sps:$4 sm:$0xff]   ;;  %v3542_v23 = vld [vmem:[%s3704_s9 + $0x208] ss:$36 sps:$4 sm:$0xff]  }
  0x66   : > { %3159 = vmatpush3.bf16.msra.mxu1 %v3520_v42  ;;  %v3573_v42 = vld [vmem:[%s3704_s9 + $0x370] ss:$36 sps:$4 sm:$0xff]  }
  0x67   : > { %3160 = vmatprep.subr.bf16.mxu1 %v3534_v47 }
  0x6a   : > { %3161 = vmatpush3.bf16.msra.mxu1 %v3535_v48 }
  0x6c   : > { %1754 = vmatmul.mubr.bf16.gmra.mxu0 %v3453_v27  ;;  %1883 = vmatmul.mubr.bf16.gmra.mxu1 %v3454_v30  ;;  %v3548_v27 = vld [vmem:[%s3704_s9 + $0x250] ss:$36 sps:$4 sm:$0xff]   ;;  %v3554_v30 = vld [vmem:[%s3704_s9 + $0x298] ss:$36 sps:$4 sm:$0xff]  }
  0x6d   : > { %1761 = vmatprep.mubr.bf16.mxu0 %v3459_v31  ;;  %1890 = vmatprep.mubr.bf16.mxu1 %v3461_v32  ;;  %v3555_v31 = vld [vmem:[%s3704_s9 + $0x60] ss:$36 sps:$4 sm:$0xff]  }
  0x6e   : > { %v3556_v32 = vld [vmem:[%s3704_s9 + $0x2e4] ss:$36 sps:$4 sm:$0xff]  }
  0x74   : > { %1762 = vmatmul.mubr.bf16.gmra.mxu0 %v3463_v34  ;;  %1891 = vmatmul.mubr.bf16.gmra.mxu1 %v3464_v36  ;;  %v3560_v34 = vld [vmem:[%s3704_s9 + $0x2e0] ss:$36 sps:$4 sm:$0xff]   ;;  %v3563_v36 = vld [vmem:[%s3704_s9 + $0x32c] ss:$36 sps:$4 sm:$0xff]  }
  0x75   : > { %1769 = vmatprep.mubr.bf16.mxu0 %v3467_v37  ;;  %1898 = vmatprep.mubr.bf16.mxu1 %v3469_v38  ;;  %v3565_v37 = vld [vmem:[%s3704_s9 + $0xf4] ss:$36 sps:$4 sm:$0xff]   ;;  %v3567_v38 = vld [vmem:[%s3704_s9 + $0x328] ss:$36 sps:$4 sm:$0xff]  }
  0x7c   : > { %1770 = vmatmul.mubr.bf16.gmra.mxu0 %v3471_v39  ;;  %1899 = vmatmul.mubr.bf16.gmra.mxu1 %v3472_v40  ;;  %v3568_v39 = vld [vmem:[%s3704_s9 + $0xf0] ss:$36 sps:$4 sm:$0xff]  }
  0x7d   : > { %1777 = vmatprep.mubr.bf16.mxu0 %v3475_v43  ;;  %1906 = vmatprep.mubr.bf16.mxu1 %v3477_v44  ;;  %v3569_v40 = vld [vmem:[%s3704_s9 + $0x374] ss:$36 sps:$4 sm:$0xff]   ;;  %v3576_v44 = vld [vmem:[%s3704_s9 + $0x3bc] ss:$36 sps:$4 sm:$0xff]  }
  0x7e   : > { %v3574_v43 = vld [vmem:[%s3704_s9 + $0x138] ss:$36 sps:$4 sm:$0xff]  }
  0x84   : > { %1778 = vmatmul.mubr.bf16.gmra.mxu0 %v3479_v45  ;;  %1907 = vmatmul.mubr.bf16.gmra.mxu1 %v3480_v46  ;;  %v3578_v45 = vld [vmem:[%s3704_s9 + $0x184] ss:$36 sps:$4 sm:$0xff]  }
  0x85   : > { %1914 = vmatprep.mubr.bf16.mxu1 %v3483_v49  ;;  %2011 = vmatprep.mubr.bf16.mxu0 %v3487_v50 }
  0x8c   : > { %1915 = vmatmul.mubr.bf16.gmra.mxu1 %v3488_v52  ;;  %2012 = vmatmul.mubr.bf16.vlgmr.msra.gmra.mxu0 %v3485_v51 }
  0x8d   : > { %3283 = vmatpush3.bf16.msra.mxu0 %v3491_v29  ;;  %1922 = vmatprep.mubr.bf16.mxu1 %v3492_v53  ;;  %v3552_v29 = vld [vmem:[%s3704_s9 + $0x64] ss:$36 sps:$4 sm:$0xff]  }
  0x8e   : > { %2019 = vmatprep.mubr.bf16.mxu0 %v3494_v54  ;;  %3284 = vmatprep.subr.bf16.mxu0 %v3506_v55  ;;  %v3580_v54 = vld [vmem:[%s3704_s9 + $0x3b8] ss:$36 sps:$4 sm:$0xff]  }
  0x91   : > { %3285 = vmatpush3.bf16.msra.mxu0 %v3506_v55  ;;  %v3581_v55 = vld [vmem:[%s3704_s9 + $0x180] ss:$36 sps:$4 sm:$0xff]  }
  0x92   : > { %3286 = vmatprep.subr.bf16.mxu0 %v3521_v56 }
  0x94   : > { %1923 = vmatmul.mubr.bf16.gmra.mxu1 %v3496_v57  ;;  %2020 = vmatmul.mubr.bf16.gmra.mxu0 %v3497_v58  ;;  %v3584_v57 = vld [vmem:[%s3704_s9 + $0x1cc] ss:$36 sps:$4 sm:$0xff]  }
  0x95   : > { %1930 = vmatprep.mubr.bf16.mxu1 %v3498_v59  ;;  %2027 = vmatprep.mubr.bf16.mxu0 %v3500_v60 }
  0x96   : > { %3287 = vmatpush3.bf16.msra.mxu0 %v3521_v56  ;;  %v3582_v56 = vld [vmem:[%s3704_s9 + $0x404] ss:$36 sps:$4 sm:$0xff]  }
  0x97   : > { %3288 = vmatprep.subr.bf16.mxu0 %v3536_v61 }
  0x9a   : > { %3289 = vmatpush3.bf16.msra.mxu0 %v3536_v61 }
  0x9b   : > { %3290 = vmatprep.subr.bf16.mxu0 %v3549_v63 }
  0x9c   : > { %1931 = vmatmul.mubr.bf16.gmra.mxu1 %v3502_v62  ;;  %2028 = vmatmul.mubr.bf16.gmra.mxu0 %v3503_v0 }
  0x9d   : > { %1938 = vmatprep.mubr.bf16.mxu1 %v3507_v1  ;;  %2035 = vmatprep.mubr.bf16.mxu0 %v3509_v2 }
  0x9e   : > { %3291 = vmatpush3.bf16.msra.mxu0 %v3549_v63 }
  0x9f   : > { %3292 = vmatprep.subr.bf16.mxu0 %v3562_v3 }
  0xa2   : > { %3293 = vmatpush3.bf16.msra.mxu0 %v3562_v3 }
  0xa3   : > { %3294 = vmatprep.subr.bf16.mxu0 %v3575_v5 }
  0xa4   : > { %1939 = vmatmul.mubr.bf16.gmra.mxu1 %v3511_v4  ;;  %2036 = vmatmul.mubr.bf16.gmra.mxu0 %v3512_v6  ;;  %v3586_v6 = vld [vmem:[%s3704_s9 + $0x400] ss:$36 sps:$4 sm:$0xff]  }
  0xa5   : > { %1946 = vmatprep.mubr.bf16.mxu1 %v3513_v7  ;;  %2043 = vmatprep.mubr.bf16.mxu0 %v3515_v8  ;;  %v3587_v7 = vld [vmem:[%s3704_s9 + $0x1c8] ss:$36 sps:$4 sm:$0xff]  }
  0xa6   : > { %3295 = vmatpush3.bf16.msra.mxu0 %v3575_v5  ;;  %v3589_v8 = vld [vmem:[%s3704_s9 + $0x44c] ss:$36 sps:$4 sm:$0xff]  }
  0xa7   : > { %3296 = vmatprep.subr.bf16.mxu0 %v3588_v9 }
  0xaa   : > { %3297 = vmatpush3.bf16.msra.mxu0 %v3588_v9  ;;  %v3591_v9 = vld [vmem:[%s3704_s9 + $0x214] ss:$36 sps:$4 sm:$0xff]  }
  0xac   : > { %1947 = vmatmul.mubr.bf16.gmra.mxu1 %v3517_v10  ;;  %2044 = vmatmul.mubr.bf16.gmra.mxu0 %v3518_v11 }
  0xad   : > { %1954 = vmatprep.mubr.bf16.mxu1 %v3522_v12  ;;  %2051 = vmatprep.mubr.bf16.mxu0 %v3524_v13 }
  0xb4   : > { %1955 = vmatmul.mubr.bf16.gmra.mxu1 %v3526_v14  ;;  %2052 = vmatmul.mubr.bf16.gmra.mxu0 %v3527_v15 }
  0xb5   : > { %1962 = vmatprep.mubr.bf16.mxu1 %v3528_v16  ;;  %2059 = vmatprep.mubr.bf16.mxu0 %v3530_v17 }
  0xbc   : > { %1963 = vmatmul.mubr.bf16.gmra.mxu1 %v3532_v18  ;;  %2060 = vmatmul.mubr.bf16.gmra.mxu0 %v3533_v19 }
  0xbd   : > { %1970 = vmatprep.mubr.bf16.mxu1 %v3537_v20  ;;  %2067 = vmatprep.mubr.bf16.mxu0 %v3539_v21 }
  0xc4   : > { %1971 = vmatmul.mubr.bf16.gmra.mxu1 %v3541_v22  ;;  %2068 = vmatmul.mubr.bf16.gmra.mxu0 %v3542_v23  ;;  %v3593_v22 = vld [vmem:[%s3704_s9 + $0x448] ss:$36 sps:$4 sm:$0xff]   ;;  %v3594_v23 = vld [vmem:[%s3704_s9 + $0x210] ss:$36 sps:$4 sm:$0xff]  }
  0xc5   : > { %2075 = vmatprep.mubr.bf16.mxu0 %v3543_v24  ;;  %2172 = vmatprep.mubr.bf16.mxu1 %v3547_v25  ;;  %v3597_v24 = vld [vmem:[%s3704_s9 + $0x25c] ss:$36 sps:$4 sm:$0xff]  }
  0xc6   : > { %v3598_v25 = vld [vmem:[%s3704_s9 + $0x20] ss:$36 sps:$4 sm:$0xff]  }
  0xcc   : > { %2076 = vmatmul.mubr.bf16.gmra.mxu0 %v3548_v27  ;;  %2173 = vmatmul.mubr.bf16.vlgmr.msra.gmra.mxu1 %v3545_v26 }
  0xcd   : > { %2083 = vmatprep.mubr.bf16.mxu0 %v3550_v28  ;;  %2180 = vmatprep.mubr.bf16.mxu1 %v3552_v29 }
  0xd4   : > { %2084 = vmatmul.mubr.bf16.gmra.mxu0 %v3554_v30  ;;  %2181 = vmatmul.mubr.bf16.gmra.mxu1 %v3555_v31 }
  0xd5   : > { %2091 = vmatprep.mubr.bf16.mxu0 %v3556_v32  ;;  %2188 = vmatprep.mubr.bf16.mxu1 %v3558_v33 }
  0xdc   : > { %2092 = vmatmul.mubr.bf16.gmra.mxu0 %v3560_v34  ;;  %2189 = vmatmul.mubr.bf16.gmra.mxu1 %v3561_v35 }
  0xdd   : > { %2099 = vmatprep.mubr.bf16.mxu0 %v3563_v36  ;;  %2196 = vmatprep.mubr.bf16.mxu1 %v3565_v37 }
  0xe4   : > { %2100 = vmatmul.mubr.bf16.gmra.mxu0 %v3567_v38  ;;  %2197 = vmatmul.mubr.bf16.gmra.mxu1 %v3568_v39  ;;  %v3595_v38 = vld [vmem:[%s3704_s9 + $0x258] ss:$36 sps:$4 sm:$0xff]   ;;  %v3599_v39 = vld [vmem:[%s3704_s9 + $0x68] ss:$36 sps:$4 sm:$0xff]  }
  0xe5   : > { %2107 = vmatprep.mubr.bf16.mxu0 %v3569_v40  ;;  %2204 = vmatprep.mubr.bf16.mxu1 %v3571_v41  ;;  %v3602_v40 = vld [vmem:[%s3704_s9 + $0x2a4] ss:$36 sps:$4 sm:$0xff]   ;;  %v3603_v41 = vld [vmem:[%s3704_s9 + $0xb0] ss:$36 sps:$4 sm:$0xff]  }
  0xec   : > { %v2826_v46 = vpop.f32.mrf.mxu0  ;;  %v2898_v47 = vpop.f32.mrf.mxu1  ;;  %2108 = vmatmul.mubr.bf16.gmra.mxu0 %v3573_v42  ;;  %2205 = vmatmul.mubr.bf16.gmra.mxu1 %v3574_v43 }
  0xed   : > { %2115 = vmatprep.mubr.bf16.mxu0 %v3576_v44  ;;  %2212 = vmatprep.mubr.bf16.mxu1 %v3578_v45 }
  0xee   : > { %v2827_v48 = vpop.f32.mrf.mxu0  ;;  %v2899_v49 = vpop.f32.mrf.mxu1 }
  0xef   : > { %v3997_v50 = vadd.f32 %v2827_v48, %v2826_v46  ;;  %v3999_v51 = vadd.f32 %v2899_v49, %v2898_v47  ;;  %v4048_v48 = vld [vmem:[%s4533_s2] ss:$0 sm:$0xff] }
  0xf0   : > { %v2829_v52 = vpop.f32.mrf.mxu0  ;;  %v2901_v53 = vpop.f32.mrf.mxu1 }
  0xf2   : > { %v2830_v58 = vpop.f32.mrf.mxu0  ;;  %v2902_v59 = vpop.f32.mrf.mxu1 }
  0xf3   : > { %v4005_v60 = vadd.f32 %v2830_v58, %v2829_v52  ;;  %v4007_v61 = vadd.f32 %v2902_v59, %v2901_v53  ;;  %v1692_v53 = vadd.f32 %v3997_v50, %v4048_v48  ;;  %v3600_v58 = vld [vmem:[%s3704_s9 + $0x2a0] ss:$36 sps:$4 sm:$0xff]   ;;  %v3604_v59 = vld [vmem:[%s3704_s9 + $0xf8] ss:$36 sps:$4 sm:$0xff]  }
  0xf4   : > { %v2832_v62 = vpop.f32.mrf.mxu0  ;;  %v2904_v63 = vpop.f32.mrf.mxu1  ;;  %2116 = vmatmul.mubr.bf16.gmra.mxu0 %v3580_v54  ;;  %2213 = vmatmul.mubr.bf16.gmra.mxu1 %v3581_v55 }
  0xf5   : > { %2123 = vmatprep.mubr.bf16.mxu0 %v3582_v56  ;;  %2220 = vmatprep.mubr.bf16.mxu1 %v3584_v57 }
  0xf6   : > { %v2833_v0 = vpop.f32.mrf.mxu0  ;;  %v2905_v1 = vpop.f32.mrf.mxu1 }
  0xf7   : > { %v4009_v2 = vadd.f32 %v2833_v0, %v2832_v62  ;;  %v4011_v3 = vadd.f32 %v2905_v1, %v2904_v63  ;;  %v3607_v63 = vld [vmem:[%s3704_s9 + $0x2ec] ss:$36 sps:$4 sm:$0xff]   ;;  %v3608_v0 = vld [vmem:[%s3704_s9 + $0x140] ss:$36 sps:$4 sm:$0xff]  }
  0xf8   : > { %v2835_v4 = vpop.f32.mrf.mxu0  ;;  %v2907_v5 = vpop.f32.mrf.mxu1 }
  0xfa   : > { %v2836_v10 = vpop.f32.mrf.mxu0  ;;  %v2908_v11 = vpop.f32.mrf.mxu1 }
  0xfb   : > { %v4017_v12 = vadd.f32 %v2836_v10, %v2835_v4  ;;  %v4019_v13 = vadd.f32 %v2908_v11, %v2907_v5  ;;  %v1695_v5 = vadd.f32 %v4005_v60, %v4048_v48  ;;  %v1700_v60 = vadd.f32 %v4009_v2, %v4048_v48 }
  0xfc   : > { %v2838_v14 = vpop.f32.mrf.mxu0  ;;  %v2910_v15 = vpop.f32.mrf.mxu1  ;;  %2124 = vmatmul.mubr.bf16.gmra.mxu0 %v3586_v6  ;;  %2221 = vmatmul.mubr.bf16.gmra.mxu1 %v3587_v7 }
  0xfd   : > { %2131 = vmatprep.mubr.bf16.mxu0 %v3589_v8  ;;  %2228 = vmatprep.mubr.bf16.mxu1 %v3591_v9 }
  0xfe   : > { %v2839_v16 = vpop.f32.mrf.mxu0  ;;  %v2911_v17 = vpop.f32.mrf.mxu1 }
  0xff   : > { %v4021_v18 = vadd.f32 %v2839_v16, %v2838_v14  ;;  %v4023_v19 = vadd.f32 %v2911_v17, %v2910_v15 }
 0x100   : > { %v2841_v20 = vpop.f32.mrf.mxu0  ;;  %v2913_v21 = vpop.f32.mrf.mxu1 }
 0x102   : > { %v2842_v26 = vpop.f32.mrf.mxu0  ;;  %v2914_v27 = vpop.f32.mrf.mxu1 }
 0x103   : > { %v4029_v28 = vadd.f32 %v2842_v26, %v2841_v20  ;;  %v4031_v29 = vadd.f32 %v2914_v27, %v2913_v21  ;;  %v3605_v20 = vld [vmem:[%s3704_s9 + $0x2e8] ss:$36 sps:$4 sm:$0xff]   ;;  %v1703_v27 = vadd.f32 %v4017_v12, %v4048_v48  ;;  %v1708_v12 = vadd.f32 %v4021_v18, %v4048_v48 }
 0x104   : > { %v2844_v30 = vpop.f32.mrf.mxu0  ;;  %v2916_v31 = vpop.f32.mrf.mxu1  ;;  %2132 = vmatmul.mubr.bf16.gmra.mxu0 %v3593_v22  ;;  %2229 = vmatmul.mubr.bf16.gmra.mxu1 %v3594_v23  ;;  %v3609_v21 = vld [vmem:[%s3704_s9 + $0x188] ss:$36 sps:$4 sm:$0xff]   ;;  %v3612_v23 = vld [vmem:[%s3704_s9 + $0x334] ss:$36 sps:$4 sm:$0xff]  }
 0x105   : > { %2236 = vmatprep.mubr.bf16.mxu1 %v3597_v24  ;;  %3298 = vmatprep.mubr.bf16.mxu0 %v3598_v25  ;;  %v3613_v24 = vld [vmem:[%s3704_s9 + $0x1d0] ss:$36 sps:$4 sm:$0xff]  }
 0x106   : > { %v2845_v32 = vpop.f32.mrf.mxu0  ;;  %v2917_v33 = vpop.f32.mrf.mxu1 }
 0x107   : > { %v4033_v34 = vadd.f32 %v2845_v32, %v2844_v30  ;;  %v4035_v35 = vadd.f32 %v2917_v33, %v2916_v31 }
 0x108   : > { %v2847_v36 = vpop.f32.mrf.mxu0  ;;  %v2919_v37 = vpop.f32.mrf.mxu1 }
 0x10a   : > { %v2848_v42 = vpop.f32.mrf.mxu0  ;;  %v2920_v43 = vpop.f32.mrf.mxu1 }
 0x10b   : > { %v4041_v44 = vadd.f32 %v2848_v42, %v2847_v36  ;;  %v4043_v45 = vadd.f32 %v2920_v43, %v2919_v37  ;;  %v3610_v42 = vld [vmem:[%s3704_s9 + $0x330] ss:$36 sps:$4 sm:$0xff]   ;;  %v3614_v43 = vld [vmem:[%s3704_s9 + $0x218] ss:$36 sps:$4 sm:$0xff]  }
 0x10c   : > { %v2850_v46 = vpop.f32.mrf.mxu0  ;;  %v2938_v47 = vpop.f32.mrf.mxu1  ;;  %2237 = vmatmul.mubr.bf16.gmra.mxu1 %v3595_v38  ;;  %3299 = vmatmul.mubr.bf16.vlgmr.msra.gmra.mxu0 %v3599_v39 }
 0x10d   : > { %2244 = vmatprep.mubr.bf16.mxu1 %v3602_v40  ;;  %3302 = vmatprep.mubr.bf16.mxu0 %v3603_v41 }
 0x10e   : > { %v2851_v49 = vpop.f32.mrf.mxu0  ;;  %v2939_v52 = vpop.f32.mrf.mxu1 }
 0x10f   : > { %v4052_v54 = vadd.f32 %v2851_v49, %v2850_v46  ;;  %v2940_v55 = vadd.f32 %v2939_v52, %v2938_v47  ;;  %v3617_v47 = vld [vmem:[%s3704_s9 + $0x37c] ss:$36 sps:$4 sm:$0xff]  }
 0x110   : > { %v2853_v56 = vpop.f32.mrf.mxu0  ;;  %v2941_v57 = vpop.f32.mrf.mxu1  ;;  %v3618_v49 = vld [vmem:[%s3704_s9 + $0x260] ss:$36 sps:$4 sm:$0xff]  }
 0x111   : > { %v4056_v62 = vadd.f32 %v2940_v55, %v1692_v53  ;;  %v1711_v55 = vadd.f32 %v4029_v28, %v4048_v48  ;;  %v1716_v28 = vadd.f32 %v4033_v34, %v4048_v48 }
 0x112   : > { %v2854_v1 = vpop.f32.mrf.mxu0  ;;  %v2942_v4 = vpop.f32.mrf.mxu1 }
 0x113   : > { %v4062_v6 = vadd.f32 %v2854_v1, %v2853_v56  ;;  %v2943_v50 = vadd.f32 %v2942_v4, %v2941_v57 }
 0x114   : > { %v2856_v7 = vpop.f32.mrf.mxu0  ;;  %v2944_v8 = vpop.f32.mrf.mxu1  ;;  %2245 = vmatmul.mubr.bf16.gmra.mxu1 %v3600_v58  ;;  %3303 = vmatmul.mubr.bf16.gmra.mxu0 %v3604_v59 }
 0x115   : > { %v4064_v9 = vadd.f32 %v2943_v50, %v1695_v5  ;;  %2252 = vmatprep.mubr.bf16.mxu1 %v3607_v63  ;;  %3306 = vmatprep.mubr.bf16.mxu0 %v3608_v0 }
 0x116   : > { %v2857_v10 = vpop.f32.mrf.mxu0  ;;  %v2945_v11 = vpop.f32.mrf.mxu1 }
 0x117   : > { %v4068_v14 = vadd.f32 %v2857_v10, %v2856_v7  ;;  %v2946_v15 = vadd.f32 %v2945_v11, %v2944_v8  ;;  %v3615_v7 = vld [vmem:[%s3704_s9 + $0x378] ss:$36 sps:$4 sm:$0xff]   ;;  %v3619_v8 = vld [vmem:[%s3704_s9 + $0x2a8] ss:$36 sps:$4 sm:$0xff]  }
 0x118   : > { %v2859_v16 = vpop.f32.mrf.mxu0  ;;  %v2947_v17 = vpop.f32.mrf.mxu1  ;;  %v3622_v11 = vld [vmem:[%s3704_s9 + $0x3c4] ss:$36 sps:$4 sm:$0xff]  }
 0x119   : > { %v4072_v22 = vadd.f32 %v2946_v15, %v1700_v60  ;;  %v3623_v60 = vld [vmem:[%s3704_s9 + $0x2f0] ss:$36 sps:$4 sm:$0xff]  }
 0x11a   : > { %v2860_v25 = vpop.f32.mrf.mxu0  ;;  %v2948_v26 = vpop.f32.mrf.mxu1 }
 0x11b   : > { %v4078_v30 = vadd.f32 %v2860_v25, %v2859_v16  ;;  %v2949_v2 = vadd.f32 %v2948_v26, %v2947_v17  ;;  %v1719_v17 = vadd.f32 %v4041_v44, %v4048_v48  ;;  %v1724_v44 = vadd.f32 %v4052_v54, %v4048_v48 }
 0x11c   : > { %v2862_v31 = vpop.f32.mrf.mxu0  ;;  %v2950_v32 = vpop.f32.mrf.mxu1  ;;  %2253 = vmatmul.mubr.bf16.gmra.mxu1 %v3605_v20  ;;  %3307 = vmatmul.mubr.bf16.gmra.mxu0 %v3609_v21 }
 0x11d   : > { %v4080_v33 = vadd.f32 %v2949_v2, %v1703_v27  ;;  %2260 = vmatprep.mubr.bf16.mxu1 %v3612_v23  ;;  %3310 = vmatprep.mubr.bf16.mxu0 %v3613_v24 }
 0x11e   : > { %v2863_v36 = vpop.f32.mrf.mxu0  ;;  %v2951_v37 = vpop.f32.mrf.mxu1 }
 0x11f   : > { %v4084_v38 = vadd.f32 %v2863_v36, %v2862_v31  ;;  %v2952_v39 = vadd.f32 %v2951_v37, %v2950_v32  ;;  %v3620_v36 = vld [vmem:[%s3704_s9 + $0x3c0] ss:$36 sps:$4 sm:$0xff]   ;;  %v3624_v37 = vld [vmem:[%s3704_s9 + $0x338] ss:$36 sps:$4 sm:$0xff]  }
 0x120   : > { %v2865_v40 = vpop.f32.mrf.mxu0  ;;  %v2953_v41 = vpop.f32.mrf.mxu1 }
 0x121   : > { %v4088_v46 = vadd.f32 %v2952_v39, %v1708_v12  ;;  %v3627_v39 = vld [vmem:[%s3704_s9 + $0x40c] ss:$36 sps:$4 sm:$0xff]  }
 0x122   : > { %v2866_v52 = vpop.f32.mrf.mxu0  ;;  %v2954_v53 = vpop.f32.mrf.mxu1 }
 0x123   : > { %v4094_v56 = vadd.f32 %v2866_v52, %v2865_v40  ;;  %v2955_v18 = vadd.f32 %v2954_v53, %v2953_v41  ;;  %v3628_v40 = vld [vmem:[%s3704_s9 + $0x380] ss:$36 sps:$4 sm:$0xff]  }
 0x124   : > { %v2868_v57 = vpop.f32.mrf.mxu0  ;;  %v2956_v58 = vpop.f32.mrf.mxu1  ;;  %2261 = vmatmul.mubr.bf16.gmra.mxu1 %v3610_v42  ;;  %3311 = vmatmul.mubr.bf16.gmra.mxu0 %v3614_v43  ;;  %v1727_v43 = vadd.f32 %v4062_v6, %v4048_v48  ;;  %v1732_v6 = vadd.f32 %v4068_v14, %v4048_v48 }
 0x125   : > { %v4096_v59 = vadd.f32 %v2955_v18, %v1711_v55  ;;  %2268 = vmatprep.mubr.bf16.mxu1 %v3617_v47  ;;  %3314 = vmatprep.mubr.bf16.mxu0 %v3618_v49 }
 0x126   : > { %v2869_v63 = vpop.f32.mrf.mxu0  ;;  %v2957_v0 = vpop.f32.mrf.mxu1 }
 0x127   : > { %v4100_v1 = vadd.f32 %v2869_v63, %v2868_v57  ;;  %v2958_v4 = vadd.f32 %v2957_v0, %v2956_v58 }
 0x128   : > { %v2871_v5 = vpop.f32.mrf.mxu0  ;;  %v2959_v50 = vpop.f32.mrf.mxu1 }
 0x129   : > { %v4104_v10 = vadd.f32 %v2958_v4, %v1716_v28  ;;  %v3625_v28 = vld [vmem:[%s3704_s9 + $0x408] ss:$36 sps:$4 sm:$0xff]  }
 0x12a   : > { %v2872_v15 = vpop.f32.mrf.mxu0  ;;  %v2960_v16 = vpop.f32.mrf.mxu1  ;;  %v3629_v4 = vld [vmem:[%s3704_s9 + $0x3c8] ss:$36 sps:$4 sm:$0xff]  }
 0x12b   : > { %v4110_v20 = vadd.f32 %v2872_v15, %v2871_v5  ;;  %v2961_v34 = vadd.f32 %v2960_v16, %v2959_v50  ;;  %v3632_v50 = vld [vmem:[%s3704_s9 + $0x454] ss:$36 sps:$4 sm:$0xff]  }
 0x12c   : > { %v2874_v21 = vpop.f32.mrf.mxu0  ;;  %v2962_v23 = vpop.f32.mrf.mxu1  ;;  %2269 = vmatmul.mubr.bf16.gmra.mxu1 %v3615_v7  ;;  %3315 = vmatmul.mubr.bf16.gmra.mxu0 %v3619_v8  ;;  %v3633_v7 = vld [vmem:[%s3704_s9 + $0x410] ss:$36 sps:$4 sm:$0xff]  }
 0x12d   : > { %v4112_v24 = vadd.f32 %v2961_v34, %v1719_v17  ;;  %2276 = vmatprep.mubr.bf16.mxu1 %v3622_v11  ;;  %3318 = vmatprep.mubr.bf16.mxu0 %v3623_v60  ;;  %v1735_v60 = vadd.f32 %v4078_v30, %v4048_v48 }
 0x12e   : > { %v2875_v25 = vpop.f32.mrf.mxu0  ;;  %v2963_v26 = vpop.f32.mrf.mxu1 }
 0x12f   : > { %v4116_v27 = vadd.f32 %v2875_v25, %v2874_v21  ;;  %v2964_v2 = vadd.f32 %v2963_v26, %v2962_v23  ;;  %v1740_v25 = vadd.f32 %v4084_v38, %v4048_v48 }
 0x130   : > { %v2877_v31 = vpop.f32.mrf.mxu0  ;;  %v2965_v32 = vpop.f32.mrf.mxu1 }
 0x131   : > { %v4120_v12 = vadd.f32 %v2964_v2, %v1724_v44 }
 0x132   : > { %v2878_v41 = vpop.f32.mrf.mxu0  ;;  %v2966_v42 = vpop.f32.mrf.mxu1 }
 0x133   : > { %v4126_v47 = vadd.f32 %v2878_v41, %v2877_v31  ;;  %v2967_v54 = vadd.f32 %v2966_v42, %v2965_v32  ;;  %v3630_v31 = vld [vmem:[%s3704_s9 + $0x450] ss:$36 sps:$4 sm:$0xff]   ;;  %v3634_v32 = vld [vmem:[%s3704_s9 + $0x458] ss:$36 sps:$4 sm:$0xff]   ;;  %s2590_s9 = sshll.u32 %s4556_s16, 3 }
 0x134   : > { %v2880_v49 = vpop.f32.mrf.mxu0  ;;  %v2968_v52 = vpop.f32.mrf.mxu1  ;;  %2277 = vmatmul.mubr.bf16.gmra.mxu1 %v3620_v36  ;;  %3319 = vmatmul.mubr.bf16.gmra.mxu0 %v3624_v37  ;;  %s4412_s22 = scalar_lea.vmem %s4534_s3, %s2590_s9 }
 0x135   : > { %v4128_v53 = vadd.f32 %v2967_v54, %v1727_v43  ;;  %2284 = vmatprep.mubr.bf16.mxu1 %v3627_v39  ;;  %3322 = vmatprep.mubr.bf16.mxu0 %v3628_v40  ;;  %v1743_v40 = vadd.f32 %v4094_v56, %v4048_v48 }
 0x136   : > { %v2881_v55 = vpop.f32.mrf.mxu0  ;;  %v2969_v18 = vpop.f32.mrf.mxu1 }
 0x137   : > { %v4132_v57 = vadd.f32 %v2881_v55, %v2880_v49  ;;  %v2970_v58 = vadd.f32 %v2969_v18, %v2968_v52  ;;  %v1748_v55 = vadd.f32 %v4100_v1, %v4048_v48 }
 0x138   : > { %v2883_v63 = vpop.f32.mrf.mxu0  ;;  %v2971_v0 = vpop.f32.mrf.mxu1 }
 0x139   : > { %v4136_v5 = vadd.f32 %v2970_v58, %v1732_v6 }
 0x13a   : > { %v2884_v8 = vpop.f32.mrf.mxu0  ;;  %v2972_v11 = vpop.f32.mrf.mxu1 }
 0x13b   : > { %v4142_v15 = vadd.f32 %v2884_v8, %v2883_v63  ;;  %v2973_v14 = vadd.f32 %v2972_v11, %v2971_v0 }
 0x13c   : > { %v2886_v16 = vpop.f32.mrf.mxu0  ;;  %v2974_v17 = vpop.f32.mrf.mxu1  ;;  %2285 = vmatmul.mubr.bf16.gmra.mxu1 %v3625_v28  ;;  %3323 = vmatmul.mubr.bf16.gmra.mxu0 %v3629_v4  ;;  %v1751_v4 = vadd.f32 %v4110_v20, %v4048_v48 }
 0x13d   : > { %v4144_v34 = vadd.f32 %v2973_v14, %v1735_v60  ;;  %2292 = vmatprep.mubr.bf16.mxu1 %v3632_v50  ;;  %3326 = vmatprep.mubr.bf16.mxu0 %v3633_v7 }
 0x13e   : > { %v2887_v21 = vpop.f32.mrf.mxu0  ;;  %v2975_v23 = vpop.f32.mrf.mxu1 }
 0x13f   : > { %v4148_v26 = vadd.f32 %v2887_v21, %v2886_v16  ;;  %v2976_v30 = vadd.f32 %v2975_v23, %v2974_v17  ;;  %v1756_v16 = vadd.f32 %v4116_v27, %v4048_v48 }
 0x140   : > { %v2889_v44 = vpop.f32.mrf.mxu0  ;;  %v2977_v2 = vpop.f32.mrf.mxu1 }
 0x141   : > { %v4152_v36 = vadd.f32 %v2976_v30, %v1740_v25 }
 0x142   : > { %v2890_v37 = vpop.f32.mrf.mxu0  ;;  %v2978_v39 = vpop.f32.mrf.mxu1 }
 0x143   : > { %v4156_v41 = vadd.f32 %v2890_v37, %v2889_v44  ;;  %v2979_v42 = vadd.f32 %v2978_v39, %v2977_v2 }
 0x144   : > { %v2892_v43 = vpop.f32.mrf.mxu0  ;;  %v2980_v54 = vpop.f32.mrf.mxu1  ;;  %2293 = vmatmul.mubr.bf16.gmra.mxu1 %v3630_v31  ;;  %3327 = vmatmul.mubr.bf16.gmra.mxu0 %v3634_v32  ;;  %v1759_v31 = vadd.f32 %v4126_v47, %v4048_v48 }
 0x145   : > { %v4158_v38 = vadd.f32 %v2979_v42, %v1743_v40 }
 0x146   : > { %v2893_v49 = vpop.f32.mrf.mxu0  ;;  %v2981_v52 = vpop.f32.mrf.mxu1 }
 0x147   : > { %v4162_v18 = vadd.f32 %v2893_v49, %v2892_v43  ;;  %v2982_v6 = vadd.f32 %v2981_v52, %v2980_v54 }
 0x148   : > { %v2895_v58 = vpop.f32.mrf.mxu0  ;;  %v2983_v63 = vpop.f32.mrf.mxu1 }
 0x149   : > { %v4164_v56 = vadd.f32 %v2982_v6, %v1748_v55 }
 0x14a   : > { %v2896_v0 = vpop.f32.mrf.mxu0  ;;  %v2984_v28 = vpop.f32.mrf.mxu1 }
 0x14b   : > { %v4168_v50 = vadd.f32 %v2896_v0, %v2895_v58  ;;  %v2985_v7 = vadd.f32 %v2984_v28, %v2983_v63 }
 0x14c   : > { %v2986_v8 = vpop.f32.mrf.mxu1  ;;  %v3050_v11 = vpop.f32.mrf.mxu0 }
 0x14d   : > { %v4170_v60 = vadd.f32 %v2985_v7, %v1751_v4 }
 0x14e   : > { %v2987_v1 = vpop.f32.mrf.mxu1  ;;  %v3051_v14 = vpop.f32.mrf.mxu0 }
 0x14f   : > { %v2988_v17 = vadd.f32 %v2987_v1, %v2986_v8  ;;  %v3052_v21 = vadd.f32 %v3051_v14, %v3050_v11 }
 0x150   : > { %v2989_v23 = vpop.f32.mrf.mxu1  ;;  %v3053_v25 = vpop.f32.mrf.mxu0 }
 0x151   : > { %v4174_v30 = vadd.f32 %v2988_v17, %v1756_v16  ;;  %v4177_v20 = vadd.f32 %v3052_v21, %v4056_v62  ;;  %v1764_v62 = vadd.f32 %v4132_v57, %v4048_v48 }
 0x152   : > { %v2990_v44 = vpop.f32.mrf.mxu1  ;;  %v3054_v2 = vpop.f32.mrf.mxu0 }
 0x153   : > { %v2991_v32 = vadd.f32 %v2990_v44, %v2989_v23  ;;  %v3055_v37 = vadd.f32 %v3054_v2, %v3053_v25 }
 0x154   : > { %v2992_v39 = vpop.f32.mrf.mxu1  ;;  %v3056_v40 = vpop.f32.mrf.mxu0 }
 0x155   : > { %v4181_v42 = vadd.f32 %v2991_v32, %v1759_v31  ;;  %v4184_v27 = vadd.f32 %v3055_v37, %v4064_v9  ;;  %v1767_v9 = vadd.f32 %v4142_v15, %v4048_v48 }
 0x156   : > { %v2993_v43 = vpop.f32.mrf.mxu1  ;;  %v3057_v54 = vpop.f32.mrf.mxu0 }
 0x157   : > { %v2994_v49 = vadd.f32 %v2993_v43, %v2992_v39  ;;  %v3058_v52 = vadd.f32 %v3057_v54, %v3056_v40 }
 0x158   : > { %v2995_v55 = vpop.f32.mrf.mxu1  ;;  %v3059_v6 = vpop.f32.mrf.mxu0 }
 0x159   : > { %v4188_v58 = vadd.f32 %v2994_v49, %v1764_v62  ;;  %v4191_v47 = vadd.f32 %v3058_v52, %v4072_v22  ;;  %v1772_v22 = vadd.f32 %v4148_v26, %v4048_v48 }
 0x15a   : > { %v2996_v63 = vpop.f32.mrf.mxu1  ;;  %v3060_v0 = vpop.f32.mrf.mxu0 }
 0x15b   : > { %v2997_v28 = vadd.f32 %v2996_v63, %v2995_v55  ;;  %v3061_v4 = vadd.f32 %v3060_v0, %v3059_v6 }
 0x15c   : > { %v2998_v7 = vpop.f32.mrf.mxu1  ;;  %v3062_v8 = vpop.f32.mrf.mxu0 }
 0x15d   : > { %v4195_v11 = vadd.f32 %v2997_v28, %v1767_v9  ;;  %v4198_v57 = vadd.f32 %v3061_v4, %v4080_v33  ;;  %v1775_v33 = vadd.f32 %v4156_v41, %v4048_v48 }
 0x15e   : > { %v2999_v1 = vpop.f32.mrf.mxu1  ;;  %v3063_v14 = vpop.f32.mrf.mxu0 }
 0x15f   : > { %v3000_v16 = vadd.f32 %v2999_v1, %v2998_v7  ;;  %v3064_v17 = vadd.f32 %v3063_v14, %v3062_v8 }
 0x160   : > { %v3001_v21 = vpop.f32.mrf.mxu1  ;;  %v3065_v23 = vpop.f32.mrf.mxu0 }
 0x161   : > { %v4202_v25 = vadd.f32 %v3000_v16, %v1772_v22  ;;  %v4205_v15 = vadd.f32 %v3064_v17, %v4088_v46  ;;  %v1780_v46 = vadd.f32 %v4162_v18, %v4048_v48 }
 0x162   : > { %v3002_v44 = vpop.f32.mrf.mxu1  ;;  %v3066_v2 = vpop.f32.mrf.mxu0 }
 0x163   : > { %v3003_v31 = vadd.f32 %v3002_v44, %v3001_v21  ;;  %v3067_v32 = vadd.f32 %v3066_v2, %v3065_v23 }
 0x164   : > { %v3004_v37 = vpop.f32.mrf.mxu1  ;;  %v3068_v39 = vpop.f32.mrf.mxu0 }
 0x165   : > { %v4209_v40 = vadd.f32 %v3003_v31, %v1775_v33  ;;  %v4212_v26 = vadd.f32 %v3067_v32, %v4096_v59  ;;  %v1783_v59 = vadd.f32 %v4168_v50, %v4048_v48 }
 0x166   : > { %v3005_v43 = vpop.f32.mrf.mxu1  ;;  %v3069_v54 = vpop.f32.mrf.mxu0 }
 0x167   : > { %v3006_v62 = vadd.f32 %v3005_v43, %v3004_v37  ;;  %v3070_v49 = vadd.f32 %v3069_v54, %v3068_v39 }
 0x168   : > { %v3007_v52 = vpop.f32.mrf.mxu1  ;;  %v3071_v55 = vpop.f32.mrf.mxu0 }
 0x169   : > { %v4216_v6 = vadd.f32 %v3006_v62, %v1780_v46  ;;  %v4219_v41 = vadd.f32 %v3070_v49, %v4104_v10  ;;  %v1788_v10 = vadd.f32 %v3999_v51, %v4048_v48 }
 0x16a   : > { %v3008_v63 = vpop.f32.mrf.mxu1  ;;  %v3072_v0 = vpop.f32.mrf.mxu0 }
 0x16b   : > { %v3009_v9 = vadd.f32 %v3008_v63, %v3007_v52  ;;  %v3073_v28 = vadd.f32 %v3072_v0, %v3071_v55 }
 0x16c   : > { %v3010_v4 = vpop.f32.mrf.mxu1  ;;  %v3074_v7 = vpop.f32.mrf.mxu0 }
 0x16d   : > { %v4223_v8 = vadd.f32 %v3009_v9, %v1783_v59  ;;  %v4226_v18 = vadd.f32 %v3073_v28, %v4112_v24  ;;  %v1791_v24 = vadd.f32 %v4007_v61, %v4048_v48 }
 0x16e   : > { %v3011_v1 = vpop.f32.mrf.mxu1  ;;  %v3075_v14 = vpop.f32.mrf.mxu0 }
 0x16f   : > { %v3012_v22 = vadd.f32 %v3011_v1, %v3010_v4  ;;  %v3076_v16 = vadd.f32 %v3075_v14, %v3074_v7 }
 0x170   : > { %v3013_v17 = vpop.f32.mrf.mxu1  ;;  %v3077_v21 = vpop.f32.mrf.mxu0 }
 0x171   : > { %v4230_v23 = vadd.f32 %v3012_v22, %v1788_v10  ;;  %v4233_v50 = vadd.f32 %v3076_v16, %v4120_v12  ;;  %v1796_v12 = vadd.f32 %v4011_v3, %v4048_v48 }
 0x172   : > { %v3014_v44 = vpop.f32.mrf.mxu1  ;;  %v3078_v2 = vpop.f32.mrf.mxu0 }
 0x173   : > { %v3015_v33 = vadd.f32 %v3014_v44, %v3013_v17  ;;  %v3079_v31 = vadd.f32 %v3078_v2, %v3077_v21 }
 0x174   : > { %v3016_v32 = vpop.f32.mrf.mxu1  ;;  %v3080_v37 = vpop.f32.mrf.mxu0 }
 0x175   : > { %v4237_v39 = vadd.f32 %v3015_v33, %v1791_v24  ;;  %v4240_v51 = vadd.f32 %v3079_v31, %v4128_v53  ;;  %v1799_v53 = vadd.f32 %v4019_v13, %v4048_v48 }
 0x176   : > { %v3017_v43 = vpop.f32.mrf.mxu1  ;;  %v3081_v54 = vpop.f32.mrf.mxu0 }
 0x177   : > { %v3018_v46 = vadd.f32 %v3017_v43, %v3016_v32  ;;  %v3082_v62 = vadd.f32 %v3081_v54, %v3080_v37 }
 0x178   : > { %v3019_v49 = vpop.f32.mrf.mxu1  ;;  %v3083_v52 = vpop.f32.mrf.mxu0 }
 0x179   : > { %v4244_v55 = vadd.f32 %v3018_v46, %v1796_v12  ;;  %v4247_v61 = vadd.f32 %v3082_v62, %v4136_v5  ;;  %v1804_v5 = vadd.f32 %v4023_v19, %v4048_v48 }
 0x17a   : > { %v3020_v63 = vpop.f32.mrf.mxu1  ;;  %v3084_v0 = vpop.f32.mrf.mxu0 }
 0x17b   : > { %v3021_v59 = vadd.f32 %v3020_v63, %v3019_v49  ;;  %v3085_v9 = vadd.f32 %v3084_v0, %v3083_v52 }
 0x17c   : > { %v3022_v28 = vpop.f32.mrf.mxu1  ;;  %v3086_v4 = vpop.f32.mrf.mxu0 }
 0x17d   : > { %v4251_v7 = vadd.f32 %v3021_v59, %v1799_v53  ;;  %v4254_v3 = vadd.f32 %v3085_v9, %v4144_v34  ;;  %v1807_v34 = vadd.f32 %v4031_v29, %v4048_v48 }
 0x17e   : > { %v3023_v1 = vpop.f32.mrf.mxu1  ;;  %v3087_v14 = vpop.f32.mrf.mxu0 }
 0x17f   : > { %v3024_v10 = vadd.f32 %v3023_v1, %v3022_v28  ;;  %v3088_v22 = vadd.f32 %v3087_v14, %v3086_v4 }
 0x180   : > { %v3025_v16 = vpop.f32.mrf.mxu1  ;;  %v3089_v17 = vpop.f32.mrf.mxu0 }
 0x181   : > { %v4258_v21 = vadd.f32 %v3024_v10, %v1804_v5  ;;  %v4261_v13 = vadd.f32 %v3088_v22, %v4152_v36  ;;  %v1812_v36 = vadd.f32 %v4035_v35, %v4048_v48 }
 0x182   : > { %v3026_v44 = vpop.f32.mrf.mxu1  ;;  %v3090_v2 = vpop.f32.mrf.mxu0 }
 0x183   : > { %v3027_v24 = vadd.f32 %v3026_v44, %v3025_v16  ;;  %v3091_v33 = vadd.f32 %v3090_v2, %v3089_v17 }
 0x184   : > { %v3028_v31 = vpop.f32.mrf.mxu1  ;;  %v3092_v32 = vpop.f32.mrf.mxu0 }
 0x185   : > { %v4265_v37 = vadd.f32 %v3027_v24, %v1807_v34  ;;  %v4268_v19 = vadd.f32 %v3091_v33, %v4158_v38  ;;  %v1815_v38 = vadd.f32 %v4043_v45, %v4048_v48 }
 0x186   : > { %v3029_v43 = vpop.f32.mrf.mxu1  ;;  %v3093_v54 = vpop.f32.mrf.mxu0 }
 0x187   : > { %v3030_v12 = vadd.f32 %v3029_v43, %v3028_v31  ;;  %v3094_v46 = vadd.f32 %v3093_v54, %v3092_v32 }
 0x188   : > { %v3031_v62 = vpop.f32.mrf.mxu1  ;;  %v3095_v49 = vpop.f32.mrf.mxu0 }
 0x189   : > { %v4272_v52 = vadd.f32 %v3030_v12, %v1812_v36  ;;  %v4275_v29 = vadd.f32 %v3094_v46, %v4164_v56 }
 0x18a   : > { %v3032_v63 = vpop.f32.mrf.mxu1  ;;  %v3096_v0 = vpop.f32.mrf.mxu0 }
 0x18b   : > { %v3033_v53 = vadd.f32 %v3032_v63, %v3031_v62  ;;  %v3097_v59 = vadd.f32 %v3096_v0, %v3095_v49 }
 0x18c   : > { %v3098_v9 = vpop.f32.mrf.mxu0  ;;  %v4279_v28 = vpop.f32.mrf.mxu1 }
 0x18d   : > { %v4281_v35 = vadd.f32 %v3033_v53, %v1815_v38  ;;  %v4284_v4 = vadd.f32 %v3097_v59, %v4170_v60 }
 0x18e   : > { %v3099_v1 = vpop.f32.mrf.mxu0  ;;  %v4286_v14 = vpop.f32.mrf.mxu1 }
 0x18f   : > { %v3100_v56 = vadd.f32 %v3099_v1, %v3098_v9 }
 0x190   : > { %v3101_v5 = vpop.f32.mrf.mxu0  ;;  %v4288_v10 = vpop.f32.mrf.mxu1 }
 0x191   : > { %v4291_v22 = vadd.f32 %v3100_v56, %v4174_v30 }
 0x192   : > { %v3102_v45 = vpop.f32.mrf.mxu0  ;;  %v4293_v48 = vpop.f32.mrf.mxu1 }
 0x193   : > { %v3103_v16 = vadd.f32 %v3102_v45, %v3101_v5 }
 0x194   : > { %v3104_v17 = vpop.f32.mrf.mxu0  ;;  %v4295_v44 = vpop.f32.mrf.mxu1 }
 0x195   : > { %v4298_v60 = vadd.f32 %v3103_v16, %v4181_v42 }
 0x196   : > { %v3105_v2 = vpop.f32.mrf.mxu0  ;;  %v4300_v34 = vpop.f32.mrf.mxu1 }
 0x197   : > { %4535 = vst [vmem:[#allocation2_spill] sm:$0xff] %v4298_v60  ;;  %v3106_v24 = vadd.f32 %v3105_v2, %v3104_v17 }
 0x198   : > { %v3107_v33 = vpop.f32.mrf.mxu0  ;;  %v4302_v31 = vpop.f32.mrf.mxu1 }
 0x199   : > { %v4305_v30 = vadd.f32 %v3106_v24, %v4188_v58 }
 0x19a   : > { %v3108_v32 = vpop.f32.mrf.mxu0  ;;  %v4307_v43 = vpop.f32.mrf.mxu1 }
 0x19b   : > { %v3109_v54 = vadd.f32 %v3108_v32, %v3107_v33 }
 0x19c   : > { %v3110_v36 = vpop.f32.mrf.mxu0  ;;  %v4309_v12 = vpop.f32.mrf.mxu1 }
 0x19d   : > { %v4312_v42 = vadd.f32 %v3109_v54, %v4195_v11 }
 0x19e   : > { %v3111_v46 = vpop.f32.mrf.mxu0  ;;  %v4314_v62 = vpop.f32.mrf.mxu1 }
 0x19f   : > { %v3112_v49 = vadd.f32 %v3111_v46, %v3110_v36 }
 0x1a0   : > { %v3113_v63 = vpop.f32.mrf.mxu0  ;;  %v4316_v0 = vpop.f32.mrf.mxu1 }
 0x1a1   : > { %v4319_v58 = vadd.f32 %v3112_v49, %v4202_v25 }
 0x1a2   : > { %v3114_v38 = vpop.f32.mrf.mxu0  ;;  %v4321_v53 = vpop.f32.mrf.mxu1 }
 0x1a3   : > { %4536 = vst [vmem:[#allocation3_spill] sm:$0xff] %v4319_v58  ;;  %v3115_v59 = vadd.f32 %v3114_v38, %v3113_v63 }
 0x1a4   : > { %v3116_v9 = vpop.f32.mrf.mxu0  ;;  %v4323_v1 = vpop.f32.mrf.mxu1 }
 0x1a5   : > { %v4326_v11 = vadd.f32 %v3115_v59, %v4209_v40 }
 0x1a6   : > { %v3117_v56 = vpop.f32.mrf.mxu0  ;;  %v4328_v5 = vpop.f32.mrf.mxu1 }
 0x1a7   : > { %4537 = vst [vmem:[#allocation4_spill] sm:$0xff] %v4326_v11  ;;  %v3118_v45 = vadd.f32 %v3117_v56, %v3116_v9 }
 0x1a8   : > { %v3119_v16 = vpop.f32.mrf.mxu0  ;;  %v4330_v17 = vpop.f32.mrf.mxu1 }
 0x1a9   : > { %v4333_v25 = vadd.f32 %v3118_v45, %v4216_v6 }
 0x1aa   : > { %v3120_v2 = vpop.f32.mrf.mxu0  ;;  %v4335_v24 = vpop.f32.mrf.mxu1 }
 0x1ab   : > { %4538 = vst [vmem:[#allocation5_spill] sm:$0xff] %v4333_v25  ;;  %v3121_v33 = vadd.f32 %v3120_v2, %v3119_v16 }
 0x1ac   : > { %v3122_v32 = vpop.f32.mrf.mxu0  ;;  %v4337_v54 = vpop.f32.mrf.mxu1 }
 0x1ad   : > { %v4340_v40 = vadd.f32 %v3121_v33, %v4223_v8 }
 0x1ae   : > { %v3123_v36 = vpop.f32.mrf.mxu0  ;;  %v4342_v46 = vpop.f32.mrf.mxu1 }
 0x1af   : > { %4539 = vst [vmem:[#allocation6_spill] sm:$0xff] %v4340_v40  ;;  %v3124_v49 = vadd.f32 %v3123_v36, %v3122_v32 }
 0x1b0   : > { %v3125_v63 = vpop.f32.mrf.mxu0  ;;  %v4344_v38 = vpop.f32.mrf.mxu1 }
 0x1b1   : > { %v4347_v6 = vadd.f32 %v3124_v49, %v4230_v23 }
 0x1b2   : > { %v3126_v59 = vpop.f32.mrf.mxu0  ;;  %v4349_v9 = vpop.f32.mrf.mxu1 }
 0x1b3   : > { %4540 = vst [vmem:[#allocation7_spill] sm:$0xff] %v4347_v6  ;;  %v3127_v56 = vadd.f32 %v3126_v59, %v3125_v63 }
 0x1b4   : > { %v3128_v45 = vpop.f32.mrf.mxu0  ;;  %v4351_v16 = vpop.f32.mrf.mxu1 }
 0x1b5   : > { %v4354_v8 = vadd.f32 %v3127_v56, %v4237_v39 }
 0x1b6   : > { %v3129_v2 = vpop.f32.mrf.mxu0  ;;  %v4356_v33 = vpop.f32.mrf.mxu1 }
 0x1b7   : > { %4541 = vst [vmem:[#allocation8_spill] sm:$0xff] %v4354_v8  ;;  %v3130_v32 = vadd.f32 %v3129_v2, %v3128_v45 }
 0x1b8   : > { %v3131_v36 = vpop.f32.mrf.mxu0  ;;  %v4358_v11 = vpop.f32.mrf.mxu1 }
 0x1b9   : > { %v4361_v23 = vadd.f32 %v3130_v32, %v4244_v55 }
 0x1ba   : > { %v3132_v49 = vpop.f32.mrf.mxu0  ;;  %v4363_v6 = vpop.f32.mrf.mxu1 }
 0x1bb   : > { %4542 = vst [vmem:[#allocation9_spill] sm:$0xff] %v4361_v23  ;;  %v3133_v63 = vadd.f32 %v3132_v49, %v3131_v36 }
 0x1bc   : > { %v3134_v59 = vpop.f32.mrf.mxu0  ;;  %v4365_v40 = vpop.f32.mrf.mxu1 }
 0x1bd   : > { %v4368_v39 = vadd.f32 %v3133_v63, %v4251_v7 }
 0x1be   : > { %v3135_v56 = vpop.f32.mrf.mxu0  ;;  %v4370_v8 = vpop.f32.mrf.mxu1 }
 0x1bf   : > { %4543 = vst [vmem:[#allocation10_spill] sm:$0xff] %v4368_v39  ;;  %v3136_v45 = vadd.f32 %v3135_v56, %v3134_v59  ;;  %v3170_v59 = vadd.f32 %v4300_v34, %v4295_v44 }
 0x1c0   : > { %v3137_v2 = vpop.f32.mrf.mxu0  ;;  %v4372_v58 = vpop.f32.mrf.mxu1 }
 0x1c1   : > { %v4375_v55 = vadd.f32 %v3136_v45, %v4258_v21  ;;  %v2183_v44 = vadd.f32 %v3170_v59, %v4191_v47  ;;  %v3176_v59 = vadd.f32 %v4314_v62, %v4309_v12  ;;  %v3179_v62 = vadd.f32 %v4321_v53, %v4316_v0 }
 0x1c2   : > { %v3138_v32 = vpop.f32.mrf.mxu0  ;;  %v4377_v23 = vpop.f32.mrf.mxu1  ;;  %v3188_v0 = vadd.f32 %v4342_v46, %v4337_v54  ;;  %v3191_v54 = vadd.f32 %v4349_v9, %v4344_v38  ;;  %v3200_v9 = vadd.f32 %v4370_v8, %v4365_v40 }
 0x1c3   : > { %4544 = vst [vmem:[#allocation11_spill] sm:$0xff] %v4375_v55  ;;  %v3139_v36 = vadd.f32 %v3138_v32, %v3137_v2  ;;  %v3164_v2 = vadd.f32 %v4286_v14, %v4279_v28  ;;  %v3203_v40 = vadd.f32 %v4377_v23, %v4372_v58 }
 0x1c4   : > { %v3140_v49 = vpop.f32.mrf.mxu0  ;;  %v4379_v25 = vpop.f32.mrf.mxu1 }
 0x1c5   : > { %v4382_v7 = vadd.f32 %v3139_v36, %v4265_v37  ;;  %v3173_v37 = vadd.f32 %v4307_v43, %v4302_v31  ;;  %v2175_v14 = vadd.f32 %v3164_v2, %v4177_v20  ;;  %v3182_v43 = vadd.f32 %v4328_v5, %v4323_v1 }
 0x1c6   : > { %v3141_v63 = vpop.f32.mrf.mxu0  ;;  %v4384_v39 = vpop.f32.mrf.mxu1  ;;  %v3185_v1 = vadd.f32 %v4335_v24, %v4330_v17  ;;  %v3194_v17 = vadd.f32 %v4356_v33, %v4351_v16  ;;  %v3197_v16 = vadd.f32 %v4363_v6, %v4358_v11 }
 0x1c7   : > { %v3142_v56 = vadd.f32 %v3141_v63, %v3140_v49  ;;  %v3167_v63 = vadd.f32 %v4293_v48, %v4288_v10  ;;  %v3206_v6 = vadd.f32 %v4384_v39, %v4379_v25 }
 0x1c8   : > { %v3143_v21 = vpop.f32.mrf.mxu0  ;;  %v4388_v45 = vpop.f32.mrf.mxu1 }
 0x1c9   : > { %v4393_v32 = vadd.f32 %v3142_v56, %v4272_v52  ;;  %v2178_v2 = vadd.f32 %v3167_v63, %v4184_v27 }
 0x1ca   : > { %v3144_v55 = vpop.f32.mrf.mxu0  ;;  %v4395_v60 = vpop.f32.mrf.mxu1 }
 0x1cb   : > { %v3145_v36 = vadd.f32 %v3144_v55, %v3143_v21  ;;  %v3209_v39 = vadd.f32 %v4395_v60, %v4388_v45 }
 0x1cc   : > { %v4401_v34 = vpop.f32.mrf.mxu1  ;;  %v3300_v49 = vpop.f32.mrf.mxu0 }
 0x1cd   : > { %v4406_v28 = vadd.f32 %v3145_v36, %v4281_v35  ;;  %v2344_v52 = vadd.f32 %v3300_v49, %v2183_v44  ;;  %v2186_v35 = vadd.f32 %v3173_v37, %v4198_v57  ;;  %v2199_v37 = vadd.f32 %v3182_v43, %v4219_v41 }
 0x1ce   : > { %v4414_v31 = vpop.f32.mrf.mxu1  ;;  %v2335_v47 = vpop.f32.mrf.mxu0  ;;  %v2202_v43 = vadd.f32 %v3185_v1, %v4226_v18 }
 0x1cf   : > { %v2464_v10 = vmax.f32 %v2344_v52, 0.0  ;;  %v2336_v48 = vadd.f32 %v2335_v47, %v2175_v14  ;;  %v2191_v52 = vadd.f32 %v3176_v59, %v4205_v15  ;;  %v3212_v58 = vadd.f32 %v4414_v31, %v4401_v34 }
 0x1d0   : > { %v4419_v55 = vpop.f32.mrf.mxu1  ;;  %v3301_v20 = vpop.f32.mrf.mxu0 }
 0x1d1   : > { %2496 = vst [vmem:[%s4412_s22 + $0x10] sm:$0xff] %v2464_v10  ;;  %v2462_v56 = vmax.f32 %v2336_v48, 0.0  ;;  %v2347_v21 = vadd.f32 %v3301_v20, %v2186_v35  ;;  %v2194_v35 = vadd.f32 %v3179_v62, %v4212_v26  ;;  %v2210_v62 = vadd.f32 %v3191_v54, %v4240_v51 }
 0x1d2   : > { %v4425_v36 = vpop.f32.mrf.mxu1  ;;  %v2338_v44 = vpop.f32.mrf.mxu0 }
 0x1d3   : > { %2494 = vst [vmem:[%s4412_s22] sm:$0xff] %v2462_v56  ;;  %v2465_v57 = vmax.f32 %v2347_v21, 0.0  ;;  %v2339_v5 = vadd.f32 %v2338_v44, %v2178_v2  ;;  %v2215_v56 = vadd.f32 %v3194_v17, %v4247_v61  ;;  %v2207_v44 = vadd.f32 %v3188_v0, %v4233_v50 }
 0x1d4   : > { %v4431_v49 = vpop.f32.mrf.mxu1  ;;  %v3304_v12 = vpop.f32.mrf.mxu0  ;;  %v3215_v34 = vadd.f32 %v4425_v36, %v4419_v55 }
 0x1d5   : > { %2497 = vst [vmem:[%s4412_s22 + $0x18] sm:$0xff] %v2465_v57  ;;  %v2463_v27 = vmax.f32 %v2339_v5, 0.0  ;;  %v2360_v63 = vadd.f32 %v3304_v12, %v2199_v37  ;;  %v2218_v5 = vadd.f32 %v3197_v16, %v4254_v3 }
 0x1d6   : > { %v3217_v14 = vpop.f32.mrf.mxu1  ;;  %v2351_v47 = vpop.f32.mrf.mxu0 }
 0x1d7   : > { %2495 = vst [vmem:[%s4412_s22 + $0x8] sm:$0xff] %v2463_v27  ;;  %v2468_v41 = vmax.f32 %v2360_v63, 0.0  ;;  %v2352_v24 = vadd.f32 %v2351_v47, %v2191_v52  ;;  %v2231_v52 = vadd.f32 %v3206_v6, %v4275_v29  ;;  %v3218_v60 = vadd.f32 %v3217_v14, %v4431_v49  ;;  %v4545_v6 = vld [vmem:[#allocation2_spill] sm:$0xff] }
 0x1d8   : > { %v4441_v10 = vpop.f32.mrf.mxu1  ;;  %v3305_v48 = vpop.f32.mrf.mxu0  ;;  %v2234_v29 = vadd.f32 %v3209_v39, %v4284_v4  ;;  %v4547_v39 = vld [vmem:[#allocation3_spill] sm:$0xff] }
 0x1d9   : > { %2500 = vst [vmem:[%s4412_s22 + $0x30] sm:$0xff] %v2468_v41  ;;  %v2466_v15 = vmax.f32 %v2352_v24, 0.0  ;;  %v2363_v53 = vadd.f32 %v3305_v48, %v2202_v43  ;;  %v2223_v41 = vadd.f32 %v3200_v9, %v4261_v13  ;;  %v2226_v13 = vadd.f32 %v3203_v40, %v4268_v19 }
 0x1da   : > { %v3220_v20 = vpop.f32.mrf.mxu1  ;;  %v2354_v59 = vpop.f32.mrf.mxu0  ;;  %v2247_v4 = vadd.f32 %v3218_v60, %v4305_v30  ;;  %v2239_v19 = vadd.f32 %v3212_v58, %v4291_v22  ;;  %v2242_v22 = vadd.f32 %v3215_v34, %v4545_v6  ;;  %v4549_v60 = vld [vmem:[#allocation4_spill] sm:$0xff] }
 0x1db   : > { %2498 = vst [vmem:[%s4412_s22 + $0x20] sm:$0xff] %v2466_v15  ;;  %v2469_v18 = vmax.f32 %v2363_v53, 0.0  ;;  %v2355_v33 = vadd.f32 %v2354_v59, %v2194_v35  ;;  %v3221_v49 = vadd.f32 %v3220_v20, %v4441_v10 }
 0x1dc   : > { %v4451_v21 = vpop.f32.mrf.mxu1  ;;  %v3308_v2 = vpop.f32.mrf.mxu0 }
 0x1dd   : > { %2501 = vst [vmem:[%s4412_s22 + $0x38] sm:$0xff] %v2469_v18  ;;  %v2467_v26 = vmax.f32 %v2355_v33, 0.0  ;;  %v2376_v46 = vadd.f32 %v3308_v2, %v2215_v56  ;;  %v2250_v30 = vadd.f32 %v3221_v49, %v4312_v42 }
 0x1de   : > { %v4457_v1 = vpop.f32.mrf.mxu1  ;;  %v2367_v11 = vpop.f32.mrf.mxu0 }
 0x1df   : > { %2499 = vst [vmem:[%s4412_s22 + $0x28] sm:$0xff] %v2467_v26  ;;  %v2472_v61 = vmax.f32 %v2376_v46, 0.0  ;;  %v2368_v57 = vadd.f32 %v2367_v11, %v2207_v44  ;;  %v3224_v55 = vadd.f32 %v4457_v1, %v4451_v21 }
 0x1e0   : > { %v4463_v37 = vpop.f32.mrf.mxu1  ;;  %v3309_v38 = vpop.f32.mrf.mxu0 }
 0x1e1   : > { %2504 = vst [vmem:[%s4412_s22 + $0x50] sm:$0xff] %v2472_v61  ;;  %v2470_v50 = vmax.f32 %v2368_v57, 0.0  ;;  %v2379_v12 = vadd.f32 %v3309_v38, %v2218_v5 }
 0x1e2   : > { %v4469_v27 = vpop.f32.mrf.mxu1  ;;  %v2370_v25 = vpop.f32.mrf.mxu0 }
 0x1e3   : > { %2502 = vst [vmem:[%s4412_s22 + $0x40] sm:$0xff] %v2470_v50  ;;  %v2473_v3 = vmax.f32 %v2379_v12, 0.0  ;;  %v2371_v63 = vadd.f32 %v2370_v25, %v2210_v62  ;;  %v4546_v50 = vld [vmem:[#allocation5_spill] sm:$0xff]  ;;  %v3227_v21 = vadd.f32 %v4469_v27, %v4463_v37 }
 0x1e4   : > { %v3228_v47 = vpop.f32.mrf.mxu1  ;;  %v3312_v17 = vpop.f32.mrf.mxu0 }
 0x1e5   : > { %2505 = vst [vmem:[%s4412_s22 + $0x58] sm:$0xff] %v2473_v3  ;;  %v2471_v51 = vmax.f32 %v2371_v63, 0.0  ;;  %v2392_v8 = vadd.f32 %v3312_v17, %v2231_v52  ;;  %v2255_v3 = vadd.f32 %v3224_v55, %v4547_v39 }
 0x1e6   : > { %v3229_v24 = vpop.f32.mrf.mxu1  ;;  %v2383_v43 = vpop.f32.mrf.mxu0 }
 0x1e7   : > { %2503 = vst [vmem:[%s4412_s22 + $0x48] sm:$0xff] %v2471_v51  ;;  %v2476_v45 = vmax.f32 %v2392_v8, 0.0  ;;  %v2384_v48 = vadd.f32 %v2383_v43, %v2223_v41  ;;  %v3230_v10 = vadd.f32 %v3229_v24, %v3228_v47  ;;  %v4548_v51 = vld [vmem:[#allocation6_spill] sm:$0xff] }
 0x1e8   : > { %v3231_v0 = vpop.f32.mrf.mxu1  ;;  %v3313_v15 = vpop.f32.mrf.mxu0 }
 0x1e9   : > { %2508 = vst [vmem:[%s4412_s22 + $0x70] sm:$0xff] %v2476_v45  ;;  %v2474_v23 = vmax.f32 %v2384_v48, 0.0  ;;  %v2395_v53 = vadd.f32 %v3313_v15, %v2234_v29  ;;  %v2263_v42 = vadd.f32 %v3230_v10, %v4546_v50  ;;  %v2258_v45 = vadd.f32 %v3227_v21, %v4549_v60 }
 0x1ea   : > { %v3232_v35 = vpop.f32.mrf.mxu1  ;;  %v2386_v59 = vpop.f32.mrf.mxu0 }
 0x1eb   : > { %2506 = vst [vmem:[%s4412_s22 + $0x60] sm:$0xff] %v2474_v23  ;;  %v2477_v14 = vmax.f32 %v2395_v53, 0.0  ;;  %v2387_v16 = vadd.f32 %v2386_v59, %v2226_v13  ;;  %v3233_v5 = vadd.f32 %v3232_v35, %v3231_v0  ;;  %v4550_v23 = vld [vmem:[#allocation9_spill] sm:$0xff] }
 0x1ec   : > { %v3234_v18 = vpop.f32.mrf.mxu1  ;;  %v3316_v33 = vpop.f32.mrf.mxu0 }
 0x1ed   : > { %2509 = vst [vmem:[%s4412_s22 + $0x78] sm:$0xff] %v2477_v14  ;;  %v2475_v31 = vmax.f32 %v2387_v16, 0.0  ;;  %v2408_v56 = vadd.f32 %v3316_v33, %v2247_v4  ;;  %v2266_v8 = vadd.f32 %v3233_v5, %v4548_v51  ;;  %v4551_v16 = vld [vmem:[#allocation7_spill] sm:$0xff] }
 0x1ee   : > { %v3235_v2 = vpop.f32.mrf.mxu1  ;;  %v2399_v54 = vpop.f32.mrf.mxu0  ;;  %v4554_v5 = vld [vmem:[#allocation11_spill] sm:$0xff] }
 0x1ef   : > { %2507 = vst [vmem:[%s4412_s22 + $0x68] sm:$0xff] %v2475_v31  ;;  %v2480_v20 = vmax.f32 %v2408_v56, 0.0  ;;  %v2400_v26 = vadd.f32 %v2399_v54, %v2239_v19  ;;  %v3236_v43 = vadd.f32 %v3235_v2, %v3234_v18  ;;  %v4552_v56 = vld [vmem:[#allocation10_spill] sm:$0xff] }
 0x1f0   : > { %v3237_v46 = vpop.f32.mrf.mxu1  ;;  %v3317_v44 = vpop.f32.mrf.mxu0 }
 0x1f1   : > { %2512 = vst [vmem:[%s4412_s22 + $0x90] sm:$0xff] %v2480_v20  ;;  %v2478_v36 = vmax.f32 %v2400_v26, 0.0  ;;  %v2411_v11 = vadd.f32 %v3317_v44, %v2250_v30  ;;  %v2271_v4 = vadd.f32 %v3236_v43, %v4551_v16  ;;  %v4553_v30 = vld [vmem:[#allocation8_spill] sm:$0xff] }
 0x1f2   : > { %v3238_v61 = vpop.f32.mrf.mxu1  ;;  %v2402_v57 = vpop.f32.mrf.mxu0 }
 0x1f3   : > { %2510 = vst [vmem:[%s4412_s22 + $0x80] sm:$0xff] %v2478_v36  ;;  %v2481_v38 = vmax.f32 %v2411_v11, 0.0  ;;  %v2403_v9 = vadd.f32 %v2402_v57, %v2242_v22  ;;  %v3239_v59 = vadd.f32 %v3238_v61, %v3237_v46 }
 0x1f4   : > { %v3240_v12 = vpop.f32.mrf.mxu1  ;;  %v3320_v62 = vpop.f32.mrf.mxu0 }
 0x1f5   : > { %2513 = vst [vmem:[%s4412_s22 + $0x98] sm:$0xff] %v2481_v38  ;;  %v2479_v1 = vmax.f32 %v2403_v9, 0.0  ;;  %v2424_v25 = vadd.f32 %v3320_v62, %v2263_v42  ;;  %v2274_v46 = vadd.f32 %v3239_v59, %v4553_v30 }
 0x1f6   : > { %v3241_v63 = vpop.f32.mrf.mxu1  ;;  %v2415_v52 = vpop.f32.mrf.mxu0 }
 0x1f7   : > { %2511 = vst [vmem:[%s4412_s22 + $0x88] sm:$0xff] %v2479_v1  ;;  %v2484_v47 = vmax.f32 %v2424_v25, 0.0  ;;  %v3242_v17 = vadd.f32 %v3241_v63, %v3240_v12  ;;  %v2416_v40 = vadd.f32 %v2415_v52, %v2255_v3 }
 0x1f8   : > { %v3243_v41 = vpop.f32.mrf.mxu1  ;;  %v3321_v24 = vpop.f32.mrf.mxu0 }
 0x1f9   : > { %2516 = vst [vmem:[%s4412_s22 + $0xb0] sm:$0xff] %v2484_v47  ;;  %v2482_v37 = vmax.f32 %v2416_v40, 0.0  ;;  %v2427_v27 = vadd.f32 %v3321_v24, %v2266_v8  ;;  %v2279_v53 = vadd.f32 %v3242_v17, %v4550_v23 }
 0x1fa   : > { %v3244_v48 = vpop.f32.mrf.mxu1  ;;  %v2418_v29 = vpop.f32.mrf.mxu0 }
 0x1fb   : > { %2514 = vst [vmem:[%s4412_s22 + $0xa0] sm:$0xff] %v2482_v37  ;;  %v2485_v0 = vmax.f32 %v2427_v27, 0.0  ;;  %v3245_v15 = vadd.f32 %v3244_v48, %v3243_v41  ;;  %v2419_v58 = vadd.f32 %v2418_v29, %v2258_v45 }
 0x1fc   : > { %v3246_v13 = vpop.f32.mrf.mxu1  ;;  %v3324_v35 = vpop.f32.mrf.mxu0 }
 0x1fd   : > { %2517 = vst [vmem:[%s4412_s22 + $0xb8] sm:$0xff] %v2485_v0  ;;  %v2483_v49 = vmax.f32 %v2419_v58, 0.0  ;;  %v2440_v14 = vadd.f32 %v3324_v35, %v2279_v53  ;;  %v2282_v19 = vadd.f32 %v3245_v15, %v4552_v56 }
 0x1fe   : > { %v3247_v18 = vpop.f32.mrf.mxu1  ;;  %v2431_v33 = vpop.f32.mrf.mxu0 }
 0x1ff   : > { %2515 = vst [vmem:[%s4412_s22 + $0xa8] sm:$0xff] %v2483_v49  ;;  %v2488_v34 = vmax.f32 %v2440_v14, 0.0  ;;  %v2432_v31 = vadd.f32 %v2431_v33, %v2271_v4  ;;  %v3248_v10 = vadd.f32 %v3247_v18, %v3246_v13 }
 0x200   : > { %v3249_v2 = vpop.f32.mrf.mxu1  ;;  %v3325_v54 = vpop.f32.mrf.mxu0 }
 0x201   : > { %2520 = vst [vmem:[%s4412_s22 + $0xd0] sm:$0xff] %v2488_v34  ;;  %v2486_v20 = vmax.f32 %v2432_v31, 0.0  ;;  %v2443_v26 = vadd.f32 %v3325_v54, %v2282_v19  ;;  %v2287_v38 = vadd.f32 %v3248_v10, %v4554_v5 }
 0x202   : > { %v3250_v44 = vpop.f32.mrf.mxu1  ;;  %v2434_v55 = vpop.f32.mrf.mxu0 }
 0x203   : > { %2518 = vst [vmem:[%s4412_s22 + $0xc0] sm:$0xff] %v2486_v20  ;;  %v2489_v36 = vmax.f32 %v2443_v26, 0.0  ;;  %v2435_v11 = vadd.f32 %v2434_v55, %v2274_v46  ;;  %v3251_v61 = vadd.f32 %v3250_v44, %v3249_v2 }
 0x204   : > { %v3252_v6 = vpop.f32.mrf.mxu1  ;;  %v3328_v22 = vpop.f32.mrf.mxu0 }
 0x205   : > { %2521 = vst [vmem:[%s4412_s22 + $0xd8] sm:$0xff] %v2489_v36  ;;  %v2487_v57 = vmax.f32 %v2435_v11, 0.0  ;;  %v2290_v39 = vadd.f32 %v3251_v61, %v4382_v7 }
 0x206   : > { %v3253_v9 = vpop.f32.mrf.mxu1  ;;  %v2447_v50 = vpop.f32.mrf.mxu0 }
 0x207   : > { %2519 = vst [vmem:[%s4412_s22 + $0xc8] sm:$0xff] %v2487_v57  ;;  %v3254_v42 = vadd.f32 %v3253_v9, %v3252_v6  ;;  %v2448_v12 = vadd.f32 %v2447_v50, %v2287_v38 }
 0x208   : > { %v3255_v62 = vpop.f32.mrf.mxu1  ;;  %v3329_v21 = vpop.f32.mrf.mxu0 }
 0x209   : > { %v2295_v1 = vadd.f32 %v3254_v42, %v4393_v32  ;;  %v2490_v25 = vmax.f32 %v2448_v12, 0.0 }
 0x20a   : > { %v3256_v3 = vpop.f32.mrf.mxu1  ;;  %v2450_v63 = vpop.f32.mrf.mxu0 }
 0x20b   : > { %v2456_v52 = vadd.f32 %v3328_v22, %v2295_v1  ;;  %2522 = vst [vmem:[%s4412_s22 + $0xe0] sm:$0xff] %v2490_v25  ;;  %v3257_v47 = vadd.f32 %v3256_v3, %v3255_v62  ;;  %v2451_v17 = vadd.f32 %v2450_v63, %v2290_v39 }
 0x20d   : > { %v2492_v40 = vmax.f32 %v2456_v52, 0.0  ;;  %v2298_v51 = vadd.f32 %v3257_v47, %v4406_v28  ;;  %v2491_v8 = vmax.f32 %v2451_v17, 0.0 }
 0x20f   : > { %2524 = vst [vmem:[%s4412_s22 + $0xf0] sm:$0xff] %v2492_v40  ;;  %v2459_v41 = vadd.f32 %v3329_v21, %v2298_v51  ;;  %2523 = vst [vmem:[%s4412_s22 + $0xe8] sm:$0xff] %v2491_v8 }
 0x211   : > { %v2493_v24 = vmax.f32 %v2459_v41, 0.0 }
 0x213   : > { %2525 = vst [vmem:[%s4412_s22 + $0xf8] sm:$0xff] %v2493_v24 }
 0x214 PF: > { %s13_s12 = sadd.s32 1, %s3641_s12  }
 0x215   : > { %p10_p4 = scmp.ge.s32.totalorder %s13_s12, 4  }
 0x217   :  { %12 = sbr.rel (!%p10_p4) target bundleno = 1 (0x1), region = 62 }

// kernel: conv_autoencoder_forward.16
= control target key start
LH: loop header
LB: loop body
LE: loop exit
PB: predicated region body
PF: predicated region fallthrough
CT: control target
= control target key end

     0   :  { %s5204_s12 = smov 0   ;;  %s6162_s0 = inlined_call_operand.vmem [shape: bf16[512,1728], index: 0, kind: input, shape index: {}]   ;;  %s6163_s1 = inlined_call_operand.vmem [shape: bf16[1728,128], index: 1, kind: input, shape index: {}]   ;;  %s6164_s2 = inlined_call_operand.vmem [shape: f32[1,128], index: 2, kind: input, shape index: {}]   ;;  %s6165_s3 = inlined_call_operand.vmem [shape: f32[512,128], index: 3, kind: output, shape index: {}]  }
   0x1 LB: > { %s3673_s13 = sadd.s32 4294967295, %s5181_s12   ;;  %p3677_p0 = scmp.ge.s32.totalorder %s5181_s12, 1  ;;  %s5181_s12 = sphi %s5204_s12, %s13_s12  }
   0x2   : > { %p139_p1 = scmp.lt.s32.totalorder %s5181_s12, 3 }
   0x4   : > { %p140_p2 = pnand %p3677_p0, %p139_p1 }
   0x5   : > { %s3678_s16 = sshll.u32 (!%p140_p2), %s3673_s13, 5 }
   0x6   : > { %143 = sbr.rel (%p140_p2) target bundleno = 692 (0x2b4), region = 32  ;;  %p165_p3 = scmp.lt.s32.totalorder (!%p140_p2), %s3678_s16, 63 }
   0xb   : > { %v4731_v0 = vld [vmem:[%s6163_s1 + $0x78] sm:$0xff]   ;;  %v4733_v2 = vld [vmem:[%s6163_s1 + $0x70] sm:$0xff]   ;;  %v4735_v4 = vld [vmem:[%s6163_s1 + $0x68] sm:$0xff]   ;;  %s6167_s16 = smov (!%p165_p3, %s3678_s16), 63  ;;  %vm2377_vm0 = vcmask 523264  }
   0xc   : > { %v4732_v1 = vld [vmem:[%s6163_s1 + $0x38] sm:$0xff]   ;;  %4705 = vmatprep.subr.bf16.mxu1 %v4731_v0  ;;  %4033 = vmatprep.subr.bf16.mxu0 %v4731_v0  ;;  %v4734_v3 = vld [vmem:[%s6163_s1 + $0x30] sm:$0xff]   ;;  %v4736_v5 = vld [vmem:[%s6163_s1 + $0x28] sm:$0xff]   ;;  %s4721_s29 = smul.u32 56, %s6167_s16 }
   0xd   : > { %4713 = vmatpush3.bf16.msra.mxu1 %v4732_v1  ;;  %4034 = vmatpush3.bf16.msra.mxu0 %v4732_v1  ;;  %v4737_v6 = vld [vmem:[%s6163_s1 + $0x60] sm:$0xff]   ;;  %v4739_v8 = vld [vmem:[%s6163_s1 + $0x58] sm:$0xff]   ;;  %v4741_v10 = vld [vmem:[%s6163_s1 + $0x50] sm:$0xff]  }
   0xe   : > { %4706 = vmatprep.subr.bf16.mxu1 %v4733_v2  ;;  %4035 = vmatprep.subr.bf16.mxu0 %v4733_v2  ;;  %v4738_v7 = vld [vmem:[%s6163_s1 + $0x20] sm:$0xff]   ;;  %s5245_s9 = scalar_lea.vmem %s6162_s0, %s4721_s29  ;;  %v4740_v9 = vld [vmem:[%s6163_s1 + $0x18] sm:$0xff]   ;;  %v4742_v13 = vld [vmem:[%s6163_s1 + $0x10] sm:$0xff]  }
   0xf   : > { %v4749_v11 = vld [vmem:[%s5245_s9 + $0x384] ss:$56 sps:$4 sm:$0xff]   ;;  %v4743_v14 = vld [vmem:[%s6163_s1 + $0x48] sm:$0xff]   ;;  %v4747_v19 = vld [vmem:[%s5245_s9 + $0x380] ss:$56 sps:$4 sm:$0xff]  }
  0x10   : > { %v4752_v12 = vld [vmem:[%s5245_s9 + $0x4] ss:$56 sps:$4 sm:$0xff]   ;;  %2522 = vmatprep.mubr.bf16.mxu1 %v4749_v11  ;;  %v4744_v15 = vld [vmem:[%s6163_s1 + $0x8] sm:$0xff]   ;;  %v4750_v21 = vld [vmem:[%s5245_s9] ss:$56 sps:$4 sm:$0xff]  }
  0x11   : > { %4714 = vmatpush3.bf16.msra.mxu1 %v4734_v3  ;;  %4036 = vmatpush3.bf16.msra.mxu0 %v4734_v3  ;;  %v4745_v16 = vld [vmem:[%s6163_s1 + $0x40] sm:$0xff]   ;;  %v4753_v18 = vld [vmem:[%s6163_s1 + $0xf8] sm:$0xff]   ;;  %v4756_v23 = vld [vmem:[%s5245_s9 + $0x3f4] ss:$56 sps:$4 sm:$0xff]  }
  0x12   : > { %4707 = vmatprep.subr.bf16.mxu1 %v4735_v4  ;;  %4037 = vmatprep.subr.bf16.mxu0 %v4735_v4  ;;  %v4746_v17 = vld [vmem:[%s6163_s1] sm:$0xff]   ;;  %v4755_v20 = vld [vmem:[%s6163_s1 + $0x178] sm:$0xff]   ;;  %v4759_v25 = vld [vmem:[%s5245_s9 + $0x74] ss:$56 sps:$4 sm:$0xff]  }
  0x13   : > { %2458 = vmatprep.mubr.bf16.mxu0 %v4752_v12  ;;  %v4754_v22 = vld [vmem:[%s6163_s1 + $0xb8] sm:$0xff]   ;;  %v4762_v26 = vld [vmem:[%s6163_s1 + $0xf0] sm:$0xff]   ;;  %v4772_v32 = vld [vmem:[%s6163_s1 + $0xe8] sm:$0xff]  }
  0x14   : > { %v4758_v24 = vld [vmem:[%s6163_s1 + $0x138] sm:$0xff]   ;;  %v4765_v27 = vld [vmem:[%s6163_s1 + $0x170] sm:$0xff]   ;;  %v4775_v34 = vld [vmem:[%s6163_s1 + $0x168] sm:$0xff]  }
  0x15   : > { %4715 = vmatpush3.bf16.msra.mxu1 %v4736_v5  ;;  %4038 = vmatpush3.bf16.msra.mxu0 %v4736_v5  ;;  %v4764_v28 = vld [vmem:[%s6163_s1 + $0xb0] sm:$0xff]   ;;  %v4766_v33 = vld [vmem:[%s5245_s9 + $0x464] ss:$56 sps:$4 sm:$0xff]   ;;  %v4774_v36 = vld [vmem:[%s6163_s1 + $0xa8] sm:$0xff]  }
  0x16   : > { %4708 = vmatprep.subr.bf16.mxu1 %v4737_v6  ;;  %4039 = vmatprep.subr.bf16.mxu0 %v4737_v6  ;;  %v4768_v29 = vld [vmem:[%s6163_s1 + $0x130] sm:$0xff]   ;;  %v4769_v35 = vld [vmem:[%s5245_s9 + $0xe4] ss:$56 sps:$4 sm:$0xff]   ;;  %v4778_v37 = vld [vmem:[%s6163_s1 + $0x128] sm:$0xff]  }
  0x17   : > { %v4761_v30 = vld [vmem:[%s5245_s9 + $0x3f0] ss:$56 sps:$4 sm:$0xff]   ;;  %v4782_v38 = vld [vmem:[%s6163_s1 + $0xe0] sm:$0xff]   ;;  %v4776_v44 = vld [vmem:[%s5245_s9 + $0x4d4] ss:$56 sps:$4 sm:$0xff]  }
  0x18   : > { %v4763_v31 = vld [vmem:[%s5245_s9 + $0x70] ss:$56 sps:$4 sm:$0xff]   ;;  %v4785_v39 = vld [vmem:[%s6163_s1 + $0x160] sm:$0xff]   ;;  %v4792_v45 = vld [vmem:[%s6163_s1 + $0xd8] sm:$0xff]  }
  0x19   : > { %4716 = vmatpush3.bf16.msra.mxu1 %v4738_v7  ;;  %4040 = vmatpush3.bf16.msra.mxu0 %v4738_v7  ;;  %v4771_v40 = vld [vmem:[%s5245_s9 + $0x460] ss:$56 sps:$4 sm:$0xff]   ;;  %v4779_v46 = vld [vmem:[%s5245_s9 + $0x154] ss:$56 sps:$4 sm:$0xff]   ;;  %v4781_v50 = vld [vmem:[%s5245_s9 + $0x4d0] ss:$56 sps:$4 sm:$0xff]  }
  0x1a   : > { %4709 = vmatprep.subr.bf16.mxu1 %v4739_v8  ;;  %4041 = vmatprep.subr.bf16.mxu0 %v4739_v8  ;;  %v4773_v41 = vld [vmem:[%s5245_s9 + $0xe0] ss:$56 sps:$4 sm:$0xff]   ;;  %v4783_v51 = vld [vmem:[%s5245_s9 + $0x150] ss:$56 sps:$4 sm:$0xff]   ;;  %v4786_v53 = vld [vmem:[%s5245_s9 + $0x544] ss:$56 sps:$4 sm:$0xff]  }
  0x1b   : > { %v4784_v42 = vld [vmem:[%s6163_s1 + $0xa0] sm:$0xff]   ;;  %v4794_v47 = vld [vmem:[%s6163_s1 + $0x98] sm:$0xff]   ;;  %v4802_v52 = vld [vmem:[%s6163_s1 + $0xd0] sm:$0xff]  }
  0x1c   : > { %v4788_v43 = vld [vmem:[%s6163_s1 + $0x120] sm:$0xff]   ;;  %v4795_v48 = vld [vmem:[%s6163_s1 + $0x158] sm:$0xff]   ;;  %v4804_v54 = vld [vmem:[%s6163_s1 + $0x90] sm:$0xff]  }
  0x1d   : > { %4717 = vmatpush3.bf16.msra.mxu1 %v4740_v9  ;;  %4042 = vmatpush3.bf16.msra.mxu0 %v4740_v9  ;;  %v4798_v49 = vld [vmem:[%s6163_s1 + $0x118] sm:$0xff]   ;;  %v4805_v55 = vld [vmem:[%s6163_s1 + $0x150] sm:$0xff]   ;;  %v4812_v58 = vld [vmem:[%s6163_s1 + $0xc8] sm:$0xff]  }
  0x1e   : > { %4710 = vmatprep.subr.bf16.mxu1 %v4741_v10  ;;  %4043 = vmatprep.subr.bf16.mxu0 %v4741_v10  ;;  %v4789_v56 = vld [vmem:[%s5245_s9 + $0x1c4] ss:$56 sps:$4 sm:$0xff]   ;;  %v4808_v57 = vld [vmem:[%s6163_s1 + $0x110] sm:$0xff]   ;;  %v4791_v59 = vld [vmem:[%s5245_s9 + $0x540] ss:$56 sps:$4 sm:$0xff]  }
  0x1f   : > { %v4793_v60 = vld [vmem:[%s5245_s9 + $0x1c0] ss:$56 sps:$4 sm:$0xff]   ;;  %v4814_v61 = vld [vmem:[%s6163_s1 + $0x88] sm:$0xff]   ;;  %v4806_v8 = vld [vmem:[%s5245_s9 + $0x624] ss:$56 sps:$4 sm:$0xff]  }
  0x20   : > { %v4796_v62 = vld [vmem:[%s5245_s9 + $0x5b4] ss:$56 sps:$4 sm:$0xff]   ;;  %v4822_v2 = vld [vmem:[%s6163_s1 + $0xc0] sm:$0xff]   ;;  %v4801_v6 = vld [vmem:[%s5245_s9 + $0x5b0] ss:$56 sps:$4 sm:$0xff]  }
  0x21   : > { %4718 = vmatpush3.bf16.msra.mxu1 %v4742_v13  ;;  %4044 = vmatpush3.bf16.msra.mxu0 %v4742_v13  ;;  %v4815_v63 = vld [vmem:[%s6163_s1 + $0x148] sm:$0xff]   ;;  %v4824_v3 = vld [vmem:[%s6163_s1 + $0x80] sm:$0xff]   ;;  %v4833_v10 = vld [vmem:[%s6163_s1 + $0x1f8] sm:$0xff]  }
  0x22   : > { %4711 = vmatprep.subr.bf16.mxu1 %v4743_v14  ;;  %4045 = vmatprep.subr.bf16.mxu0 %v4743_v14  ;;  %v4799_v0 = vld [vmem:[%s5245_s9 + $0x234] ss:$56 sps:$4 sm:$0xff]   ;;  %v4825_v4 = vld [vmem:[%s6163_s1 + $0x140] sm:$0xff]   ;;  %v4803_v7 = vld [vmem:[%s5245_s9 + $0x230] ss:$56 sps:$4 sm:$0xff]  }
  0x23   : > { %v4818_v1 = vld [vmem:[%s6163_s1 + $0x108] sm:$0xff]   ;;  %v4826_v5 = vld [vmem:[%s6163_s1 + $0x100] sm:$0xff]   ;;  %v4835_v11 = vld [vmem:[%s6163_s1 + $0x278] sm:$0xff]  }
  0x24   : > { %v4809_v9 = vld [vmem:[%s5245_s9 + $0x2a4] ss:$56 sps:$4 sm:$0xff]   ;;  %v4811_v12 = vld [vmem:[%s5245_s9 + $0x620] ss:$56 sps:$4 sm:$0xff]   ;;  %v4816_v14 = vld [vmem:[%s5245_s9 + $0x694] ss:$56 sps:$4 sm:$0xff]  }
  0x25   : > { %4719 = vmatpush3.bf16.msra.mxu1 %v4744_v15  ;;  %4046 = vmatpush3.bf16.msra.mxu0 %v4744_v15  ;;  %v4813_v13 = vld [vmem:[%s5245_s9 + $0x2a0] ss:$56 sps:$4 sm:$0xff]   ;;  %v4819_v15 = vld [vmem:[%s5245_s9 + $0x314] ss:$56 sps:$4 sm:$0xff]  }
  0x26   : > { %4712 = vmatprep.subr.bf16.mxu1 %v4745_v16  ;;  %4047 = vmatprep.subr.bf16.mxu0 %v4745_v16  ;;  %v4821_v16 = vld [vmem:[%s5245_s9 + $0x690] ss:$56 sps:$4 sm:$0xff]  }
  0x29   : > { %4720 = vmatpush3.bf16.msra.mxu1 %v4746_v17  ;;  %4048 = vmatpush3.bf16.msra.mxu0 %v4746_v17  ;;  %v4823_v17 = vld [vmem:[%s5245_s9 + $0x310] ss:$56 sps:$4 sm:$0xff]  }
  0x2a   : > { %4145 = vmatprep.subr.bf16.mxu1 %v4753_v18  ;;  %4257 = vmatprep.subr.bf16.mxu0 %v4755_v20  ;;  %v4829_v18 = vld [vmem:[%s5245_s9 + $0xc] ss:$56 sps:$4 sm:$0xff]   ;;  %v4827_v20 = vld [vmem:[%s5245_s9 + $0x8] ss:$56 sps:$4 sm:$0xff]  }
  0x2c   : > { %2523 = vmatmul.mubr.bf16.vlgmr.msra.gmra.mxu1 %v4747_v19  ;;  %2459 = vmatmul.mubr.bf16.vlgmr.msra.gmra.mxu0 %v4750_v21  ;;  %v4832_v19 = vld [vmem:[%s5245_s9 + $0x14] ss:$56 sps:$4 sm:$0xff]   ;;  %v4830_v21 = vld [vmem:[%s5245_s9 + $0x10] ss:$56 sps:$4 sm:$0xff]  }
  0x2d   : > { %4146 = vmatpush3.bf16.msra.mxu1 %v4754_v22  ;;  %2530 = vmatprep.mubr.bf16.mxu1 %v4756_v23  ;;  %v4834_v22 = vld [vmem:[%s6163_s1 + $0x1b8] sm:$0xff]  }
  0x2e   : > { %4258 = vmatpush3.bf16.msra.mxu0 %v4758_v24  ;;  %2466 = vmatprep.mubr.bf16.mxu0 %v4759_v25  ;;  %v4836_v23 = vld [vmem:[%s5245_s9 + $0x7c] ss:$56 sps:$4 sm:$0xff]  }
  0x2f   : > { %4147 = vmatprep.subr.bf16.mxu1 %v4762_v26  ;;  %4259 = vmatprep.subr.bf16.mxu0 %v4765_v27  ;;  %v4838_v24 = vld [vmem:[%s6163_s1 + $0x238] sm:$0xff]   ;;  %v4848_v26 = vld [vmem:[%s6163_s1 + $0x1f0] sm:$0xff]  }
  0x30   : > { %v4840_v25 = vld [vmem:[%s5245_s9 + $0x84] ss:$56 sps:$4 sm:$0xff]   ;;  %v4851_v27 = vld [vmem:[%s6163_s1 + $0x270] sm:$0xff]  }
  0x31   : > { %4148 = vmatpush3.bf16.msra.mxu1 %v4764_v28  ;;  %v4850_v28 = vld [vmem:[%s6163_s1 + $0x1b0] sm:$0xff]  }
  0x32   : > { %4260 = vmatpush3.bf16.msra.mxu0 %v4768_v29  ;;  %4149 = vmatprep.subr.bf16.mxu1 %v4772_v32  ;;  %v4839_v29 = vld [vmem:[%s5245_s9 + $0x78] ss:$56 sps:$4 sm:$0xff]   ;;  %v4864_v32 = vld [vmem:[%s6163_s1 + $0x1e8] sm:$0xff]  }
  0x33   : > { %4261 = vmatprep.subr.bf16.mxu0 %v4775_v34  ;;  %v4846_v34 = vld [vmem:[%s5245_s9 + $0xf4] ss:$56 sps:$4 sm:$0xff]  }
  0x34   : > { %2531 = vmatmul.mubr.bf16.gmra.mxu1 %v4761_v30  ;;  %2467 = vmatmul.mubr.bf16.gmra.mxu0 %v4763_v31  ;;  %v4842_v30 = vld [vmem:[%s5245_s9 + $0x80] ss:$56 sps:$4 sm:$0xff]   ;;  %v4854_v31 = vld [vmem:[%s6163_s1 + $0x230] sm:$0xff]  }
  0x35   : > { %2538 = vmatprep.mubr.bf16.mxu1 %v4766_v33  ;;  %2474 = vmatprep.mubr.bf16.mxu0 %v4769_v35  ;;  %v4843_v33 = vld [vmem:[%s5245_s9 + $0xec] ss:$56 sps:$4 sm:$0xff]  }
  0x36   : > { %4150 = vmatpush3.bf16.msra.mxu1 %v4774_v36  ;;  %4262 = vmatpush3.bf16.msra.mxu0 %v4778_v37  ;;  %v4867_v35 = vld [vmem:[%s6163_s1 + $0x268] sm:$0xff]  }
  0x37   : > { %4151 = vmatprep.subr.bf16.mxu1 %v4782_v38  ;;  %4263 = vmatprep.subr.bf16.mxu0 %v4785_v39  ;;  %v4866_v36 = vld [vmem:[%s6163_s1 + $0x1a8] sm:$0xff]   ;;  %v4880_v38 = vld [vmem:[%s6163_s1 + $0x1e0] sm:$0xff]  }
  0x38   : > { %v4870_v37 = vld [vmem:[%s6163_s1 + $0x228] sm:$0xff]   ;;  %v4883_v39 = vld [vmem:[%s6163_s1 + $0x260] sm:$0xff]  }
  0x3a   : > { %4152 = vmatpush3.bf16.msra.mxu1 %v4784_v42  ;;  %4264 = vmatpush3.bf16.msra.mxu0 %v4788_v43  ;;  %v4849_v42 = vld [vmem:[%s5245_s9 + $0xf0] ss:$56 sps:$4 sm:$0xff]   ;;  %v4886_v43 = vld [vmem:[%s6163_s1 + $0x220] sm:$0xff]  }
  0x3b   : > { %4153 = vmatprep.subr.bf16.mxu1 %v4792_v45  ;;  %4265 = vmatprep.subr.bf16.mxu0 %v4795_v48  ;;  %v4896_v45 = vld [vmem:[%s6163_s1 + $0x1d8] sm:$0xff]  }
  0x3c   : > { %2539 = vmatmul.mubr.bf16.gmra.mxu1 %v4771_v40  ;;  %2475 = vmatmul.mubr.bf16.gmra.mxu0 %v4773_v41  ;;  %v4882_v40 = vld [vmem:[%s6163_s1 + $0x1a0] sm:$0xff]   ;;  %v4899_v48 = vld [vmem:[%s6163_s1 + $0x258] sm:$0xff]  }
  0x3d   : > { %2546 = vmatprep.mubr.bf16.mxu1 %v4776_v44  ;;  %2482 = vmatprep.mubr.bf16.mxu0 %v4779_v46  ;;  %v4845_v41 = vld [vmem:[%s5245_s9 + $0xe8] ss:$56 sps:$4 sm:$0xff]   ;;  %v4852_v44 = vld [vmem:[%s5245_s9 + $0x15c] ss:$56 sps:$4 sm:$0xff]  }
  0x3e   : > { %4154 = vmatpush3.bf16.msra.mxu1 %v4794_v47  ;;  %4266 = vmatpush3.bf16.msra.mxu0 %v4798_v49  ;;  %v4856_v46 = vld [vmem:[%s5245_s9 + $0x164] ss:$56 sps:$4 sm:$0xff]  }
  0x3f   : > { %4155 = vmatprep.subr.bf16.mxu1 %v4802_v52  ;;  %4267 = vmatprep.subr.bf16.mxu0 %v4805_v55  ;;  %v4898_v47 = vld [vmem:[%s6163_s1 + $0x198] sm:$0xff]   ;;  %v4859_v52 = vld [vmem:[%s5245_s9 + $0x1cc] ss:$56 sps:$4 sm:$0xff]   ;;  %v4914_v55 = vld [vmem:[%s6163_s1 + $0x190] sm:$0xff]  }
  0x40   : > { %v4902_v49 = vld [vmem:[%s6163_s1 + $0x218] sm:$0xff]  }
  0x42   : > { %4156 = vmatpush3.bf16.msra.mxu1 %v4804_v54  ;;  %4268 = vmatpush3.bf16.msra.mxu0 %v4808_v57  ;;  %v4912_v54 = vld [vmem:[%s6163_s1 + $0x1d0] sm:$0xff]  }
  0x43   : > { %4157 = vmatprep.subr.bf16.mxu1 %v4812_v58  ;;  %4269 = vmatprep.subr.bf16.mxu0 %v4815_v63  ;;  %v4918_v57 = vld [vmem:[%s6163_s1 + $0x210] sm:$0xff]   ;;  %v4861_v58 = vld [vmem:[%s5245_s9 + $0x1c8] ss:$56 sps:$4 sm:$0xff]  }
  0x44   : > { %2547 = vmatmul.mubr.bf16.gmra.mxu1 %v4781_v50  ;;  %2483 = vmatmul.mubr.bf16.gmra.mxu0 %v4783_v51  ;;  %v4855_v50 = vld [vmem:[%s5245_s9 + $0x158] ss:$56 sps:$4 sm:$0xff]   ;;  %v4930_v63 = vld [vmem:[%s6163_s1 + $0x188] sm:$0xff]  }
  0x45   : > { %2554 = vmatprep.mubr.bf16.mxu1 %v4786_v53  ;;  %2490 = vmatprep.mubr.bf16.mxu0 %v4789_v56  ;;  %v4858_v51 = vld [vmem:[%s5245_s9 + $0x160] ss:$56 sps:$4 sm:$0xff]   ;;  %v4862_v53 = vld [vmem:[%s5245_s9 + $0x1d4] ss:$56 sps:$4 sm:$0xff]  }
  0x46   : > { %4158 = vmatpush3.bf16.msra.mxu1 %v4814_v61  ;;  %4270 = vmatpush3.bf16.msra.mxu0 %v4818_v1  ;;  %v4915_v56 = vld [vmem:[%s6163_s1 + $0x250] sm:$0xff]   ;;  %v4872_v61 = vld [vmem:[%s5245_s9 + $0x244] ss:$56 sps:$4 sm:$0xff]   ;;  %v4934_v1 = vld [vmem:[%s6163_s1 + $0x208] sm:$0xff]  }
  0x47   : > { %4159 = vmatprep.subr.bf16.mxu1 %v4822_v2  ;;  %4271 = vmatprep.subr.bf16.mxu0 %v4825_v4  ;;  %v4871_v2 = vld [vmem:[%s5245_s9 + $0x238] ss:$56 sps:$4 sm:$0xff]   ;;  %v4875_v4 = vld [vmem:[%s5245_s9 + $0x2ac] ss:$56 sps:$4 sm:$0xff]  }
  0x4a   : > { %4160 = vmatpush3.bf16.msra.mxu1 %v4824_v3  ;;  %4272 = vmatpush3.bf16.msra.mxu0 %v4826_v5  ;;  %v4874_v3 = vld [vmem:[%s5245_s9 + $0x240] ss:$56 sps:$4 sm:$0xff]   ;;  %v4878_v5 = vld [vmem:[%s5245_s9 + $0x2b4] ss:$56 sps:$4 sm:$0xff]  }
  0x4b   : > { %4369 = vmatprep.subr.bf16.mxu1 %v4833_v10  ;;  %4481 = vmatprep.subr.bf16.mxu0 %v4835_v11  ;;  %v4881_v10 = vld [vmem:[%s5245_s9 + $0x2b0] ss:$56 sps:$4 sm:$0xff]   ;;  %v4950_v11 = vld [vmem:[%s6163_s1 + $0x200] sm:$0xff]  }
  0x4c   : > { %2555 = vmatmul.mubr.bf16.gmra.mxu1 %v4791_v59  ;;  %2491 = vmatmul.mubr.bf16.gmra.mxu0 %v4793_v60  ;;  %v4865_v59 = vld [vmem:[%s5245_s9 + $0x1d0] ss:$56 sps:$4 sm:$0xff]   ;;  %v4868_v60 = vld [vmem:[%s5245_s9 + $0x23c] ss:$56 sps:$4 sm:$0xff]  }
  0x4d   : > { %2562 = vmatprep.mubr.bf16.mxu1 %v4796_v62  ;;  %2498 = vmatprep.mubr.bf16.mxu0 %v4799_v0  ;;  %v4928_v62 = vld [vmem:[%s6163_s1 + $0x1c8] sm:$0xff]  }
  0x4e   : > { %v4931_v0 = vld [vmem:[%s6163_s1 + $0x248] sm:$0xff]  }
  0x54   : > { %2563 = vmatmul.mubr.bf16.gmra.mxu1 %v4801_v6  ;;  %2499 = vmatmul.mubr.bf16.gmra.mxu0 %v4803_v7  ;;  %v4944_v6 = vld [vmem:[%s6163_s1 + $0x1c0] sm:$0xff]  }
  0x55   : > { %2570 = vmatprep.mubr.bf16.mxu1 %v4806_v8  ;;  %2506 = vmatprep.mubr.bf16.mxu0 %v4809_v9  ;;  %v4946_v7 = vld [vmem:[%s6163_s1 + $0x180] sm:$0xff]  }
  0x56   : > { %v4947_v8 = vld [vmem:[%s6163_s1 + $0x240] sm:$0xff]  }
  0x57   : > { %v4877_v9 = vld [vmem:[%s5245_s9 + $0x2a8] ss:$56 sps:$4 sm:$0xff]  }
  0x5c   : > { %2571 = vmatmul.mubr.bf16.gmra.mxu1 %v4811_v12  ;;  %2507 = vmatmul.mubr.bf16.gmra.mxu0 %v4813_v13  ;;  %v4884_v12 = vld [vmem:[%s5245_s9 + $0x31c] ss:$56 sps:$4 sm:$0xff]  }
  0x5d   : > { %2578 = vmatprep.mubr.bf16.mxu1 %v4816_v14  ;;  %2514 = vmatprep.mubr.bf16.mxu0 %v4819_v15  ;;  %v4888_v13 = vld [vmem:[%s5245_s9 + $0x324] ss:$56 sps:$4 sm:$0xff]   ;;  %v5183_v14 = vmov 0  }
  0x5e   : > { %v4961_v15 = vld [vmem:[%s6163_s1 + $0x2f8] sm:$0xff]  }
  0x64   : > { %2579 = vmatmul.mubr.bf16.gmra.mxu1 %v4821_v16  ;;  %2515 = vmatmul.mubr.bf16.gmra.mxu0 %v4823_v17  ;;  %v4887_v16 = vld [vmem:[%s5245_s9 + $0x318] ss:$56 sps:$4 sm:$0xff]  }
  0x65   : > { %2619 = vmatprep.mubr.bf16.mxu1 %v4829_v18  ;;  %2780 = vmatprep.mubr.bf16.mxu0 %v4832_v19  ;;  %v4890_v17 = vld [vmem:[%s5245_s9 + $0x320] ss:$56 sps:$4 sm:$0xff]   ;;  %v4891_v18 = vld [vmem:[%s5245_s9 + $0x38c] ss:$56 sps:$4 sm:$0xff]  }
  0x66   : > { %v4894_v19 = vld [vmem:[%s5245_s9 + $0x394] ss:$56 sps:$4 sm:$0xff]  }
  0x6c   : > { %2620 = vmatmul.mubr.bf16.vlgmr.msra.gmra.mxu1 %v4827_v20  ;;  %2781 = vmatmul.mubr.bf16.vlgmr.msra.gmra.mxu0 %v4830_v21  ;;  %v4893_v20 = vld [vmem:[%s5245_s9 + $0x388] ss:$56 sps:$4 sm:$0xff]  }
  0x6d   : > { %4370 = vmatpush3.bf16.msra.mxu1 %v4834_v22  ;;  %2627 = vmatprep.mubr.bf16.mxu1 %v4836_v23  ;;  %v4897_v21 = vld [vmem:[%s5245_s9 + $0x390] ss:$56 sps:$4 sm:$0xff]   ;;  %v4900_v22 = vld [vmem:[%s5245_s9 + $0x3fc] ss:$56 sps:$4 sm:$0xff]  }
  0x6e   : > { %4482 = vmatpush3.bf16.msra.mxu0 %v4838_v24  ;;  %2788 = vmatprep.mubr.bf16.mxu0 %v4840_v25  ;;  %v4904_v23 = vld [vmem:[%s5245_s9 + $0x404] ss:$56 sps:$4 sm:$0xff]   ;;  %v4903_v24 = vld [vmem:[%s5245_s9 + $0x3f8] ss:$56 sps:$4 sm:$0xff]  }
  0x6f   : > { %4371 = vmatprep.subr.bf16.mxu1 %v4848_v26  ;;  %4483 = vmatprep.subr.bf16.mxu0 %v4851_v27  ;;  %v4906_v25 = vld [vmem:[%s5245_s9 + $0x400] ss:$56 sps:$4 sm:$0xff]   ;;  %v4907_v26 = vld [vmem:[%s5245_s9 + $0x46c] ss:$56 sps:$4 sm:$0xff]  }
  0x70   : > { %v4910_v27 = vld [vmem:[%s5245_s9 + $0x474] ss:$56 sps:$4 sm:$0xff]  }
  0x71   : > { %4372 = vmatpush3.bf16.msra.mxu1 %v4850_v28  ;;  %v4909_v28 = vld [vmem:[%s5245_s9 + $0x468] ss:$56 sps:$4 sm:$0xff]  }
  0x72   : > { %4484 = vmatpush3.bf16.msra.mxu0 %v4854_v31  ;;  %4373 = vmatprep.subr.bf16.mxu1 %v4864_v32  ;;  %v4920_v31 = vld [vmem:[%s5245_s9 + $0x4e4] ss:$56 sps:$4 sm:$0xff]   ;;  %v4919_v32 = vld [vmem:[%s5245_s9 + $0x4d8] ss:$56 sps:$4 sm:$0xff]  }
  0x73   : > { %4485 = vmatprep.subr.bf16.mxu0 %v4867_v35  ;;  %v4926_v35 = vld [vmem:[%s5245_s9 + $0x554] ss:$56 sps:$4 sm:$0xff]  }
  0x74   : > { %2628 = vmatmul.mubr.bf16.gmra.mxu1 %v4839_v29  ;;  %2789 = vmatmul.mubr.bf16.gmra.mxu0 %v4842_v30  ;;  %v4913_v29 = vld [vmem:[%s5245_s9 + $0x470] ss:$56 sps:$4 sm:$0xff]   ;;  %v4916_v30 = vld [vmem:[%s5245_s9 + $0x4dc] ss:$56 sps:$4 sm:$0xff]  }
  0x75   : > { %2635 = vmatprep.mubr.bf16.mxu1 %v4843_v33  ;;  %2796 = vmatprep.mubr.bf16.mxu0 %v4846_v34  ;;  %v4922_v33 = vld [vmem:[%s5245_s9 + $0x4e0] ss:$56 sps:$4 sm:$0xff]   ;;  %v4923_v34 = vld [vmem:[%s5245_s9 + $0x54c] ss:$56 sps:$4 sm:$0xff]  }
  0x76   : > { %4374 = vmatpush3.bf16.msra.mxu1 %v4866_v36  ;;  %4486 = vmatpush3.bf16.msra.mxu0 %v4870_v37  ;;  %v4925_v36 = vld [vmem:[%s5245_s9 + $0x548] ss:$56 sps:$4 sm:$0xff]  }
  0x77   : > { %4375 = vmatprep.subr.bf16.mxu1 %v4880_v38  ;;  %4487 = vmatprep.subr.bf16.mxu0 %v4883_v39  ;;  %v4929_v37 = vld [vmem:[%s5245_s9 + $0x550] ss:$56 sps:$4 sm:$0xff]   ;;  %v4932_v38 = vld [vmem:[%s5245_s9 + $0x5bc] ss:$56 sps:$4 sm:$0xff]  }
  0x78   : > { %v4936_v39 = vld [vmem:[%s5245_s9 + $0x5c4] ss:$56 sps:$4 sm:$0xff]  }
  0x7a   : > { %4376 = vmatpush3.bf16.msra.mxu1 %v4882_v40  ;;  %4488 = vmatpush3.bf16.msra.mxu0 %v4886_v43  ;;  %v4935_v40 = vld [vmem:[%s5245_s9 + $0x5b8] ss:$56 sps:$4 sm:$0xff]   ;;  %v4942_v43 = vld [vmem:[%s5245_s9 + $0x634] ss:$56 sps:$4 sm:$0xff]  }
  0x7b   : > { %4377 = vmatprep.subr.bf16.mxu1 %v4896_v45  ;;  %4489 = vmatprep.subr.bf16.mxu0 %v4899_v48  ;;  %v4945_v45 = vld [vmem:[%s5245_s9 + $0x630] ss:$56 sps:$4 sm:$0xff]  }
  0x7c   : > { %2636 = vmatmul.mubr.bf16.gmra.mxu1 %v4845_v41  ;;  %2797 = vmatmul.mubr.bf16.gmra.mxu0 %v4849_v42  ;;  %v4938_v41 = vld [vmem:[%s5245_s9 + $0x5c0] ss:$56 sps:$4 sm:$0xff]   ;;  %v4939_v42 = vld [vmem:[%s5245_s9 + $0x62c] ss:$56 sps:$4 sm:$0xff]  }
  0x7d   : > { %2643 = vmatprep.mubr.bf16.mxu1 %v4852_v44  ;;  %2804 = vmatprep.mubr.bf16.mxu0 %v4856_v46  ;;  %v4941_v44 = vld [vmem:[%s5245_s9 + $0x628] ss:$56 sps:$4 sm:$0xff]   ;;  %v4948_v46 = vld [vmem:[%s5245_s9 + $0x69c] ss:$56 sps:$4 sm:$0xff]   ;;  %v4951_v48 = vld [vmem:[%s5245_s9 + $0x698] ss:$56 sps:$4 sm:$0xff]  }
  0x7e   : > { %4378 = vmatpush3.bf16.msra.mxu1 %v4898_v47  ;;  %4490 = vmatpush3.bf16.msra.mxu0 %v4902_v49  ;;  %v4952_v47 = vld [vmem:[%s5245_s9 + $0x6a4] ss:$56 sps:$4 sm:$0xff]   ;;  %v4954_v49 = vld [vmem:[%s5245_s9 + $0x6a0] ss:$56 sps:$4 sm:$0xff]  }
  0x7f   : > { %4379 = vmatprep.subr.bf16.mxu1 %v4912_v54  ;;  %4491 = vmatprep.subr.bf16.mxu0 %v4915_v56  ;;  %v4962_v54 = vld [vmem:[%s6163_s1 + $0x2b8] sm:$0xff]  }
  0x80   : > { %v4965_v56 = vld [vmem:[%s6163_s1 + $0x338] sm:$0xff]  }
  0x82   : > { %4380 = vmatpush3.bf16.msra.mxu1 %v4914_v55  ;;  %4492 = vmatpush3.bf16.msra.mxu0 %v4918_v57  ;;  %v4963_v55 = vld [vmem:[%s5245_s9 + $0x8c] ss:$56 sps:$4 sm:$0xff]  }
  0x83   : > { %4381 = vmatprep.subr.bf16.mxu1 %v4928_v62  ;;  %4493 = vmatprep.subr.bf16.mxu0 %v4931_v0  ;;  %v4967_v57 = vld [vmem:[%s5245_s9 + $0x94] ss:$56 sps:$4 sm:$0xff]   ;;  %v5581_v62 = vld [vmem:[%s6164_s2] ss:$0 sm:$0xff] }
  0x84   : > { %2644 = vmatmul.mubr.bf16.gmra.mxu1 %v4855_v50  ;;  %2805 = vmatmul.mubr.bf16.gmra.mxu0 %v4858_v51  ;;  %v4957_v50 = vld [vmem:[%s5245_s9 + $0x1c] ss:$56 sps:$4 sm:$0xff]   ;;  %v4992_v0 = vld [vmem:[%s6163_s1 + $0x2e8] sm:$0xff]  }
  0x85   : > { %2651 = vmatprep.mubr.bf16.mxu1 %v4859_v52  ;;  %2812 = vmatprep.mubr.bf16.mxu0 %v4862_v53  ;;  %v4960_v51 = vld [vmem:[%s5245_s9 + $0x24] ss:$56 sps:$4 sm:$0xff]   ;;  %v4955_v52 = vld [vmem:[%s5245_s9 + $0x18] ss:$56 sps:$4 sm:$0xff]  }
  0x86   : > { %4382 = vmatpush3.bf16.msra.mxu1 %v4930_v63  ;;  %4494 = vmatpush3.bf16.msra.mxu0 %v4934_v1  ;;  %v4958_v53 = vld [vmem:[%s5245_s9 + $0x20] ss:$56 sps:$4 sm:$0xff]   ;;  %v4978_v63 = vld [vmem:[%s6163_s1 + $0x330] sm:$0xff]  }
  0x87   : > { %4383 = vmatprep.subr.bf16.mxu1 %v4944_v6  ;;  %4495 = vmatprep.subr.bf16.mxu0 %v4947_v8 }
  0x8a   : > { %4384 = vmatpush3.bf16.msra.mxu1 %v4946_v7  ;;  %4496 = vmatpush3.bf16.msra.mxu0 %v4950_v11  ;;  %v4970_v7 = vld [vmem:[%s5245_s9 + $0xfc] ss:$56 sps:$4 sm:$0xff]  }
  0x8b   : > { %3392 = vmatprep.subr.bf16.mxu0 %v5183_v14  ;;  %4593 = vmatprep.subr.bf16.mxu1 %v4961_v15  ;;  %v4973_v11 = vld [vmem:[%s5245_s9 + $0x104] ss:$56 sps:$4 sm:$0xff]  }
  0x8c   : > { %2652 = vmatmul.mubr.bf16.gmra.mxu1 %v4861_v58  ;;  %2813 = vmatmul.mubr.bf16.gmra.mxu0 %v4865_v59  ;;  %v4975_v58 = vld [vmem:[%s6163_s1 + $0x2f0] sm:$0xff]  }
  0x8d   : > { %2659 = vmatprep.mubr.bf16.mxu1 %v4868_v60  ;;  %2820 = vmatprep.mubr.bf16.mxu0 %v4872_v61  ;;  %v4977_v59 = vld [vmem:[%s6163_s1 + $0x2b0] sm:$0xff]  }
  0x94   : > { %2660 = vmatmul.mubr.bf16.gmra.mxu1 %v4871_v2  ;;  %2821 = vmatmul.mubr.bf16.gmra.mxu0 %v4874_v3  ;;  %v4966_v3 = vld [vmem:[%s5245_s9 + $0x88] ss:$56 sps:$4 sm:$0xff]  }
  0x95   : > { %2667 = vmatprep.mubr.bf16.mxu1 %v4875_v4  ;;  %2828 = vmatprep.mubr.bf16.mxu0 %v4878_v5  ;;  %v4969_v4 = vld [vmem:[%s5245_s9 + $0x90] ss:$56 sps:$4 sm:$0xff]  }
  0x9c   : > { %2668 = vmatmul.mubr.bf16.gmra.mxu1 %v4877_v9  ;;  %2829 = vmatmul.mubr.bf16.gmra.mxu0 %v4881_v10 }
  0x9d   : > { %2675 = vmatprep.mubr.bf16.mxu1 %v4884_v12  ;;  %2836 = vmatprep.mubr.bf16.mxu0 %v4888_v13  ;;  %v4985_v12 = vld [vmem:[%s6163_s1 + $0x328] sm:$0xff]  }
  0xa4   : > { %2676 = vmatmul.mubr.bf16.gmra.mxu1 %v4887_v16  ;;  %2837 = vmatmul.mubr.bf16.gmra.mxu0 %v4890_v17  ;;  %v4993_v16 = vld [vmem:[%s6163_s1 + $0x2a8] sm:$0xff]   ;;  %v5007_v17 = vld [vmem:[%s6163_s1 + $0x2e0] sm:$0xff]  }
  0xa5   : > { %2683 = vmatprep.mubr.bf16.mxu1 %v4891_v18  ;;  %2844 = vmatprep.mubr.bf16.mxu0 %v4894_v19 }
  0xac   : > { %2684 = vmatmul.mubr.bf16.gmra.mxu1 %v4893_v20  ;;  %2845 = vmatmul.mubr.bf16.gmra.mxu0 %v4897_v21 }
  0xad   : > { %2691 = vmatprep.mubr.bf16.mxu1 %v4900_v22  ;;  %2852 = vmatprep.mubr.bf16.mxu0 %v4904_v23  ;;  %v4997_v22 = vld [vmem:[%s6163_s1 + $0x320] sm:$0xff]  }
  0xae   : > { %v5008_v23 = vld [vmem:[%s6163_s1 + $0x2a0] sm:$0xff]  }
  0xb4   : > { %2692 = vmatmul.mubr.bf16.gmra.mxu1 %v4903_v24  ;;  %2853 = vmatmul.mubr.bf16.gmra.mxu0 %v4906_v25  ;;  %v5023_v25 = vld [vmem:[%s6163_s1 + $0x2d8] sm:$0xff]  }
  0xb5   : > { %2699 = vmatprep.mubr.bf16.mxu1 %v4907_v26  ;;  %2860 = vmatprep.mubr.bf16.mxu0 %v4910_v27 }
  0xbc   : > { %2700 = vmatmul.mubr.bf16.gmra.mxu1 %v4909_v28  ;;  %2861 = vmatmul.mubr.bf16.gmra.mxu0 %v4913_v29  ;;  %v4972_v28 = vld [vmem:[%s5245_s9 + $0xf8] ss:$56 sps:$4 sm:$0xff]  }
  0xbd   : > { %2707 = vmatprep.mubr.bf16.mxu1 %v4916_v30  ;;  %2868 = vmatprep.mubr.bf16.mxu0 %v4920_v31  ;;  %v4976_v29 = vld [vmem:[%s5245_s9 + $0x100] ss:$56 sps:$4 sm:$0xff]  }
  0xc4   : > { %2708 = vmatmul.mubr.bf16.gmra.mxu1 %v4919_v32  ;;  %2869 = vmatmul.mubr.bf16.gmra.mxu0 %v4922_v33 }
  0xc5   : > { %2715 = vmatprep.mubr.bf16.mxu1 %v4923_v34  ;;  %2876 = vmatprep.mubr.bf16.mxu0 %v4926_v35  ;;  %v4979_v35 = vld [vmem:[%s5245_s9 + $0x16c] ss:$56 sps:$4 sm:$0xff]  }
  0xcc   : > { %2716 = vmatmul.mubr.bf16.gmra.mxu1 %v4925_v36  ;;  %2877 = vmatmul.mubr.bf16.gmra.mxu0 %v4929_v37  ;;  %v4982_v36 = vld [vmem:[%s5245_s9 + $0x174] ss:$56 sps:$4 sm:$0xff]  }
  0xcd   : > { %2723 = vmatprep.mubr.bf16.mxu1 %v4932_v38  ;;  %2884 = vmatprep.mubr.bf16.mxu0 %v4936_v39  ;;  %v5009_v39 = vld [vmem:[%s6163_s1 + $0x318] sm:$0xff]  }
  0xd4   : > { %2724 = vmatmul.mubr.bf16.gmra.mxu1 %v4935_v40  ;;  %2885 = vmatmul.mubr.bf16.gmra.mxu0 %v4938_v41  ;;  %v5024_v40 = vld [vmem:[%s6163_s1 + $0x298] sm:$0xff]  }
  0xd5   : > { %2731 = vmatprep.mubr.bf16.mxu1 %v4939_v42  ;;  %2892 = vmatprep.mubr.bf16.mxu0 %v4942_v43  ;;  %v5038_v43 = vld [vmem:[%s6163_s1 + $0x2d0] sm:$0xff]  }
  0xdc   : > { %2732 = vmatmul.mubr.bf16.gmra.mxu1 %v4941_v44  ;;  %2893 = vmatmul.mubr.bf16.gmra.mxu0 %v4945_v45 }
  0xdd   : > { %2739 = vmatprep.mubr.bf16.mxu1 %v4948_v46  ;;  %2900 = vmatprep.mubr.bf16.mxu0 %v4952_v47 }
  0xe4   : > { %2740 = vmatmul.mubr.bf16.gmra.mxu1 %v4951_v48  ;;  %2901 = vmatmul.mubr.bf16.gmra.mxu0 %v4954_v49  ;;  %v5016_v49 = vld [vmem:[%s6163_s1 + $0x310] sm:$0xff]  }
  0xe5   : > { %2941 = vmatprep.mubr.bf16.mxu1 %v4957_v50  ;;  %3102 = vmatprep.mubr.bf16.mxu0 %v4960_v51  ;;  %v5039_v50 = vld [vmem:[%s6163_s1 + $0x290] sm:$0xff]  }
  0xec   : > { %v4097_v60 = vpop.f32.mrf.mxu1  ;;  %2942 = vmatmul.mubr.bf16.vlgmr.msra.gmra.mxu1 %v4955_v52  ;;  %v4049_v61 = vpop.f32.mrf.mxu0  ;;  %3103 = vmatmul.mubr.bf16.vlgmr.msra.gmra.mxu0 %v4958_v53  ;;  %v5054_v53 = vld [vmem:[%s6163_s1 + $0x2c8] sm:$0xff]  }
  0xed   : > { %4594 = vmatpush3.bf16.msra.mxu1 %v4962_v54  ;;  %2949 = vmatprep.mubr.bf16.mxu1 %v4963_v55 }
  0xee   : > { %v4098_v1 = vpop.f32.mrf.mxu1  ;;  %v4050_v2 = vpop.f32.mrf.mxu0  ;;  %3393 = vmatpush1.bf16.msra.mxu0 %v4965_v56  ;;  %3110 = vmatprep.mubr.bf16.mxu0 %v4967_v57  ;;  %v4981_v56 = vld [vmem:[%s5245_s9 + $0x168] ss:$56 sps:$4 sm:$0xff]  }
  0xef   : > { %v4099_v5 = vadd.f32 %v4098_v1, %v4097_v60  ;;  %v5591_v6 = vadd.f32 %v4050_v2, %v4049_v61  ;;  %4595 = vmatprep.subr.bf16.mxu1 %v4975_v58  ;;  %3394 = vmatprep.subr.bf16.mxu0 %v5183_v14  ;;  %v4984_v57 = vld [vmem:[%s5245_s9 + $0x170] ss:$56 sps:$4 sm:$0xff]   ;;  %v4991_v60 = vld [vmem:[%s5245_s9 + $0x1e4] ss:$56 sps:$4 sm:$0xff]  }
  0xf0   : > { %v4100_v8 = vpop.f32.mrf.mxu1  ;;  %v4052_v9 = vpop.f32.mrf.mxu0  ;;  %v5055_v1 = vld [vmem:[%s6163_s1 + $0x288] sm:$0xff]  }
  0xf1   : > { %v5596_v10 = vadd.f32 %v4099_v5, %v5581_v62  ;;  %4596 = vmatpush3.bf16.msra.mxu1 %v4977_v59  ;;  %v4988_v59 = vld [vmem:[%s5245_s9 + $0x1dc] ss:$56 sps:$4 sm:$0xff]  }
  0xf2   : > { %v4101_v13 = vpop.f32.mrf.mxu1  ;;  %v4053_v15 = vpop.f32.mrf.mxu0  ;;  %3395 = vmatpush1.bf16.msra.mxu0 %v4978_v63  ;;  %4597 = vmatprep.subr.bf16.mxu1 %v4992_v0  ;;  %v5028_v0 = vld [vmem:[%s6163_s1 + $0x308] sm:$0xff]  }
  0xf3   : > { %v4102_v18 = vadd.f32 %v4101_v13, %v4100_v8  ;;  %v5608_v19 = vadd.f32 %v4053_v15, %v4052_v9  ;;  %3396 = vmatprep.subr.bf16.mxu0 %v5183_v14  ;;  %v5070_v13 = vld [vmem:[%s6163_s1 + $0x280] sm:$0xff]  }
  0xf4   : > { %v4103_v20 = vpop.f32.mrf.mxu1  ;;  %2950 = vmatmul.mubr.bf16.gmra.mxu1 %v4966_v3  ;;  %v4055_v21 = vpop.f32.mrf.mxu0  ;;  %3111 = vmatmul.mubr.bf16.gmra.mxu0 %v4969_v4  ;;  %v5069_v4 = vld [vmem:[%s6163_s1 + $0x2c0] sm:$0xff]  }
  0xf5   : > { %v5618_v24 = vadd.f32 %v4102_v18, %v5581_v62  ;;  %2957 = vmatprep.mubr.bf16.mxu1 %v4970_v7  ;;  %3118 = vmatprep.mubr.bf16.mxu0 %v4973_v11 }
  0xf6   : > { %v4104_v26 = vpop.f32.mrf.mxu1  ;;  %v4056_v27 = vpop.f32.mrf.mxu0  ;;  %3397 = vmatpush1.bf16.msra.mxu0 %v4985_v12  ;;  %4598 = vmatpush3.bf16.msra.mxu1 %v4993_v16  ;;  %v5040_v12 = vld [vmem:[%s6163_s1 + $0x300] sm:$0xff]  }
  0xf7   : > { %v4105_v30 = vadd.f32 %v4104_v26, %v4103_v20  ;;  %v5625_v31 = vadd.f32 %v4056_v27, %v4055_v21  ;;  %3398 = vmatprep.subr.bf16.mxu0 %v5183_v14  ;;  %4599 = vmatprep.subr.bf16.mxu1 %v5007_v17  ;;  %v4986_v20 = vld [vmem:[%s5245_s9 + $0x1d8] ss:$56 sps:$4 sm:$0xff]  }
  0xf8   : > { %v4106_v32 = vpop.f32.mrf.mxu1  ;;  %v4058_v33 = vpop.f32.mrf.mxu0  ;;  %v4989_v21 = vld [vmem:[%s5245_s9 + $0x1e0] ss:$56 sps:$4 sm:$0xff]  }
  0xf9   : > { %v5629_v34 = vadd.f32 %v4105_v30, %v5581_v62 }
  0xfa   : > { %v4107_v37 = vpop.f32.mrf.mxu1  ;;  %v4059_v38 = vpop.f32.mrf.mxu0  ;;  %3399 = vmatpush1.bf16.msra.mxu0 %v4997_v22  ;;  %4600 = vmatpush3.bf16.msra.mxu1 %v5008_v23  ;;  %v4996_v23 = vld [vmem:[%s5245_s9 + $0x24c] ss:$56 sps:$4 sm:$0xff]  }
  0xfb   : > { %v4108_v41 = vadd.f32 %v4107_v37, %v4106_v32  ;;  %v5639_v42 = vadd.f32 %v4059_v38, %v4058_v33  ;;  %3400 = vmatprep.subr.bf16.mxu0 %v5183_v14  ;;  %4601 = vmatprep.subr.bf16.mxu1 %v5023_v25  ;;  %v5000_v25 = vld [vmem:[%s5245_s9 + $0x254] ss:$56 sps:$4 sm:$0xff]  }
  0xfc   : > { %v4109_v44 = vpop.f32.mrf.mxu1  ;;  %2958 = vmatmul.mubr.bf16.gmra.mxu1 %v4972_v28  ;;  %v4061_v45 = vpop.f32.mrf.mxu0  ;;  %3119 = vmatmul.mubr.bf16.gmra.mxu0 %v4976_v29  ;;  %v5047_v28 = vld [vmem:[%s6163_s1 + $0x358] sm:$0xff]   ;;  %v5059_v38 = vld [vmem:[%s6163_s1 + $0x350] sm:$0xff]  }
  0xfd   : > { %v5646_v46 = vadd.f32 %v4108_v41, %v5581_v62  ;;  %2965 = vmatprep.mubr.bf16.mxu1 %v4979_v35  ;;  %3126 = vmatprep.mubr.bf16.mxu0 %v4982_v36 }
  0xfe   : > { %v4110_v47 = vpop.f32.mrf.mxu1  ;;  %v4062_v48 = vpop.f32.mrf.mxu0  ;;  %3401 = vmatpush1.bf16.msra.mxu0 %v5009_v39  ;;  %4602 = vmatpush3.bf16.msra.mxu1 %v5024_v40 }
  0xff   : > { %v4111_v51 = vadd.f32 %v4110_v47, %v4109_v44  ;;  %v5654_v52 = vadd.f32 %v4062_v48, %v4061_v45  ;;  %3402 = vmatprep.subr.bf16.mxu0 %v5183_v14  ;;  %4603 = vmatprep.subr.bf16.mxu1 %v5038_v43  ;;  %v4994_v44 = vld [vmem:[%s5245_s9 + $0x248] ss:$56 sps:$4 sm:$0xff]   ;;  %v5003_v48 = vld [vmem:[%s5245_s9 + $0x2bc] ss:$56 sps:$4 sm:$0xff]  }
 0x100   : > { %v4112_v54 = vpop.f32.mrf.mxu1  ;;  %v4064_v55 = vpop.f32.mrf.mxu0  ;;  %v4998_v45 = vld [vmem:[%s5245_s9 + $0x250] ss:$56 sps:$4 sm:$0xff]  }
 0x101   : > { %v5663_v58 = vadd.f32 %v4111_v51, %v5581_v62 }
 0x102   : > { %v4113_v61 = vpop.f32.mrf.mxu1  ;;  %v4065_v63 = vpop.f32.mrf.mxu0  ;;  %3403 = vmatpush1.bf16.msra.mxu0 %v5016_v49  ;;  %4604 = vmatpush3.bf16.msra.mxu1 %v5039_v50  ;;  %v5006_v49 = vld [vmem:[%s5245_s9 + $0x2c4] ss:$56 sps:$4 sm:$0xff]  }
 0x103   : > { %v4114_v2 = vadd.f32 %v4113_v61, %v4112_v54  ;;  %v5673_v3 = vadd.f32 %v4065_v63, %v4064_v55  ;;  %3404 = vmatprep.subr.bf16.mxu0 %v5183_v14  ;;  %4605 = vmatprep.subr.bf16.mxu1 %v5054_v53  ;;  %v5071_v53 = vld [vmem:[%s6163_s1 + $0x348] sm:$0xff]   ;;  %v5078_v63 = vld [vmem:[%s6163_s1 + $0x340] sm:$0xff]  }
 0x104   : > { %v4115_v5 = vpop.f32.mrf.mxu1  ;;  %2966 = vmatmul.mubr.bf16.gmra.mxu1 %v4981_v56  ;;  %v4067_v7 = vpop.f32.mrf.mxu0  ;;  %3127 = vmatmul.mubr.bf16.gmra.mxu0 %v4984_v57 }
 0x105   : > { %v5680_v8 = vadd.f32 %v4114_v2, %v5581_v62  ;;  %2973 = vmatprep.mubr.bf16.mxu1 %v4988_v59  ;;  %3134 = vmatprep.mubr.bf16.mxu0 %v4991_v60 }
 0x106   : > { %v4116_v9 = vpop.f32.mrf.mxu1  ;;  %v4068_v11 = vpop.f32.mrf.mxu0  ;;  %3405 = vmatpush1.bf16.msra.mxu0 %v5028_v0  ;;  %4606 = vmatpush3.bf16.msra.mxu1 %v5055_v1 }
 0x107   : > { %v4117_v15 = vadd.f32 %v4116_v9, %v4115_v5  ;;  %v5688_v16 = vadd.f32 %v4068_v11, %v4067_v7  ;;  %3406 = vmatprep.subr.bf16.mxu0 %v5183_v14  ;;  %4607 = vmatprep.subr.bf16.mxu1 %v5069_v4  ;;  %v5001_v5 = vld [vmem:[%s5245_s9 + $0x2b8] ss:$56 sps:$4 sm:$0xff]   ;;  %v5012_v11 = vld [vmem:[%s5245_s9 + $0x32c] ss:$56 sps:$4 sm:$0xff]  }
 0x108   : > { %v4118_v17 = vpop.f32.mrf.mxu1  ;;  %v4070_v18 = vpop.f32.mrf.mxu0  ;;  %v5004_v7 = vld [vmem:[%s5245_s9 + $0x2c0] ss:$56 sps:$4 sm:$0xff]  }
 0x109   : > { %v5694_v22 = vadd.f32 %v4117_v15, %v5581_v62 }
 0x10a   : > { %v4119_v26 = vpop.f32.mrf.mxu1  ;;  %v4071_v27 = vpop.f32.mrf.mxu0  ;;  %3407 = vmatpush1.bf16.msra.mxu0 %v5040_v12  ;;  %4608 = vmatpush3.bf16.msra.mxu1 %v5070_v13  ;;  %v5015_v12 = vld [vmem:[%s5245_s9 + $0x334] ss:$56 sps:$4 sm:$0xff]  }
 0x10b   : > { %v4120_v29 = vadd.f32 %v4119_v26, %v4118_v17  ;;  %v5701_v30 = vadd.f32 %v4071_v27, %v4070_v18  ;;  %3416 = vmatprep.subr.bf16.mxu0 %v5183_v14 }
 0x10c   : > { %v4121_v32 = vpop.f32.mrf.mxu1  ;;  %2974 = vmatmul.mubr.bf16.gmra.mxu1 %v4986_v20  ;;  %v4073_v33 = vpop.f32.mrf.mxu0  ;;  %3135 = vmatmul.mubr.bf16.gmra.mxu0 %v4989_v21 }
 0x10d   : > { %v5705_v35 = vadd.f32 %v4120_v29, %v5581_v62  ;;  %2981 = vmatprep.mubr.bf16.mxu1 %v4996_v23  ;;  %3142 = vmatprep.mubr.bf16.mxu0 %v5000_v25 }
 0x10e   : > { %v4122_v36 = vpop.f32.mrf.mxu1  ;;  %v4074_v37 = vpop.f32.mrf.mxu0  ;;  %3417 = vmatpush2.bf16.msra.mxu0 %v5047_v28 }
 0x10f   : > { %v4123_v39 = vadd.f32 %v4122_v36, %v4121_v32  ;;  %v5710_v40 = vadd.f32 %v4074_v37, %v4073_v33  ;;  %3418 = vmatprep.subr.bf16.mxu0 %v5183_v14  ;;  %v5010_v32 = vld [vmem:[%s5245_s9 + $0x328] ss:$56 sps:$4 sm:$0xff]   ;;  %v5019_v37 = vld [vmem:[%s5245_s9 + $0x39c] ss:$56 sps:$4 sm:$0xff]  }
 0x110   : > { %v4124_v41 = vpop.f32.mrf.mxu1  ;;  %v4076_v43 = vpop.f32.mrf.mxu0  ;;  %v5013_v33 = vld [vmem:[%s5245_s9 + $0x330] ss:$56 sps:$4 sm:$0xff]  }
 0x111   : > { %v5716_v47 = vadd.f32 %v4123_v39, %v5581_v62 }
 0x112   : > { %v4125_v50 = vpop.f32.mrf.mxu1  ;;  %v4077_v51 = vpop.f32.mrf.mxu0  ;;  %3419 = vmatpush2.bf16.msra.mxu0 %v5059_v38  ;;  %v5022_v38 = vld [vmem:[%s5245_s9 + $0x3a4] ss:$56 sps:$4 sm:$0xff]  }
 0x113   : > { %v4126_v54 = vadd.f32 %v4125_v50, %v4124_v41  ;;  %v5723_v55 = vadd.f32 %v4077_v51, %v4076_v43  ;;  %3420 = vmatprep.subr.bf16.mxu0 %v5183_v14 }
 0x114   : > { %v4127_v56 = vpop.f32.mrf.mxu1  ;;  %2982 = vmatmul.mubr.bf16.gmra.mxu1 %v4994_v44  ;;  %v4079_v57 = vpop.f32.mrf.mxu0  ;;  %3143 = vmatmul.mubr.bf16.gmra.mxu0 %v4998_v45 }
 0x115   : > { %v5727_v59 = vadd.f32 %v4126_v54, %v5581_v62  ;;  %2989 = vmatprep.mubr.bf16.mxu1 %v5003_v48  ;;  %3150 = vmatprep.mubr.bf16.mxu0 %v5006_v49 }
 0x116   : > { %v4128_v60 = vpop.f32.mrf.mxu1  ;;  %v4080_v61 = vpop.f32.mrf.mxu0  ;;  %3421 = vmatpush2.bf16.msra.mxu0 %v5071_v53 }
 0x117   : > { %v4129_v0 = vadd.f32 %v4128_v60, %v4127_v56  ;;  %v5732_v1 = vadd.f32 %v4080_v61, %v4079_v57  ;;  %3422 = vmatprep.subr.bf16.mxu0 %v5183_v14  ;;  %v5017_v60 = vld [vmem:[%s5245_s9 + $0x398] ss:$56 sps:$4 sm:$0xff]  }
 0x118   : > { %v4130_v2 = vpop.f32.mrf.mxu1  ;;  %v4082_v4 = vpop.f32.mrf.mxu0  ;;  %v5020_v61 = vld [vmem:[%s5245_s9 + $0x3a0] ss:$56 sps:$4 sm:$0xff]  }
 0x119   : > { %v5738_v9 = vadd.f32 %v4129_v0, %v5581_v62  ;;  %v5027_v0 = vld [vmem:[%s5245_s9 + $0x40c] ss:$56 sps:$4 sm:$0xff]  }
 0x11a   : > { %v4131_v13 = vpop.f32.mrf.mxu1  ;;  %v4083_v15 = vpop.f32.mrf.mxu0  ;;  %3423 = vmatpush2.bf16.msra.mxu0 %v5078_v63 }
 0x11b   : > { %v4132_v17 = vadd.f32 %v4131_v13, %v4130_v2  ;;  %v5742_v18 = vadd.f32 %v4083_v15, %v4082_v4  ;;  %v5031_v2 = vld [vmem:[%s5245_s9 + $0x414] ss:$56 sps:$4 sm:$0xff]  }
 0x11c   : > { %v4133_v20 = vpop.f32.mrf.mxu1  ;;  %2990 = vmatmul.mubr.bf16.gmra.mxu1 %v5001_v5  ;;  %v4085_v14 = vpop.f32.mrf.mxu0  ;;  %3151 = vmatmul.mubr.bf16.gmra.mxu0 %v5004_v7 }
 0x11d   : > { %v5745_v21 = vadd.f32 %v4132_v17, %v5581_v62  ;;  %2997 = vmatprep.mubr.bf16.mxu1 %v5012_v11  ;;  %3158 = vmatprep.mubr.bf16.mxu0 %v5015_v12 }
 0x11e   : > { %v4134_v23 = vpop.f32.mrf.mxu1  ;;  %v4086_v25 = vpop.f32.mrf.mxu0 }
 0x11f   : > { %v4135_v26 = vadd.f32 %v4134_v23, %v4133_v20  ;;  %v5747_v27 = vadd.f32 %v4086_v25, %v4085_v14  ;;  %v2461_v14 = vadd.f32 %v5591_v6, %v5581_v62 }
 0x120   : > { %v4136_v28 = vpop.f32.mrf.mxu1  ;;  %v4088_v29 = vpop.f32.mrf.mxu0 }
 0x121   : > { %v5752_v36 = vadd.f32 %v4135_v26, %v5581_v62 }
 0x122   : > { %v4137_v39 = vpop.f32.mrf.mxu1  ;;  %v4089_v41 = vpop.f32.mrf.mxu0 }
 0x123   : > { %v4138_v43 = vadd.f32 %v4137_v39, %v4136_v28  ;;  %v5756_v44 = vadd.f32 %v4089_v41, %v4088_v29  ;;  %v5025_v29 = vld [vmem:[%s5245_s9 + $0x408] ss:$56 sps:$4 sm:$0xff]  }
 0x124   : > { %v4139_v45 = vpop.f32.mrf.mxu1  ;;  %2998 = vmatmul.mubr.bf16.gmra.mxu1 %v5010_v32  ;;  %v4091_v48 = vpop.f32.mrf.mxu0  ;;  %3159 = vmatmul.mubr.bf16.gmra.mxu0 %v5013_v33  ;;  %v5029_v32 = vld [vmem:[%s5245_s9 + $0x410] ss:$56 sps:$4 sm:$0xff]  }
 0x125   : > { %v5759_v49 = vadd.f32 %v4138_v43, %v5581_v62  ;;  %3005 = vmatprep.mubr.bf16.mxu1 %v5019_v37  ;;  %3166 = vmatprep.mubr.bf16.mxu0 %v5022_v38  ;;  %v5034_v37 = vld [vmem:[%s5245_s9 + $0x47c] ss:$56 sps:$4 sm:$0xff]   ;;  %v2464_v43 = vadd.f32 %v5608_v19, %v5581_v62  ;;  %v2469_v19 = vadd.f32 %v5625_v31, %v5581_v62 }
 0x126   : > { %v4140_v50 = vpop.f32.mrf.mxu1  ;;  %v4092_v51 = vpop.f32.mrf.mxu0  ;;  %v5037_v38 = vld [vmem:[%s5245_s9 + $0x484] ss:$56 sps:$4 sm:$0xff]  }
 0x127   : > { %v4141_v53 = vadd.f32 %v4140_v50, %v4139_v45  ;;  %v5761_v54 = vadd.f32 %v4092_v51, %v4091_v48 }
 0x128   : > { %v4142_v56 = vpop.f32.mrf.mxu1  ;;  %v4094_v57 = vpop.f32.mrf.mxu0 }
 0x129   : > { %v5766_v63 = vadd.f32 %v4141_v53, %v5581_v62 }
 0x12a   : > { %v4143_v4 = vpop.f32.mrf.mxu1  ;;  %v4095_v5 = vpop.f32.mrf.mxu0 }
 0x12b   : > { %v4144_v7 = vadd.f32 %v4143_v4, %v4142_v56  ;;  %v5770_v11 = vadd.f32 %v4095_v5, %v4094_v57  ;;  %v5032_v5 = vld [vmem:[%s5245_s9 + $0x478] ss:$56 sps:$4 sm:$0xff]  }
 0x12c   : > { %v4161_v12 = vpop.f32.mrf.mxu1  ;;  %3006 = vmatmul.mubr.bf16.gmra.mxu1 %v5017_v60  ;;  %v4273_v13 = vpop.f32.mrf.mxu0  ;;  %3167 = vmatmul.mubr.bf16.gmra.mxu0 %v5020_v61 }
 0x12d   : > { %v5773_v15 = vadd.f32 %v4144_v7, %v5581_v62  ;;  %3013 = vmatprep.mubr.bf16.mxu1 %v5027_v0  ;;  %3174 = vmatprep.mubr.bf16.mxu0 %v5031_v2  ;;  %v5035_v7 = vld [vmem:[%s5245_s9 + $0x480] ss:$56 sps:$4 sm:$0xff]  }
 0x12e   : > { %v4162_v17 = vpop.f32.mrf.mxu1  ;;  %v4274_v20 = vpop.f32.mrf.mxu0 }
 0x12f   : > { %v4163_v23 = vadd.f32 %v4162_v17, %v4161_v12  ;;  %v4275_v25 = vadd.f32 %v4274_v20, %v4273_v13  ;;  %v5043_v13 = vld [vmem:[%s5245_s9 + $0x4ec] ss:$56 sps:$4 sm:$0xff]  }
 0x130   : > { %v4164_v26 = vpop.f32.mrf.mxu1  ;;  %v4276_v28 = vpop.f32.mrf.mxu0  ;;  %v5046_v17 = vld [vmem:[%s5245_s9 + $0x4f4] ss:$56 sps:$4 sm:$0xff]  }
 0x131   : > { %v2622_v33 = vadd.f32 %v4163_v23, %v2461_v14  ;;  %v2472_v23 = vadd.f32 %v5639_v42, %v5581_v62  ;;  %v2477_v42 = vadd.f32 %v5654_v52, %v5581_v62 }
 0x132   : > { %v4165_v39 = vpop.f32.mrf.mxu1  ;;  %v4277_v41 = vpop.f32.mrf.mxu0 }
 0x133   : > { %v5783_v45 = vadd.f32 %v4275_v25, %v2622_v33  ;;  %v4166_v48 = vadd.f32 %v4165_v39, %v4164_v26  ;;  %v4278_v50 = vadd.f32 %v4277_v41, %v4276_v28 }
 0x134   : > { %v4167_v6 = vpop.f32.mrf.mxu1  ;;  %3014 = vmatmul.mubr.bf16.gmra.mxu1 %v5025_v29  ;;  %v4279_v51 = vpop.f32.mrf.mxu0  ;;  %3175 = vmatmul.mubr.bf16.gmra.mxu0 %v5029_v32 }
 0x135   : > { %v2625_v53 = vadd.f32 %v4166_v48, %v2464_v43  ;;  %3021 = vmatprep.mubr.bf16.mxu1 %v5034_v37  ;;  %3182 = vmatprep.mubr.bf16.mxu0 %v5037_v38 }
 0x136   : > { %v4168_v56 = vpop.f32.mrf.mxu1  ;;  %v4280_v57 = vpop.f32.mrf.mxu0 }
 0x137   : > { %v5787_v60 = vadd.f32 %v4278_v50, %v2625_v53  ;;  %v4169_v61 = vadd.f32 %v4168_v56, %v4167_v6  ;;  %v4281_v0 = vadd.f32 %v4280_v57, %v4279_v51  ;;  %v5041_v50 = vld [vmem:[%s5245_s9 + $0x4e8] ss:$56 sps:$4 sm:$0xff]   ;;  %v5050_v53 = vld [vmem:[%s5245_s9 + $0x55c] ss:$56 sps:$4 sm:$0xff]  }
 0x138   : > { %v4170_v2 = vpop.f32.mrf.mxu1  ;;  %v4282_v4 = vpop.f32.mrf.mxu0  ;;  %v5044_v6 = vld [vmem:[%s5245_s9 + $0x4f0] ss:$56 sps:$4 sm:$0xff]   ;;  %v5053_v56 = vld [vmem:[%s5245_s9 + $0x564] ss:$56 sps:$4 sm:$0xff]  }
 0x139   : > { %v2630_v12 = vadd.f32 %v4169_v61, %v2469_v19  ;;  %v2480_v61 = vadd.f32 %v5673_v3, %v5581_v62  ;;  %v2485_v3 = vadd.f32 %v5688_v16, %v5581_v62 }
 0x13a   : > { %v4171_v20 = vpop.f32.mrf.mxu1  ;;  %v4283_v14 = vpop.f32.mrf.mxu0 }
 0x13b   : > { %v5795_v25 = vadd.f32 %v4281_v0, %v2630_v12  ;;  %v4172_v26 = vadd.f32 %v4171_v20, %v4170_v2  ;;  %v4284_v31 = vadd.f32 %v4283_v14, %v4282_v4 }
 0x13c   : > { %v4173_v28 = vpop.f32.mrf.mxu1  ;;  %3022 = vmatmul.mubr.bf16.gmra.mxu1 %v5032_v5  ;;  %v4285_v29 = vpop.f32.mrf.mxu0  ;;  %3183 = vmatmul.mubr.bf16.gmra.mxu0 %v5035_v7 }
 0x13d   : > { %v2633_v32 = vadd.f32 %v4172_v26, %v2472_v23  ;;  %3029 = vmatprep.mubr.bf16.mxu1 %v5043_v13  ;;  %3190 = vmatprep.mubr.bf16.mxu0 %v5046_v17 }
 0x13e   : > { %v4174_v33 = vpop.f32.mrf.mxu1  ;;  %v4286_v37 = vpop.f32.mrf.mxu0 }
 0x13f   : > { %v5799_v38 = vadd.f32 %v4284_v31, %v2633_v32  ;;  %v4175_v39 = vadd.f32 %v4174_v33, %v4173_v28  ;;  %v4287_v41 = vadd.f32 %v4286_v37, %v4285_v29  ;;  %v5048_v31 = vld [vmem:[%s5245_s9 + $0x558] ss:$56 sps:$4 sm:$0xff]   ;;  %v5058_v32 = vld [vmem:[%s5245_s9 + $0x5cc] ss:$56 sps:$4 sm:$0xff]  }
 0x140   : > { %v4176_v43 = vpop.f32.mrf.mxu1  ;;  %v4288_v48 = vpop.f32.mrf.mxu0  ;;  %v5051_v28 = vld [vmem:[%s5245_s9 + $0x560] ss:$56 sps:$4 sm:$0xff]   ;;  %v5062_v33 = vld [vmem:[%s5245_s9 + $0x5d4] ss:$56 sps:$4 sm:$0xff]  }
 0x141   : > { %v2638_v51 = vadd.f32 %v4175_v39, %v2477_v42  ;;  %v2488_v39 = vadd.f32 %v5701_v30, %v5581_v62  ;;  %v2493_v30 = vadd.f32 %v5710_v40, %v5581_v62 }
 0x142   : > { %v4177_v57 = vpop.f32.mrf.mxu1  ;;  %v4289_v19 = vpop.f32.mrf.mxu0 }
 0x143   : > { %v5807_v0 = vadd.f32 %v4287_v41, %v2638_v51  ;;  %v4178_v2 = vadd.f32 %v4177_v57, %v4176_v43  ;;  %v4290_v52 = vadd.f32 %v4289_v19, %v4288_v48 }
 0x144   : > { %v4179_v4 = vpop.f32.mrf.mxu1  ;;  %3030 = vmatmul.mubr.bf16.gmra.mxu1 %v5041_v50  ;;  %v4291_v5 = vpop.f32.mrf.mxu0  ;;  %3191 = vmatmul.mubr.bf16.gmra.mxu0 %v5044_v6 }
 0x145   : > { %v2641_v7 = vadd.f32 %v4178_v2, %v2480_v61  ;;  %3037 = vmatprep.mubr.bf16.mxu1 %v5050_v53  ;;  %3198 = vmatprep.mubr.bf16.mxu0 %v5053_v56 }
 0x146   : > { %v4180_v12 = vpop.f32.mrf.mxu1  ;;  %v4292_v13 = vpop.f32.mrf.mxu0 }
 0x147   : > { %v5811_v17 = vadd.f32 %v4290_v52, %v2641_v7  ;;  %v4181_v20 = vadd.f32 %v4180_v12, %v4179_v4  ;;  %v4293_v14 = vadd.f32 %v4292_v13, %v4291_v5  ;;  %v5056_v52 = vld [vmem:[%s5245_s9 + $0x5c8] ss:$56 sps:$4 sm:$0xff]   ;;  %v5065_v7 = vld [vmem:[%s5245_s9 + $0x63c] ss:$56 sps:$4 sm:$0xff]  }
 0x148   : > { %v4182_v23 = vpop.f32.mrf.mxu1  ;;  %v4294_v26 = vpop.f32.mrf.mxu0  ;;  %v5060_v4 = vld [vmem:[%s5245_s9 + $0x5d0] ss:$56 sps:$4 sm:$0xff]   ;;  %v5068_v12 = vld [vmem:[%s5245_s9 + $0x644] ss:$56 sps:$4 sm:$0xff]  }
 0x149   : > { %v2646_v29 = vadd.f32 %v4181_v20, %v2485_v3  ;;  %v2496_v20 = vadd.f32 %v5723_v55, %v5581_v62  ;;  %v2501_v55 = vadd.f32 %v5732_v1, %v5581_v62 }
 0x14a   : > { %v4183_v37 = vpop.f32.mrf.mxu1  ;;  %v4295_v42 = vpop.f32.mrf.mxu0 }
 0x14b   : > { %v5819_v41 = vadd.f32 %v4293_v14, %v2646_v29  ;;  %v4184_v43 = vadd.f32 %v4183_v37, %v4182_v23  ;;  %v4296_v16 = vadd.f32 %v4295_v42, %v4294_v26 }
 0x14c   : > { %v4185_v48 = vpop.f32.mrf.mxu1  ;;  %3038 = vmatmul.mubr.bf16.gmra.mxu1 %v5048_v31  ;;  %v4297_v50 = vpop.f32.mrf.mxu0  ;;  %3199 = vmatmul.mubr.bf16.gmra.mxu0 %v5051_v28 }
 0x14d   : > { %v2649_v6 = vadd.f32 %v4184_v43, %v2488_v39  ;;  %3045 = vmatprep.mubr.bf16.mxu1 %v5058_v32  ;;  %3206 = vmatprep.mubr.bf16.mxu0 %v5062_v33 }
 0x14e   : > { %v4186_v51 = vpop.f32.mrf.mxu1  ;;  %v4298_v53 = vpop.f32.mrf.mxu0 }
 0x14f   : > { %v5823_v56 = vadd.f32 %v4296_v16, %v2649_v6  ;;  %v4187_v57 = vadd.f32 %v4186_v51, %v4185_v48  ;;  %v4299_v19 = vadd.f32 %v4298_v53, %v4297_v50  ;;  %v5063_v16 = vld [vmem:[%s5245_s9 + $0x638] ss:$56 sps:$4 sm:$0xff]   ;;  %v5074_v6 = vld [vmem:[%s5245_s9 + $0x6ac] ss:$56 sps:$4 sm:$0xff]  }
 0x150   : > { %v4188_v61 = vpop.f32.mrf.mxu1  ;;  %v4300_v2 = vpop.f32.mrf.mxu0  ;;  %v5066_v48 = vld [vmem:[%s5245_s9 + $0x640] ss:$56 sps:$4 sm:$0xff]   ;;  %v5077_v51 = vld [vmem:[%s5245_s9 + $0x6b4] ss:$56 sps:$4 sm:$0xff]  }
 0x151   : > { %v2654_v5 = vadd.f32 %v4187_v57, %v2493_v30  ;;  %v2504_v57 = vadd.f32 %v5742_v18, %v5581_v62  ;;  %v2509_v18 = vadd.f32 %v5747_v27, %v5581_v62 }
 0x152   : > { %v4189_v13 = vpop.f32.mrf.mxu1  ;;  %v4301_v3 = vpop.f32.mrf.mxu0 }
 0x153   : > { %v5831_v14 = vadd.f32 %v4299_v19, %v2654_v5  ;;  %v4190_v23 = vadd.f32 %v4189_v13, %v4188_v61  ;;  %v4302_v40 = vadd.f32 %v4301_v3, %v4300_v2 }
 0x154   : > { %v4191_v26 = vpop.f32.mrf.mxu1  ;;  %3046 = vmatmul.mubr.bf16.gmra.mxu1 %v5056_v52  ;;  %v4303_v31 = vpop.f32.mrf.mxu0  ;;  %3207 = vmatmul.mubr.bf16.gmra.mxu0 %v5060_v4 }
 0x155   : > { %v2657_v28 = vadd.f32 %v4190_v23, %v2496_v20  ;;  %3053 = vmatprep.mubr.bf16.mxu1 %v5065_v7  ;;  %3214 = vmatprep.mubr.bf16.mxu0 %v5068_v12 }
 0x156   : > { %v4192_v29 = vpop.f32.mrf.mxu1  ;;  %v4304_v32 = vpop.f32.mrf.mxu0 }
 0x157   : > { %v5835_v33 = vadd.f32 %v4302_v40, %v2657_v28  ;;  %v4193_v37 = vadd.f32 %v4192_v29, %v4191_v26  ;;  %v4305_v42 = vadd.f32 %v4304_v32, %v4303_v31  ;;  %v5072_v40 = vld [vmem:[%s5245_s9 + $0x6a8] ss:$56 sps:$4 sm:$0xff]   ;;  %v5081_v28 = vld [vmem:[%s5245_s9 + $0x2c] ss:$56 sps:$4 sm:$0xff]  }
 0x158   : > { %v4194_v39 = vpop.f32.mrf.mxu1  ;;  %v4306_v43 = vpop.f32.mrf.mxu0  ;;  %v5075_v26 = vld [vmem:[%s5245_s9 + $0x6b0] ss:$56 sps:$4 sm:$0xff]   ;;  %v5084_v29 = vld [vmem:[%s5245_s9 + $0x34] ss:$56 sps:$4 sm:$0xff]  }
 0x159   : > { %v2662_v50 = vadd.f32 %v4193_v37, %v2501_v55  ;;  %v2512_v37 = vadd.f32 %v5756_v44, %v5581_v62  ;;  %v2517_v44 = vadd.f32 %v5761_v54, %v5581_v62 }
 0x15a   : > { %v4195_v53 = vpop.f32.mrf.mxu1  ;;  %v4307_v30 = vpop.f32.mrf.mxu0 }
 0x15b   : > { %v5843_v19 = vadd.f32 %v4305_v42, %v2662_v50  ;;  %v4196_v61 = vadd.f32 %v4195_v53, %v4194_v39  ;;  %v4308_v1 = vadd.f32 %v4307_v30, %v4306_v43 }
 0x15c   : > { %v4197_v2 = vpop.f32.mrf.mxu1  ;;  %3054 = vmatmul.mubr.bf16.gmra.mxu1 %v5063_v16  ;;  %v4309_v52 = vpop.f32.mrf.mxu0  ;;  %3215 = vmatmul.mubr.bf16.gmra.mxu0 %v5066_v48 }
 0x15d   : > { %v2665_v4 = vadd.f32 %v4196_v61, %v2504_v57  ;;  %3061 = vmatprep.mubr.bf16.mxu1 %v5074_v6  ;;  %3222 = vmatprep.mubr.bf16.mxu0 %v5077_v51 }
 0x15e   : > { %v4198_v5 = vpop.f32.mrf.mxu1  ;;  %v4310_v7 = vpop.f32.mrf.mxu0 }
 0x15f   : > { %v5847_v12 = vadd.f32 %v4308_v1, %v2665_v4  ;;  %v4199_v13 = vadd.f32 %v4198_v5, %v4197_v2  ;;  %v4311_v3 = vadd.f32 %v4310_v7, %v4309_v52  ;;  %v5079_v1 = vld [vmem:[%s5245_s9 + $0x28] ss:$56 sps:$4 sm:$0xff]   ;;  %v5087_v4 = vld [vmem:[%s5245_s9 + $0x9c] ss:$56 sps:$4 sm:$0xff]  }
 0x160   : > { %v4200_v20 = vpop.f32.mrf.mxu1  ;;  %v4312_v23 = vpop.f32.mrf.mxu0  ;;  %v5082_v2 = vld [vmem:[%s5245_s9 + $0x30] ss:$56 sps:$4 sm:$0xff]   ;;  %v5088_v5 = vld [vmem:[%s5245_s9 + $0xa4] ss:$56 sps:$4 sm:$0xff]  }
 0x161   : > { %v2670_v31 = vadd.f32 %v4199_v13, %v2509_v18  ;;  %v2520_v13 = vadd.f32 %v5770_v11, %v5581_v62 }
 0x162   : > { %v4201_v32 = vpop.f32.mrf.mxu1  ;;  %v4313_v55 = vpop.f32.mrf.mxu0 }
 0x163   : > { %v5855_v42 = vadd.f32 %v4311_v3, %v2670_v31  ;;  %v4202_v27 = vadd.f32 %v4201_v32, %v4200_v20  ;;  %v4314_v39 = vadd.f32 %v4313_v55, %v4312_v23 }
 0x164   : > { %v4203_v43 = vpop.f32.mrf.mxu1  ;;  %3062 = vmatmul.mubr.bf16.gmra.mxu1 %v5072_v40  ;;  %v4315_v16 = vpop.f32.mrf.mxu0  ;;  %3223 = vmatmul.mubr.bf16.gmra.mxu0 %v5075_v26 }
 0x165   : > { %v2673_v48 = vadd.f32 %v4202_v27, %v2512_v37  ;;  %3263 = vmatprep.mubr.bf16.mxu1 %v5081_v28  ;;  %4015 = vmatprep.mubr.msk.bf16.mxu0 %vm2377_vm0, %v5084_v29  ;;  %v5085_v37 = vld [vmem:[%s5245_s9 + $0x98] ss:$56 sps:$4 sm:$0xff]  }
 0x166   : > { %v4204_v50 = vpop.f32.mrf.mxu1  ;;  %v4316_v6 = vpop.f32.mrf.mxu0  ;;  %v5090_v27 = vld [vmem:[%s5245_s9 + $0xa0] ss:$56 sps:$4 sm:$0xff]  }
 0x167   : > { %v5860_v51 = vadd.f32 %v4314_v39, %v2673_v48  ;;  %v4205_v53 = vadd.f32 %v4204_v50, %v4203_v43  ;;  %v4317_v30 = vadd.f32 %v4316_v6, %v4315_v16  ;;  %v5093_v43 = vld [vmem:[%s5245_s9 + $0x10c] ss:$56 sps:$4 sm:$0xff]  }
 0x168   : > { %v4206_v57 = vpop.f32.mrf.mxu1  ;;  %v4318_v61 = vpop.f32.mrf.mxu0  ;;  %v5094_v16 = vld [vmem:[%s5245_s9 + $0x114] ss:$56 sps:$4 sm:$0xff]  }
 0x169   : > { %v2678_v52 = vadd.f32 %v4205_v53, %v2517_v44 }
 0x16a   : > { %v4207_v7 = vpop.f32.mrf.mxu1  ;;  %v4319_v18 = vpop.f32.mrf.mxu0 }
 0x16b   : > { %v5868_v3 = vadd.f32 %v4317_v30, %v2678_v52  ;;  %v4208_v20 = vadd.f32 %v4207_v7, %v4206_v57  ;;  %v4320_v54 = vadd.f32 %v4319_v18, %v4318_v61  ;;  %v5091_v18 = vld [vmem:[%s5245_s9 + $0x108] ss:$56 sps:$4 sm:$0xff]  }
 0x16c   : > { %v4209_v23 = vpop.f32.mrf.mxu1  ;;  %3264 = vmatmul.mubr.bf16.vlgmr.msra.gmra.mxu1 %v5079_v1  ;;  %v4321_v40 = vpop.f32.mrf.mxu0  ;;  %3425 = vmatmul.mubr.bf16.vlgmr.msra.gmra.mxu0 %v5082_v2 }
 0x16d   : > { %v2681_v26 = vadd.f32 %v4208_v20, %v2520_v13  ;;  %3271 = vmatprep.mubr.bf16.mxu1 %v5087_v4  ;;  %4016 = vmatprep.mubr.msk.bf16.mxu0 %vm2377_vm0, %v5088_v5  ;;  %v5096_v13 = vld [vmem:[%s5245_s9 + $0x110] ss:$56 sps:$4 sm:$0xff]  }
 0x16e   : > { %v4210_v31 = vpop.f32.mrf.mxu1  ;;  %v4322_v28 = vpop.f32.mrf.mxu0 }
 0x16f   : > { %v5871_v29 = vadd.f32 %v4320_v54, %v2681_v26  ;;  %v4211_v62 = vadd.f32 %v4210_v31, %v4209_v23  ;;  %v4323_v11 = vadd.f32 %v4322_v28, %v4321_v40  ;;  %v5099_v54 = vld [vmem:[%s5245_s9 + $0x17c] ss:$56 sps:$4 sm:$0xff]  }
 0x170   : > { %v4212_v32 = vpop.f32.mrf.mxu1  ;;  %v4324_v55 = vpop.f32.mrf.mxu0  ;;  %v5100_v23 = vld [vmem:[%s5245_s9 + $0x184] ss:$56 sps:$4 sm:$0xff]  }
 0x171   : > { %v2686_v39 = vadd.f32 %v4211_v62, %v5596_v10 }
 0x172   : > { %v4213_v48 = vpop.f32.mrf.mxu1  ;;  %v4325_v50 = vpop.f32.mrf.mxu0 }
 0x173   : > { %v5878_v6 = vadd.f32 %v4323_v11, %v2686_v39  ;;  %v4214_v44 = vadd.f32 %v4213_v48, %v4212_v32  ;;  %v4326_v53 = vadd.f32 %v4325_v50, %v4324_v55  ;;  %v5097_v48 = vld [vmem:[%s5245_s9 + $0x178] ss:$56 sps:$4 sm:$0xff]  }
 0x174   : > { %v4215_v30 = vpop.f32.mrf.mxu1  ;;  %3272 = vmatmul.mubr.bf16.gmra.mxu1 %v5085_v37  ;;  %v4327_v57 = vpop.f32.mrf.mxu0  ;;  %3433 = vmatmul.mubr.bf16.gmra.mxu0 %v5090_v27  ;;  %v5102_v50 = vld [vmem:[%s5245_s9 + $0x180] ss:$56 sps:$4 sm:$0xff]  }
 0x175   : > { %v2689_v61 = vadd.f32 %v4214_v44, %v5618_v24  ;;  %3279 = vmatprep.mubr.bf16.mxu1 %v5093_v43  ;;  %4017 = vmatprep.mubr.msk.bf16.mxu0 %vm2377_vm0, %v5094_v16 }
 0x176   : > { %v4216_v10 = vpop.f32.mrf.mxu1  ;;  %v4328_v1 = vpop.f32.mrf.mxu0 }
 0x177   : > { %v5882_v2 = vadd.f32 %v4326_v53, %v2689_v61  ;;  %v4217_v52 = vadd.f32 %v4216_v10, %v4215_v30  ;;  %v4329_v4 = vadd.f32 %v4328_v1, %v4327_v57  ;;  %v5105_v53 = vld [vmem:[%s5245_s9 + $0x1ec] ss:$56 sps:$4 sm:$0xff]  }
 0x178   : > { %v4218_v5 = vpop.f32.mrf.mxu1  ;;  %v4330_v7 = vpop.f32.mrf.mxu0  ;;  %v5106_v30 = vld [vmem:[%s5245_s9 + $0x1f4] ss:$56 sps:$4 sm:$0xff]  }
 0x179   : > { %v2694_v20 = vadd.f32 %v4217_v52, %v5629_v34 }
 0x17a   : > { %v4219_v40 = vpop.f32.mrf.mxu1  ;;  %v4331_v26 = vpop.f32.mrf.mxu0 }
 0x17b   : > { %v5889_v24 = vadd.f32 %v4329_v4, %v2694_v20  ;;  %v4220_v31 = vadd.f32 %v4219_v40, %v4218_v5  ;;  %v4332_v28 = vadd.f32 %v4331_v26, %v4330_v7  ;;  %v5103_v40 = vld [vmem:[%s5245_s9 + $0x1e8] ss:$56 sps:$4 sm:$0xff]  }
 0x17c   : > { %v4221_v62 = vpop.f32.mrf.mxu1  ;;  %3280 = vmatmul.mubr.bf16.gmra.mxu1 %v5091_v18  ;;  %v4333_v11 = vpop.f32.mrf.mxu0  ;;  %3441 = vmatmul.mubr.bf16.gmra.mxu0 %v5096_v13  ;;  %v5108_v26 = vld [vmem:[%s5245_s9 + $0x1f0] ss:$56 sps:$4 sm:$0xff]  }
 0x17d   : > { %v2697_v32 = vadd.f32 %v4220_v31, %v5646_v46  ;;  %3287 = vmatprep.mubr.bf16.mxu1 %v5099_v54  ;;  %4018 = vmatprep.mubr.msk.bf16.mxu0 %vm2377_vm0, %v5100_v23 }
 0x17e   : > { %v4222_v34 = vpop.f32.mrf.mxu1  ;;  %v4334_v55 = vpop.f32.mrf.mxu0 }
 0x17f   : > { %v5893_v37 = vadd.f32 %v4332_v28, %v2697_v32  ;;  %v4223_v27 = vadd.f32 %v4222_v34, %v4221_v62  ;;  %v4335_v39 = vadd.f32 %v4334_v55, %v4333_v11  ;;  %v5111_v28 = vld [vmem:[%s5245_s9 + $0x25c] ss:$56 sps:$4 sm:$0xff]  }
 0x180   : > { %v4224_v43 = vpop.f32.mrf.mxu1  ;;  %v4336_v16 = vpop.f32.mrf.mxu0  ;;  %v5112_v62 = vld [vmem:[%s5245_s9 + $0x264] ss:$56 sps:$4 sm:$0xff]  }
 0x181   : > { %v2702_v44 = vadd.f32 %v4223_v27, %v5663_v58 }
 0x182   : > { %v4225_v57 = vpop.f32.mrf.mxu1  ;;  %v4337_v61 = vpop.f32.mrf.mxu0 }
 0x183   : > { %v5900_v46 = vadd.f32 %v4335_v39, %v2702_v44  ;;  %v4226_v10 = vadd.f32 %v4225_v57, %v4224_v43  ;;  %v4338_v1 = vadd.f32 %v4337_v61, %v4336_v16  ;;  %v5109_v57 = vld [vmem:[%s5245_s9 + $0x258] ss:$56 sps:$4 sm:$0xff]  }
 0x184   : > { %v4227_v52 = vpop.f32.mrf.mxu1  ;;  %3288 = vmatmul.mubr.bf16.gmra.mxu1 %v5097_v48  ;;  %v4339_v4 = vpop.f32.mrf.mxu0  ;;  %3449 = vmatmul.mubr.bf16.gmra.mxu0 %v5102_v50  ;;  %v5114_v61 = vld [vmem:[%s5245_s9 + $0x260] ss:$56 sps:$4 sm:$0xff]  }
 0x185   : > { %v2705_v5 = vadd.f32 %v4226_v10, %v5680_v8  ;;  %3295 = vmatprep.mubr.bf16.mxu1 %v5105_v53  ;;  %4019 = vmatprep.mubr.msk.bf16.mxu0 %vm2377_vm0, %v5106_v30 }
 0x186   : > { %v4228_v58 = vpop.f32.mrf.mxu1  ;;  %v4340_v7 = vpop.f32.mrf.mxu0 }
 0x187   : > { %v5904_v18 = vadd.f32 %v4338_v1, %v2705_v5  ;;  %v4229_v13 = vadd.f32 %v4228_v58, %v4227_v52  ;;  %v4341_v20 = vadd.f32 %v4340_v7, %v4339_v4  ;;  %v5117_v1 = vld [vmem:[%s5245_s9 + $0x2cc] ss:$56 sps:$4 sm:$0xff]  }
 0x188   : > { %v4230_v54 = vpop.f32.mrf.mxu1  ;;  %v4342_v23 = vpop.f32.mrf.mxu0  ;;  %v5118_v52 = vld [vmem:[%s5245_s9 + $0x2d4] ss:$56 sps:$4 sm:$0xff]  }
 0x189   : > { %v2710_v31 = vadd.f32 %v4229_v13, %v5694_v22 }
 0x18a   : > { %v4231_v11 = vpop.f32.mrf.mxu1  ;;  %v4343_v32 = vpop.f32.mrf.mxu0 }
 0x18b   : > { %v5911_v8 = vadd.f32 %v4341_v20, %v2710_v31  ;;  %v4232_v34 = vadd.f32 %v4231_v11, %v4230_v54  ;;  %v4344_v55 = vadd.f32 %v4343_v32, %v4342_v23  ;;  %v5115_v11 = vld [vmem:[%s5245_s9 + $0x2c8] ss:$56 sps:$4 sm:$0xff]  }
 0x18c   : > { %v4233_v27 = vpop.f32.mrf.mxu1  ;;  %3296 = vmatmul.mubr.bf16.gmra.mxu1 %v5103_v40  ;;  %v4345_v39 = vpop.f32.mrf.mxu0  ;;  %3457 = vmatmul.mubr.bf16.gmra.mxu0 %v5108_v26  ;;  %v5120_v32 = vld [vmem:[%s5245_s9 + $0x2d0] ss:$56 sps:$4 sm:$0xff]  }
 0x18d   : > { %v2713_v43 = vadd.f32 %v4232_v34, %v5705_v35  ;;  %3303 = vmatprep.mubr.bf16.mxu1 %v5111_v28  ;;  %4020 = vmatprep.mubr.msk.bf16.mxu0 %vm2377_vm0, %v5112_v62 }
 0x18e   : > { %v4234_v22 = vpop.f32.mrf.mxu1  ;;  %v4346_v16 = vpop.f32.mrf.mxu0 }
 0x18f   : > { %v5915_v48 = vadd.f32 %v4344_v55, %v2713_v43  ;;  %v4235_v50 = vadd.f32 %v4234_v22, %v4233_v27  ;;  %v4347_v44 = vadd.f32 %v4346_v16, %v4345_v39  ;;  %v5123_v55 = vld [vmem:[%s5245_s9 + $0x33c] ss:$56 sps:$4 sm:$0xff]  }
 0x190   : > { %v4236_v53 = vpop.f32.mrf.mxu1  ;;  %v4348_v30 = vpop.f32.mrf.mxu0  ;;  %v5124_v27 = vld [vmem:[%s5245_s9 + $0x344] ss:$56 sps:$4 sm:$0xff]  }
 0x191   : > { %v2718_v10 = vadd.f32 %v4235_v50, %v5716_v47 }
 0x192   : > { %v4237_v4 = vpop.f32.mrf.mxu1  ;;  %v4349_v5 = vpop.f32.mrf.mxu0 }
 0x193   : > { %v5922_v35 = vadd.f32 %v4347_v44, %v2718_v10  ;;  %v4238_v58 = vadd.f32 %v4237_v4, %v4236_v53  ;;  %v4350_v7 = vadd.f32 %v4349_v5, %v4348_v30  ;;  %v5121_v4 = vld [vmem:[%s5245_s9 + $0x338] ss:$56 sps:$4 sm:$0xff]  }
 0x194   : > { %v4239_v13 = vpop.f32.mrf.mxu1  ;;  %3304 = vmatmul.mubr.bf16.gmra.mxu1 %v5109_v57  ;;  %v4351_v20 = vpop.f32.mrf.mxu0  ;;  %3465 = vmatmul.mubr.bf16.gmra.mxu0 %v5114_v61  ;;  %v5126_v5 = vld [vmem:[%s5245_s9 + $0x340] ss:$56 sps:$4 sm:$0xff]  }
 0x195   : > { %v2721_v54 = vadd.f32 %v4238_v58, %v5727_v59  ;;  %3311 = vmatprep.mubr.bf16.mxu1 %v5117_v1  ;;  %4021 = vmatprep.mubr.msk.bf16.mxu0 %vm2377_vm0, %v5118_v52 }
 0x196   : > { %v4240_v47 = vpop.f32.mrf.mxu1  ;;  %v4352_v23 = vpop.f32.mrf.mxu0 }
 0x197   : > { %v5926_v40 = vadd.f32 %v4350_v7, %v2721_v54  ;;  %v4241_v26 = vadd.f32 %v4240_v47, %v4239_v13  ;;  %v4353_v31 = vadd.f32 %v4352_v23, %v4351_v20  ;;  %v5129_v7 = vld [vmem:[%s5245_s9 + $0x3ac] ss:$56 sps:$4 sm:$0xff]  }
 0x198   : > { %v4242_v28 = vpop.f32.mrf.mxu1  ;;  %v4354_v62 = vpop.f32.mrf.mxu0  ;;  %v5130_v13 = vld [vmem:[%s5245_s9 + $0x3b4] ss:$56 sps:$4 sm:$0xff]  }
 0x199   : > { %v2726_v34 = vadd.f32 %v4241_v26, %v5738_v9 }
 0x19a   : > { %v4243_v39 = vpop.f32.mrf.mxu1  ;;  %v4355_v43 = vpop.f32.mrf.mxu0 }
 0x19b   : > { %v5933_v59 = vadd.f32 %v4353_v31, %v2726_v34  ;;  %v4244_v22 = vadd.f32 %v4243_v39, %v4242_v28  ;;  %v4356_v16 = vadd.f32 %v4355_v43, %v4354_v62  ;;  %v5127_v39 = vld [vmem:[%s5245_s9 + $0x3a8] ss:$56 sps:$4 sm:$0xff]  }
 0x19c   : > { %v4245_v50 = vpop.f32.mrf.mxu1  ;;  %3312 = vmatmul.mubr.bf16.gmra.mxu1 %v5115_v11  ;;  %v4357_v44 = vpop.f32.mrf.mxu0  ;;  %3473 = vmatmul.mubr.bf16.gmra.mxu0 %v5120_v32  ;;  %v5132_v43 = vld [vmem:[%s5245_s9 + $0x3b0] ss:$56 sps:$4 sm:$0xff]  }
 0x19d   : > { %v2729_v53 = vadd.f32 %v4244_v22, %v5745_v21  ;;  %3319 = vmatprep.mubr.bf16.mxu1 %v5123_v55  ;;  %4022 = vmatprep.mubr.msk.bf16.mxu0 %vm2377_vm0, %v5124_v27 }
 0x19e   : > { %v4246_v9 = vpop.f32.mrf.mxu1  ;;  %v4358_v30 = vpop.f32.mrf.mxu0 }
 0x19f   : > { %v5937_v57 = vadd.f32 %v4356_v16, %v2729_v53  ;;  %v4247_v61 = vadd.f32 %v4246_v9, %v4245_v50  ;;  %v4359_v10 = vadd.f32 %v4358_v30, %v4357_v44  ;;  %v5135_v16 = vld [vmem:[%s5245_s9 + $0x41c] ss:$56 sps:$4 sm:$0xff]  }
 0x1a0   : > { %v4248_v1 = vpop.f32.mrf.mxu1  ;;  %v4360_v52 = vpop.f32.mrf.mxu0  ;;  %v5136_v50 = vld [vmem:[%s5245_s9 + $0x424] ss:$56 sps:$4 sm:$0xff]  }
 0x1a1   : > { %v2734_v58 = vadd.f32 %v4247_v61, %v5752_v36 }
 0x1a2   : > { %v4249_v20 = vpop.f32.mrf.mxu1  ;;  %v4361_v54 = vpop.f32.mrf.mxu0 }
 0x1a3   : > { %v5944_v21 = vadd.f32 %v4359_v10, %v2734_v58  ;;  %v4250_v47 = vadd.f32 %v4249_v20, %v4248_v1  ;;  %v4362_v23 = vadd.f32 %v4361_v54, %v4360_v52  ;;  %v5133_v20 = vld [vmem:[%s5245_s9 + $0x418] ss:$56 sps:$4 sm:$0xff]  }
 0x1a4   : > { %v4251_v26 = vpop.f32.mrf.mxu1  ;;  %3320 = vmatmul.mubr.bf16.gmra.mxu1 %v5121_v4  ;;  %v4363_v31 = vpop.f32.mrf.mxu0  ;;  %3481 = vmatmul.mubr.bf16.gmra.mxu0 %v5126_v5  ;;  %v5138_v54 = vld [vmem:[%s5245_s9 + $0x420] ss:$56 sps:$4 sm:$0xff]  }
 0x1a5   : > { %v2737_v28 = vadd.f32 %v4250_v47, %v5759_v49  ;;  %3327 = vmatprep.mubr.bf16.mxu1 %v5129_v7  ;;  %4023 = vmatprep.mubr.msk.bf16.mxu0 %vm2377_vm0, %v5130_v13 }
 0x1a6   : > { %v4252_v36 = vpop.f32.mrf.mxu1  ;;  %v4364_v62 = vpop.f32.mrf.mxu0 }
 0x1a7   : > { %v5948_v11 = vadd.f32 %v4362_v23, %v2737_v28  ;;  %v4253_v32 = vadd.f32 %v4252_v36, %v4251_v26  ;;  %v4365_v34 = vadd.f32 %v4364_v62, %v4363_v31  ;;  %v5141_v23 = vld [vmem:[%s5245_s9 + $0x48c] ss:$56 sps:$4 sm:$0xff]  }
 0x1a8   : > { %v4254_v55 = vpop.f32.mrf.mxu1  ;;  %v4366_v27 = vpop.f32.mrf.mxu0  ;;  %v5142_v26 = vld [vmem:[%s5245_s9 + $0x494] ss:$56 sps:$4 sm:$0xff]  }
 0x1a9   : > { %v2742_v22 = vadd.f32 %v4253_v32, %v5766_v63 }
 0x1aa   : > { %v4255_v44 = vpop.f32.mrf.mxu1  ;;  %v4367_v53 = vpop.f32.mrf.mxu0 }
 0x1ab   : > { %v5955_v49 = vadd.f32 %v4365_v34, %v2742_v22  ;;  %v4256_v9 = vadd.f32 %v4255_v44, %v4254_v55  ;;  %v4368_v30 = vadd.f32 %v4367_v53, %v4366_v27  ;;  %v5139_v44 = vld [vmem:[%s5245_s9 + $0x488] ss:$56 sps:$4 sm:$0xff]  }
 0x1ac   : > { %v4385_v61 = vpop.f32.mrf.mxu1  ;;  %3328 = vmatmul.mubr.bf16.gmra.mxu1 %v5127_v39  ;;  %v4497_v10 = vpop.f32.mrf.mxu0  ;;  %3489 = vmatmul.mubr.bf16.gmra.mxu0 %v5132_v43  ;;  %v5144_v53 = vld [vmem:[%s5245_s9 + $0x490] ss:$56 sps:$4 sm:$0xff]  }
 0x1ad   : > { %v2745_v1 = vadd.f32 %v4256_v9, %v5773_v15  ;;  %3335 = vmatprep.mubr.bf16.mxu1 %v5135_v16  ;;  %4024 = vmatprep.mubr.msk.bf16.mxu0 %vm2377_vm0, %v5136_v50 }
 0x1ae   : > { %v4386_v63 = vpop.f32.mrf.mxu1  ;;  %v4498_v52 = vpop.f32.mrf.mxu0 }
 0x1af   : > { %v5959_v4 = vadd.f32 %v4368_v30, %v2745_v1  ;;  %v4387_v5 = vadd.f32 %v4386_v63, %v4385_v61  ;;  %v4499_v58 = vadd.f32 %v4498_v52, %v4497_v10  ;;  %v5147_v30 = vld [vmem:[%s5245_s9 + $0x4fc] ss:$56 sps:$4 sm:$0xff]  }
 0x1b0   : > { %v4388_v7 = vpop.f32.mrf.mxu1  ;;  %v4500_v13 = vpop.f32.mrf.mxu0  ;;  %v5148_v61 = vld [vmem:[%s5245_s9 + $0x504] ss:$56 sps:$4 sm:$0xff]  }
 0x1b1   : > { %v2944_v47 = vadd.f32 %v4387_v5, %v5783_v45 }
 0x1b2   : > { %v4389_v31 = vpop.f32.mrf.mxu1  ;;  %v4501_v28 = vpop.f32.mrf.mxu0 }
 0x1b3   : > { %v5966_v15 = vadd.f32 %v4499_v58, %v2944_v47  ;;  %v4390_v36 = vadd.f32 %v4389_v31, %v4388_v7  ;;  %v4502_v62 = vadd.f32 %v4501_v28, %v4500_v13  ;;  %v5145_v31 = vld [vmem:[%s5245_s9 + $0x4f8] ss:$56 sps:$4 sm:$0xff]  }
 0x1b4   : > { %v4391_v32 = vpop.f32.mrf.mxu1  ;;  %3336 = vmatmul.mubr.bf16.gmra.mxu1 %v5133_v20  ;;  %v4503_v34 = vpop.f32.mrf.mxu0  ;;  %3497 = vmatmul.mubr.bf16.gmra.mxu0 %v5138_v54  ;;  %v5150_v28 = vld [vmem:[%s5245_s9 + $0x500] ss:$56 sps:$4 sm:$0xff]  }
 0x1b5   : > { %v2947_v55 = vadd.f32 %v4390_v36, %v5787_v60  ;;  %3343 = vmatprep.mubr.bf16.mxu1 %v5141_v23  ;;  %4025 = vmatprep.mubr.msk.bf16.mxu0 %vm2377_vm0, %v5142_v26 }
 0x1b6   : > { %v4392_v45 = vpop.f32.mrf.mxu1  ;;  %v4504_v27 = vpop.f32.mrf.mxu0 }
 0x1b7   : > { %v5970_v39 = vadd.f32 %v4502_v62, %v2947_v55  ;;  %v4393_v43 = vadd.f32 %v4392_v45, %v4391_v32  ;;  %v4505_v22 = vadd.f32 %v4504_v27, %v4503_v34  ;;  %v5153_v62 = vld [vmem:[%s5245_s9 + $0x56c] ss:$56 sps:$4 sm:$0xff]  }
 0x1b8   : > { %v4394_v16 = vpop.f32.mrf.mxu1  ;;  %v4506_v50 = vpop.f32.mrf.mxu0  ;;  %v5154_v32 = vld [vmem:[%s5245_s9 + $0x574] ss:$56 sps:$4 sm:$0xff]  }
 0x1b9   : > { %v2952_v9 = vadd.f32 %v4393_v43, %v5795_v25 }
 0x1ba   : > { %v4395_v10 = vpop.f32.mrf.mxu1  ;;  %v4507_v1 = vpop.f32.mrf.mxu0 }
 0x1bb   : > { %v5977_v60 = vadd.f32 %v4505_v22, %v2952_v9  ;;  %v4396_v63 = vadd.f32 %v4395_v10, %v4394_v16  ;;  %v4508_v52 = vadd.f32 %v4507_v1, %v4506_v50  ;;  %v5151_v10 = vld [vmem:[%s5245_s9 + $0x568] ss:$56 sps:$4 sm:$0xff]  }
 0x1bc   : > { %v4397_v5 = vpop.f32.mrf.mxu1  ;;  %3344 = vmatmul.mubr.bf16.gmra.mxu1 %v5139_v44  ;;  %v4509_v58 = vpop.f32.mrf.mxu0  ;;  %3505 = vmatmul.mubr.bf16.gmra.mxu0 %v5144_v53  ;;  %v5156_v1 = vld [vmem:[%s5245_s9 + $0x570] ss:$56 sps:$4 sm:$0xff]  }
 0x1bd   : > { %v2955_v7 = vadd.f32 %v4396_v63, %v5799_v38  ;;  %3351 = vmatprep.mubr.bf16.mxu1 %v5147_v30  ;;  %4026 = vmatprep.mubr.msk.bf16.mxu0 %vm2377_vm0, %v5148_v61 }
 0x1be   : > { %v4398_v25 = vpop.f32.mrf.mxu1  ;;  %v4510_v13 = vpop.f32.mrf.mxu0 }
 0x1bf   : > { %v5981_v20 = vadd.f32 %v4508_v52, %v2955_v7  ;;  %v4399_v54 = vadd.f32 %v4398_v25, %v4397_v5  ;;  %v4511_v47 = vadd.f32 %v4510_v13, %v4509_v58  ;;  %v5159_v52 = vld [vmem:[%s5245_s9 + $0x5dc] ss:$56 sps:$4 sm:$0xff]  }
 0x1c0   : > { %v4400_v23 = vpop.f32.mrf.mxu1  ;;  %v4512_v26 = vpop.f32.mrf.mxu0  ;;  %v5160_v5 = vld [vmem:[%s5245_s9 + $0x5e4] ss:$56 sps:$4 sm:$0xff]  }
 0x1c1   : > { %v2960_v36 = vadd.f32 %v4399_v54, %v5807_v0 }
 0x1c2   : > { %v4401_v34 = vpop.f32.mrf.mxu1  ;;  %v4513_v55 = vpop.f32.mrf.mxu0 }
 0x1c3   : > { %v5988_v38 = vadd.f32 %v4511_v47, %v2960_v36  ;;  %v4402_v45 = vadd.f32 %v4401_v34, %v4400_v23  ;;  %v4514_v27 = vadd.f32 %v4513_v55, %v4512_v26  ;;  %v5157_v34 = vld [vmem:[%s5245_s9 + $0x5d8] ss:$56 sps:$4 sm:$0xff]  }
 0x1c4   : > { %v4403_v43 = vpop.f32.mrf.mxu1  ;;  %3352 = vmatmul.mubr.bf16.gmra.mxu1 %v5145_v31  ;;  %v4515_v22 = vpop.f32.mrf.mxu0  ;;  %3513 = vmatmul.mubr.bf16.gmra.mxu0 %v5150_v28  ;;  %v5162_v55 = vld [vmem:[%s5245_s9 + $0x5e0] ss:$56 sps:$4 sm:$0xff]  }
 0x1c5   : > { %v2963_v16 = vadd.f32 %v4402_v45, %v5811_v17  ;;  %3359 = vmatprep.mubr.bf16.mxu1 %v5153_v62  ;;  %4027 = vmatprep.mubr.msk.bf16.mxu0 %vm2377_vm0, %v5154_v32 }
 0x1c6   : > { %v4404_v0 = vpop.f32.mrf.mxu1  ;;  %v4516_v50 = vpop.f32.mrf.mxu0 }
 0x1c7   : > { %v5992_v44 = vadd.f32 %v4514_v27, %v2963_v16  ;;  %v4405_v53 = vadd.f32 %v4404_v0, %v4403_v43  ;;  %v4517_v9 = vadd.f32 %v4516_v50, %v4515_v22  ;;  %v5165_v27 = vld [vmem:[%s5245_s9 + $0x64c] ss:$56 sps:$4 sm:$0xff]  }
 0x1c8   : > { %v4406_v30 = vpop.f32.mrf.mxu1  ;;  %v4518_v61 = vpop.f32.mrf.mxu0  ;;  %v5166_v43 = vld [vmem:[%s5245_s9 + $0x654] ss:$56 sps:$4 sm:$0xff]  }
 0x1c9   : > { %v2968_v63 = vadd.f32 %v4405_v53, %v5819_v41 }
 0x1ca   : > { %v4407_v58 = vpop.f32.mrf.mxu1  ;;  %v4519_v7 = vpop.f32.mrf.mxu0 }
 0x1cb   : > { %v5999_v17 = vadd.f32 %v4517_v9, %v2968_v63  ;;  %v4408_v25 = vadd.f32 %v4407_v58, %v4406_v30  ;;  %v4520_v13 = vadd.f32 %v4519_v7, %v4518_v61  ;;  %v5163_v58 = vld [vmem:[%s5245_s9 + $0x648] ss:$56 sps:$4 sm:$0xff]  }
 0x1cc   : > { %v4409_v54 = vpop.f32.mrf.mxu1  ;;  %3360 = vmatmul.mubr.bf16.gmra.mxu1 %v5151_v10  ;;  %v4521_v47 = vpop.f32.mrf.mxu0  ;;  %3521 = vmatmul.mubr.bf16.gmra.mxu0 %v5156_v1  ;;  %v5168_v7 = vld [vmem:[%s5245_s9 + $0x650] ss:$56 sps:$4 sm:$0xff]  }
 0x1cd   : > { %v2971_v23 = vadd.f32 %v4408_v25, %v5823_v56  ;;  %3367 = vmatprep.mubr.bf16.mxu1 %v5159_v52  ;;  %4028 = vmatprep.mubr.msk.bf16.mxu0 %vm2377_vm0, %v5160_v5 }
 0x1ce   : > { %v4410_v41 = vpop.f32.mrf.mxu1  ;;  %v4522_v26 = vpop.f32.mrf.mxu0 }
 0x1cf   : > { %v6003_v31 = vadd.f32 %v4520_v13, %v2971_v23  ;;  %v4411_v28 = vadd.f32 %v4410_v41, %v4409_v54  ;;  %v4523_v36 = vadd.f32 %v4522_v26, %v4521_v47  ;;  %v5171_v13 = vld [vmem:[%s5245_s9 + $0x6bc] ss:$56 sps:$4 sm:$0xff]  }
 0x1d0   : > { %v4412_v62 = vpop.f32.mrf.mxu1  ;;  %v4524_v32 = vpop.f32.mrf.mxu0  ;;  %v5172_v54 = vld [vmem:[%s5245_s9 + $0x6c4] ss:$56 sps:$4 sm:$0xff]  }
 0x1d1   : > { %v2976_v45 = vadd.f32 %v4411_v28, %v5831_v14 }
 0x1d2   : > { %v4413_v22 = vpop.f32.mrf.mxu1  ;;  %v4525_v16 = vpop.f32.mrf.mxu0 }
 0x1d3   : > { %v6010_v56 = vadd.f32 %v4523_v36, %v2976_v45  ;;  %v4414_v0 = vadd.f32 %v4413_v22, %v4412_v62  ;;  %v4526_v50 = vadd.f32 %v4525_v16, %v4524_v32  ;;  %v5169_v22 = vld [vmem:[%s5245_s9 + $0x6b8] ss:$56 sps:$4 sm:$0xff]  }
 0x1d4   : > { %v4415_v53 = vpop.f32.mrf.mxu1  ;;  %3368 = vmatmul.mubr.bf16.gmra.mxu1 %v5157_v34  ;;  %v4527_v9 = vpop.f32.mrf.mxu0  ;;  %3529 = vmatmul.mubr.bf16.gmra.mxu0 %v5162_v55  ;;  %v5174_v16 = vld [vmem:[%s5245_s9 + $0x6c0] ss:$56 sps:$4 sm:$0xff]   ;;  %s3681_s9 = sshll.u32 %s6167_s16, 3 }
 0x1d5   : > { %v2979_v30 = vadd.f32 %v4414_v0, %v5835_v33  ;;  %3375 = vmatprep.mubr.bf16.mxu1 %v5165_v27  ;;  %4029 = vmatprep.mubr.msk.bf16.mxu0 %vm2377_vm0, %v5166_v43  ;;  %s6094_s22 = scalar_lea.vmem %s6165_s3, %s3681_s9 }
 0x1d6   : > { %v4416_v14 = vpop.f32.mrf.mxu1  ;;  %v4528_v61 = vpop.f32.mrf.mxu0 }
 0x1d7   : > { %v6014_v10 = vadd.f32 %v4526_v50, %v2979_v30  ;;  %v4417_v1 = vadd.f32 %v4416_v14, %v4415_v53  ;;  %v4529_v63 = vadd.f32 %v4528_v61, %v4527_v9 }
 0x1d8   : > { %v4418_v52 = vpop.f32.mrf.mxu1  ;;  %v4530_v5 = vpop.f32.mrf.mxu0 }
 0x1d9   : > { %v2984_v25 = vadd.f32 %v4417_v1, %v5843_v19 }
 0x1da   : > { %v4419_v47 = vpop.f32.mrf.mxu1  ;;  %v4531_v23 = vpop.f32.mrf.mxu0 }
 0x1db   : > { %v6021_v33 = vadd.f32 %v4529_v63, %v2984_v25  ;;  %v4420_v41 = vadd.f32 %v4419_v47, %v4418_v52  ;;  %v4532_v26 = vadd.f32 %v4531_v23, %v4530_v5 }
 0x1dc   : > { %v4421_v28 = vpop.f32.mrf.mxu1  ;;  %3376 = vmatmul.mubr.bf16.gmra.mxu1 %v5163_v58  ;;  %v4533_v36 = vpop.f32.mrf.mxu0  ;;  %3537 = vmatmul.mubr.bf16.gmra.mxu0 %v5168_v7 }
 0x1dd   : > { %v2987_v62 = vadd.f32 %v4420_v41, %v5847_v12  ;;  %3383 = vmatprep.mubr.bf16.mxu1 %v5171_v13  ;;  %4030 = vmatprep.mubr.msk.bf16.mxu0 %vm2377_vm0, %v5172_v54 }
 0x1de   : > { %v4422_v19 = vpop.f32.mrf.mxu1  ;;  %v4534_v32 = vpop.f32.mrf.mxu0 }
 0x1df   : > { %v6025_v34 = vadd.f32 %v4532_v26, %v2987_v62  ;;  %v4423_v55 = vadd.f32 %v4422_v19, %v4421_v28  ;;  %v4535_v45 = vadd.f32 %v4534_v32, %v4533_v36 }
 0x1e0   : > { %v4424_v27 = vpop.f32.mrf.mxu1  ;;  %v4536_v43 = vpop.f32.mrf.mxu0 }
 0x1e1   : > { %v2992_v0 = vadd.f32 %v4423_v55, %v5855_v42 }
 0x1e2   : > { %v4425_v50 = vpop.f32.mrf.mxu1  ;;  %v4537_v53 = vpop.f32.mrf.mxu0 }
 0x1e3   : > { %v6030_v9 = vadd.f32 %v4535_v45, %v2992_v0  ;;  %v4426_v12 = vadd.f32 %v4425_v50, %v4424_v27  ;;  %v4538_v30 = vadd.f32 %v4537_v53, %v4536_v43 }
 0x1e4   : > { %v4427_v14 = vpop.f32.mrf.mxu1  ;;  %3384 = vmatmul.mubr.bf16.gmra.mxu1 %v5169_v22  ;;  %v4539_v61 = vpop.f32.mrf.mxu0  ;;  %3545 = vmatmul.mubr.bf16.gmra.mxu0 %v5174_v16 }
 0x1e5   : > { %v2995_v1 = vadd.f32 %v4426_v12, %v5860_v51 }
 0x1e6   : > { %v4428_v63 = vpop.f32.mrf.mxu1  ;;  %v4540_v52 = vpop.f32.mrf.mxu0 }
 0x1e7   : > { %v6033_v5 = vadd.f32 %v4538_v30, %v2995_v1  ;;  %v4429_v58 = vadd.f32 %v4428_v63, %v4427_v14  ;;  %v4541_v7 = vadd.f32 %v4540_v52, %v4539_v61 }
 0x1e8   : > { %v4430_v25 = vpop.f32.mrf.mxu1  ;;  %v4542_v42 = vpop.f32.mrf.mxu0 }
 0x1e9   : > { %v3000_v13 = vadd.f32 %v4429_v58, %v5868_v3 }
 0x1ea   : > { %v4431_v54 = vpop.f32.mrf.mxu1  ;;  %v4543_v47 = vpop.f32.mrf.mxu0 }
 0x1eb   : > { %v6036_v23 = vadd.f32 %v4541_v7, %v3000_v13  ;;  %v4432_v41 = vadd.f32 %v4431_v54, %v4430_v25  ;;  %v4544_v26 = vadd.f32 %v4543_v47, %v4542_v42 }
 0x1ec   : > { %v4433_v28 = vpop.f32.mrf.mxu1  ;;  %v4545_v36 = vpop.f32.mrf.mxu0 }
 0x1ed   : > { %v3003_v51 = vadd.f32 %v4432_v41, %v5871_v29 }
 0x1ee   : > { %v4434_v62 = vpop.f32.mrf.mxu1  ;;  %v4546_v19 = vpop.f32.mrf.mxu0 }
 0x1ef   : > { %v6039_v32 = vadd.f32 %v4544_v26, %v3003_v51  ;;  %v4435_v55 = vadd.f32 %v4434_v62, %v4433_v28  ;;  %v4547_v45 = vadd.f32 %v4546_v19, %v4545_v36 }
 0x1f0   : > { %v4436_v27 = vpop.f32.mrf.mxu1  ;;  %v4548_v43 = vpop.f32.mrf.mxu0 }
 0x1f1   : > { %v3008_v3 = vadd.f32 %v4435_v55, %v5878_v6 }
 0x1f2   : > { %v4437_v22 = vpop.f32.mrf.mxu1  ;;  %v4549_v16 = vpop.f32.mrf.mxu0 }
 0x1f3   : > { %v6042_v0 = vadd.f32 %v4547_v45, %v3008_v3  ;;  %v4438_v50 = vadd.f32 %v4437_v22, %v4436_v27  ;;  %v4550_v53 = vadd.f32 %v4549_v16, %v4548_v43 }
 0x1f4   : > { %v4439_v12 = vpop.f32.mrf.mxu1  ;;  %v4551_v30 = vpop.f32.mrf.mxu0 }
 0x1f5   : > { %v3011_v29 = vadd.f32 %v4438_v50, %v5882_v2 }
 0x1f6   : > { %v4440_v14 = vpop.f32.mrf.mxu1  ;;  %v4552_v61 = vpop.f32.mrf.mxu0 }
 0x1f7   : > { %v6045_v1 = vadd.f32 %v4550_v53, %v3011_v29  ;;  %v4441_v63 = vadd.f32 %v4440_v14, %v4439_v12  ;;  %v4553_v52 = vadd.f32 %v4552_v61, %v4551_v30 }
 0x1f8   : > { %v4442_v58 = vpop.f32.mrf.mxu1  ;;  %v4554_v7 = vpop.f32.mrf.mxu0 }
 0x1f9   : > { %v3016_v6 = vadd.f32 %v4441_v63, %v5889_v24 }
 0x1fa   : > { %v4443_v25 = vpop.f32.mrf.mxu1  ;;  %v4555_v42 = vpop.f32.mrf.mxu0 }
 0x1fb   : > { %v6048_v13 = vadd.f32 %v4553_v52, %v3016_v6  ;;  %v4444_v54 = vadd.f32 %v4443_v25, %v4442_v58  ;;  %v4556_v47 = vadd.f32 %v4555_v42, %v4554_v7 }
 0x1fc   : > { %v4445_v41 = vpop.f32.mrf.mxu1  ;;  %v4557_v26 = vpop.f32.mrf.mxu0 }
 0x1fd   : > { %v3019_v2 = vadd.f32 %v4444_v54, %v5893_v37 }
 0x1fe   : > { %v4446_v28 = vpop.f32.mrf.mxu1  ;;  %v4558_v36 = vpop.f32.mrf.mxu0 }
 0x1ff   : > { %v6051_v51 = vadd.f32 %v4556_v47, %v3019_v2  ;;  %v4447_v62 = vadd.f32 %v4446_v28, %v4445_v41  ;;  %v4559_v19 = vadd.f32 %v4558_v36, %v4557_v26 }
 0x200   : > { %v4448_v55 = vpop.f32.mrf.mxu1  ;;  %v4560_v45 = vpop.f32.mrf.mxu0 }
 0x201   : > { %v3024_v24 = vadd.f32 %v4447_v62, %v5900_v46 }
 0x202   : > { %v4449_v27 = vpop.f32.mrf.mxu1  ;;  %v4561_v43 = vpop.f32.mrf.mxu0 }
 0x203   : > { %v6054_v3 = vadd.f32 %v4559_v19, %v3024_v24  ;;  %v4450_v22 = vadd.f32 %v4449_v27, %v4448_v55  ;;  %v4562_v16 = vadd.f32 %v4561_v43, %v4560_v45 }
 0x204   : > { %v4451_v50 = vpop.f32.mrf.mxu1  ;;  %v4563_v53 = vpop.f32.mrf.mxu0 }
 0x205   : > { %v3027_v37 = vadd.f32 %v4450_v22, %v5904_v18 }
 0x206   : > { %v4452_v12 = vpop.f32.mrf.mxu1  ;;  %v4564_v30 = vpop.f32.mrf.mxu0 }
 0x207   : > { %v6057_v29 = vadd.f32 %v4562_v16, %v3027_v37  ;;  %v4453_v14 = vadd.f32 %v4452_v12, %v4451_v50  ;;  %v4565_v61 = vadd.f32 %v4564_v30, %v4563_v53 }
 0x208   : > { %v4454_v63 = vpop.f32.mrf.mxu1  ;;  %v4566_v52 = vpop.f32.mrf.mxu0 }
 0x209   : > { %v3032_v46 = vadd.f32 %v4453_v14, %v5911_v8 }
 0x20a   : > { %v4455_v58 = vpop.f32.mrf.mxu1  ;;  %v4567_v7 = vpop.f32.mrf.mxu0 }
 0x20b   : > { %v6060_v6 = vadd.f32 %v4565_v61, %v3032_v46  ;;  %v4456_v25 = vadd.f32 %v4455_v58, %v4454_v63  ;;  %v4568_v42 = vadd.f32 %v4567_v7, %v4566_v52 }
 0x20c   : > { %v4457_v54 = vpop.f32.mrf.mxu1  ;;  %v4569_v47 = vpop.f32.mrf.mxu0 }
 0x20d   : > { %v3035_v18 = vadd.f32 %v4456_v25, %v5915_v48 }
 0x20e   : > { %v4458_v41 = vpop.f32.mrf.mxu1  ;;  %v4570_v26 = vpop.f32.mrf.mxu0 }
 0x20f   : > { %v6063_v2 = vadd.f32 %v4568_v42, %v3035_v18  ;;  %v4459_v28 = vadd.f32 %v4458_v41, %v4457_v54  ;;  %v4571_v36 = vadd.f32 %v4570_v26, %v4569_v47 }
 0x210   : > { %v4460_v62 = vpop.f32.mrf.mxu1  ;;  %v4572_v19 = vpop.f32.mrf.mxu0 }
 0x211   : > { %v3040_v8 = vadd.f32 %v4459_v28, %v5922_v35 }
 0x212   : > { %v4461_v55 = vpop.f32.mrf.mxu1  ;;  %v4573_v45 = vpop.f32.mrf.mxu0 }
 0x213   : > { %v6066_v24 = vadd.f32 %v4571_v36, %v3040_v8  ;;  %v4462_v27 = vadd.f32 %v4461_v55, %v4460_v62  ;;  %v4574_v43 = vadd.f32 %v4573_v45, %v4572_v19 }
 0x214   : > { %v4463_v22 = vpop.f32.mrf.mxu1  ;;  %v4575_v16 = vpop.f32.mrf.mxu0 }
 0x215   : > { %v3043_v48 = vadd.f32 %v4462_v27, %v5926_v40 }
 0x216   : > { %v4464_v50 = vpop.f32.mrf.mxu1  ;;  %v4576_v53 = vpop.f32.mrf.mxu0 }
 0x217   : > { %v6069_v37 = vadd.f32 %v4574_v43, %v3043_v48  ;;  %v4465_v12 = vadd.f32 %v4464_v50, %v4463_v22  ;;  %v4577_v30 = vadd.f32 %v4576_v53, %v4575_v16 }
 0x218   : > { %v4466_v14 = vpop.f32.mrf.mxu1  ;;  %v4578_v61 = vpop.f32.mrf.mxu0 }
 0x219   : > { %v3048_v35 = vadd.f32 %v4465_v12, %v5933_v59 }
 0x21a   : > { %v4467_v63 = vpop.f32.mrf.mxu1  ;;  %v4579_v52 = vpop.f32.mrf.mxu0 }
 0x21b   : > { %v6072_v46 = vadd.f32 %v4577_v30, %v3048_v35  ;;  %v4468_v58 = vadd.f32 %v4467_v63, %v4466_v14  ;;  %v4580_v7 = vadd.f32 %v4579_v52, %v4578_v61 }
 0x21c   : > { %v4469_v25 = vpop.f32.mrf.mxu1  ;;  %v4581_v42 = vpop.f32.mrf.mxu0 }
 0x21d   : > { %v3051_v40 = vadd.f32 %v4468_v58, %v5937_v57 }
 0x21e   : > { %v4470_v54 = vpop.f32.mrf.mxu1  ;;  %v4582_v47 = vpop.f32.mrf.mxu0 }
 0x21f   : > { %v6075_v18 = vadd.f32 %v4580_v7, %v3051_v40  ;;  %v4471_v41 = vadd.f32 %v4470_v54, %v4469_v25  ;;  %v4583_v26 = vadd.f32 %v4582_v47, %v4581_v42 }
 0x220   : > { %v4472_v28 = vpop.f32.mrf.mxu1  ;;  %v4584_v36 = vpop.f32.mrf.mxu0 }
 0x221   : > { %v3056_v59 = vadd.f32 %v4471_v41, %v5944_v21 }
 0x222   : > { %v4473_v62 = vpop.f32.mrf.mxu1  ;;  %v4585_v19 = vpop.f32.mrf.mxu0 }
 0x223   : > { %v6078_v8 = vadd.f32 %v4583_v26, %v3056_v59  ;;  %v4474_v55 = vadd.f32 %v4473_v62, %v4472_v28  ;;  %v4586_v45 = vadd.f32 %v4585_v19, %v4584_v36 }
 0x224   : > { %v4475_v27 = vpop.f32.mrf.mxu1  ;;  %v4587_v43 = vpop.f32.mrf.mxu0 }
 0x225   : > { %v3059_v57 = vadd.f32 %v4474_v55, %v5948_v11 }
 0x226   : > { %v4476_v22 = vpop.f32.mrf.mxu1  ;;  %v4588_v16 = vpop.f32.mrf.mxu0 }
 0x227   : > { %v6081_v48 = vadd.f32 %v4586_v45, %v3059_v57  ;;  %v4477_v50 = vadd.f32 %v4476_v22, %v4475_v27  ;;  %v4589_v53 = vadd.f32 %v4588_v16, %v4587_v43 }
 0x228   : > { %v4478_v12 = vpop.f32.mrf.mxu1  ;;  %v4590_v30 = vpop.f32.mrf.mxu0 }
 0x229   : > { %v3064_v21 = vadd.f32 %v4477_v50, %v5955_v49 }
 0x22a   : > { %v4479_v14 = vpop.f32.mrf.mxu1  ;;  %v4591_v61 = vpop.f32.mrf.mxu0 }
 0x22b   : > { %v6084_v35 = vadd.f32 %v4589_v53, %v3064_v21  ;;  %v4480_v63 = vadd.f32 %v4479_v14, %v4478_v12  ;;  %v4592_v52 = vadd.f32 %v4591_v61, %v4590_v30 }
 0x22c   : > { %v4609_v58 = vpop.f32.mrf.mxu1  ;;  %v3426_v7 = vpop.f32.mrf.mxu0 }
 0x22d   : > { %v3067_v11 = vadd.f32 %v4480_v63, %v5959_v4 }
 0x22e   : > { %v4610_v25 = vpop.f32.mrf.mxu1  ;;  %v3428_v42 = vpop.f32.mrf.mxu0 }
 0x22f   : > { %v6087_v40 = vadd.f32 %v4592_v52, %v3067_v11  ;;  %v4611_v54 = vadd.f32 %v4610_v25, %v4609_v58 }
 0x230   : > { %v4612_v47 = vpop.f32.mrf.mxu1  ;;  %v3429_v41 = vpop.f32.mrf.mxu0 }
 0x231   : > { %v3266_v49 = vadd.f32 %v4611_v54, %v5966_v15 }
 0x232   : > { %v4613_v26 = vpop.f32.mrf.mxu1  ;;  %v3431_v28 = vpop.f32.mrf.mxu0 }
 0x233   : > { %v3427_v36 = vadd.f32 %v3426_v7, %v3266_v49  ;;  %v4614_v59 = vadd.f32 %v4613_v26, %v4612_v47 }
 0x234   : > { %v4615_v4 = vpop.f32.mrf.mxu1  ;;  %v3434_v62 = vpop.f32.mrf.mxu0 }
 0x235   : > { %v3553_v19 = vmax.f32 %v3427_v36, 0.0  ;;  %v3269_v55 = vadd.f32 %v4614_v59, %v5970_v39 }
 0x236   : > { %v4616_v45 = vpop.f32.mrf.mxu1  ;;  %v3436_v27 = vpop.f32.mrf.mxu0 }
 0x237   : > { %3585 = vst [vmem:[%s6094_s22] sm:$0xff] %v3553_v19  ;;  %v3430_v15 = vadd.f32 %v3429_v41, %v3269_v55  ;;  %v4617_v43 = vadd.f32 %v4616_v45, %v4615_v4 }
 0x238   : > { %v4618_v57 = vpop.f32.mrf.mxu1  ;;  %v3437_v22 = vpop.f32.mrf.mxu0 }
 0x239   : > { %v3554_v16 = vmax.f32 %v3430_v15, 0.0  ;;  %v3274_v50 = vadd.f32 %v4617_v43, %v5977_v60 }
 0x23a   : > { %v4619_v53 = vpop.f32.mrf.mxu1  ;;  %v3439_v12 = vpop.f32.mrf.mxu0 }
 0x23b   : > { %3586 = vst [vmem:[%s6094_s22 + $0x8] sm:$0xff] %v3554_v16  ;;  %v3435_v30 = vadd.f32 %v3434_v62, %v3274_v50  ;;  %v4620_v21 = vadd.f32 %v4619_v53, %v4618_v57 }
 0x23c   : > { %v4621_v14 = vpop.f32.mrf.mxu1  ;;  %v3442_v61 = vpop.f32.mrf.mxu0 }
 0x23d   : > { %v3555_v39 = vmax.f32 %v3435_v30, 0.0  ;;  %v3277_v63 = vadd.f32 %v4620_v21, %v5981_v20 }
 0x23e   : > { %v4622_v52 = vpop.f32.mrf.mxu1  ;;  %v3444_v58 = vpop.f32.mrf.mxu0 }
 0x23f   : > { %3587 = vst [vmem:[%s6094_s22 + $0x10] sm:$0xff] %v3555_v39  ;;  %v3438_v7 = vadd.f32 %v3437_v22, %v3277_v63  ;;  %v4623_v11 = vadd.f32 %v4622_v52, %v4621_v14 }
 0x240   : > { %v4624_v25 = vpop.f32.mrf.mxu1  ;;  %v3445_v42 = vpop.f32.mrf.mxu0 }
 0x241   : > { %v3556_v60 = vmax.f32 %v3438_v7, 0.0  ;;  %v3282_v54 = vadd.f32 %v4623_v11, %v5988_v38 }
 0x242   : > { %v4625_v47 = vpop.f32.mrf.mxu1  ;;  %v3447_v41 = vpop.f32.mrf.mxu0 }
 0x243   : > { %3588 = vst [vmem:[%s6094_s22 + $0x18] sm:$0xff] %v3556_v60  ;;  %v3443_v49 = vadd.f32 %v3442_v61, %v3282_v54  ;;  %v4626_v26 = vadd.f32 %v4625_v47, %v4624_v25 }
 0x244   : > { %v4627_v28 = vpop.f32.mrf.mxu1  ;;  %v3450_v36 = vpop.f32.mrf.mxu0 }
 0x245   : > { %v3557_v20 = vmax.f32 %v3443_v49, 0.0  ;;  %v3285_v59 = vadd.f32 %v4626_v26, %v5992_v44 }
 0x246   : > { %v4628_v4 = vpop.f32.mrf.mxu1  ;;  %v3452_v62 = vpop.f32.mrf.mxu0 }
 0x247   : > { %3589 = vst [vmem:[%s6094_s22 + $0x20] sm:$0xff] %v3557_v20  ;;  %v3446_v19 = vadd.f32 %v3445_v42, %v3285_v59  ;;  %v4629_v55 = vadd.f32 %v4628_v4, %v4627_v28 }
 0x248   : > { %v4630_v45 = vpop.f32.mrf.mxu1  ;;  %v3453_v27 = vpop.f32.mrf.mxu0 }
 0x249   : > { %v3558_v38 = vmax.f32 %v3446_v19, 0.0  ;;  %v3290_v15 = vadd.f32 %v4629_v55, %v5999_v17 }
 0x24a   : > { %v4631_v43 = vpop.f32.mrf.mxu1  ;;  %v3455_v57 = vpop.f32.mrf.mxu0 }
 0x24b   : > { %3590 = vst [vmem:[%s6094_s22 + $0x28] sm:$0xff] %v3558_v38  ;;  %v3451_v22 = vadd.f32 %v3450_v36, %v3290_v15  ;;  %v4632_v16 = vadd.f32 %v4631_v43, %v4630_v45 }
 0x24c   : > { %v4633_v50 = vpop.f32.mrf.mxu1  ;;  %v3458_v53 = vpop.f32.mrf.mxu0 }
 0x24d   : > { %v3559_v44 = vmax.f32 %v3451_v22, 0.0  ;;  %v3293_v12 = vadd.f32 %v4632_v16, %v6003_v31 }
 0x24e   : > { %v4634_v30 = vpop.f32.mrf.mxu1  ;;  %v3460_v21 = vpop.f32.mrf.mxu0 }
 0x24f   : > { %3591 = vst [vmem:[%s6094_s22 + $0x30] sm:$0xff] %v3559_v44  ;;  %v3454_v14 = vadd.f32 %v3453_v27, %v3293_v12  ;;  %v4635_v61 = vadd.f32 %v4634_v30, %v4633_v50 }
 0x250   : > { %v4636_v39 = vpop.f32.mrf.mxu1  ;;  %v3461_v63 = vpop.f32.mrf.mxu0 }
 0x251   : > { %v3560_v17 = vmax.f32 %v3454_v14, 0.0  ;;  %v3298_v52 = vadd.f32 %v4635_v61, %v6010_v56 }
 0x252   : > { %v4637_v58 = vpop.f32.mrf.mxu1  ;;  %v3463_v7 = vpop.f32.mrf.mxu0 }
 0x253   : > { %3592 = vst [vmem:[%s6094_s22 + $0x38] sm:$0xff] %v3560_v17  ;;  %v3459_v11 = vadd.f32 %v3458_v53, %v3298_v52  ;;  %v4638_v25 = vadd.f32 %v4637_v58, %v4636_v39 }
 0x254   : > { %v4639_v42 = vpop.f32.mrf.mxu1  ;;  %v3466_v60 = vpop.f32.mrf.mxu0 }
 0x255   : > { %v3561_v31 = vmax.f32 %v3459_v11, 0.0  ;;  %v3301_v54 = vadd.f32 %v4638_v25, %v6014_v10 }
 0x256   : > { %v4640_v47 = vpop.f32.mrf.mxu1  ;;  %v3468_v41 = vpop.f32.mrf.mxu0 }
 0x257   : > { %3593 = vst [vmem:[%s6094_s22 + $0x40] sm:$0xff] %v3561_v31  ;;  %v3462_v49 = vadd.f32 %v3461_v63, %v3301_v54  ;;  %v4641_v26 = vadd.f32 %v4640_v47, %v4639_v42 }
 0x258   : > { %v4642_v28 = vpop.f32.mrf.mxu1  ;;  %v3469_v36 = vpop.f32.mrf.mxu0 }
 0x259   : > { %v3562_v56 = vmax.f32 %v3462_v49, 0.0  ;;  %v3306_v20 = vadd.f32 %v4641_v26, %v6021_v33 }
 0x25a   : > { %v4643_v59 = vpop.f32.mrf.mxu1  ;;  %v3471_v4 = vpop.f32.mrf.mxu0 }
 0x25b   : > { %3594 = vst [vmem:[%s6094_s22 + $0x48] sm:$0xff] %v3562_v56  ;;  %v3467_v62 = vadd.f32 %v3466_v60, %v3306_v20  ;;  %v4644_v19 = vadd.f32 %v4643_v59, %v4642_v28 }
 0x25c   : > { %v4645_v55 = vpop.f32.mrf.mxu1  ;;  %v3474_v45 = vpop.f32.mrf.mxu0 }
 0x25d   : > { %v3563_v10 = vmax.f32 %v3467_v62, 0.0  ;;  %v3309_v27 = vadd.f32 %v4644_v19, %v6025_v34 }
 0x25e   : > { %v4646_v38 = vpop.f32.mrf.mxu1  ;;  %v3476_v15 = vpop.f32.mrf.mxu0 }
 0x25f   : > { %3595 = vst [vmem:[%s6094_s22 + $0x50] sm:$0xff] %v3563_v10  ;;  %v3470_v43 = vadd.f32 %v3469_v36, %v3309_v27  ;;  %v4647_v57 = vadd.f32 %v4646_v38, %v4645_v55 }
 0x260   : > { %v4648_v22 = vpop.f32.mrf.mxu1  ;;  %v3477_v16 = vpop.f32.mrf.mxu0 }
 0x261   : > { %v3564_v33 = vmax.f32 %v3470_v43, 0.0  ;;  %v3314_v50 = vadd.f32 %v4647_v57, %v6030_v9 }
 0x262   : > { %v4649_v53 = vpop.f32.mrf.mxu1  ;;  %v3479_v44 = vpop.f32.mrf.mxu0 }
 0x263   : > { %3596 = vst [vmem:[%s6094_s22 + $0x58] sm:$0xff] %v3564_v33  ;;  %v3475_v12 = vadd.f32 %v3474_v45, %v3314_v50  ;;  %v4650_v30 = vadd.f32 %v4649_v53, %v4648_v22 }
 0x264   : > { %v4651_v21 = vpop.f32.mrf.mxu1  ;;  %v3482_v14 = vpop.f32.mrf.mxu0 }
 0x265   : > { %v3565_v34 = vmax.f32 %v3475_v12, 0.0  ;;  %v3317_v61 = vadd.f32 %v4650_v30, %v6033_v5 }
 0x266   : > { %v4652_v39 = vpop.f32.mrf.mxu1  ;;  %v3484_v63 = vpop.f32.mrf.mxu0 }
 0x267   : > { %3597 = vst [vmem:[%s6094_s22 + $0x60] sm:$0xff] %v3565_v34  ;;  %v3478_v17 = vadd.f32 %v3477_v16, %v3317_v61  ;;  %v4653_v52 = vadd.f32 %v4652_v39, %v4651_v21 }
 0x268   : > { %v4654_v58 = vpop.f32.mrf.mxu1  ;;  %v3485_v7 = vpop.f32.mrf.mxu0 }
 0x269   : > { %v3566_v9 = vmax.f32 %v3478_v17, 0.0  ;;  %v3322_v11 = vadd.f32 %v4653_v52, %v6036_v23 }
 0x26a   : > { %v4655_v25 = vpop.f32.mrf.mxu1  ;;  %v3487_v42 = vpop.f32.mrf.mxu0 }
 0x26b   : > { %3598 = vst [vmem:[%s6094_s22 + $0x68] sm:$0xff] %v3566_v9  ;;  %v3483_v60 = vadd.f32 %v3482_v14, %v3322_v11  ;;  %v4656_v31 = vadd.f32 %v4655_v25, %v4654_v58 }
 0x26c   : > { %v4657_v54 = vpop.f32.mrf.mxu1  ;;  %v3490_v47 = vpop.f32.mrf.mxu0 }
 0x26d   : > { %v3567_v5 = vmax.f32 %v3483_v60, 0.0  ;;  %v3325_v41 = vadd.f32 %v4656_v31, %v6039_v32 }
 0x26e   : > { %v4658_v49 = vpop.f32.mrf.mxu1  ;;  %v3492_v26 = vpop.f32.mrf.mxu0 }
 0x26f   : > { %3599 = vst [vmem:[%s6094_s22 + $0x70] sm:$0xff] %v3567_v5  ;;  %v3486_v28 = vadd.f32 %v3485_v7, %v3325_v41  ;;  %v4659_v36 = vadd.f32 %v4658_v49, %v4657_v54 }
 0x270   : > { %v4660_v56 = vpop.f32.mrf.mxu1  ;;  %v3493_v20 = vpop.f32.mrf.mxu0 }
 0x271   : > { %v3568_v23 = vmax.f32 %v3486_v28, 0.0  ;;  %v3330_v59 = vadd.f32 %v4659_v36, %v6042_v0 }
 0x272   : > { %v4661_v4 = vpop.f32.mrf.mxu1  ;;  %v3495_v62 = vpop.f32.mrf.mxu0 }
 0x273   : > { %3600 = vst [vmem:[%s6094_s22 + $0x78] sm:$0xff] %v3568_v23  ;;  %v3491_v19 = vadd.f32 %v3490_v47, %v3330_v59  ;;  %v4662_v55 = vadd.f32 %v4661_v4, %v4660_v56 }
 0x274   : > { %v4663_v45 = vpop.f32.mrf.mxu1  ;;  %v3498_v10 = vpop.f32.mrf.mxu0 }
 0x275   : > { %v3569_v32 = vmax.f32 %v3491_v19, 0.0  ;;  %v3333_v27 = vadd.f32 %v4662_v55, %v6045_v1 }
 0x276   : > { %v4664_v38 = vpop.f32.mrf.mxu1  ;;  %v3500_v15 = vpop.f32.mrf.mxu0 }
 0x277   : > { %3601 = vst [vmem:[%s6094_s22 + $0x80] sm:$0xff] %v3569_v32  ;;  %v3494_v43 = vadd.f32 %v3493_v20, %v3333_v27  ;;  %v4665_v57 = vadd.f32 %v4664_v38, %v4663_v45 }
 0x278   : > { %v4666_v22 = vpop.f32.mrf.mxu1  ;;  %v3501_v16 = vpop.f32.mrf.mxu0 }
 0x279   : > { %v3570_v0 = vmax.f32 %v3494_v43, 0.0  ;;  %v3338_v33 = vadd.f32 %v4665_v57, %v6048_v13 }
 0x27a   : > { %v4667_v50 = vpop.f32.mrf.mxu1  ;;  %v3503_v53 = vpop.f32.mrf.mxu0 }
 0x27b   : > { %3602 = vst [vmem:[%s6094_s22 + $0x88] sm:$0xff] %v3570_v0  ;;  %v3499_v44 = vadd.f32 %v3498_v10, %v3338_v33  ;;  %v4668_v12 = vadd.f32 %v4667_v50, %v4666_v22 }
 0x27c   : > { %v4669_v30 = vpop.f32.mrf.mxu1  ;;  %v3506_v21 = vpop.f32.mrf.mxu0 }
 0x27d   : > { %v3571_v1 = vmax.f32 %v3499_v44, 0.0  ;;  %v3341_v14 = vadd.f32 %v4668_v12, %v6051_v51 }
 0x27e   : > { %v4670_v34 = vpop.f32.mrf.mxu1  ;;  %v3508_v61 = vpop.f32.mrf.mxu0 }
 0x27f   : > { %3603 = vst [vmem:[%s6094_s22 + $0x90] sm:$0xff] %v3571_v1  ;;  %v3502_v39 = vadd.f32 %v3501_v16, %v3341_v14  ;;  %v4671_v63 = vadd.f32 %v4670_v34, %v4669_v30 }
 0x280   : > { %v4672_v17 = vpop.f32.mrf.mxu1  ;;  %v3509_v52 = vpop.f32.mrf.mxu0 }
 0x281   : > { %v3572_v13 = vmax.f32 %v3502_v39, 0.0  ;;  %v3346_v58 = vadd.f32 %v4671_v63, %v6054_v3 }
 0x282   : > { %v4673_v7 = vpop.f32.mrf.mxu1  ;;  %v3511_v9 = vpop.f32.mrf.mxu0 }
 0x283   : > { %3604 = vst [vmem:[%s6094_s22 + $0x98] sm:$0xff] %v3572_v13  ;;  %v3507_v11 = vadd.f32 %v3506_v21, %v3346_v58  ;;  %v4674_v25 = vadd.f32 %v4673_v7, %v4672_v17 }
 0x284   : > { %v4675_v42 = vpop.f32.mrf.mxu1  ;;  %v3514_v60 = vpop.f32.mrf.mxu0 }
 0x285   : > { %v3573_v51 = vmax.f32 %v3507_v11, 0.0  ;;  %v3349_v31 = vadd.f32 %v4674_v25, %v6057_v29 }
 0x286   : > { %v4676_v54 = vpop.f32.mrf.mxu1  ;;  %v3516_v47 = vpop.f32.mrf.mxu0 }
 0x287   : > { %3605 = vst [vmem:[%s6094_s22 + $0xa0] sm:$0xff] %v3573_v51  ;;  %v3510_v5 = vadd.f32 %v3509_v52, %v3349_v31  ;;  %v4677_v41 = vadd.f32 %v4676_v54, %v4675_v42 }
 0x288   : > { %v4678_v49 = vpop.f32.mrf.mxu1  ;;  %v3517_v26 = vpop.f32.mrf.mxu0 }
 0x289   : > { %v3574_v3 = vmax.f32 %v3510_v5, 0.0  ;;  %v3354_v28 = vadd.f32 %v4677_v41, %v6060_v6 }
 0x28a   : > { %v4679_v36 = vpop.f32.mrf.mxu1  ;;  %v3519_v56 = vpop.f32.mrf.mxu0 }
 0x28b   : > { %3606 = vst [vmem:[%s6094_s22 + $0xa8] sm:$0xff] %v3574_v3  ;;  %v3515_v20 = vadd.f32 %v3514_v60, %v3354_v28  ;;  %v4680_v23 = vadd.f32 %v4679_v36, %v4678_v49 }
 0x28c   : > { %v4681_v59 = vpop.f32.mrf.mxu1  ;;  %v3522_v4 = vpop.f32.mrf.mxu0 }
 0x28d   : > { %v3575_v29 = vmax.f32 %v3515_v20, 0.0  ;;  %v3357_v62 = vadd.f32 %v4680_v23, %v6063_v2 }
 0x28e   : > { %v4682_v19 = vpop.f32.mrf.mxu1  ;;  %v3524_v55 = vpop.f32.mrf.mxu0 }
 0x28f   : > { %3607 = vst [vmem:[%s6094_s22 + $0xb0] sm:$0xff] %v3575_v29  ;;  %v3518_v45 = vadd.f32 %v3517_v26, %v3357_v62  ;;  %v4683_v10 = vadd.f32 %v4682_v19, %v4681_v59 }
 0x290   : > { %v4684_v32 = vpop.f32.mrf.mxu1  ;;  %v3525_v27 = vpop.f32.mrf.mxu0 }
 0x291   : > { %v3576_v6 = vmax.f32 %v3518_v45, 0.0  ;;  %v3362_v38 = vadd.f32 %v4683_v10, %v6066_v24 }
 0x292   : > { %v4685_v15 = vpop.f32.mrf.mxu1  ;;  %v3527_v43 = vpop.f32.mrf.mxu0 }
 0x293   : > { %3608 = vst [vmem:[%s6094_s22 + $0xb8] sm:$0xff] %v3576_v6  ;;  %v3523_v57 = vadd.f32 %v3522_v4, %v3362_v38  ;;  %v4686_v22 = vadd.f32 %v4685_v15, %v4684_v32 }
 0x294   : > { %v4687_v16 = vpop.f32.mrf.mxu1  ;;  %v3530_v0 = vpop.f32.mrf.mxu0 }
 0x295   : > { %v3577_v2 = vmax.f32 %v3523_v57, 0.0  ;;  %v3365_v33 = vadd.f32 %v4686_v22, %v6069_v37 }
 0x296   : > { %v4688_v50 = vpop.f32.mrf.mxu1  ;;  %v3532_v53 = vpop.f32.mrf.mxu0 }
 0x297   : > { %3609 = vst [vmem:[%s6094_s22 + $0xc0] sm:$0xff] %v3577_v2  ;;  %v3526_v44 = vadd.f32 %v3525_v27, %v3365_v33  ;;  %v4689_v12 = vadd.f32 %v4688_v50, %v4687_v16 }
 0x298   : > { %v4690_v30 = vpop.f32.mrf.mxu1  ;;  %v3533_v21 = vpop.f32.mrf.mxu0 }
 0x299   : > { %v3578_v24 = vmax.f32 %v3526_v44, 0.0  ;;  %v3370_v1 = vadd.f32 %v4689_v12, %v6072_v46 }
 0x29a   : > { %v4691_v14 = vpop.f32.mrf.mxu1  ;;  %v3535_v34 = vpop.f32.mrf.mxu0 }
 0x29b   : > { %3610 = vst [vmem:[%s6094_s22 + $0xc8] sm:$0xff] %v3578_v24  ;;  %v3531_v61 = vadd.f32 %v3530_v0, %v3370_v1  ;;  %v4692_v39 = vadd.f32 %v4691_v14, %v4690_v30 }
 0x29c   : > { %v4693_v63 = vpop.f32.mrf.mxu1  ;;  %v3538_v17 = vpop.f32.mrf.mxu0 }
 0x29d   : > { %v3579_v37 = vmax.f32 %v3531_v61, 0.0  ;;  %v3373_v52 = vadd.f32 %v4692_v39, %v6075_v18 }
 0x29e   : > { %v4694_v13 = vpop.f32.mrf.mxu1  ;;  %v3540_v58 = vpop.f32.mrf.mxu0 }
 0x29f   : > { %3611 = vst [vmem:[%s6094_s22 + $0xd0] sm:$0xff] %v3579_v37  ;;  %v3534_v7 = vadd.f32 %v3533_v21, %v3373_v52  ;;  %v4695_v9 = vadd.f32 %v4694_v13, %v4693_v63 }
 0x2a0   : > { %v4696_v11 = vpop.f32.mrf.mxu1  ;;  %v3541_v25 = vpop.f32.mrf.mxu0 }
 0x2a1   : > { %v3580_v46 = vmax.f32 %v3534_v7, 0.0  ;;  %v3378_v42 = vadd.f32 %v4695_v9, %v6078_v8 }
 0x2a2   : > { %v4697_v60 = vpop.f32.mrf.mxu1  ;;  %v3543_v51 = vpop.f32.mrf.mxu0 }
 0x2a3   : > { %3612 = vst [vmem:[%s6094_s22 + $0xd8] sm:$0xff] %v3580_v46  ;;  %v3539_v31 = vadd.f32 %v3538_v17, %v3378_v42  ;;  %v4698_v54 = vadd.f32 %v4697_v60, %v4696_v11 }
 0x2a4   : > { %v4699_v47 = vpop.f32.mrf.mxu1  ;;  %v3546_v5 = vpop.f32.mrf.mxu0 }
 0x2a5   : > { %v3581_v18 = vmax.f32 %v3539_v31, 0.0  ;;  %v3381_v41 = vadd.f32 %v4698_v54, %v6081_v48 }
 0x2a6   : > { %v4700_v49 = vpop.f32.mrf.mxu1  ;;  %v3548_v26 = vpop.f32.mrf.mxu0 }
 0x2a7   : > { %3613 = vst [vmem:[%s6094_s22 + $0xe0] sm:$0xff] %v3581_v18  ;;  %v3542_v3 = vadd.f32 %v3541_v25, %v3381_v41  ;;  %v4701_v28 = vadd.f32 %v4700_v49, %v4699_v47 }
 0x2a8   : > { %v4702_v36 = vpop.f32.mrf.mxu1  ;;  %v3549_v8 = vpop.f32.mrf.mxu0 }
 0x2a9   : > { %v3582_v56 = vmax.f32 %v3542_v3, 0.0  ;;  %v3386_v20 = vadd.f32 %v4701_v28, %v6084_v35 }
 0x2aa   : > { %v4703_v23 = vpop.f32.mrf.mxu1  ;;  %v3551_v59 = vpop.f32.mrf.mxu0 }
 0x2ab   : > { %3614 = vst [vmem:[%s6094_s22 + $0xe8] sm:$0xff] %v3582_v56  ;;  %v3547_v4 = vadd.f32 %v3546_v5, %v3386_v20  ;;  %v4704_v29 = vadd.f32 %v4703_v23, %v4702_v36 }
 0x2ad   : > { %v3583_v62 = vmax.f32 %v3547_v4, 0.0  ;;  %v3389_v48 = vadd.f32 %v4704_v29, %v6087_v40 }
 0x2af   : > { %3615 = vst [vmem:[%s6094_s22 + $0xf0] sm:$0xff] %v3583_v62  ;;  %v3550_v19 = vadd.f32 %v3549_v8, %v3389_v48 }
 0x2b1   : > { %v3584_v55 = vmax.f32 %v3550_v19, 0.0 }
 0x2b3   : > { %3616 = vst [vmem:[%s6094_s22 + $0xf8] sm:$0xff] %v3584_v55 }
 0x2b4 PF: > { %s13_s12 = sadd.s32 1, %s5181_s12  }
 0x2b5   : > { %p10_p4 = scmp.ge.s32.totalorder %s13_s12, 4  }
 0x2b7   :  { %12 = sbr.rel (!%p10_p4) target bundleno = 1 (0x1), region = 62 }

// kernel: conv_autoencoder_forward.17
= control target key start
LH: loop header
LB: loop body
LE: loop exit
PB: predicated region body
PF: predicated region fallthrough
CT: control target
= control target key end

     0   :  { %s947_s12 = smov 0   ;;  %s1119_s0 = inlined_call_operand.vmem [shape: bf16[512,144], index: 0, kind: input, shape index: {}]   ;;  %s1120_s1 = inlined_call_operand.vmem [shape: bf16[144,128], index: 1, kind: input, shape index: {}]   ;;  %s1121_s2 = inlined_call_operand.vmem [shape: f32[1,128], index: 2, kind: input, shape index: {}]   ;;  %s1122_s3 = inlined_call_operand.vmem [shape: f32[512,128], index: 3, kind: output, shape index: {}]  }
   0x1 LB: > { %s763_s13 = sadd.s32 4294967295, %s924_s12   ;;  %p767_p0 = scmp.ge.s32.totalorder %s924_s12, 1  ;;  %s924_s12 = sphi %s947_s12, %s13_s12  }
   0x2   : > { %p139_p1 = scmp.lt.s32.totalorder %s924_s12, 3 }
   0x4   : > { %p140_p2 = pnand %p767_p0, %p139_p1 }
   0x5   : > { %s768_s16 = sshll.u32 (!%p140_p2), %s763_s13, 5 }
   0x6   : > { %143 = sbr.rel (%p140_p2) target bundleno = 306 (0x132), region = 32  ;;  %p165_p3 = scmp.lt.s32.totalorder (!%p140_p2), %s768_s16, 63 }
   0xb   : > { %v861_v0 = vld [vmem:[%s1120_s1 + $0x38] sm:$0xff]   ;;  %v926_v1 = vmov 0   ;;  %v862_v2 = vld [vmem:[%s1120_s1 + $0x30] sm:$0xff]   ;;  %s1124_s16 = smov (!%p165_p3, %s768_s16), 63  ;;  %v863_v3 = vld [vmem:[%s1120_s1 + $0x28] sm:$0xff]   ;;  %vm433_vm0 = vcmask 130048  }
   0xc   : > { %482 = vmatprep.subr.bf16.mxu0 %v926_v1  ;;  %834 = vmatprep.subr.bf16.mxu1 %v926_v1  ;;  %s833_s21 = sshll.u32 %s1124_s16, 3  ;;  %v864_v4 = vld [vmem:[%s1120_s1 + $0x20] sm:$0xff]   ;;  %v865_v7 = vld [vmem:[%s1120_s1 + $0x18] sm:$0xff]   ;;  %v866_v8 = vld [vmem:[%s1120_s1 + $0x10] sm:$0xff]  }
   0xd   : > { %483 = vmatpush1.bf16.msra.mxu0 %v861_v0  ;;  %843 = vmatpush1.bf16.msra.mxu1 %v861_v0  ;;  %s972_s24 = scalar_lea.vmem %s1119_s0, %s833_s21  ;;  %v867_v9 = vld [vmem:[%s1120_s1 + $0x8] sm:$0xff]   ;;  %v868_v10 = vld [vmem:[%s1120_s1] sm:$0xff]   ;;  %s1052_s15 = scalar_lea.vmem %s1122_s3, %s833_s21 }
   0xe   : > { %484 = vmatprep.subr.bf16.mxu0 %v926_v1  ;;  %835 = vmatprep.subr.bf16.mxu1 %v926_v1  ;;  %v872_v5 = vld [vmem:[%s972_s24 + $0x4] ss:$8 sps:$4 sm:$0xff]   ;;  %v870_v12 = vld [vmem:[%s972_s24] ss:$8 sps:$4 sm:$0xff]   ;;  %v876_v14 = vld [vmem:[%s972_s24 + $0x14] ss:$8 sps:$4 sm:$0xff]  }
   0xf   : > { %v875_v6 = vld [vmem:[%s972_s24 + $0x84] ss:$8 sps:$4 sm:$0xff]   ;;  %815 = vmatprep.mubr.msk.bf16.mxu0 %vm433_vm0, %v872_v5  ;;  %v873_v13 = vld [vmem:[%s972_s24 + $0x80] ss:$8 sps:$4 sm:$0xff]   ;;  %v878_v15 = vld [vmem:[%s972_s24 + $0x94] ss:$8 sps:$4 sm:$0xff]  }
  0x10   : > { %823 = vmatprep.mubr.msk.bf16.mxu1 %vm433_vm0, %v875_v6  ;;  %v869_v11 = vld [vmem:[%s1120_s1 + $0x40] sm:$0xff]   ;;  %v880_v16 = vld [vmem:[%s972_s24 + $0x10] ss:$8 sps:$4 sm:$0xff]   ;;  %v888_v22 = vld [vmem:[%s972_s24 + $0x34] ss:$8 sps:$4 sm:$0xff]  }
  0x11   : > { %485 = vmatpush1.bf16.msra.mxu0 %v862_v2  ;;  %844 = vmatpush1.bf16.msra.mxu1 %v862_v2  ;;  %v881_v17 = vld [vmem:[%s972_s24 + $0x90] ss:$8 sps:$4 sm:$0xff]   ;;  %v882_v18 = vld [vmem:[%s972_s24 + $0x24] ss:$8 sps:$4 sm:$0xff]   ;;  %v886_v20 = vld [vmem:[%s972_s24 + $0x20] ss:$8 sps:$4 sm:$0xff]  }
  0x12   : > { %486 = vmatprep.subr.bf16.mxu0 %v926_v1  ;;  %836 = vmatprep.subr.bf16.mxu1 %v926_v1  ;;  %v884_v19 = vld [vmem:[%s972_s24 + $0xa4] ss:$8 sps:$4 sm:$0xff]   ;;  %v887_v21 = vld [vmem:[%s972_s24 + $0xa0] ss:$8 sps:$4 sm:$0xff]   ;;  %v890_v23 = vld [vmem:[%s972_s24 + $0xb4] ss:$8 sps:$4 sm:$0xff]  }
  0x13   : > { %v892_v24 = vld [vmem:[%s972_s24 + $0x30] ss:$8 sps:$4 sm:$0xff]   ;;  %v894_v26 = vld [vmem:[%s972_s24 + $0x44] ss:$8 sps:$4 sm:$0xff]   ;;  %v898_v28 = vld [vmem:[%s972_s24 + $0x40] ss:$8 sps:$4 sm:$0xff]  }
  0x14   : > { %v893_v25 = vld [vmem:[%s972_s24 + $0xb0] ss:$8 sps:$4 sm:$0xff]   ;;  %v896_v27 = vld [vmem:[%s972_s24 + $0xc4] ss:$8 sps:$4 sm:$0xff]   ;;  %v899_v29 = vld [vmem:[%s972_s24 + $0xc0] ss:$8 sps:$4 sm:$0xff]  }
  0x15   : > { %487 = vmatpush1.bf16.msra.mxu0 %v863_v3  ;;  %845 = vmatpush1.bf16.msra.mxu1 %v863_v3  ;;  %v900_v30 = vld [vmem:[%s972_s24 + $0x54] ss:$8 sps:$4 sm:$0xff]   ;;  %v904_v32 = vld [vmem:[%s972_s24 + $0x50] ss:$8 sps:$4 sm:$0xff]   ;;  %v906_v34 = vld [vmem:[%s972_s24 + $0x64] ss:$8 sps:$4 sm:$0xff]  }
  0x16   : > { %488 = vmatprep.subr.bf16.mxu0 %v926_v1  ;;  %837 = vmatprep.subr.bf16.mxu1 %v926_v1  ;;  %v902_v31 = vld [vmem:[%s972_s24 + $0xd4] ss:$8 sps:$4 sm:$0xff]   ;;  %v905_v33 = vld [vmem:[%s972_s24 + $0xd0] ss:$8 sps:$4 sm:$0xff]   ;;  %v908_v35 = vld [vmem:[%s972_s24 + $0xe4] ss:$8 sps:$4 sm:$0xff]  }
  0x17   : > { %v910_v36 = vld [vmem:[%s972_s24 + $0x60] ss:$8 sps:$4 sm:$0xff]   ;;  %v912_v38 = vld [vmem:[%s972_s24 + $0x74] ss:$8 sps:$4 sm:$0xff]   ;;  %v916_v40 = vld [vmem:[%s972_s24 + $0x70] ss:$8 sps:$4 sm:$0xff]  }
  0x18   : > { %v911_v37 = vld [vmem:[%s972_s24 + $0xe0] ss:$8 sps:$4 sm:$0xff]   ;;  %v914_v39 = vld [vmem:[%s972_s24 + $0xf4] ss:$8 sps:$4 sm:$0xff]   ;;  %v917_v41 = vld [vmem:[%s972_s24 + $0xf0] ss:$8 sps:$4 sm:$0xff]  }
  0x19   : > { %489 = vmatpush1.bf16.msra.mxu0 %v864_v4  ;;  %846 = vmatpush1.bf16.msra.mxu1 %v864_v4  ;;  %v1043_v42 = vld [vmem:[%s1121_s2] ss:$0 sm:$0xff] }
  0x1a   : > { %490 = vmatprep.subr.bf16.mxu0 %v926_v1  ;;  %838 = vmatprep.subr.bf16.mxu1 %v926_v1 }
  0x1d   : > { %491 = vmatpush1.bf16.msra.mxu0 %v865_v7  ;;  %847 = vmatpush1.bf16.msra.mxu1 %v865_v7 }
  0x1e   : > { %492 = vmatprep.subr.bf16.mxu0 %v926_v1  ;;  %839 = vmatprep.subr.bf16.mxu1 %v926_v1 }
  0x21   : > { %493 = vmatpush1.bf16.msra.mxu0 %v866_v8  ;;  %848 = vmatpush1.bf16.msra.mxu1 %v866_v8 }
  0x22   : > { %494 = vmatprep.subr.bf16.mxu0 %v926_v1  ;;  %840 = vmatprep.subr.bf16.mxu1 %v926_v1 }
  0x25   : > { %495 = vmatpush1.bf16.msra.mxu0 %v867_v9  ;;  %849 = vmatpush1.bf16.msra.mxu1 %v867_v9 }
  0x26   : > { %496 = vmatprep.subr.bf16.mxu0 %v926_v1  ;;  %841 = vmatprep.subr.bf16.mxu1 %v926_v1 }
  0x29   : > { %497 = vmatpush1.bf16.msra.mxu0 %v868_v10  ;;  %850 = vmatpush1.bf16.msra.mxu1 %v868_v10 }
  0x2a   : > { %512 = vmatprep.subr.bf16.mxu0 %v926_v1  ;;  %842 = vmatprep.subr.bf16.mxu1 %v926_v1 }
  0x2d   : > { %513 = vmatpush2.bf16.msra.mxu0 %v869_v11  ;;  %851 = vmatpush2.bf16.msra.mxu1 %v869_v11 }
  0x30   : > { %515 = vmatmul.mubr.bf16.vlgmr.msra.gmra.mxu0 %v870_v12  ;;  %579 = vmatmul.mubr.bf16.vlgmr.msra.gmra.mxu1 %v873_v13 }
  0x31   : > { %816 = vmatprep.mubr.msk.bf16.mxu0 %vm433_vm0, %v876_v14  ;;  %824 = vmatprep.mubr.msk.bf16.mxu1 %vm433_vm0, %v878_v15 }
  0x38   : > { %523 = vmatmul.mubr.bf16.gmra.mxu0 %v880_v16  ;;  %587 = vmatmul.mubr.bf16.gmra.mxu1 %v881_v17 }
  0x39   : > { %817 = vmatprep.mubr.msk.bf16.mxu0 %vm433_vm0, %v882_v18  ;;  %825 = vmatprep.mubr.msk.bf16.mxu1 %vm433_vm0, %v884_v19 }
  0x40   : > { %531 = vmatmul.mubr.bf16.gmra.mxu0 %v886_v20  ;;  %595 = vmatmul.mubr.bf16.gmra.mxu1 %v887_v21 }
  0x41   : > { %818 = vmatprep.mubr.msk.bf16.mxu0 %vm433_vm0, %v888_v22  ;;  %826 = vmatprep.mubr.msk.bf16.mxu1 %vm433_vm0, %v890_v23 }
  0x48   : > { %539 = vmatmul.mubr.bf16.gmra.mxu0 %v892_v24  ;;  %603 = vmatmul.mubr.bf16.gmra.mxu1 %v893_v25 }
  0x49   : > { %819 = vmatprep.mubr.msk.bf16.mxu0 %vm433_vm0, %v894_v26  ;;  %827 = vmatprep.mubr.msk.bf16.mxu1 %vm433_vm0, %v896_v27 }
  0x50   : > { %547 = vmatmul.mubr.bf16.gmra.mxu0 %v898_v28  ;;  %611 = vmatmul.mubr.bf16.gmra.mxu1 %v899_v29 }
  0x51   : > { %820 = vmatprep.mubr.msk.bf16.mxu0 %vm433_vm0, %v900_v30  ;;  %828 = vmatprep.mubr.msk.bf16.mxu1 %vm433_vm0, %v902_v31 }
  0x58   : > { %555 = vmatmul.mubr.bf16.gmra.mxu0 %v904_v32  ;;  %619 = vmatmul.mubr.bf16.gmra.mxu1 %v905_v33 }
  0x59   : > { %821 = vmatprep.mubr.msk.bf16.mxu0 %vm433_vm0, %v906_v34  ;;  %829 = vmatprep.mubr.msk.bf16.mxu1 %vm433_vm0, %v908_v35 }
  0x60   : > { %563 = vmatmul.mubr.bf16.gmra.mxu0 %v910_v36  ;;  %627 = vmatmul.mubr.bf16.gmra.mxu1 %v911_v37 }
  0x61   : > { %822 = vmatprep.mubr.msk.bf16.mxu0 %vm433_vm0, %v912_v38  ;;  %830 = vmatprep.mubr.msk.bf16.mxu1 %vm433_vm0, %v914_v39 }
  0x68   : > { %571 = vmatmul.mubr.bf16.gmra.mxu0 %v916_v40  ;;  %635 = vmatmul.mubr.bf16.gmra.mxu1 %v917_v41 }
  0xf0   : > { %v516_v43 = vpop.f32.mrf.mxu0  ;;  %v580_v44 = vpop.f32.mrf.mxu1 }
  0xf1   : > { %v517_v45 = vadd.f32 %v1043_v42, %v516_v43  ;;  %v581_v46 = vadd.f32 %v1043_v42, %v580_v44 }
  0xf2   : > { %v518_v47 = vpop.f32.mrf.mxu0  ;;  %v582_v48 = vpop.f32.mrf.mxu1 }
  0xf3   : > { %v643_v49 = vmax.f32 %v517_v45, 0.0  ;;  %v659_v50 = vmax.f32 %v581_v46, 0.0 }
  0xf4   : > { %v519_v51 = vpop.f32.mrf.mxu0  ;;  %v583_v52 = vpop.f32.mrf.mxu1 }
  0xf5   : > { %675 = vst [vmem:[%s1052_s15] sm:$0xff] %v643_v49  ;;  %691 = vst [vmem:[%s1052_s15 + $0x80] sm:$0xff] %v659_v50  ;;  %v520_v53 = vadd.f32 %v1043_v42, %v519_v51  ;;  %v584_v54 = vadd.f32 %v1043_v42, %v583_v52 }
  0xf6   : > { %v521_v55 = vpop.f32.mrf.mxu0  ;;  %v585_v56 = vpop.f32.mrf.mxu1 }
  0xf7   : > { %v644_v57 = vmax.f32 %v520_v53, 0.0  ;;  %v660_v58 = vmax.f32 %v584_v54, 0.0 }
  0xf8   : > { %v524_v59 = vpop.f32.mrf.mxu0  ;;  %v588_v60 = vpop.f32.mrf.mxu1 }
  0xf9   : > { %676 = vst [vmem:[%s1052_s15 + $0x8] sm:$0xff] %v644_v57  ;;  %692 = vst [vmem:[%s1052_s15 + $0x88] sm:$0xff] %v660_v58  ;;  %v525_v61 = vadd.f32 %v1043_v42, %v524_v59  ;;  %v589_v62 = vadd.f32 %v1043_v42, %v588_v60 }
  0xfa   : > { %v526_v63 = vpop.f32.mrf.mxu0  ;;  %v590_v0 = vpop.f32.mrf.mxu1 }
  0xfb   : > { %v645_v1 = vmax.f32 %v525_v61, 0.0  ;;  %v661_v2 = vmax.f32 %v589_v62, 0.0 }
  0xfc   : > { %v527_v3 = vpop.f32.mrf.mxu0  ;;  %v591_v4 = vpop.f32.mrf.mxu1 }
  0xfd   : > { %677 = vst [vmem:[%s1052_s15 + $0x10] sm:$0xff] %v645_v1  ;;  %693 = vst [vmem:[%s1052_s15 + $0x90] sm:$0xff] %v661_v2  ;;  %v528_v5 = vadd.f32 %v1043_v42, %v527_v3  ;;  %v592_v6 = vadd.f32 %v1043_v42, %v591_v4 }
  0xfe   : > { %v529_v7 = vpop.f32.mrf.mxu0  ;;  %v593_v8 = vpop.f32.mrf.mxu1 }
  0xff   : > { %v646_v9 = vmax.f32 %v528_v5, 0.0  ;;  %v662_v10 = vmax.f32 %v592_v6, 0.0 }
 0x100   : > { %v532_v11 = vpop.f32.mrf.mxu0  ;;  %v596_v12 = vpop.f32.mrf.mxu1 }
 0x101   : > { %678 = vst [vmem:[%s1052_s15 + $0x18] sm:$0xff] %v646_v9  ;;  %694 = vst [vmem:[%s1052_s15 + $0x98] sm:$0xff] %v662_v10  ;;  %v533_v13 = vadd.f32 %v1043_v42, %v532_v11  ;;  %v597_v14 = vadd.f32 %v1043_v42, %v596_v12 }
 0x102   : > { %v534_v15 = vpop.f32.mrf.mxu0  ;;  %v598_v16 = vpop.f32.mrf.mxu1 }
 0x103   : > { %v647_v17 = vmax.f32 %v533_v13, 0.0  ;;  %v663_v18 = vmax.f32 %v597_v14, 0.0 }
 0x104   : > { %v535_v19 = vpop.f32.mrf.mxu0  ;;  %v599_v20 = vpop.f32.mrf.mxu1 }
 0x105   : > { %679 = vst [vmem:[%s1052_s15 + $0x20] sm:$0xff] %v647_v17  ;;  %695 = vst [vmem:[%s1052_s15 + $0xa0] sm:$0xff] %v663_v18  ;;  %v536_v21 = vadd.f32 %v1043_v42, %v535_v19  ;;  %v600_v22 = vadd.f32 %v1043_v42, %v599_v20 }
 0x106   : > { %v537_v23 = vpop.f32.mrf.mxu0  ;;  %v601_v24 = vpop.f32.mrf.mxu1 }
 0x107   : > { %v648_v25 = vmax.f32 %v536_v21, 0.0  ;;  %v664_v26 = vmax.f32 %v600_v22, 0.0 }
 0x108   : > { %v540_v27 = vpop.f32.mrf.mxu0  ;;  %v604_v28 = vpop.f32.mrf.mxu1 }
 0x109   : > { %680 = vst [vmem:[%s1052_s15 + $0x28] sm:$0xff] %v648_v25  ;;  %696 = vst [vmem:[%s1052_s15 + $0xa8] sm:$0xff] %v664_v26  ;;  %v541_v29 = vadd.f32 %v1043_v42, %v540_v27  ;;  %v605_v30 = vadd.f32 %v1043_v42, %v604_v28 }
 0x10a   : > { %v542_v31 = vpop.f32.mrf.mxu0  ;;  %v606_v32 = vpop.f32.mrf.mxu1 }
 0x10b   : > { %v649_v33 = vmax.f32 %v541_v29, 0.0  ;;  %v665_v34 = vmax.f32 %v605_v30, 0.0 }
 0x10c   : > { %v543_v35 = vpop.f32.mrf.mxu0  ;;  %v607_v36 = vpop.f32.mrf.mxu1 }
 0x10d   : > { %681 = vst [vmem:[%s1052_s15 + $0x30] sm:$0xff] %v649_v33  ;;  %697 = vst [vmem:[%s1052_s15 + $0xb0] sm:$0xff] %v665_v34  ;;  %v544_v37 = vadd.f32 %v1043_v42, %v543_v35  ;;  %v608_v38 = vadd.f32 %v1043_v42, %v607_v36 }
 0x10e   : > { %v545_v39 = vpop.f32.mrf.mxu0  ;;  %v609_v40 = vpop.f32.mrf.mxu1 }
 0x10f   : > { %v650_v41 = vmax.f32 %v544_v37, 0.0  ;;  %v666_v43 = vmax.f32 %v608_v38, 0.0 }
 0x110   : > { %v548_v44 = vpop.f32.mrf.mxu0  ;;  %v612_v45 = vpop.f32.mrf.mxu1 }
 0x111   : > { %682 = vst [vmem:[%s1052_s15 + $0x38] sm:$0xff] %v650_v41  ;;  %698 = vst [vmem:[%s1052_s15 + $0xb8] sm:$0xff] %v666_v43  ;;  %v549_v46 = vadd.f32 %v1043_v42, %v548_v44  ;;  %v613_v47 = vadd.f32 %v1043_v42, %v612_v45 }
 0x112   : > { %v550_v48 = vpop.f32.mrf.mxu0  ;;  %v614_v49 = vpop.f32.mrf.mxu1 }
 0x113   : > { %v651_v50 = vmax.f32 %v549_v46, 0.0  ;;  %v667_v51 = vmax.f32 %v613_v47, 0.0 }
 0x114   : > { %v551_v52 = vpop.f32.mrf.mxu0  ;;  %v615_v53 = vpop.f32.mrf.mxu1 }
 0x115   : > { %683 = vst [vmem:[%s1052_s15 + $0x40] sm:$0xff] %v651_v50  ;;  %699 = vst [vmem:[%s1052_s15 + $0xc0] sm:$0xff] %v667_v51  ;;  %v552_v54 = vadd.f32 %v1043_v42, %v551_v52  ;;  %v616_v55 = vadd.f32 %v1043_v42, %v615_v53 }
 0x116   : > { %v553_v56 = vpop.f32.mrf.mxu0  ;;  %v617_v57 = vpop.f32.mrf.mxu1 }
 0x117   : > { %v652_v58 = vmax.f32 %v552_v54, 0.0  ;;  %v668_v59 = vmax.f32 %v616_v55, 0.0 }
 0x118   : > { %v556_v60 = vpop.f32.mrf.mxu0  ;;  %v620_v61 = vpop.f32.mrf.mxu1 }
 0x119   : > { %684 = vst [vmem:[%s1052_s15 + $0x48] sm:$0xff] %v652_v58  ;;  %700 = vst [vmem:[%s1052_s15 + $0xc8] sm:$0xff] %v668_v59  ;;  %v557_v62 = vadd.f32 %v1043_v42, %v556_v60  ;;  %v621_v63 = vadd.f32 %v1043_v42, %v620_v61 }
 0x11a   : > { %v558_v0 = vpop.f32.mrf.mxu0  ;;  %v622_v1 = vpop.f32.mrf.mxu1 }
 0x11b   : > { %v653_v2 = vmax.f32 %v557_v62, 0.0  ;;  %v669_v3 = vmax.f32 %v621_v63, 0.0 }
 0x11c   : > { %v559_v4 = vpop.f32.mrf.mxu0  ;;  %v623_v5 = vpop.f32.mrf.mxu1 }
 0x11d   : > { %685 = vst [vmem:[%s1052_s15 + $0x50] sm:$0xff] %v653_v2  ;;  %701 = vst [vmem:[%s1052_s15 + $0xd0] sm:$0xff] %v669_v3  ;;  %v560_v6 = vadd.f32 %v1043_v42, %v559_v4  ;;  %v624_v7 = vadd.f32 %v1043_v42, %v623_v5 }
 0x11e   : > { %v561_v8 = vpop.f32.mrf.mxu0  ;;  %v625_v9 = vpop.f32.mrf.mxu1 }
 0x11f   : > { %v654_v10 = vmax.f32 %v560_v6, 0.0  ;;  %v670_v11 = vmax.f32 %v624_v7, 0.0 }
 0x120   : > { %v564_v12 = vpop.f32.mrf.mxu0  ;;  %v628_v13 = vpop.f32.mrf.mxu1 }
 0x121   : > { %686 = vst [vmem:[%s1052_s15 + $0x58] sm:$0xff] %v654_v10  ;;  %702 = vst [vmem:[%s1052_s15 + $0xd8] sm:$0xff] %v670_v11  ;;  %v565_v14 = vadd.f32 %v1043_v42, %v564_v12  ;;  %v629_v15 = vadd.f32 %v1043_v42, %v628_v13 }
 0x122   : > { %v566_v16 = vpop.f32.mrf.mxu0  ;;  %v630_v17 = vpop.f32.mrf.mxu1 }
 0x123   : > { %v655_v18 = vmax.f32 %v565_v14, 0.0  ;;  %v671_v19 = vmax.f32 %v629_v15, 0.0 }
 0x124   : > { %v567_v20 = vpop.f32.mrf.mxu0  ;;  %v631_v21 = vpop.f32.mrf.mxu1 }
 0x125   : > { %687 = vst [vmem:[%s1052_s15 + $0x60] sm:$0xff] %v655_v18  ;;  %703 = vst [vmem:[%s1052_s15 + $0xe0] sm:$0xff] %v671_v19  ;;  %v568_v22 = vadd.f32 %v1043_v42, %v567_v20  ;;  %v632_v23 = vadd.f32 %v1043_v42, %v631_v21 }
 0x126   : > { %v569_v24 = vpop.f32.mrf.mxu0  ;;  %v633_v25 = vpop.f32.mrf.mxu1 }
 0x127   : > { %v656_v26 = vmax.f32 %v568_v22, 0.0  ;;  %v672_v27 = vmax.f32 %v632_v23, 0.0 }
 0x128   : > { %v572_v28 = vpop.f32.mrf.mxu0  ;;  %v636_v29 = vpop.f32.mrf.mxu1 }
 0x129   : > { %688 = vst [vmem:[%s1052_s15 + $0x68] sm:$0xff] %v656_v26  ;;  %704 = vst [vmem:[%s1052_s15 + $0xe8] sm:$0xff] %v672_v27  ;;  %v573_v30 = vadd.f32 %v1043_v42, %v572_v28  ;;  %v637_v31 = vadd.f32 %v1043_v42, %v636_v29 }
 0x12a   : > { %v574_v32 = vpop.f32.mrf.mxu0  ;;  %v638_v33 = vpop.f32.mrf.mxu1 }
 0x12b   : > { %v657_v34 = vmax.f32 %v573_v30, 0.0  ;;  %v673_v35 = vmax.f32 %v637_v31, 0.0 }
 0x12c   : > { %v575_v36 = vpop.f32.mrf.mxu0  ;;  %v639_v37 = vpop.f32.mrf.mxu1 }
 0x12d   : > { %689 = vst [vmem:[%s1052_s15 + $0x70] sm:$0xff] %v657_v34  ;;  %705 = vst [vmem:[%s1052_s15 + $0xf0] sm:$0xff] %v673_v35  ;;  %v576_v38 = vadd.f32 %v1043_v42, %v575_v36  ;;  %v640_v39 = vadd.f32 %v1043_v42, %v639_v37 }
 0x12e   : > { %v577_v40 = vpop.f32.mrf.mxu0  ;;  %v641_v41 = vpop.f32.mrf.mxu1 }
 0x12f   : > { %v658_v43 = vmax.f32 %v576_v38, 0.0  ;;  %v674_v44 = vmax.f32 %v640_v39, 0.0 }
 0x131   : > { %690 = vst [vmem:[%s1052_s15 + $0x78] sm:$0xff] %v658_v43  ;;  %706 = vst [vmem:[%s1052_s15 + $0xf8] sm:$0xff] %v674_v44 }
 0x132 PF: > { %s13_s12 = sadd.s32 1, %s924_s12  }
 0x133   : > { %p10_p4 = scmp.ge.s32.totalorder %s13_s12, 4  }
 0x135   :  { %12 = sbr.rel (!%p10_p4) target bundleno = 1 (0x1), region = 62 }

</bundles_post_ra>
